<compile_context>
chip_gen: v7x
topology: tpu7x:2x2x1
jax: 0.10.0
libtpu: 0.0.40
codegen_flags: <defaults>
</compile_context>

<pallas_src>
import functools
import math

import numpy as np
import jax
import jax.numpy as jnp
from jax.experimental import pallas as pl
from jax.experimental.pallas import tpu as pltpu

F32 = jnp.float32
_EPS = 1e-5          # nn.LayerNorm default eps
_NEG = -1e30         # additive mask value for padded key positions


# ----------------------------------------------------------------------------
# In-kernel math helpers
# ----------------------------------------------------------------------------
def _ln(x, g, b):
    """LayerNorm over the last dim; g/b are (1, E)."""
    mu = jnp.mean(x, axis=-1, keepdims=True)
    d = x - mu
    var = jnp.mean(d * d, axis=-1, keepdims=True)
    return d * jax.lax.rsqrt(var + _EPS) * g + b


def _softmax(s):
    s = s - jnp.max(s, axis=-1, keepdims=True)
    p = jnp.exp(s)
    return p / jnp.sum(p, axis=-1, keepdims=True)


def _bmm_qkt(q, k):
    """(B, M, D) x (B, N, D) -> (B, M, N); K is consumed transposed by dot_general."""
    return jax.lax.dot_general(q, k, (((2,), (2,)), ((0,), (0,))),
                               preferred_element_type=F32)


def _bmm(p, v):
    """(B, M, N) x (B, N, D) -> (B, M, D)."""
    return jax.lax.dot_general(p, v, (((2,), (1,)), ((0,), (0,))),
                               preferred_element_type=F32)


# ----------------------------------------------------------------------------
# One encoder / decoder layer on VMEM-resident values.
#   wA   : (E, 8E)  = [self Wq*scale | Wk | Wv | Wo | cross Wq*scale | Wk | Wv | Wo]
#   ba   : (2, 3E)  = [[self bq*scale|bk|bv], [cross bq*scale|bk|bv]]
#   bm   : (9, E)   = [self bo, cross bo, ffn b2, g1, b1, g2, b2, g3, b3]
#   b1   : (1, F)   = ffn first bias
# ----------------------------------------------------------------------------
def _enc_layer(x2, wA, w1, w2, ba, bm, b1, *, B, L, H, Dh, bias):
    E = H * Dh
    qkv = jnp.dot(x2, wA[:, :3 * E], preferred_element_type=F32) + ba[0:1, :]
    qkv3 = qkv.reshape(B, L, 3 * E)
    heads = []
    for h in range(H):                                  # H is small and static
        q = qkv3[:, :, h * Dh:(h + 1) * Dh]
        k = qkv3[:, :, E + h * Dh:E + (h + 1) * Dh]
        v = qkv3[:, :, 2 * E + h * Dh:2 * E + (h + 1) * Dh]
        s = _bmm_qkt(q, k)                              # (B, L, L)
        if bias is not None:
            s = s + bias                                # (B, 1, L) key mask
        heads.append(_bmm(_softmax(s), v))              # (B, L, Dh)
    ctx = jnp.concatenate(heads, axis=-1).reshape(B * L, E)
    a = jnp.dot(ctx, wA[:, 3 * E:4 * E], preferred_element_type=F32) + bm[0:1, :]
    h1 = _ln(x2 + a, bm[3:4, :], bm[4:5, :])
    ff = jnp.maximum(jnp.dot(h1, w1, preferred_element_type=F32) + b1, 0.0)
    ff = jnp.dot(ff, w2, preferred_element_type=F32) + bm[2:3, :]
    return _ln(h1 + ff, bm[5:6, :], bm[6:7, :])


def _dec_layer(t, m2, wA, w1, w2, ba, bm, b1, *, B, L, H, Dh, bias):
    E = H * Dh
    # Target length is always 1 in this model: self-attention over a single
    # position reduces to out_proj(v_proj(t)) (softmax over one key == 1).
    v = jnp.dot(t, wA[:, 2 * E:3 * E], preferred_element_type=F32) + ba[0:1, 2 * E:3 * E]
    a = jnp.dot(v, wA[:, 3 * E:4 * E], preferred_element_type=F32) + bm[0:1, :]
    h1 = _ln(t + a, bm[3:4, :], bm[4:5, :])
    # Cross attention: query length 1, memory length L per batch element.
    q = jnp.dot(h1, wA[:, 4 * E:5 * E], preferred_element_type=F32) + ba[1:2, 0:E]
    kv = jnp.dot(m2, wA[:, 5 * E:7 * E], preferred_element_type=F32) + ba[1:2, E:3 * E]
    q3 = q[:, None, :]                                  # (B, 1, E)
    kv3 = kv.reshape(B, L, 2 * E)
    heads = []
    for h in range(H):
        qh = q3[:, :, h * Dh:(h + 1) * Dh]
        kh = kv3[:, :, h * Dh:(h + 1) * Dh]
        vh = kv3[:, :, E + h * Dh:E + (h + 1) * Dh]
        s = _bmm_qkt(qh, kh)                            # (B, 1, L)
        if bias is not None:
            s = s + bias
        heads.append(_bmm(_softmax(s), vh))             # (B, 1, Dh)
    ctx = jnp.concatenate(heads, axis=-1)[:, 0, :]      # (B, E)
    a2 = jnp.dot(ctx, wA[:, 7 * E:8 * E], preferred_element_type=F32) + bm[1:2, :]
    h2 = _ln(h1 + a2, bm[5:6, :], bm[6:7, :])
    ff = jnp.maximum(jnp.dot(h2, w1, preferred_element_type=F32) + b1, 0.0)
    ff = jnp.dot(ff, w2, preferred_element_type=F32) + bm[2:3, :]
    return _ln(h2 + ff, bm[7:8, :], bm[8:9, :])


def _transformer_step(l, mem_ref, out_ref,
                      wA_ref, w1_ref, w2_ref, battn_ref, bmisc_ref, b1_ref, fnorm_ref,
                      *, n_enc, n_dec, B, L, H, Dh, enc_bias, dec_bias):
    """One grid step of the fused transformer: encoder layer for l < n_enc,
    decoder layer otherwise.  Encoder/decoder final LayerNorms are folded into
    the last layer of each stack.  mem_ref (scratch) holds the memory, out_ref
    (revisited output block) holds the decoder state."""
    wA = wA_ref[0]
    w1 = w1_ref[0]
    w2 = w2_ref[0]
    ba = battn_ref[0]
    bm = bmisc_ref[0]
    b1 = b1_ref[0]
    n_layers = n_enc + n_dec

    @pl.when(l < n_enc)
    def _():
        x = _enc_layer(mem_ref[...], wA, w1, w2, ba, bm, b1,
                       B=B, L=L, H=H, Dh=Dh, bias=enc_bias)

        @pl.when(l == n_enc - 1)
        def _():
            mem_ref[...] = _ln(x, fnorm_ref[0:1, :], fnorm_ref[1:2, :])

        @pl.when(l != n_enc - 1)
        def _():
            mem_ref[...] = x

    @pl.when(l >= n_enc)
    def _():
        t = _dec_layer(out_ref[...], mem_ref[...], wA, w1, w2, ba, bm, b1,
                       B=B, L=L, H=H, Dh=Dh, bias=dec_bias)

        @pl.when(l == n_layers - 1)
        def _():
            out_ref[...] = _ln(t, fnorm_ref[2:3, :], fnorm_ref[3:4, :])

        @pl.when(l != n_layers - 1)
        def _():
            out_ref[...] = t


# ----------------------------------------------------------------------------
# Stage kernels (one pallas_call each; grid axis = layer index)
# ----------------------------------------------------------------------------
def _col_stage_kernel(x_ref, y_ref, wpre_ref, bpre_ref,
                      wA_ref, w1_ref, w2_ref, battn_ref, bmisc_ref, b1_ref, fnorm_ref,
                      out_ref, yproj_ref, mem_ref,
                      *, n_enc, n_dec, B, L, H, Dh):
    E = H * Dh
    l = pl.program_id(0)

    @pl.when(l == 0)
    def _():
        wp = wpre_ref[...]
        bp = bpre_ref[...]
        # act(feat_col_projection(x)) -> encoder memory init
        mem_ref[...] = jnp.maximum(
            jnp.dot(x_ref[...], wp[:, :E], preferred_element_type=F32) + bp[:, :E], 0.0)
        # act(targ_col_projection(y)) -> decoder init (and exported for row stage)
        yp = jnp.maximum(
            jnp.dot(y_ref[...], wp[:, E:], preferred_element_type=F32) + bp[:, E:], 0.0)
        yproj_ref[...] = yp
        out_ref[...] = yp

    _transformer_step(l, mem_ref, out_ref, wA_ref, w1_ref, w2_ref, battn_ref,
                      bmisc_ref, b1_ref, fnorm_ref,
                      n_enc=n_enc, n_dec=n_dec, B=B, L=L, H=H, Dh=Dh,
                      enc_bias=None, dec_bias=None)


def _row_stage_kernel(x_ref, y_ref, mask_ref, wg1_ref, wg2_ref, bg_ref,
                      wA_ref, w1_ref, w2_ref, battn_ref, bmisc_ref, b1_ref, fnorm_ref,
                      out_ref, ycomp_ref, mem_ref,
                      *, n_enc, n_dec, B, L, H, Dh):
    E = H * Dh
    l = pl.program_id(0)
    # Precomputed additive key mask (0 for valid rows, -1e30 for padded rows);
    # reused by every layer / head -> no per-layer mask construction.
    attn_bias = mask_ref[0][:, None, :]                 # (B, 1, L)

    @pl.when(l == 0)
    def _():
        wg1 = wg1_ref[...]
        bg = bg_ref[...]
        # x = act(col_transformer_out); x = act(feat_row_projection(x))
        x = jnp.maximum(x_ref[...], 0.0)
        mem_ref[...] = jnp.maximum(
            jnp.dot(x, wg1[:, :E], preferred_element_type=F32) + bg[:, :E], 0.0)
        # y = act(targ_row_projection(y)); y = MeanCompressor(y) over valid rows
        yr = jnp.maximum(
            jnp.dot(y_ref[...], wg1[:, E:2 * E], preferred_element_type=F32) + bg[:, E:2 * E], 0.0)
        w = mask_ref[1]                                 # (B, L): 1/n_valid or 0
        ym = jnp.sum(yr.reshape(B, L, E) * w[:, :, None], axis=1)     # (B, E)
        yc = jnp.maximum(
            jnp.dot(ym, wg2_ref[...], preferred_element_type=F32) + bg[:, 2 * E:], 0.0)
        ycomp_ref[...] = yc
        out_ref[...] = yc

    _transformer_step(l, mem_ref, out_ref, wA_ref, w1_ref, w2_ref, battn_ref,
                      bmisc_ref, b1_ref, fnorm_ref,
                      n_enc=n_enc, n_dec=n_dec, B=B, L=L, H=H, Dh=Dh,
                      enc_bias=attn_bias, dec_bias=attn_bias)


def _out_stage_kernel(x_ref, y_ref, wg1_ref, wg2_ref, bg_ref,
                      wA_ref, w1_ref, w2_ref, battn_ref, bmisc_ref, b1_ref, fnorm_ref,
                      out_ref, mem_ref,
                      *, n_enc, n_dec, B, L, H, Dh):
    E = H * Dh
    l = pl.program_id(0)

    @pl.when(l == 0)
    def _():
        wg1 = wg1_ref[...]
        wg2 = wg2_ref[...]
        bg = bg_ref[...]
        # x = act(row_transformer_out); x = act(feat_out_projection(x))
        x = jnp.maximum(x_ref[...], 0.0)
        xo = jnp.maximum(jnp.dot(x, wg1[:, :E], preferred_element_type=F32) + bg[:, :E], 0.0)
        # y = act(targ_out_projection(y_compressed))
        yo = jnp.maximum(jnp.dot(y_ref[...], wg1[:, E:2 * E],
                                 preferred_element_type=F32) + bg[:, E:2 * E], 0.0)
        # out_projection(cat([x, y], -1)) with split weights (no in-kernel concat)
        mem_ref[...] = (jnp.dot(xo, wg2[0:E, :], preferred_element_type=F32)
                        + jnp.dot(yo, wg2[E:2 * E, :], preferred_element_type=F32)
                        + bg[:, 2 * E:3 * E])
        # targ_out_compressor: mean over subsets, linear, ReLU -> decoder init
        ym = jnp.mean(yo, axis=0, keepdims=True)
        out_ref[...] = jnp.maximum(
            jnp.dot(ym, wg2[2 * E:3 * E, :], preferred_element_type=F32) + bg[:, 3 * E:], 0.0)

    _transformer_step(l, mem_ref, out_ref, wA_ref, w1_ref, w2_ref, battn_ref,
                      bmisc_ref, b1_ref, fnorm_ref,
                      n_enc=n_enc, n_dec=n_dec, B=B, L=L, H=H, Dh=Dh,
                      enc_bias=None, dec_bias=None)


# ----------------------------------------------------------------------------
# pallas_call builders
# ----------------------------------------------------------------------------
def _full_spec(shape):
    n = len(shape)
    return pl.BlockSpec(shape, lambda l, n=n: (0,) * n)


def _layer_specs(E, F):
    """BlockSpecs for per-layer stacked weights (streamed along the layer grid)."""
    lmap = lambda l: (l, 0, 0)
    return [
        pl.BlockSpec((1, E, 8 * E), lmap),   # wA
        pl.BlockSpec((1, E, F), lmap),       # w1
        pl.BlockSpec((1, F, E), lmap),       # w2
        pl.BlockSpec((1, 2, 3 * E), lmap),   # battn
        pl.BlockSpec((1, 9, E), lmap),       # bmisc
        pl.BlockSpec((1, 1, F), lmap),       # b1
        _full_spec((4, E)),                  # final enc/dec LayerNorm params
    ]


def _run_col_stage(tr, glue, x_raw, y_raw, *, B, L, n_enc, n_dec, H):
    E = tr["fnorm"].shape[1]
    F = tr["w1"].shape[2]
    N = B * L
    kernel = functools.partial(_col_stage_kernel, n_enc=n_enc, n_dec=n_dec,
                               B=B, L=L, H=H, Dh=E // H)
    grid_spec = pltpu.PrefetchScalarGridSpec(
        num_scalar_prefetch=0, grid=(n_enc + n_dec,),
        in_specs=[_full_spec(x_raw.shape), _full_spec(y_raw.shape),
                  _full_spec(glue["w"].shape), _full_spec(glue["b"].shape)]
                 + _layer_specs(E, F),
        out_specs=[_full_spec((B, E)), _full_spec((B, E))],
        scratch_shapes=[pltpu.VMEM((N, E), F32)])
    return pl.pallas_call(
        kernel, grid_spec=grid_spec,
        out_shape=(jax.ShapeDtypeStruct((B, E), F32),
                   jax.ShapeDtypeStruct((B, E), F32)),
        compiler_params=pltpu.CompilerParams(dimension_semantics=("arbitrary",)),
    )(x_raw, y_raw, glue["w"], glue["b"],
      tr["wA"], tr["w1"], tr["w2"], tr["battn"], tr["bmisc"], tr["b1"], tr["fnorm"])


def _run_row_stage(tr, glue, x_in, y_in, maskinfo, *, B, L, n_enc, n_dec, H):
    E = tr["fnorm"].shape[1]
    F = tr["w1"].shape[2]
    kernel = functools.partial(_row_stage_kernel, n_enc=n_enc, n_dec=n_dec,
                               B=B, L=L, H=H, Dh=E // H)
    grid_spec = pltpu.PrefetchScalarGridSpec(
        num_scalar_prefetch=0, grid=(n_enc + n_dec,),
        in_specs=[_full_spec(x_in.shape), _full_spec(y_in.shape), _full_spec(maskinfo.shape),
                  _full_spec(glue["w1"].shape), _full_spec(glue["w2"].shape),
                  _full_spec(glue["b"].shape)]
                 + _layer_specs(E, F),
        out_specs=[_full_spec((B, E)), _full_spec((B, E))],
        scratch_shapes=[pltpu.VMEM((B * L, E), F32)])
    return pl.pallas_call(
        kernel, grid_spec=grid_spec,
        out_shape=(jax.ShapeDtypeStruct((B, E), F32),
                   jax.ShapeDtypeStruct((B, E), F32)),
        compiler_params=pltpu.CompilerParams(dimension_semantics=("arbitrary",)),
    )(x_in, y_in, maskinfo, glue["w1"], glue["w2"], glue["b"],
      tr["wA"], tr["w1"], tr["w2"], tr["battn"], tr["bmisc"], tr["b1"], tr["fnorm"])


def _run_out_stage(tr, glue, x_in, y_in, *, B, L, n_enc, n_dec, H):
    E = tr["fnorm"].shape[1]
    F = tr["w1"].shape[2]
    kernel = functools.partial(_out_stage_kernel, n_enc=n_enc, n_dec=n_dec,
                               B=B, L=L, H=H, Dh=E // H)
    grid_spec = pltpu.PrefetchScalarGridSpec(
        num_scalar_prefetch=0, grid=(n_enc + n_dec,),
        in_specs=[_full_spec(x_in.shape), _full_spec(y_in.shape),
                  _full_spec(glue["w1"].shape), _full_spec(glue["w2"].shape),
                  _full_spec(glue["b"].shape)]
                 + _layer_specs(E, F),
        out_specs=_full_spec((B, E)),
        scratch_shapes=[pltpu.VMEM((B * L, E), F32)])
    return pl.pallas_call(
        kernel, grid_spec=grid_spec,
        out_shape=jax.ShapeDtypeStruct((B, E), F32),
        compiler_params=pltpu.CompilerParams(dimension_semantics=("arbitrary",)),
    )(x_in, y_in, glue["w1"], glue["w2"], glue["b"],
      tr["wA"], tr["w1"], tr["w2"], tr["battn"], tr["bmisc"], tr["b1"], tr["fnorm"])


# ----------------------------------------------------------------------------
# Forward pass wrapper (eval mode, compressor='mean', activation=ReLU)
# ----------------------------------------------------------------------------
def make_forward(hyper, max_subset_size, min_n_subsets):
    """hyper: {'col'|'row'|'out': {'n_enc', 'n_dec', 'H'}} (static ints)."""

    @jax.jit
    def forward(pp, dataset):
        C, n_rows, inp = dataset.shape
        n_subsets = max(min_n_subsets, int(math.ceil(n_rows / max_subset_size)))
        chunk = -(-n_rows // n_subsets)                 # torch.chunk chunk size
        S = -(-n_rows // chunk)                         # actual number of chunks
        last = n_rows - (S - 1) * chunk
        pad = S * chunk - n_rows

        data = jnp.pad(dataset, ((0, 0), (0, pad), (0, 0))) if pad else dataset
        data = data.reshape(C, S, chunk, inp)
        # (subset, row) is the flattened batch axis; columns are the col-transformer seq.
        x_raw = jnp.transpose(data[:C - 1], (1, 2, 0, 3)).reshape(S * chunk * (C - 1), inp)
        y_raw = data[C - 1].reshape(S * chunk, inp)

        # Valid-row info for the ragged last chunk (static -> baked constants):
        # row 0: additive attention key mask (0 valid / -1e30 pad)
        # row 1: MeanCompressor weights (1/n_valid valid / 0 pad)
        counts = np.full((S,), float(chunk), dtype=np.float32)
        counts[S - 1] = float(last)
        valid = (np.arange(chunk)[None, :] < counts[:, None]).astype(np.float32)
        maskinfo = jnp.asarray(np.stack([(valid - 1.0) * (-_NEG),
                                         valid / counts[:, None]], axis=0).astype(np.float32))

        col_out, y_col = _run_col_stage(pp["col"], pp["col_glue"], x_raw, y_raw,
                                        B=S * chunk, L=C - 1, **hyper["col"])
        row_out, y_row = _run_row_stage(pp["row"], pp["row_glue"], col_out, y_col,
                                        maskinfo, B=S, L=chunk, **hyper["row"])
        out = _run_out_stage(pp["out"], pp["out_glue"], row_out, y_row,
                             B=1, L=S, **hyper["out"])
        return out[0]                                   # squeeze -> (out_dim,)

    return forward


# ----------------------------------------------------------------------------
# Parameter init (deterministic, PyTorch-like uniform fan-in init)
# ----------------------------------------------------------------------------
def init_linear(key, fan_in, fan_out):
    k1, k2 = jax.random.split(key)
    bound = 1.0 / math.sqrt(fan_in)
    return {"w": jax.random.uniform(k1, (fan_in, fan_out), F32, -bound, bound),
            "b": jax.random.uniform(k2, (fan_out,), F32, -bound, bound)}


def init_layernorm(d):
    return {"g": jnp.ones((d,), F32), "b": jnp.zeros((d,), F32)}


def init_mha(key, d):
    ks = jax.random.split(key, 4)
    q = init_linear(ks[0], d, d)
    k = init_linear(ks[1], d, d)
    v = init_linear(ks[2], d, d)
    o = init_linear(ks[3], d, d)
    return {"wq": q["w"], "bq": q["b"], "wk": k["w"], "bk": k["b"],
            "wv": v["w"], "bv": v["b"], "wo": o["w"], "bo": o["b"]}


def init_transformer(key, d, n_enc, n_dec, d_ff):
    keys = jax.random.split(key, n_enc + n_dec + 1)
    enc_layers, dec_layers = [], []
    for i in range(n_enc):
        ks = jax.random.split(keys[i], 3)
        enc_layers.append({"self_attn": init_mha(ks[0], d),
                           "lin1": init_linear(ks[1], d, d_ff),
                           "lin2": init_linear(ks[2], d_ff, d),
                           "norm1": init_layernorm(d), "norm2": init_layernorm(d)})
    for i in range(n_dec):
        ks = jax.random.split(keys[n_enc + i], 4)
        dec_layers.append({"self_attn": init_mha(ks[0], d),
                           "cross_attn": init_mha(ks[1], d),
                           "lin1": init_linear(ks[2], d, d_ff),
                           "lin2": init_linear(ks[3], d_ff, d),
                           "norm1": init_layernorm(d), "norm2": init_layernorm(d),
                           "norm3": init_layernorm(d)})
    return {"enc_layers": enc_layers, "dec_layers": dec_layers,
            "enc_norm": init_layernorm(d), "dec_norm": init_layernorm(d)}


def init_model(key, inp_dim, col_h, col_n_head, row_h, row_n_head, out_h, out_n_head,
               col_enc, col_dec, col_ff, row_enc, row_dec, row_ff,
               out_enc, out_dec, out_ff):
    col_dim = col_h * col_n_head
    row_dim = row_h * row_n_head
    out_dim = out_h * out_n_head
    keys = jax.random.split(key, 12)
    return {
        "feat_col_proj": init_linear(keys[0], inp_dim, col_dim),
        "targ_col_proj": init_linear(keys[1], inp_dim, col_dim),
        "col_transformer": init_transformer(keys[2], col_dim, col_enc, col_dec, col_ff),
        "feat_row_proj": init_linear(keys[3], col_dim, row_dim),
        "targ_row_proj": init_linear(keys[4], col_dim, row_dim),
        "targ_row_compressor": init_linear(keys[5], row_dim, row_dim),
        "row_transformer": init_transformer(keys[6], row_dim, row_enc, row_dec, row_ff),
        "feat_out_proj": init_linear(keys[7], row_dim, out_dim),
        "targ_out_proj": init_linear(keys[8], row_dim, out_dim),
        "out_proj": init_linear(keys[9], 2 * out_dim, out_dim),
        "out_transformer": init_transformer(keys[10], out_dim, out_enc, out_dec, out_ff),
        "targ_out_compressor": init_linear(keys[11], out_dim, out_dim),
    }


# ----------------------------------------------------------------------------
# Pack params into kernel-friendly stacked layouts (once, outside jit)
# ----------------------------------------------------------------------------
def _pack_layer(lp, E, H, has_cross):
    Dh = E // H
    scale = 1.0 / math.sqrt(Dh)                         # folded into query weights/bias
    sa = lp["self_attn"]
    self_w = jnp.concatenate([sa["wq"] * scale, sa["wk"], sa["wv"], sa["wo"]], axis=1)
    self_b = jnp.concatenate([sa["bq"] * scale, sa["bk"], sa["bv"]], axis=0).reshape(1, 3 * E)
    if has_cross:
        ca = lp["cross_attn"]
        cross_w = jnp.concatenate([ca["wq"] * scale, ca["wk"], ca["wv"], ca["wo"]], axis=1)
        cross_b = jnp.concatenate([ca["bq"] * scale, ca["bk"], ca["bv"]], axis=0).reshape(1, 3 * E)
        c_bo = ca["bo"]
        g3, b3 = lp["norm3"]["g"], lp["norm3"]["b"]
    else:
        cross_w = jnp.zeros((E, 4 * E), F32)
        cross_b = jnp.zeros((1, 3 * E), F32)
        c_bo = jnp.zeros((E,), F32)
        g3 = jnp.zeros((E,), F32)
        b3 = jnp.zeros((E,), F32)
    wA = jnp.concatenate([self_w, cross_w], axis=1)                     # (E, 8E)
    battn = jnp.concatenate([self_b, cross_b], axis=0)                  # (2, 3E)
    bmisc = jnp.stack([sa["bo"], c_bo, lp["lin2"]["b"],
                       lp["norm1"]["g"], lp["norm1"]["b"],
                       lp["norm2"]["g"], lp["norm2"]["b"], g3, b3], axis=0)   # (9, E)
    return wA, lp["lin1"]["w"], lp["lin2"]["w"], battn, bmisc, lp["lin1"]["b"].reshape(1, -1)


def pack_transformer(tp, H):
    E = tp["enc_norm"]["g"].shape[0]
    layers = ([_pack_layer(lp, E, H, has_cross=False) for lp in tp["enc_layers"]]
              + [_pack_layer(lp, E, H, has_cross=True) for lp in tp["dec_layers"]])
    stk = lambda i: jnp.stack([lay[i] for lay in layers], axis=0)
    return {"wA": stk(0), "w1": stk(1), "w2": stk(2), "battn": stk(3),
            "bmisc": stk(4), "b1": stk(5),
            "fnorm": jnp.stack([tp["enc_norm"]["g"], tp["enc_norm"]["b"],
                                tp["dec_norm"]["g"], tp["dec_norm"]["b"]], axis=0)}


def pack_model(p, hyper):
    od = p["out_proj"]["w"].shape[1]
    col_glue = {
        "w": jnp.concatenate([p["feat_col_proj"]["w"], p["targ_col_proj"]["w"]], axis=1),
        "b": jnp.concatenate([p["feat_col_proj"]["b"], p["targ_col_proj"]["b"]], axis=0).reshape(1, -1)}
    row_glue = {
        "w1": jnp.concatenate([p["feat_row_proj"]["w"], p["targ_row_proj"]["w"]], axis=1),
        "w2": p["targ_row_compressor"]["w"],
        "b": jnp.concatenate([p["feat_row_proj"]["b"], p["targ_row_proj"]["b"],
                              p["targ_row_compressor"]["b"]], axis=0).reshape(1, -1)}
    out_glue = {
        "w1": jnp.concatenate([p["feat_out_proj"]["w"], p["targ_out_proj"]["w"]], axis=1),
        "w2": jnp.concatenate([p["out_proj"]["w"][:od], p["out_proj"]["w"][od:],
                               p["targ_out_compressor"]["w"]], axis=0),
        "b": jnp.concatenate([p["feat_out_proj"]["b"], p["targ_out_proj"]["b"],
                              p["out_proj"]["b"], p["targ_out_compressor"]["b"]],
                             axis=0).reshape(1, -1)}
    return {"col": pack_transformer(p["col_transformer"], hyper["col"]["H"]),
            "row": pack_transformer(p["row_transformer"], hyper["row"]["H"]),
            "out": pack_transformer(p["out_transformer"], hyper["out"]["H"]),
            "col_glue": col_glue, "row_glue": row_glue, "out_glue": out_glue}


# ----------------------------------------------------------------------------
# Demo / smoke test
# ----------------------------------------------------------------------------
if __name__ == "__main__":
    key = jax.random.PRNGKey(0)
    pkey, dkey = jax.random.split(key)

    inp_dim = 8
    col_h, col_n_head = 8, 2          # col_dim = 16
    row_h, row_n_head = 8, 2          # row_dim = 16
    out_h, out_n_head = 8, 2          # out_dim = 16
    ff = 32
    max_subset_size = 4
    min_n_subsets = 2
    col_enc, col_dec = 2, 1
    row_enc, row_dec = 1, 1
    out_enc, out_dec = 1, 1

    params = init_model(pkey, inp_dim, col_h, col_n_head, row_h, row_n_head,
                        out_h, out_n_head,
                        col_enc, col_dec, ff, row_enc, row_dec, ff,
                        out_enc, out_dec, ff)
    hyper = {"col": {"n_enc": col_enc, "n_dec": col_dec, "H": col_n_head},
             "row": {"n_enc": row_enc, "n_dec": row_dec, "H": row_n_head},
             "out": {"n_enc": out_enc, "n_dec": out_dec, "H": out_n_head}}
    packed = pack_model(params, hyper)
    forward = make_forward(hyper, max_subset_size, min_n_subsets)

    # dataset: [columns, rows, inp_dim]; rows=10 exercises the padded ragged tail
    # (3 chunks of 4/4/2 rows handled by ONE batched pass with a valid-row mask).
    cols, rows = 5, 10
    dataset = jax.random.normal(dkey, (cols, rows, inp_dim), F32)

    out = jax.block_until_ready(forward(packed, dataset))
    assert out.shape == (out_h * out_n_head,), out.shape
    assert bool(jnp.all(jnp.isfinite(out)))
    print("KERNEL_OK")
</pallas_src>

<mosaic_0001>
module attributes {stable_mosaic.version = 11 : i64} {
  func.func @_row_stage_kernel(%arg0: i32, %arg1: memref<12x16xf32, #tpu.memory_space<vmem>>, %arg2: memref<12x16xf32, #tpu.memory_space<vmem>>, %arg3: memref<2x3x4xf32, #tpu.memory_space<vmem>>, %arg4: memref<16x32xf32, #tpu.memory_space<vmem>>, %arg5: memref<16x16xf32, #tpu.memory_space<vmem>>, %arg6: memref<1x48xf32, #tpu.memory_space<vmem>>, %arg7: memref<1x16x128xf32, #tpu.memory_space<vmem>>, %arg8: memref<1x16x32xf32, #tpu.memory_space<vmem>>, %arg9: memref<1x32x16xf32, #tpu.memory_space<vmem>>, %arg10: memref<1x2x48xf32, #tpu.memory_space<vmem>>, %arg11: memref<1x9x16xf32, #tpu.memory_space<vmem>>, %arg12: memref<1x1x32xf32, #tpu.memory_space<vmem>>, %arg13: memref<4x16xf32, #tpu.memory_space<vmem>>, %arg14: memref<3x16xf32, #tpu.memory_space<vmem>>, %arg15: memref<3x16xf32, #tpu.memory_space<vmem>>, %arg16: memref<12x16xf32, #tpu.memory_space<vmem>>) attributes {dimension_semantics = [#tpu.dimension_semantics<arbitrary>], iteration_bounds = array<i64: 2>, scalar_prefetch = 0 : i64, scratch_operands = 1 : i64, tpu.core_type = #tpu.core_type<tc>, window_params = [{pipeline_mode = #tpu.pipeline_mode<synchronous>, transform_indices = @transform_0, window_bounds = array<i64: 12, 16>}, {pipeline_mode = #tpu.pipeline_mode<synchronous>, transform_indices = @transform_1, window_bounds = array<i64: 12, 16>}, {pipeline_mode = #tpu.pipeline_mode<synchronous>, transform_indices = @transform_2, window_bounds = array<i64: 2, 3, 4>}, {pipeline_mode = #tpu.pipeline_mode<synchronous>, transform_indices = @transform_3, window_bounds = array<i64: 16, 32>}, {pipeline_mode = #tpu.pipeline_mode<synchronous>, transform_indices = @transform_4, window_bounds = array<i64: 16, 16>}, {pipeline_mode = #tpu.pipeline_mode<synchronous>, transform_indices = @transform_5, window_bounds = array<i64: 1, 48>}, {transform_indices = @transform_6, window_bounds = array<i64: 1, 16, 128>}, {transform_indices = @transform_7, window_bounds = array<i64: 1, 16, 32>}, {transform_indices = @transform_8, window_bounds = array<i64: 1, 32, 16>}, {transform_indices = @transform_9, window_bounds = array<i64: 1, 2, 48>}, {transform_indices = @transform_10, window_bounds = array<i64: 1, 9, 16>}, {transform_indices = @transform_11, window_bounds = array<i64: 1, 1, 32>}, {pipeline_mode = #tpu.pipeline_mode<synchronous>, transform_indices = @transform_12, window_bounds = array<i64: 4, 16>}, {pipeline_mode = #tpu.pipeline_mode<synchronous>, transform_indices = @transform_13, window_bounds = array<i64: 3, 16>}, {pipeline_mode = #tpu.pipeline_mode<synchronous>, transform_indices = @transform_14, window_bounds = array<i64: 3, 16>}]} {
    %c0 = arith.constant 0 : index
    %c0_0 = arith.constant 0 : index
    %c0_1 = arith.constant 0 : index
    %0 = vector.load %arg3[%c0, %c0_0, %c0_1] : memref<2x3x4xf32, #tpu.memory_space<vmem>>, vector<1x3x4xf32>
    %1 = vector.shape_cast %0 : vector<1x3x4xf32> to vector<3x4xf32>
    %2 = vector.shape_cast %1 : vector<3x4xf32> to vector<3x1x4xf32>
    %c0_i32 = arith.constant 0 : i32
    %3 = arith.cmpi eq, %arg0, %c0_i32 : i32
    %4 = arith.extui %3 : i1 to i32
    %c0_i32_2 = arith.constant 0 : i32
    %5 = arith.cmpi ne, %4, %c0_i32_2 : i32
    scf.if %5 {
      %c0_24 = arith.constant 0 : index
      %c0_25 = arith.constant 0 : index
      %24 = vector.load %arg4[%c0_24, %c0_25] : memref<16x32xf32, #tpu.memory_space<vmem>>, vector<16x32xf32>
      %c0_26 = arith.constant 0 : index
      %c0_27 = arith.constant 0 : index
      %25 = vector.load %arg6[%c0_26, %c0_27] : memref<1x48xf32, #tpu.memory_space<vmem>>, vector<1x48xf32>
      %c0_28 = arith.constant 0 : index
      %c0_29 = arith.constant 0 : index
      %26 = vector.load %arg1[%c0_28, %c0_29] : memref<12x16xf32, #tpu.memory_space<vmem>>, vector<12x16xf32>
      %cst = arith.constant 0.000000e+00 : f32
      %27 = vector.broadcast %cst : f32 to vector<12x16xf32>
      %28 = arith.maximumf %26, %27 : vector<12x16xf32>
      %29 = vector.extract_strided_slice %24 {offsets = [0, 0], sizes = [16, 16], strides = [1, 1]} : vector<16x32xf32> to vector<16x16xf32>
      %cst_30 = arith.constant dense<0.000000e+00> : vector<12x16xf32>
      %30 = tpu.matmul %28, %29, %cst_30 {dimension_numbers = #tpu.dot_dimension_numbers<[1], [0], [0], [1], [0, 0, 1, 1], [], []>} : vector<12x16xf32>, vector<16x16xf32>, vector<12x16xf32> -> vector<12x16xf32>
      %31 = vector.extract_strided_slice %25 {offsets = [0, 0], sizes = [1, 16], strides = [1, 1]} : vector<1x48xf32> to vector<1x16xf32>
      %32 = vector.broadcast %31 : vector<1x16xf32> to vector<12x16xf32>
      %33 = arith.addf %30, %32 : vector<12x16xf32>
      %cst_31 = arith.constant 0.000000e+00 : f32
      %34 = vector.broadcast %cst_31 : f32 to vector<12x16xf32>
      %35 = arith.maximumf %33, %34 : vector<12x16xf32>
      %c0_32 = arith.constant 0 : index
      %c0_33 = arith.constant 0 : index
      %36 = vector.load %arg16[%c0_32, %c0_33] : memref<12x16xf32, #tpu.memory_space<vmem>>, vector<12x16xf32>
      tpu.vector_store %arg16[%c0_32, %c0_33], %35 {strides = array<i32>} : memref<12x16xf32, #tpu.memory_space<vmem>>, vector<12x16xf32>,
      %c0_34 = arith.constant 0 : index
      %c0_35 = arith.constant 0 : index
      %37 = vector.load %arg2[%c0_34, %c0_35] : memref<12x16xf32, #tpu.memory_space<vmem>>, vector<12x16xf32>
      %38 = vector.extract_strided_slice %24 {offsets = [0, 16], sizes = [16, 16], strides = [1, 1]} : vector<16x32xf32> to vector<16x16xf32>
      %cst_36 = arith.constant dense<0.000000e+00> : vector<12x16xf32>
      %39 = tpu.matmul %37, %38, %cst_36 {dimension_numbers = #tpu.dot_dimension_numbers<[1], [0], [0], [1], [0, 0, 1, 1], [], []>} : vector<12x16xf32>, vector<16x16xf32>, vector<12x16xf32> -> vector<12x16xf32>
      %40 = vector.extract_strided_slice %25 {offsets = [0, 16], sizes = [1, 16], strides = [1, 1]} : vector<1x48xf32> to vector<1x16xf32>
      %41 = vector.broadcast %40 : vector<1x16xf32> to vector<12x16xf32>
      %42 = arith.addf %39, %41 : vector<12x16xf32>
      %cst_37 = arith.constant 0.000000e+00 : f32
      %43 = vector.broadcast %cst_37 : f32 to vector<12x16xf32>
      %44 = arith.maximumf %42, %43 : vector<12x16xf32>
      %c1 = arith.constant 1 : index
      %c0_38 = arith.constant 0 : index
      %c0_39 = arith.constant 0 : index
      %45 = vector.load %arg3[%c1, %c0_38, %c0_39] : memref<2x3x4xf32, #tpu.memory_space<vmem>>, vector<1x3x4xf32>
      %46 = vector.shape_cast %45 : vector<1x3x4xf32> to vector<3x4xf32>
      %47 = vector.shape_cast %44 : vector<12x16xf32> to vector<3x4x16xf32>
      %48 = vector.shape_cast %46 : vector<3x4xf32> to vector<3x4x1xf32>
      %49 = vector.broadcast %48 : vector<3x4x1xf32> to vector<3x4x16xf32>
      %50 = arith.mulf %47, %49 : vector<3x4x16xf32>
      %cst_40 = arith.constant dense<0.000000e+00> : vector<3x16xf32>
      %51 = vector.multi_reduction <add>, %50, %cst_40 [1] : vector<3x4x16xf32> to vector<3x16xf32>
      %c0_41 = arith.constant 0 : index
      %c0_42 = arith.constant 0 : index
      %52 = vector.load %arg5[%c0_41, %c0_42] : memref<16x16xf32, #tpu.memory_space<vmem>>, vector<16x16xf32>
      %cst_43 = arith.constant dense<0.000000e+00> : vector<3x16xf32>
      %53 = tpu.matmul %51, %52, %cst_43 {dimension_numbers = #tpu.dot_dimension_numbers<[1], [0], [0], [1], [0, 0, 1, 1], [], []>} : vector<3x16xf32>, vector<16x16xf32>, vector<3x16xf32> -> vector<3x16xf32>
      %54 = vector.extract_strided_slice %25 {offsets = [0, 32], sizes = [1, 16], strides = [1, 1]} : vector<1x48xf32> to vector<1x16xf32>
      %55 = vector.broadcast %54 : vector<1x16xf32> to vector<3x16xf32>
      %56 = arith.addf %53, %55 : vector<3x16xf32>
      %cst_44 = arith.constant 0.000000e+00 : f32
      %57 = vector.broadcast %cst_44 : f32 to vector<3x16xf32>
      %58 = arith.maximumf %56, %57 : vector<3x16xf32>
      %c0_45 = arith.constant 0 : index
      %c0_46 = arith.constant 0 : index
      %59 = vector.load %arg15[%c0_45, %c0_46] : memref<3x16xf32, #tpu.memory_space<vmem>>, vector<3x16xf32>
      tpu.vector_store %arg15[%c0_45, %c0_46], %58 {strides = array<i32>} : memref<3x16xf32, #tpu.memory_space<vmem>>, vector<3x16xf32>,
      %c0_47 = arith.constant 0 : index
      %c0_48 = arith.constant 0 : index
      %60 = vector.load %arg14[%c0_47, %c0_48] : memref<3x16xf32, #tpu.memory_space<vmem>>, vector<3x16xf32>
      tpu.vector_store %arg14[%c0_47, %c0_48], %58 {strides = array<i32>} : memref<3x16xf32, #tpu.memory_space<vmem>>, vector<3x16xf32>,
    } else {
    }
    %c0_3 = arith.constant 0 : index
    %c0_4 = arith.constant 0 : index
    %c0_5 = arith.constant 0 : index
    %6 = vector.load %arg7[%c0_3, %c0_4, %c0_5] : memref<1x16x128xf32, #tpu.memory_space<vmem>>, vector<1x16x128xf32>
    %7 = vector.shape_cast %6 : vector<1x16x128xf32> to vector<16x128xf32>
    %c0_6 = arith.constant 0 : index
    %c0_7 = arith.constant 0 : index
    %c0_8 = arith.constant 0 : index
    %8 = vector.load %arg8[%c0_6, %c0_7, %c0_8] : memref<1x16x32xf32, #tpu.memory_space<vmem>>, vector<1x16x32xf32>
    %9 = vector.shape_cast %8 : vector<1x16x32xf32> to vector<16x32xf32>
    %c0_9 = arith.constant 0 : index
    %c0_10 = arith.constant 0 : index
    %c0_11 = arith.constant 0 : index
    %10 = vector.load %arg9[%c0_9, %c0_10, %c0_11] : memref<1x32x16xf32, #tpu.memory_space<vmem>>, vector<1x32x16xf32>
    %11 = vector.shape_cast %10 : vector<1x32x16xf32> to vector<32x16xf32>
    %c0_12 = arith.constant 0 : index
    %c0_13 = arith.constant 0 : index
    %c0_14 = arith.constant 0 : index
    %12 = vector.load %arg10[%c0_12, %c0_13, %c0_14] : memref<1x2x48xf32, #tpu.memory_space<vmem>>, vector<1x2x48xf32>
    %13 = vector.shape_cast %12 : vector<1x2x48xf32> to vector<2x48xf32>
    %c0_15 = arith.constant 0 : index
    %c0_16 = arith.constant 0 : index
    %c0_17 = arith.constant 0 : index
    %14 = vector.load %arg11[%c0_15, %c0_16, %c0_17] : memref<1x9x16xf32, #tpu.memory_space<vmem>>, vector<1x9x16xf32>
    %15 = vector.shape_cast %14 : vector<1x9x16xf32> to vector<9x16xf32>
    %c0_18 = arith.constant 0 : index
    %c0_19 = arith.constant 0 : index
    %c0_20 = arith.constant 0 : index
    %16 = vector.load %arg12[%c0_18, %c0_19, %c0_20] : memref<1x1x32xf32, #tpu.memory_space<vmem>>, vector<1x1x32xf32>
    %17 = vector.shape_cast %16 : vector<1x1x32xf32> to vector<1x32xf32>
    %c1_i32 = arith.constant 1 : i32
    %18 = arith.cmpi slt, %arg0, %c1_i32 : i32
    %19 = arith.extui %18 : i1 to i32
    %c0_i32_21 = arith.constant 0 : i32
    %20 = arith.cmpi ne, %19, %c0_i32_21 : i32
    scf.if %20 {
      %c0_24 = arith.constant 0 : index
      %c0_25 = arith.constant 0 : index
      %24 = vector.load %arg16[%c0_24, %c0_25] : memref<12x16xf32, #tpu.memory_space<vmem>>, vector<12x16xf32>
      %25 = vector.extract_strided_slice %7 {offsets = [0, 0], sizes = [16, 48], strides = [1, 1]} : vector<16x128xf32> to vector<16x48xf32>
      %cst = arith.constant dense<0.000000e+00> : vector<12x48xf32>
      %26 = tpu.matmul %24, %25, %cst {dimension_numbers = #tpu.dot_dimension_numbers<[1], [0], [0], [1], [0, 0, 1, 1], [], []>} : vector<12x16xf32>, vector<16x48xf32>, vector<12x48xf32> -> vector<12x48xf32>
      %27 = vector.extract_strided_slice %13 {offsets = [0, 0], sizes = [1, 48], strides = [1, 1]} : vector<2x48xf32> to vector<1x48xf32>
      %28 = vector.broadcast %27 : vector<1x48xf32> to vector<12x48xf32>
      %29 = arith.addf %26, %28 : vector<12x48xf32>
      %30 = vector.shape_cast %29 : vector<12x48xf32> to vector<3x4x48xf32>
      %31 = vector.extract_strided_slice %30 {offsets = [0, 0, 0], sizes = [3, 4, 8], strides = [1, 1, 1]} : vector<3x4x48xf32> to vector<3x4x8xf32>
      %32 = vector.extract_strided_slice %30 {offsets = [0, 0, 16], sizes = [3, 4, 8], strides = [1, 1, 1]} : vector<3x4x48xf32> to vector<3x4x8xf32>
      %33 = vector.extract_strided_slice %30 {offsets = [0, 0, 32], sizes = [3, 4, 8], strides = [1, 1, 1]} : vector<3x4x48xf32> to vector<3x4x8xf32>
      %cst_26 = arith.constant dense<0.000000e+00> : vector<3x4x4xf32>
      %34 = tpu.matmul %31, %32, %cst_26 {dimension_numbers = #tpu.dot_dimension_numbers<[2], [2], [1], [1], [0, 0, 0, 1, 1, 1], [0], [0]>} : vector<3x4x8xf32>, vector<3x4x8xf32>, vector<3x4x4xf32> -> vector<3x4x4xf32>
      %35 = vector.broadcast %2 : vector<3x1x4xf32> to vector<3x4x4xf32>
      %36 = arith.addf %34, %35 : vector<3x4x4xf32>
      %cst_27 = arith.constant dense<0xFF800000> : vector<3x4xf32>
      %37 = vector.multi_reduction <maximumf>, %36, %cst_27 [2] : vector<3x4x4xf32> to vector<3x4xf32>
      %38 = vector.shape_cast %37 : vector<3x4xf32> to vector<3x4x1xf32>
      %39 = vector.broadcast %38 : vector<3x4x1xf32> to vector<3x4x4xf32>
      %40 = arith.subf %36, %39 : vector<3x4x4xf32>
      %41 = math.exp %40 : vector<3x4x4xf32>
      %cst_28 = arith.constant dense<0.000000e+00> : vector<3x4xf32>
      %42 = vector.multi_reduction <add>, %41, %cst_28 [2] : vector<3x4x4xf32> to vector<3x4xf32>
      %43 = vector.shape_cast %42 : vector<3x4xf32> to vector<3x4x1xf32>
      %44 = vector.broadcast %43 : vector<3x4x1xf32> to vector<3x4x4xf32>
      %45 = arith.divf %41, %44 : vector<3x4x4xf32>
      %cst_29 = arith.constant dense<0.000000e+00> : vector<3x4x8xf32>
      %46 = tpu.matmul %45, %33, %cst_29 {dimension_numbers = #tpu.dot_dimension_numbers<[2], [1], [1], [2], [0, 0, 0, 1, 1, 2], [0], [0]>} : vector<3x4x4xf32>, vector<3x4x8xf32>, vector<3x4x8xf32> -> vector<3x4x8xf32>
      %47 = vector.extract_strided_slice %30 {offsets = [0, 0, 8], sizes = [3, 4, 8], strides = [1, 1, 1]} : vector<3x4x48xf32> to vector<3x4x8xf32>
      %48 = vector.extract_strided_slice %30 {offsets = [0, 0, 24], sizes = [3, 4, 8], strides = [1, 1, 1]} : vector<3x4x48xf32> to vector<3x4x8xf32>
      %49 = vector.extract_strided_slice %30 {offsets = [0, 0, 40], sizes = [3, 4, 8], strides = [1, 1, 1]} : vector<3x4x48xf32> to vector<3x4x8xf32>
      %cst_30 = arith.constant dense<0.000000e+00> : vector<3x4x4xf32>
      %50 = tpu.matmul %47, %48, %cst_30 {dimension_numbers = #tpu.dot_dimension_numbers<[2], [2], [1], [1], [0, 0, 0, 1, 1, 1], [0], [0]>} : vector<3x4x8xf32>, vector<3x4x8xf32>, vector<3x4x4xf32> -> vector<3x4x4xf32>
      %51 = vector.broadcast %2 : vector<3x1x4xf32> to vector<3x4x4xf32>
      %52 = arith.addf %50, %51 : vector<3x4x4xf32>
      %cst_31 = arith.constant dense<0xFF800000> : vector<3x4xf32>
      %53 = vector.multi_reduction <maximumf>, %52, %cst_31 [2] : vector<3x4x4xf32> to vector<3x4xf32>
      %54 = vector.shape_cast %53 : vector<3x4xf32> to vector<3x4x1xf32>
      %55 = vector.broadcast %54 : vector<3x4x1xf32> to vector<3x4x4xf32>
      %56 = arith.subf %52, %55 : vector<3x4x4xf32>
      %57 = math.exp %56 : vector<3x4x4xf32>
      %cst_32 = arith.constant dense<0.000000e+00> : vector<3x4xf32>
      %58 = vector.multi_reduction <add>, %57, %cst_32 [2] : vector<3x4x4xf32> to vector<3x4xf32>
      %59 = vector.shape_cast %58 : vector<3x4xf32> to vector<3x4x1xf32>
      %60 = vector.broadcast %59 : vector<3x4x1xf32> to vector<3x4x4xf32>
      %61 = arith.divf %57, %60 : vector<3x4x4xf32>
      %cst_33 = arith.constant dense<0.000000e+00> : vector<3x4x8xf32>
      %62 = tpu.matmul %61, %49, %cst_33 {dimension_numbers = #tpu.dot_dimension_numbers<[2], [1], [1], [2], [0, 0, 0, 1, 1, 2], [0], [0]>} : vector<3x4x4xf32>, vector<3x4x8xf32>, vector<3x4x8xf32> -> vector<3x4x8xf32>
      %63 = tpu.concatenate %46, %62 in 2 : vector<3x4x8xf32>, vector<3x4x8xf32> -> vector<3x4x16xf32>
      %64 = vector.shape_cast %63 : vector<3x4x16xf32> to vector<12x16xf32>
      %65 = vector.extract_strided_slice %7 {offsets = [0, 48], sizes = [16, 16], strides = [1, 1]} : vector<16x128xf32> to vector<16x16xf32>
      %cst_34 = arith.constant dense<0.000000e+00> : vector<12x16xf32>
      %66 = tpu.matmul %64, %65, %cst_34 {dimension_numbers = #tpu.dot_dimension_numbers<[1], [0], [0], [1], [0, 0, 1, 1], [], []>} : vector<12x16xf32>, vector<16x16xf32>, vector<12x16xf32> -> vector<12x16xf32>
      %67 = vector.extract_strided_slice %15 {offsets = [0, 0], sizes = [1, 16], strides = [1, 1]} : vector<9x16xf32> to vector<1x16xf32>
      %68 = vector.broadcast %67 : vector<1x16xf32> to vector<12x16xf32>
      %69 = arith.addf %66, %68 : vector<12x16xf32>
      %70 = arith.addf %24, %69 : vector<12x16xf32>
      %71 = vector.extract_strided_slice %15 {offsets = [3, 0], sizes = [1, 16], strides = [1, 1]} : vector<9x16xf32> to vector<1x16xf32>
      %72 = vector.extract_strided_slice %15 {offsets = [4, 0], sizes = [1, 16], strides = [1, 1]} : vector<9x16xf32> to vector<1x16xf32>
      %cst_35 = arith.constant dense<0.000000e+00> : vector<12xf32>
      %73 = vector.multi_reduction <add>, %70, %cst_35 [1] : vector<12x16xf32> to vector<12xf32>
      %74 = vector.shape_cast %73 : vector<12xf32> to vector<12x1xf32>
      %cst_36 = arith.constant 1.600000e+01 : f32
      %75 = vector.broadcast %cst_36 : f32 to vector<12x1xf32>
      %76 = arith.divf %74, %75 : vector<12x1xf32>
      %77 = vector.broadcast %76 : vector<12x1xf32> to vector<12x16xf32>
      %78 = arith.subf %70, %77 : vector<12x16xf32>
      %79 = arith.mulf %78, %78 : vector<12x16xf32>
      %cst_37 = arith.constant dense<0.000000e+00> : vector<12xf32>
      %80 = vector.multi_reduction <add>, %79, %cst_37 [1] : vector<12x16xf32> to vector<12xf32>
      %81 = vector.shape_cast %80 : vector<12xf32> to vector<12x1xf32>
      %cst_38 = arith.constant 1.600000e+01 : f32
      %82 = vector.broadcast %cst_38 : f32 to vector<12x1xf32>
      %83 = arith.divf %81, %82 : vector<12x1xf32>
      %cst_39 = arith.constant 9.99999974E-6 : f32
      %84 = vector.broadcast %cst_39 : f32 to vector<12x1xf32>
      %85 = arith.addf %83, %84 : vector<12x1xf32>
      %86 = math.rsqrt %85 : vector<12x1xf32>
      %87 = vector.broadcast %86 : vector<12x1xf32> to vector<12x16xf32>
      %88 = arith.mulf %78, %87 : vector<12x16xf32>
      %89 = vector.broadcast %71 : vector<1x16xf32> to vector<12x16xf32>
      %90 = arith.mulf %88, %89 : vector<12x16xf32>
      %91 = vector.broadcast %72 : vector<1x16xf32> to vector<12x16xf32>
      %92 = arith.addf %90, %91 : vector<12x16xf32>
      %cst_40 = arith.constant dense<0.000000e+00> : vector<12x32xf32>
      %93 = tpu.matmul %92, %9, %cst_40 {dimension_numbers = #tpu.dot_dimension_numbers<[1], [0], [0], [1], [0, 0, 1, 1], [], []>} : vector<12x16xf32>, vector<16x32xf32>, vector<12x32xf32> -> vector<12x32xf32>
      %94 = vector.broadcast %17 : vector<1x32xf32> to vector<12x32xf32>
      %95 = arith.addf %93, %94 : vector<12x32xf32>
      %cst_41 = arith.constant 0.000000e+00 : f32
      %96 = vector.broadcast %cst_41 : f32 to vector<12x32xf32>
      %97 = arith.maximumf %95, %96 : vector<12x32xf32>
      %cst_42 = arith.constant dense<0.000000e+00> : vector<12x16xf32>
      %98 = tpu.matmul %97, %11, %cst_42 {dimension_numbers = #tpu.dot_dimension_numbers<[1], [0], [0], [1], [0, 0, 1, 1], [], []>} : vector<12x32xf32>, vector<32x16xf32>, vector<12x16xf32> -> vector<12x16xf32>
      %99 = vector.extract_strided_slice %15 {offsets = [2, 0], sizes = [1, 16], strides = [1, 1]} : vector<9x16xf32> to vector<1x16xf32>
      %100 = vector.broadcast %99 : vector<1x16xf32> to vector<12x16xf32>
      %101 = arith.addf %98, %100 : vector<12x16xf32>
      %102 = arith.addf %92, %101 : vector<12x16xf32>
      %103 = vector.extract_strided_slice %15 {offsets = [5, 0], sizes = [1, 16], strides = [1, 1]} : vector<9x16xf32> to vector<1x16xf32>
      %104 = vector.extract_strided_slice %15 {offsets = [6, 0], sizes = [1, 16], strides = [1, 1]} : vector<9x16xf32> to vector<1x16xf32>
      %cst_43 = arith.constant dense<0.000000e+00> : vector<12xf32>
      %105 = vector.multi_reduction <add>, %102, %cst_43 [1] : vector<12x16xf32> to vector<12xf32>
      %106 = vector.shape_cast %105 : vector<12xf32> to vector<12x1xf32>
      %cst_44 = arith.constant 1.600000e+01 : f32
      %107 = vector.broadcast %cst_44 : f32 to vector<12x1xf32>
      %108 = arith.divf %106, %107 : vector<12x1xf32>
      %109 = vector.broadcast %108 : vector<12x1xf32> to vector<12x16xf32>
      %110 = arith.subf %102, %109 : vector<12x16xf32>
      %111 = arith.mulf %110, %110 : vector<12x16xf32>
      %cst_45 = arith.constant dense<0.000000e+00> : vector<12xf32>
      %112 = vector.multi_reduction <add>, %111, %cst_45 [1] : vector<12x16xf32> to vector<12xf32>
      %113 = vector.shape_cast %112 : vector<12xf32> to vector<12x1xf32>
      %cst_46 = arith.constant 1.600000e+01 : f32
      %114 = vector.broadcast %cst_46 : f32 to vector<12x1xf32>
      %115 = arith.divf %113, %114 : vector<12x1xf32>
      %cst_47 = arith.constant 9.99999974E-6 : f32
      %116 = vector.broadcast %cst_47 : f32 to vector<12x1xf32>
      %117 = arith.addf %115, %116 : vector<12x1xf32>
      %118 = math.rsqrt %117 : vector<12x1xf32>
      %119 = vector.broadcast %118 : vector<12x1xf32> to vector<12x16xf32>
      %120 = arith.mulf %110, %119 : vector<12x16xf32>
      %121 = vector.broadcast %103 : vector<1x16xf32> to vector<12x16xf32>
      %122 = arith.mulf %120, %121 : vector<12x16xf32>
      %123 = vector.broadcast %104 : vector<1x16xf32> to vector<12x16xf32>
      %124 = arith.addf %122, %123 : vector<12x16xf32>
      %c0_i32_48 = arith.constant 0 : i32
      %125 = arith.cmpi eq, %arg0, %c0_i32_48 : i32
      %126 = arith.extui %125 : i1 to i32
      %c0_i32_49 = arith.constant 0 : i32
      %127 = arith.cmpi ne, %126, %c0_i32_49 : i32
      scf.if %127 {
        %c0_52 = arith.constant 0 : index
        %c0_53 = arith.constant 0 : index
        %131 = vector.load %arg13[%c0_52, %c0_53] : memref<4x16xf32, #tpu.memory_space<vmem>>, vector<1x16xf32>
        %c1 = arith.constant 1 : index
        %c0_54 = arith.constant 0 : index
        %132 = vector.load %arg13[%c1, %c0_54] : memref<4x16xf32, #tpu.memory_space<vmem>>, vector<1x16xf32>
        %cst_55 = arith.constant dense<0.000000e+00> : vector<12xf32>
        %133 = vector.multi_reduction <add>, %124, %cst_55 [1] : vector<12x16xf32> to vector<12xf32>
        %134 = vector.shape_cast %133 : vector<12xf32> to vector<12x1xf32>
        %cst_56 = arith.constant 1.600000e+01 : f32
        %135 = vector.broadcast %cst_56 : f32 to vector<12x1xf32>
        %136 = arith.divf %134, %135 : vector<12x1xf32>
        %137 = vector.broadcast %136 : vector<12x1xf32> to vector<12x16xf32>
        %138 = arith.subf %124, %137 : vector<12x16xf32>
        %139 = arith.mulf %138, %138 : vector<12x16xf32>
        %cst_57 = arith.constant dense<0.000000e+00> : vector<12xf32>
        %140 = vector.multi_reduction <add>, %139, %cst_57 [1] : vector<12x16xf32> to vector<12xf32>
        %141 = vector.shape_cast %140 : vector<12xf32> to vector<12x1xf32>
        %cst_58 = arith.constant 1.600000e+01 : f32
        %142 = vector.broadcast %cst_58 : f32 to vector<12x1xf32>
        %143 = arith.divf %141, %142 : vector<12x1xf32>
        %cst_59 = arith.constant 9.99999974E-6 : f32
        %144 = vector.broadcast %cst_59 : f32 to vector<12x1xf32>
        %145 = arith.addf %143, %144 : vector<12x1xf32>
        %146 = math.rsqrt %145 : vector<12x1xf32>
        %147 = vector.broadcast %146 : vector<12x1xf32> to vector<12x16xf32>
        %148 = arith.mulf %138, %147 : vector<12x16xf32>
        %149 = vector.broadcast %131 : vector<1x16xf32> to vector<12x16xf32>
        %150 = arith.mulf %148, %149 : vector<12x16xf32>
        %151 = vector.broadcast %132 : vector<1x16xf32> to vector<12x16xf32>
        %152 = arith.addf %150, %151 : vector<12x16xf32>
        %c0_60 = arith.constant 0 : index
        %c0_61 = arith.constant 0 : index
        %153 = vector.load %arg16[%c0_60, %c0_61] : memref<12x16xf32, #tpu.memory_space<vmem>>, vector<12x16xf32>
        tpu.vector_store %arg16[%c0_60, %c0_61], %152 {strides = array<i32>} : memref<12x16xf32, #tpu.memory_space<vmem>>, vector<12x16xf32>,
      } else {
      }
      %c0_i32_50 = arith.constant 0 : i32
      %128 = arith.cmpi ne, %arg0, %c0_i32_50 : i32
      %129 = arith.extui %128 : i1 to i32
      %c0_i32_51 = arith.constant 0 : i32
      %130 = arith.cmpi ne, %129, %c0_i32_51 : i32
      scf.if %130 {
        %c0_52 = arith.constant 0 : index
        %c0_53 = arith.constant 0 : index
        %131 = vector.load %arg16[%c0_52, %c0_53] : memref<12x16xf32, #tpu.memory_space<vmem>>, vector<12x16xf32>
        tpu.vector_store %arg16[%c0_52, %c0_53], %124 {strides = array<i32>} : memref<12x16xf32, #tpu.memory_space<vmem>>, vector<12x16xf32>,
      } else {
      }
    } else {
    }
    %c1_i32_22 = arith.constant 1 : i32
    %21 = arith.cmpi sge, %arg0, %c1_i32_22 : i32
    %22 = arith.extui %21 : i1 to i32
    %c0_i32_23 = arith.constant 0 : i32
    %23 = arith.cmpi ne, %22, %c0_i32_23 : i32
    scf.if %23 {
      %c0_24 = arith.constant 0 : index
      %c0_25 = arith.constant 0 : index
      %24 = vector.load %arg14[%c0_24, %c0_25] : memref<3x16xf32, #tpu.memory_space<vmem>>, vector<3x16xf32>
      %c0_26 = arith.constant 0 : index
      %c0_27 = arith.constant 0 : index
      %25 = vector.load %arg16[%c0_26, %c0_27] : memref<12x16xf32, #tpu.memory_space<vmem>>, vector<12x16xf32>
      %26 = vector.extract_strided_slice %7 {offsets = [0, 32], sizes = [16, 16], strides = [1, 1]} : vector<16x128xf32> to vector<16x16xf32>
      %cst = arith.constant dense<0.000000e+00> : vector<3x16xf32>
      %27 = tpu.matmul %24, %26, %cst {dimension_numbers = #tpu.dot_dimension_numbers<[1], [0], [0], [1], [0, 0, 1, 1], [], []>} : vector<3x16xf32>, vector<16x16xf32>, vector<3x16xf32> -> vector<3x16xf32>
      %28 = vector.extract_strided_slice %13 {offsets = [0, 32], sizes = [1, 16], strides = [1, 1]} : vector<2x48xf32> to vector<1x16xf32>
      %29 = vector.broadcast %28 : vector<1x16xf32> to vector<3x16xf32>
      %30 = arith.addf %27, %29 : vector<3x16xf32>
      %31 = vector.extract_strided_slice %7 {offsets = [0, 48], sizes = [16, 16], strides = [1, 1]} : vector<16x128xf32> to vector<16x16xf32>
      %cst_28 = arith.constant dense<0.000000e+00> : vector<3x16xf32>
      %32 = tpu.matmul %30, %31, %cst_28 {dimension_numbers = #tpu.dot_dimension_numbers<[1], [0], [0], [1], [0, 0, 1, 1], [], []>} : vector<3x16xf32>, vector<16x16xf32>, vector<3x16xf32> -> vector<3x16xf32>
      %33 = vector.extract_strided_slice %15 {offsets = [0, 0], sizes = [1, 16], strides = [1, 1]} : vector<9x16xf32> to vector<1x16xf32>
      %34 = vector.broadcast %33 : vector<1x16xf32> to vector<3x16xf32>
      %35 = arith.addf %32, %34 : vector<3x16xf32>
      %36 = arith.addf %24, %35 : vector<3x16xf32>
      %37 = vector.extract_strided_slice %15 {offsets = [3, 0], sizes = [1, 16], strides = [1, 1]} : vector<9x16xf32> to vector<1x16xf32>
      %38 = vector.extract_strided_slice %15 {offsets = [4, 0], sizes = [1, 16], strides = [1, 1]} : vector<9x16xf32> to vector<1x16xf32>
      %cst_29 = arith.constant dense<0.000000e+00> : vector<3xf32>
      %39 = vector.multi_reduction <add>, %36, %cst_29 [1] : vector<3x16xf32> to vector<3xf32>
      %40 = vector.shape_cast %39 : vector<3xf32> to vector<3x1xf32>
      %cst_30 = arith.constant 1.600000e+01 : f32
      %41 = vector.broadcast %cst_30 : f32 to vector<3x1xf32>
      %42 = arith.divf %40, %41 : vector<3x1xf32>
      %43 = vector.broadcast %42 : vector<3x1xf32> to vector<3x16xf32>
      %44 = arith.subf %36, %43 : vector<3x16xf32>
      %45 = arith.mulf %44, %44 : vector<3x16xf32>
      %cst_31 = arith.constant dense<0.000000e+00> : vector<3xf32>
      %46 = vector.multi_reduction <add>, %45, %cst_31 [1] : vector<3x16xf32> to vector<3xf32>
      %47 = vector.shape_cast %46 : vector<3xf32> to vector<3x1xf32>
      %cst_32 = arith.constant 1.600000e+01 : f32
      %48 = vector.broadcast %cst_32 : f32 to vector<3x1xf32>
      %49 = arith.divf %47, %48 : vector<3x1xf32>
      %cst_33 = arith.constant 9.99999974E-6 : f32
      %50 = vector.broadcast %cst_33 : f32 to vector<3x1xf32>
      %51 = arith.addf %49, %50 : vector<3x1xf32>
      %52 = math.rsqrt %51 : vector<3x1xf32>
      %53 = vector.broadcast %52 : vector<3x1xf32> to vector<3x16xf32>
      %54 = arith.mulf %44, %53 : vector<3x16xf32>
      %55 = vector.broadcast %37 : vector<1x16xf32> to vector<3x16xf32>
      %56 = arith.mulf %54, %55 : vector<3x16xf32>
      %57 = vector.broadcast %38 : vector<1x16xf32> to vector<3x16xf32>
      %58 = arith.addf %56, %57 : vector<3x16xf32>
      %59 = vector.extract_strided_slice %7 {offsets = [0, 64], sizes = [16, 16], strides = [1, 1]} : vector<16x128xf32> to vector<16x16xf32>
      %cst_34 = arith.constant dense<0.000000e+00> : vector<3x16xf32>
      %60 = tpu.matmul %58, %59, %cst_34 {dimension_numbers = #tpu.dot_dimension_numbers<[1], [0], [0], [1], [0, 0, 1, 1], [], []>} : vector<3x16xf32>, vector<16x16xf32>, vector<3x16xf32> -> vector<3x16xf32>
      %61 = vector.extract_strided_slice %13 {offsets = [1, 0], sizes = [1, 16], strides = [1, 1]} : vector<2x48xf32> to vector<1x16xf32>
      %62 = vector.broadcast %61 : vector<1x16xf32> to vector<3x16xf32>
      %63 = arith.addf %60, %62 : vector<3x16xf32>
      %64 = vector.extract_strided_slice %7 {offsets = [0, 80], sizes = [16, 32], strides = [1, 1]} : vector<16x128xf32> to vector<16x32xf32>
      %cst_35 = arith.constant dense<0.000000e+00> : vector<12x32xf32>
      %65 = tpu.matmul %25, %64, %cst_35 {dimension_numbers = #tpu.dot_dimension_numbers<[1], [0], [0], [1], [0, 0, 1, 1], [], []>} : vector<12x16xf32>, vector<16x32xf32>, vector<12x32xf32> -> vector<12x32xf32>
      %66 = vector.extract_strided_slice %13 {offsets = [1, 16], sizes = [1, 32], strides = [1, 1]} : vector<2x48xf32> to vector<1x32xf32>
      %67 = vector.broadcast %66 : vector<1x32xf32> to vector<12x32xf32>
      %68 = arith.addf %65, %67 : vector<12x32xf32>
      %69 = vector.shape_cast %63 : vector<3x16xf32> to vector<3x1x16xf32>
      %70 = vector.shape_cast %68 : vector<12x32xf32> to vector<3x4x32xf32>
      %71 = vector.extract_strided_slice %69 {offsets = [0, 0, 0], sizes = [3, 1, 8], strides = [1, 1, 1]} : vector<3x1x16xf32> to vector<3x1x8xf32>
      %72 = vector.extract_strided_slice %70 {offsets = [0, 0, 0], sizes = [3, 4, 8], strides = [1, 1, 1]} : vector<3x4x32xf32> to vector<3x4x8xf32>
      %73 = vector.extract_strided_slice %70 {offsets = [0, 0, 16], sizes = [3, 4, 8], strides = [1, 1, 1]} : vector<3x4x32xf32> to vector<3x4x8xf32>
      %cst_36 = arith.constant dense<0.000000e+00> : vector<3x1x4xf32>
      %74 = tpu.matmul %71, %72, %cst_36 {dimension_numbers = #tpu.dot_dimension_numbers<[2], [2], [1], [1], [0, 0, 0, 1, 1, 1], [0], [0]>} : vector<3x1x8xf32>, vector<3x4x8xf32>, vector<3x1x4xf32> -> vector<3x1x4xf32>
      %75 = arith.addf %74, %2 : vector<3x1x4xf32>
      %cst_37 = arith.constant dense<0xFF800000> : vector<3x1xf32>
      %76 = vector.multi_reduction <maximumf>, %75, %cst_37 [2] : vector<3x1x4xf32> to vector<3x1xf32>
      %77 = vector.shape_cast %76 : vector<3x1xf32> to vector<3x1x1xf32>
      %78 = vector.broadcast %77 : vector<3x1x1xf32> to vector<3x1x4xf32>
      %79 = arith.subf %75, %78 : vector<3x1x4xf32>
      %80 = math.exp %79 : vector<3x1x4xf32>
      %cst_38 = arith.constant dense<0.000000e+00> : vector<3x1xf32>
      %81 = vector.multi_reduction <add>, %80, %cst_38 [2] : vector<3x1x4xf32> to vector<3x1xf32>
      %82 = vector.shape_cast %81 : vector<3x1xf32> to vector<3x1x1xf32>
      %83 = vector.broadcast %82 : vector<3x1x1xf32> to vector<3x1x4xf32>
      %84 = arith.divf %80, %83 : vector<3x1x4xf32>
      %cst_39 = arith.constant dense<0.000000e+00> : vector<3x1x8xf32>
      %85 = tpu.matmul %84, %73, %cst_39 {dimension_numbers = #tpu.dot_dimension_numbers<[2], [1], [1], [2], [0, 0, 0, 1, 1, 2], [0], [0]>} : vector<3x1x4xf32>, vector<3x4x8xf32>, vector<3x1x8xf32> -> vector<3x1x8xf32>
      %86 = vector.extract_strided_slice %69 {offsets = [0, 0, 8], sizes = [3, 1, 8], strides = [1, 1, 1]} : vector<3x1x16xf32> to vector<3x1x8xf32>
      %87 = vector.extract_strided_slice %70 {offsets = [0, 0, 8], sizes = [3, 4, 8], strides = [1, 1, 1]} : vector<3x4x32xf32> to vector<3x4x8xf32>
      %88 = vector.extract_strided_slice %70 {offsets = [0, 0, 24], sizes = [3, 4, 8], strides = [1, 1, 1]} : vector<3x4x32xf32> to vector<3x4x8xf32>
      %cst_40 = arith.constant dense<0.000000e+00> : vector<3x1x4xf32>
      %89 = tpu.matmul %86, %87, %cst_40 {dimension_numbers = #tpu.dot_dimension_numbers<[2], [2], [1], [1], [0, 0, 0, 1, 1, 1], [0], [0]>} : vector<3x1x8xf32>, vector<3x4x8xf32>, vector<3x1x4xf32> -> vector<3x1x4xf32>
      %90 = arith.addf %89, %2 : vector<3x1x4xf32>
      %cst_41 = arith.constant dense<0xFF800000> : vector<3x1xf32>
      %91 = vector.multi_reduction <maximumf>, %90, %cst_41 [2] : vector<3x1x4xf32> to vector<3x1xf32>
      %92 = vector.shape_cast %91 : vector<3x1xf32> to vector<3x1x1xf32>
      %93 = vector.broadcast %92 : vector<3x1x1xf32> to vector<3x1x4xf32>
      %94 = arith.subf %90, %93 : vector<3x1x4xf32>
      %95 = math.exp %94 : vector<3x1x4xf32>
      %cst_42 = arith.constant dense<0.000000e+00> : vector<3x1xf32>
      %96 = vector.multi_reduction <add>, %95, %cst_42 [2] : vector<3x1x4xf32> to vector<3x1xf32>
      %97 = vector.shape_cast %96 : vector<3x1xf32> to vector<3x1x1xf32>
      %98 = vector.broadcast %97 : vector<3x1x1xf32> to vector<3x1x4xf32>
      %99 = arith.divf %95, %98 : vector<3x1x4xf32>
      %cst_43 = arith.constant dense<0.000000e+00> : vector<3x1x8xf32>
      %100 = tpu.matmul %99, %88, %cst_43 {dimension_numbers = #tpu.dot_dimension_numbers<[2], [1], [1], [2], [0, 0, 0, 1, 1, 2], [0], [0]>} : vector<3x1x4xf32>, vector<3x4x8xf32>, vector<3x1x8xf32> -> vector<3x1x8xf32>
      %101 = tpu.concatenate %85, %100 in 2 : vector<3x1x8xf32>, vector<3x1x8xf32> -> vector<3x1x16xf32>
      %102 = vector.shape_cast %101 : vector<3x1x16xf32> to vector<3x16xf32>
      %103 = vector.extract_strided_slice %7 {offsets = [0, 112], sizes = [16, 16], strides = [1, 1]} : vector<16x128xf32> to vector<16x16xf32>
      %cst_44 = arith.constant dense<0.000000e+00> : vector<3x16xf32>
      %104 = tpu.matmul %102, %103, %cst_44 {dimension_numbers = #tpu.dot_dimension_numbers<[1], [0], [0], [1], [0, 0, 1, 1], [], []>} : vector<3x16xf32>, vector<16x16xf32>, vector<3x16xf32> -> vector<3x16xf32>
      %105 = vector.extract_strided_slice %15 {offsets = [1, 0], sizes = [1, 16], strides = [1, 1]} : vector<9x16xf32> to vector<1x16xf32>
      %106 = vector.broadcast %105 : vector<1x16xf32> to vector<3x16xf32>
      %107 = arith.addf %104, %106 : vector<3x16xf32>
      %108 = arith.addf %58, %107 : vector<3x16xf32>
      %109 = vector.extract_strided_slice %15 {offsets = [5, 0], sizes = [1, 16], strides = [1, 1]} : vector<9x16xf32> to vector<1x16xf32>
      %110 = vector.extract_strided_slice %15 {offsets = [6, 0], sizes = [1, 16], strides = [1, 1]} : vector<9x16xf32> to vector<1x16xf32>
      %cst_45 = arith.constant dense<0.000000e+00> : vector<3xf32>
      %111 = vector.multi_reduction <add>, %108, %cst_45 [1] : vector<3x16xf32> to vector<3xf32>
      %112 = vector.shape_cast %111 : vector<3xf32> to vector<3x1xf32>
      %cst_46 = arith.constant 1.600000e+01 : f32
      %113 = vector.broadcast %cst_46 : f32 to vector<3x1xf32>
      %114 = arith.divf %112, %113 : vector<3x1xf32>
      %115 = vector.broadcast %114 : vector<3x1xf32> to vector<3x16xf32>
      %116 = arith.subf %108, %115 : vector<3x16xf32>
      %117 = arith.mulf %116, %116 : vector<3x16xf32>
      %cst_47 = arith.constant dense<0.000000e+00> : vector<3xf32>
      %118 = vector.multi_reduction <add>, %117, %cst_47 [1] : vector<3x16xf32> to vector<3xf32>
      %119 = vector.shape_cast %118 : vector<3xf32> to vector<3x1xf32>
      %cst_48 = arith.constant 1.600000e+01 : f32
      %120 = vector.broadcast %cst_48 : f32 to vector<3x1xf32>
      %121 = arith.divf %119, %120 : vector<3x1xf32>
      %cst_49 = arith.constant 9.99999974E-6 : f32
      %122 = vector.broadcast %cst_49 : f32 to vector<3x1xf32>
      %123 = arith.addf %121, %122 : vector<3x1xf32>
      %124 = math.rsqrt %123 : vector<3x1xf32>
      %125 = vector.broadcast %124 : vector<3x1xf32> to vector<3x16xf32>
      %126 = arith.mulf %116, %125 : vector<3x16xf32>
      %127 = vector.broadcast %109 : vector<1x16xf32> to vector<3x16xf32>
      %128 = arith.mulf %126, %127 : vector<3x16xf32>
      %129 = vector.broadcast %110 : vector<1x16xf32> to vector<3x16xf32>
      %130 = arith.addf %128, %129 : vector<3x16xf32>
      %cst_50 = arith.constant dense<0.000000e+00> : vector<3x32xf32>
      %131 = tpu.matmul %130, %9, %cst_50 {dimension_numbers = #tpu.dot_dimension_numbers<[1], [0], [0], [1], [0, 0, 1, 1], [], []>} : vector<3x16xf32>, vector<16x32xf32>, vector<3x32xf32> -> vector<3x32xf32>
      %132 = vector.broadcast %17 : vector<1x32xf32> to vector<3x32xf32>
      %133 = arith.addf %131, %132 : vector<3x32xf32>
      %cst_51 = arith.constant 0.000000e+00 : f32
      %134 = vector.broadcast %cst_51 : f32 to vector<3x32xf32>
      %135 = arith.maximumf %133, %134 : vector<3x32xf32>
      %cst_52 = arith.constant dense<0.000000e+00> : vector<3x16xf32>
      %136 = tpu.matmul %135, %11, %cst_52 {dimension_numbers = #tpu.dot_dimension_numbers<[1], [0], [0], [1], [0, 0, 1, 1], [], []>} : vector<3x32xf32>, vector<32x16xf32>, vector<3x16xf32> -> vector<3x16xf32>
      %137 = vector.extract_strided_slice %15 {offsets = [2, 0], sizes = [1, 16], strides = [1, 1]} : vector<9x16xf32> to vector<1x16xf32>
      %138 = vector.broadcast %137 : vector<1x16xf32> to vector<3x16xf32>
      %139 = arith.addf %136, %138 : vector<3x16xf32>
      %140 = arith.addf %130, %139 : vector<3x16xf32>
      %141 = vector.extract_strided_slice %15 {offsets = [7, 0], sizes = [1, 16], strides = [1, 1]} : vector<9x16xf32> to vector<1x16xf32>
      %142 = vector.extract_strided_slice %15 {offsets = [8, 0], sizes = [1, 16], strides = [1, 1]} : vector<9x16xf32> to vector<1x16xf32>
      %cst_53 = arith.constant dense<0.000000e+00> : vector<3xf32>
      %143 = vector.multi_reduction <add>, %140, %cst_53 [1] : vector<3x16xf32> to vector<3xf32>
      %144 = vector.shape_cast %143 : vector<3xf32> to vector<3x1xf32>
      %cst_54 = arith.constant 1.600000e+01 : f32
      %145 = vector.broadcast %cst_54 : f32 to vector<3x1xf32>
      %146 = arith.divf %144, %145 : vector<3x1xf32>
      %147 = vector.broadcast %146 : vector<3x1xf32> to vector<3x16xf32>
      %148 = arith.subf %140, %147 : vector<3x16xf32>
      %149 = arith.mulf %148, %148 : vector<3x16xf32>
      %cst_55 = arith.constant dense<0.000000e+00> : vector<3xf32>
      %150 = vector.multi_reduction <add>, %149, %cst_55 [1] : vector<3x16xf32> to vector<3xf32>
      %151 = vector.shape_cast %150 : vector<3xf32> to vector<3x1xf32>
      %cst_56 = arith.constant 1.600000e+01 : f32
      %152 = vector.broadcast %cst_56 : f32 to vector<3x1xf32>
      %153 = arith.divf %151, %152 : vector<3x1xf32>
      %cst_57 = arith.constant 9.99999974E-6 : f32
      %154 = vector.broadcast %cst_57 : f32 to vector<3x1xf32>
      %155 = arith.addf %153, %154 : vector<3x1xf32>
      %156 = math.rsqrt %155 : vector<3x1xf32>
      %157 = vector.broadcast %156 : vector<3x1xf32> to vector<3x16xf32>
      %158 = arith.mulf %148, %157 : vector<3x16xf32>
      %159 = vector.broadcast %141 : vector<1x16xf32> to vector<3x16xf32>
      %160 = arith.mulf %158, %159 : vector<3x16xf32>
      %161 = vector.broadcast %142 : vector<1x16xf32> to vector<3x16xf32>
      %162 = arith.addf %160, %161 : vector<3x16xf32>
      %c1_i32_58 = arith.constant 1 : i32
      %163 = arith.cmpi eq, %arg0, %c1_i32_58 : i32
      %164 = arith.extui %163 : i1 to i32
      %c0_i32_59 = arith.constant 0 : i32
      %165 = arith.cmpi ne, %164, %c0_i32_59 : i32
      scf.if %165 {
        %c2 = arith.constant 2 : index
        %c0_62 = arith.constant 0 : index
        %169 = vector.load %arg13[%c2, %c0_62] : memref<4x16xf32, #tpu.memory_space<vmem>>, vector<1x16xf32>
        %c3 = arith.constant 3 : index
        %c0_63 = arith.constant 0 : index
        %170 = vector.load %arg13[%c3, %c0_63] : memref<4x16xf32, #tpu.memory_space<vmem>>, vector<1x16xf32>
        %cst_64 = arith.constant dense<0.000000e+00> : vector<3xf32>
        %171 = vector.multi_reduction <add>, %162, %cst_64 [1] : vector<3x16xf32> to vector<3xf32>
        %172 = vector.shape_cast %171 : vector<3xf32> to vector<3x1xf32>
        %cst_65 = arith.constant 1.600000e+01 : f32
        %173 = vector.broadcast %cst_65 : f32 to vector<3x1xf32>
        %174 = arith.divf %172, %173 : vector<3x1xf32>
        %175 = vector.broadcast %174 : vector<3x1xf32> to vector<3x16xf32>
        %176 = arith.subf %162, %175 : vector<3x16xf32>
        %177 = arith.mulf %176, %176 : vector<3x16xf32>
        %cst_66 = arith.constant dense<0.000000e+00> : vector<3xf32>
        %178 = vector.multi_reduction <add>, %177, %cst_66 [1] : vector<3x16xf32> to vector<3xf32>
        %179 = vector.shape_cast %178 : vector<3xf32> to vector<3x1xf32>
        %cst_67 = arith.constant 1.600000e+01 : f32
        %180 = vector.broadcast %cst_67 : f32 to vector<3x1xf32>
        %181 = arith.divf %179, %180 : vector<3x1xf32>
        %cst_68 = arith.constant 9.99999974E-6 : f32
        %182 = vector.broadcast %cst_68 : f32 to vector<3x1xf32>
        %183 = arith.addf %181, %182 : vector<3x1xf32>
        %184 = math.rsqrt %183 : vector<3x1xf32>
        %185 = vector.broadcast %184 : vector<3x1xf32> to vector<3x16xf32>
        %186 = arith.mulf %176, %185 : vector<3x16xf32>
        %187 = vector.broadcast %169 : vector<1x16xf32> to vector<3x16xf32>
        %188 = arith.mulf %186, %187 : vector<3x16xf32>
        %189 = vector.broadcast %170 : vector<1x16xf32> to vector<3x16xf32>
        %190 = arith.addf %188, %189 : vector<3x16xf32>
        %c0_69 = arith.constant 0 : index
        %c0_70 = arith.constant 0 : index
        %191 = vector.load %arg14[%c0_69, %c0_70] : memref<3x16xf32, #tpu.memory_space<vmem>>, vector<3x16xf32>
        tpu.vector_store %arg14[%c0_69, %c0_70], %190 {strides = array<i32>} : memref<3x16xf32, #tpu.memory_space<vmem>>, vector<3x16xf32>,
      } else {
      }
      %c1_i32_60 = arith.constant 1 : i32
      %166 = arith.cmpi ne, %arg0, %c1_i32_60 : i32
      %167 = arith.extui %166 : i1 to i32
      %c0_i32_61 = arith.constant 0 : i32
      %168 = arith.cmpi ne, %167, %c0_i32_61 : i32
      scf.if %168 {
        %c0_62 = arith.constant 0 : index
        %c0_63 = arith.constant 0 : index
        %169 = vector.load %arg14[%c0_62, %c0_63] : memref<3x16xf32, #tpu.memory_space<vmem>>, vector<3x16xf32>
        tpu.vector_store %arg14[%c0_62, %c0_63], %162 {strides = array<i32>} : memref<3x16xf32, #tpu.memory_space<vmem>>, vector<3x16xf32>,
      } else {
      }
    } else {
    }
    return
  }
  func.func @transform_0(%arg0: i32) -> (i32, i32) {
    %c0_i32 = arith.constant 0 : i32
    %c0_i32_0 = arith.constant 0 : i32
    %c0_i32_1 = arith.constant 0 : i32
    return %c0_i32, %c0_i32_0 : i32, i32
  }
  func.func @transform_1(%arg0: i32) -> (i32, i32) {
    %c0_i32 = arith.constant 0 : i32
    %c0_i32_0 = arith.constant 0 : i32
    %c0_i32_1 = arith.constant 0 : i32
    return %c0_i32, %c0_i32_0 : i32, i32
  }
  func.func @transform_2(%arg0: i32) -> (i32, i32, i32) {
    %c0_i32 = arith.constant 0 : i32
    %c0_i32_0 = arith.constant 0 : i32
    %c0_i32_1 = arith.constant 0 : i32
    %c0_i32_2 = arith.constant 0 : i32
    return %c0_i32, %c0_i32_0, %c0_i32_1 : i32, i32, i32
  }
  func.func @transform_3(%arg0: i32) -> (i32, i32) {
    %c0_i32 = arith.constant 0 : i32
    %c0_i32_0 = arith.constant 0 : i32
    %c0_i32_1 = arith.constant 0 : i32
    return %c0_i32, %c0_i32_0 : i32, i32
  }
  func.func @transform_4(%arg0: i32) -> (i32, i32) {
    %c0_i32 = arith.constant 0 : i32
    %c0_i32_0 = arith.constant 0 : i32
    %c0_i32_1 = arith.constant 0 : i32
    return %c0_i32, %c0_i32_0 : i32, i32
  }
  func.func @transform_5(%arg0: i32) -> (i32, i32) {
    %c0_i32 = arith.constant 0 : i32
    %c0_i32_0 = arith.constant 0 : i32
    %c0_i32_1 = arith.constant 0 : i32
    return %c0_i32, %c0_i32_0 : i32, i32
  }
  func.func @transform_6(%arg0: i32) -> (i32, i32, i32) {
    %c0_i32 = arith.constant 0 : i32
    %c0_i32_0 = arith.constant 0 : i32
    %c0_i32_1 = arith.constant 0 : i32
    return %arg0, %c0_i32, %c0_i32_0 : i32, i32, i32
  }
  func.func @transform_7(%arg0: i32) -> (i32, i32, i32) {
    %c0_i32 = arith.constant 0 : i32
    %c0_i32_0 = arith.constant 0 : i32
    %c0_i32_1 = arith.constant 0 : i32
    return %arg0, %c0_i32, %c0_i32_0 : i32, i32, i32
  }
  func.func @transform_8(%arg0: i32) -> (i32, i32, i32) {
    %c0_i32 = arith.constant 0 : i32
    %c0_i32_0 = arith.constant 0 : i32
    %c0_i32_1 = arith.constant 0 : i32
    return %arg0, %c0_i32, %c0_i32_0 : i32, i32, i32
  }
  func.func @transform_9(%arg0: i32) -> (i32, i32, i32) {
    %c0_i32 = arith.constant 0 : i32
    %c0_i32_0 = arith.constant 0 : i32
    %c0_i32_1 = arith.constant 0 : i32
    return %arg0, %c0_i32, %c0_i32_0 : i32, i32, i32
  }
  func.func @transform_10(%arg0: i32) -> (i32, i32, i32) {
    %c0_i32 = arith.constant 0 : i32
    %c0_i32_0 = arith.constant 0 : i32
    %c0_i32_1 = arith.constant 0 : i32
    return %arg0, %c0_i32, %c0_i32_0 : i32, i32, i32
  }
  func.func @transform_11(%arg0: i32) -> (i32, i32, i32) {
    %c0_i32 = arith.constant 0 : i32
    %c0_i32_0 = arith.constant 0 : i32
    %c0_i32_1 = arith.constant 0 : i32
    return %arg0, %c0_i32, %c0_i32_0 : i32, i32, i32
  }
  func.func @transform_12(%arg0: i32) -> (i32, i32) {
    %c0_i32 = arith.constant 0 : i32
    %c0_i32_0 = arith.constant 0 : i32
    %c0_i32_1 = arith.constant 0 : i32
    return %c0_i32, %c0_i32_0 : i32, i32
  }
  func.func @transform_13(%arg0: i32) -> (i32, i32) {
    %c0_i32 = arith.constant 0 : i32
    %c0_i32_0 = arith.constant 0 : i32
    %c0_i32_1 = arith.constant 0 : i32
    return %c0_i32, %c0_i32_0 : i32, i32
  }
  func.func @transform_14(%arg0: i32) -> (i32, i32) {
    %c0_i32 = arith.constant 0 : i32
    %c0_i32_0 = arith.constant 0 : i32
    %c0_i32_1 = arith.constant 0 : i32
    return %c0_i32, %c0_i32_0 : i32, i32
  }
}

module attributes {stable_mosaic.version = 11 : i64} {
  func.func @_out_stage_kernel(%arg0: i32, %arg1: memref<3x16xf32, #tpu.memory_space<vmem>>, %arg2: memref<3x16xf32, #tpu.memory_space<vmem>>, %arg3: memref<16x32xf32, #tpu.memory_space<vmem>>, %arg4: memref<48x16xf32, #tpu.memory_space<vmem>>, %arg5: memref<1x64xf32, #tpu.memory_space<vmem>>, %arg6: memref<1x16x128xf32, #tpu.memory_space<vmem>>, %arg7: memref<1x16x32xf32, #tpu.memory_space<vmem>>, %arg8: memref<1x32x16xf32, #tpu.memory_space<vmem>>, %arg9: memref<1x2x48xf32, #tpu.memory_space<vmem>>, %arg10: memref<1x9x16xf32, #tpu.memory_space<vmem>>, %arg11: memref<1x1x32xf32, #tpu.memory_space<vmem>>, %arg12: memref<4x16xf32, #tpu.memory_space<vmem>>, %arg13: memref<1x16xf32, #tpu.memory_space<vmem>>, %arg14: memref<3x16xf32, #tpu.memory_space<vmem>>) attributes {dimension_semantics = [#tpu.dimension_semantics<arbitrary>], iteration_bounds = array<i64: 2>, scalar_prefetch = 0 : i64, scratch_operands = 1 : i64, tpu.core_type = #tpu.core_type<tc>, window_params = [{pipeline_mode = #tpu.pipeline_mode<synchronous>, transform_indices = @transform_0, window_bounds = array<i64: 3, 16>}, {pipeline_mode = #tpu.pipeline_mode<synchronous>, transform_indices = @transform_1, window_bounds = array<i64: 3, 16>}, {pipeline_mode = #tpu.pipeline_mode<synchronous>, transform_indices = @transform_2, window_bounds = array<i64: 16, 32>}, {pipeline_mode = #tpu.pipeline_mode<synchronous>, transform_indices = @transform_3, window_bounds = array<i64: 48, 16>}, {pipeline_mode = #tpu.pipeline_mode<synchronous>, transform_indices = @transform_4, window_bounds = array<i64: 1, 64>}, {transform_indices = @transform_5, window_bounds = array<i64: 1, 16, 128>}, {transform_indices = @transform_6, window_bounds = array<i64: 1, 16, 32>}, {transform_indices = @transform_7, window_bounds = array<i64: 1, 32, 16>}, {transform_indices = @transform_8, window_bounds = array<i64: 1, 2, 48>}, {transform_indices = @transform_9, window_bounds = array<i64: 1, 9, 16>}, {transform_indices = @transform_10, window_bounds = array<i64: 1, 1, 32>}, {pipeline_mode = #tpu.pipeline_mode<synchronous>, transform_indices = @transform_11, window_bounds = array<i64: 4, 16>}, {pipeline_mode = #tpu.pipeline_mode<synchronous>, transform_indices = @transform_12, window_bounds = array<i64: 1, 16>}]} {
    %c0_i32 = arith.constant 0 : i32
    %0 = arith.cmpi eq, %arg0, %c0_i32 : i32
    %1 = arith.extui %0 : i1 to i32
    %c0_i32_0 = arith.constant 0 : i32
    %2 = arith.cmpi ne, %1, %c0_i32_0 : i32
    scf.if %2 {
      %c0_21 = arith.constant 0 : index
      %c0_22 = arith.constant 0 : index
      %21 = vector.load %arg3[%c0_21, %c0_22] : memref<16x32xf32, #tpu.memory_space<vmem>>, vector<16x32xf32>
      %c0_23 = arith.constant 0 : index
      %c0_24 = arith.constant 0 : index
      %22 = vector.load %arg4[%c0_23, %c0_24] : memref<48x16xf32, #tpu.memory_space<vmem>>, vector<48x16xf32>
      %c0_25 = arith.constant 0 : index
      %c0_26 = arith.constant 0 : index
      %23 = vector.load %arg5[%c0_25, %c0_26] : memref<1x64xf32, #tpu.memory_space<vmem>>, vector<1x64xf32>
      %c0_27 = arith.constant 0 : index
      %c0_28 = arith.constant 0 : index
      %24 = vector.load %arg1[%c0_27, %c0_28] : memref<3x16xf32, #tpu.memory_space<vmem>>, vector<3x16xf32>
      %cst = arith.constant 0.000000e+00 : f32
      %25 = vector.broadcast %cst : f32 to vector<3x16xf32>
      %26 = arith.maximumf %24, %25 : vector<3x16xf32>
      %27 = vector.extract_strided_slice %21 {offsets = [0, 0], sizes = [16, 16], strides = [1, 1]} : vector<16x32xf32> to vector<16x16xf32>
      %cst_29 = arith.constant dense<0.000000e+00> : vector<3x16xf32>
      %28 = tpu.matmul %26, %27, %cst_29 {dimension_numbers = #tpu.dot_dimension_numbers<[1], [0], [0], [1], [0, 0, 1, 1], [], []>} : vector<3x16xf32>, vector<16x16xf32>, vector<3x16xf32> -> vector<3x16xf32>
      %29 = vector.extract_strided_slice %23 {offsets = [0, 0], sizes = [1, 16], strides = [1, 1]} : vector<1x64xf32> to vector<1x16xf32>
      %30 = vector.broadcast %29 : vector<1x16xf32> to vector<3x16xf32>
      %31 = arith.addf %28, %30 : vector<3x16xf32>
      %cst_30 = arith.constant 0.000000e+00 : f32
      %32 = vector.broadcast %cst_30 : f32 to vector<3x16xf32>
      %33 = arith.maximumf %31, %32 : vector<3x16xf32>
      %c0_31 = arith.constant 0 : index
      %c0_32 = arith.constant 0 : index
      %34 = vector.load %arg2[%c0_31, %c0_32] : memref<3x16xf32, #tpu.memory_space<vmem>>, vector<3x16xf32>
      %35 = vector.extract_strided_slice %21 {offsets = [0, 16], sizes = [16, 16], strides = [1, 1]} : vector<16x32xf32> to vector<16x16xf32>
      %cst_33 = arith.constant dense<0.000000e+00> : vector<3x16xf32>
      %36 = tpu.matmul %34, %35, %cst_33 {dimension_numbers = #tpu.dot_dimension_numbers<[1], [0], [0], [1], [0, 0, 1, 1], [], []>} : vector<3x16xf32>, vector<16x16xf32>, vector<3x16xf32> -> vector<3x16xf32>
      %37 = vector.extract_strided_slice %23 {offsets = [0, 16], sizes = [1, 16], strides = [1, 1]} : vector<1x64xf32> to vector<1x16xf32>
      %38 = vector.broadcast %37 : vector<1x16xf32> to vector<3x16xf32>
      %39 = arith.addf %36, %38 : vector<3x16xf32>
      %cst_34 = arith.constant 0.000000e+00 : f32
      %40 = vector.broadcast %cst_34 : f32 to vector<3x16xf32>
      %41 = arith.maximumf %39, %40 : vector<3x16xf32>
      %42 = vector.extract_strided_slice %22 {offsets = [0, 0], sizes = [16, 16], strides = [1, 1]} : vector<48x16xf32> to vector<16x16xf32>
      %cst_35 = arith.constant dense<0.000000e+00> : vector<3x16xf32>
      %43 = tpu.matmul %33, %42, %cst_35 {dimension_numbers = #tpu.dot_dimension_numbers<[1], [0], [0], [1], [0, 0, 1, 1], [], []>} : vector<3x16xf32>, vector<16x16xf32>, vector<3x16xf32> -> vector<3x16xf32>
      %44 = vector.extract_strided_slice %22 {offsets = [16, 0], sizes = [16, 16], strides = [1, 1]} : vector<48x16xf32> to vector<16x16xf32>
      %cst_36 = arith.constant dense<0.000000e+00> : vector<3x16xf32>
      %45 = tpu.matmul %41, %44, %cst_36 {dimension_numbers = #tpu.dot_dimension_numbers<[1], [0], [0], [1], [0, 0, 1, 1], [], []>} : vector<3x16xf32>, vector<16x16xf32>, vector<3x16xf32> -> vector<3x16xf32>
      %46 = arith.addf %43, %45 : vector<3x16xf32>
      %47 = vector.extract_strided_slice %23 {offsets = [0, 32], sizes = [1, 16], strides = [1, 1]} : vector<1x64xf32> to vector<1x16xf32>
      %48 = vector.broadcast %47 : vector<1x16xf32> to vector<3x16xf32>
      %49 = arith.addf %46, %48 : vector<3x16xf32>
      %c0_37 = arith.constant 0 : index
      %c0_38 = arith.constant 0 : index
      %50 = vector.load %arg14[%c0_37, %c0_38] : memref<3x16xf32, #tpu.memory_space<vmem>>, vector<3x16xf32>
      tpu.vector_store %arg14[%c0_37, %c0_38], %49 {strides = array<i32>} : memref<3x16xf32, #tpu.memory_space<vmem>>, vector<3x16xf32>,
      %cst_39 = arith.constant dense<0.000000e+00> : vector<16xf32>
      %51 = vector.multi_reduction <add>, %41, %cst_39 [0] : vector<3x16xf32> to vector<16xf32>
      %52 = vector.shape_cast %51 : vector<16xf32> to vector<1x16xf32>
      %cst_40 = arith.constant 3.000000e+00 : f32
      %53 = vector.broadcast %cst_40 : f32 to vector<1x16xf32>
      %54 = arith.divf %52, %53 : vector<1x16xf32>
      %55 = vector.extract_strided_slice %22 {offsets = [32, 0], sizes = [16, 16], strides = [1, 1]} : vector<48x16xf32> to vector<16x16xf32>
      %cst_41 = arith.constant dense<0.000000e+00> : vector<1x16xf32>
      %56 = tpu.matmul %54, %55, %cst_41 {dimension_numbers = #tpu.dot_dimension_numbers<[1], [0], [0], [1], [0, 0, 1, 1], [], []>} : vector<1x16xf32>, vector<16x16xf32>, vector<1x16xf32> -> vector<1x16xf32>
      %57 = vector.extract_strided_slice %23 {offsets = [0, 48], sizes = [1, 16], strides = [1, 1]} : vector<1x64xf32> to vector<1x16xf32>
      %58 = arith.addf %56, %57 : vector<1x16xf32>
      %cst_42 = arith.constant 0.000000e+00 : f32
      %59 = vector.broadcast %cst_42 : f32 to vector<1x16xf32>
      %60 = arith.maximumf %58, %59 : vector<1x16xf32>
      %c0_43 = arith.constant 0 : index
      %c0_44 = arith.constant 0 : index
      %61 = vector.load %arg13[%c0_43, %c0_44] : memref<1x16xf32, #tpu.memory_space<vmem>>, vector<1x16xf32>
      tpu.vector_store %arg13[%c0_43, %c0_44], %60 {strides = array<i32>} : memref<1x16xf32, #tpu.memory_space<vmem>>, vector<1x16xf32>,
    } else {
    }
    %c0 = arith.constant 0 : index
    %c0_1 = arith.constant 0 : index
    %c0_2 = arith.constant 0 : index
    %3 = vector.load %arg6[%c0, %c0_1, %c0_2] : memref<1x16x128xf32, #tpu.memory_space<vmem>>, vector<1x16x128xf32>
    %4 = vector.shape_cast %3 : vector<1x16x128xf32> to vector<16x128xf32>
    %c0_3 = arith.constant 0 : index
    %c0_4 = arith.constant 0 : index
    %c0_5 = arith.constant 0 : index
    %5 = vector.load %arg7[%c0_3, %c0_4, %c0_5] : memref<1x16x32xf32, #tpu.memory_space<vmem>>, vector<1x16x32xf32>
    %6 = vector.shape_cast %5 : vector<1x16x32xf32> to vector<16x32xf32>
    %c0_6 = arith.constant 0 : index
    %c0_7 = arith.constant 0 : index
    %c0_8 = arith.constant 0 : index
    %7 = vector.load %arg8[%c0_6, %c0_7, %c0_8] : memref<1x32x16xf32, #tpu.memory_space<vmem>>, vector<1x32x16xf32>
    %8 = vector.shape_cast %7 : vector<1x32x16xf32> to vector<32x16xf32>
    %c0_9 = arith.constant 0 : index
    %c0_10 = arith.constant 0 : index
    %c0_11 = arith.constant 0 : index
    %9 = vector.load %arg9[%c0_9, %c0_10, %c0_11] : memref<1x2x48xf32, #tpu.memory_space<vmem>>, vector<1x2x48xf32>
    %10 = vector.shape_cast %9 : vector<1x2x48xf32> to vector<2x48xf32>
    %c0_12 = arith.constant 0 : index
    %c0_13 = arith.constant 0 : index
    %c0_14 = arith.constant 0 : index
    %11 = vector.load %arg10[%c0_12, %c0_13, %c0_14] : memref<1x9x16xf32, #tpu.memory_space<vmem>>, vector<1x9x16xf32>
    %12 = vector.shape_cast %11 : vector<1x9x16xf32> to vector<9x16xf32>
    %c0_15 = arith.constant 0 : index
    %c0_16 = arith.constant 0 : index
    %c0_17 = arith.constant 0 : index
    %13 = vector.load %arg11[%c0_15, %c0_16, %c0_17] : memref<1x1x32xf32, #tpu.memory_space<vmem>>, vector<1x1x32xf32>
    %14 = vector.shape_cast %13 : vector<1x1x32xf32> to vector<1x32xf32>
    %c1_i32 = arith.constant 1 : i32
    %15 = arith.cmpi slt, %arg0, %c1_i32 : i32
    %16 = arith.extui %15 : i1 to i32
    %c0_i32_18 = arith.constant 0 : i32
    %17 = arith.cmpi ne, %16, %c0_i32_18 : i32
    scf.if %17 {
      %c0_21 = arith.constant 0 : index
      %c0_22 = arith.constant 0 : index
      %21 = vector.load %arg14[%c0_21, %c0_22] : memref<3x16xf32, #tpu.memory_space<vmem>>, vector<3x16xf32>
      %22 = vector.extract_strided_slice %4 {offsets = [0, 0], sizes = [16, 48], strides = [1, 1]} : vector<16x128xf32> to vector<16x48xf32>
      %cst = arith.constant dense<0.000000e+00> : vector<3x48xf32>
      %23 = tpu.matmul %21, %22, %cst {dimension_numbers = #tpu.dot_dimension_numbers<[1], [0], [0], [1], [0, 0, 1, 1], [], []>} : vector<3x16xf32>, vector<16x48xf32>, vector<3x48xf32> -> vector<3x48xf32>
      %24 = vector.extract_strided_slice %10 {offsets = [0, 0], sizes = [1, 48], strides = [1, 1]} : vector<2x48xf32> to vector<1x48xf32>
      %25 = vector.broadcast %24 : vector<1x48xf32> to vector<3x48xf32>
      %26 = arith.addf %23, %25 : vector<3x48xf32>
      %27 = vector.shape_cast %26 : vector<3x48xf32> to vector<1x3x48xf32>
      %28 = vector.extract_strided_slice %27 {offsets = [0, 0, 0], sizes = [1, 3, 8], strides = [1, 1, 1]} : vector<1x3x48xf32> to vector<1x3x8xf32>
      %29 = vector.extract_strided_slice %27 {offsets = [0, 0, 16], sizes = [1, 3, 8], strides = [1, 1, 1]} : vector<1x3x48xf32> to vector<1x3x8xf32>
      %30 = vector.extract_strided_slice %27 {offsets = [0, 0, 32], sizes = [1, 3, 8], strides = [1, 1, 1]} : vector<1x3x48xf32> to vector<1x3x8xf32>
      %cst_23 = arith.constant dense<0.000000e+00> : vector<1x3x3xf32>
      %31 = tpu.matmul %28, %29, %cst_23 {dimension_numbers = #tpu.dot_dimension_numbers<[2], [2], [1], [1], [0, 0, 0, 1, 1, 1], [0], [0]>} : vector<1x3x8xf32>, vector<1x3x8xf32>, vector<1x3x3xf32> -> vector<1x3x3xf32>
      %cst_24 = arith.constant dense<0xFF800000> : vector<1x3xf32>
      %32 = vector.multi_reduction <maximumf>, %31, %cst_24 [2] : vector<1x3x3xf32> to vector<1x3xf32>
      %33 = vector.shape_cast %32 : vector<1x3xf32> to vector<1x3x1xf32>
      %34 = vector.broadcast %33 : vector<1x3x1xf32> to vector<1x3x3xf32>
      %35 = arith.subf %31, %34 : vector<1x3x3xf32>
      %36 = math.exp %35 : vector<1x3x3xf32>
      %cst_25 = arith.constant dense<0.000000e+00> : vector<1x3xf32>
      %37 = vector.multi_reduction <add>, %36, %cst_25 [2] : vector<1x3x3xf32> to vector<1x3xf32>
      %38 = vector.shape_cast %37 : vector<1x3xf32> to vector<1x3x1xf32>
      %39 = vector.broadcast %38 : vector<1x3x1xf32> to vector<1x3x3xf32>
      %40 = arith.divf %36, %39 : vector<1x3x3xf32>
      %cst_26 = arith.constant dense<0.000000e+00> : vector<1x3x8xf32>
      %41 = tpu.matmul %40, %30, %cst_26 {dimension_numbers = #tpu.dot_dimension_numbers<[2], [1], [1], [2], [0, 0, 0, 1, 1, 2], [0], [0]>} : vector<1x3x3xf32>, vector<1x3x8xf32>, vector<1x3x8xf32> -> vector<1x3x8xf32>
      %42 = vector.extract_strided_slice %27 {offsets = [0, 0, 8], sizes = [1, 3, 8], strides = [1, 1, 1]} : vector<1x3x48xf32> to vector<1x3x8xf32>
      %43 = vector.extract_strided_slice %27 {offsets = [0, 0, 24], sizes = [1, 3, 8], strides = [1, 1, 1]} : vector<1x3x48xf32> to vector<1x3x8xf32>
      %44 = vector.extract_strided_slice %27 {offsets = [0, 0, 40], sizes = [1, 3, 8], strides = [1, 1, 1]} : vector<1x3x48xf32> to vector<1x3x8xf32>
      %cst_27 = arith.constant dense<0.000000e+00> : vector<1x3x3xf32>
      %45 = tpu.matmul %42, %43, %cst_27 {dimension_numbers = #tpu.dot_dimension_numbers<[2], [2], [1], [1], [0, 0, 0, 1, 1, 1], [0], [0]>} : vector<1x3x8xf32>, vector<1x3x8xf32>, vector<1x3x3xf32> -> vector<1x3x3xf32>
      %cst_28 = arith.constant dense<0xFF800000> : vector<1x3xf32>
      %46 = vector.multi_reduction <maximumf>, %45, %cst_28 [2] : vector<1x3x3xf32> to vector<1x3xf32>
      %47 = vector.shape_cast %46 : vector<1x3xf32> to vector<1x3x1xf32>
      %48 = vector.broadcast %47 : vector<1x3x1xf32> to vector<1x3x3xf32>
      %49 = arith.subf %45, %48 : vector<1x3x3xf32>
      %50 = math.exp %49 : vector<1x3x3xf32>
      %cst_29 = arith.constant dense<0.000000e+00> : vector<1x3xf32>
      %51 = vector.multi_reduction <add>, %50, %cst_29 [2] : vector<1x3x3xf32> to vector<1x3xf32>
      %52 = vector.shape_cast %51 : vector<1x3xf32> to vector<1x3x1xf32>
      %53 = vector.broadcast %52 : vector<1x3x1xf32> to vector<1x3x3xf32>
      %54 = arith.divf %50, %53 : vector<1x3x3xf32>
      %cst_30 = arith.constant dense<0.000000e+00> : vector<1x3x8xf32>
      %55 = tpu.matmul %54, %44, %cst_30 {dimension_numbers = #tpu.dot_dimension_numbers<[2], [1], [1], [2], [0, 0, 0, 1, 1, 2], [0], [0]>} : vector<1x3x3xf32>, vector<1x3x8xf32>, vector<1x3x8xf32> -> vector<1x3x8xf32>
      %56 = tpu.concatenate %41, %55 in 2 : vector<1x3x8xf32>, vector<1x3x8xf32> -> vector<1x3x16xf32>
      %57 = vector.shape_cast %56 : vector<1x3x16xf32> to vector<3x16xf32>
      %58 = vector.extract_strided_slice %4 {offsets = [0, 48], sizes = [16, 16], strides = [1, 1]} : vector<16x128xf32> to vector<16x16xf32>
      %cst_31 = arith.constant dense<0.000000e+00> : vector<3x16xf32>
      %59 = tpu.matmul %57, %58, %cst_31 {dimension_numbers = #tpu.dot_dimension_numbers<[1], [0], [0], [1], [0, 0, 1, 1], [], []>} : vector<3x16xf32>, vector<16x16xf32>, vector<3x16xf32> -> vector<3x16xf32>
      %60 = vector.extract_strided_slice %12 {offsets = [0, 0], sizes = [1, 16], strides = [1, 1]} : vector<9x16xf32> to vector<1x16xf32>
      %61 = vector.broadcast %60 : vector<1x16xf32> to vector<3x16xf32>
      %62 = arith.addf %59, %61 : vector<3x16xf32>
      %63 = arith.addf %21, %62 : vector<3x16xf32>
      %64 = vector.extract_strided_slice %12 {offsets = [3, 0], sizes = [1, 16], strides = [1, 1]} : vector<9x16xf32> to vector<1x16xf32>
      %65 = vector.extract_strided_slice %12 {offsets = [4, 0], sizes = [1, 16], strides = [1, 1]} : vector<9x16xf32> to vector<1x16xf32>
      %cst_32 = arith.constant dense<0.000000e+00> : vector<3xf32>
      %66 = vector.multi_reduction <add>, %63, %cst_32 [1] : vector<3x16xf32> to vector<3xf32>
      %67 = vector.shape_cast %66 : vector<3xf32> to vector<3x1xf32>
      %cst_33 = arith.constant 1.600000e+01 : f32
      %68 = vector.broadcast %cst_33 : f32 to vector<3x1xf32>
      %69 = arith.divf %67, %68 : vector<3x1xf32>
      %70 = vector.broadcast %69 : vector<3x1xf32> to vector<3x16xf32>
      %71 = arith.subf %63, %70 : vector<3x16xf32>
      %72 = arith.mulf %71, %71 : vector<3x16xf32>
      %cst_34 = arith.constant dense<0.000000e+00> : vector<3xf32>
      %73 = vector.multi_reduction <add>, %72, %cst_34 [1] : vector<3x16xf32> to vector<3xf32>
      %74 = vector.shape_cast %73 : vector<3xf32> to vector<3x1xf32>
      %cst_35 = arith.constant 1.600000e+01 : f32
      %75 = vector.broadcast %cst_35 : f32 to vector<3x1xf32>
      %76 = arith.divf %74, %75 : vector<3x1xf32>
      %cst_36 = arith.constant 9.99999974E-6 : f32
      %77 = vector.broadcast %cst_36 : f32 to vector<3x1xf32>
      %78 = arith.addf %76, %77 : vector<3x1xf32>
      %79 = math.rsqrt %78 : vector<3x1xf32>
      %80 = vector.broadcast %79 : vector<3x1xf32> to vector<3x16xf32>
      %81 = arith.mulf %71, %80 : vector<3x16xf32>
      %82 = vector.broadcast %64 : vector<1x16xf32> to vector<3x16xf32>
      %83 = arith.mulf %81, %82 : vector<3x16xf32>
      %84 = vector.broadcast %65 : vector<1x16xf32> to vector<3x16xf32>
      %85 = arith.addf %83, %84 : vector<3x16xf32>
      %cst_37 = arith.constant dense<0.000000e+00> : vector<3x32xf32>
      %86 = tpu.matmul %85, %6, %cst_37 {dimension_numbers = #tpu.dot_dimension_numbers<[1], [0], [0], [1], [0, 0, 1, 1], [], []>} : vector<3x16xf32>, vector<16x32xf32>, vector<3x32xf32> -> vector<3x32xf32>
      %87 = vector.broadcast %14 : vector<1x32xf32> to vector<3x32xf32>
      %88 = arith.addf %86, %87 : vector<3x32xf32>
      %cst_38 = arith.constant 0.000000e+00 : f32
      %89 = vector.broadcast %cst_38 : f32 to vector<3x32xf32>
      %90 = arith.maximumf %88, %89 : vector<3x32xf32>
      %cst_39 = arith.constant dense<0.000000e+00> : vector<3x16xf32>
      %91 = tpu.matmul %90, %8, %cst_39 {dimension_numbers = #tpu.dot_dimension_numbers<[1], [0], [0], [1], [0, 0, 1, 1], [], []>} : vector<3x32xf32>, vector<32x16xf32>, vector<3x16xf32> -> vector<3x16xf32>
      %92 = vector.extract_strided_slice %12 {offsets = [2, 0], sizes = [1, 16], strides = [1, 1]} : vector<9x16xf32> to vector<1x16xf32>
      %93 = vector.broadcast %92 : vector<1x16xf32> to vector<3x16xf32>
      %94 = arith.addf %91, %93 : vector<3x16xf32>
      %95 = arith.addf %85, %94 : vector<3x16xf32>
      %96 = vector.extract_strided_slice %12 {offsets = [5, 0], sizes = [1, 16], strides = [1, 1]} : vector<9x16xf32> to vector<1x16xf32>
      %97 = vector.extract_strided_slice %12 {offsets = [6, 0], sizes = [1, 16], strides = [1, 1]} : vector<9x16xf32> to vector<1x16xf32>
      %cst_40 = arith.constant dense<0.000000e+00> : vector<3xf32>
      %98 = vector.multi_reduction <add>, %95, %cst_40 [1] : vector<3x16xf32> to vector<3xf32>
      %99 = vector.shape_cast %98 : vector<3xf32> to vector<3x1xf32>
      %cst_41 = arith.constant 1.600000e+01 : f32
      %100 = vector.broadcast %cst_41 : f32 to vector<3x1xf32>
      %101 = arith.divf %99, %100 : vector<3x1xf32>
      %102 = vector.broadcast %101 : vector<3x1xf32> to vector<3x16xf32>
      %103 = arith.subf %95, %102 : vector<3x16xf32>
      %104 = arith.mulf %103, %103 : vector<3x16xf32>
      %cst_42 = arith.constant dense<0.000000e+00> : vector<3xf32>
      %105 = vector.multi_reduction <add>, %104, %cst_42 [1] : vector<3x16xf32> to vector<3xf32>
      %106 = vector.shape_cast %105 : vector<3xf32> to vector<3x1xf32>
      %cst_43 = arith.constant 1.600000e+01 : f32
      %107 = vector.broadcast %cst_43 : f32 to vector<3x1xf32>
      %108 = arith.divf %106, %107 : vector<3x1xf32>
      %cst_44 = arith.constant 9.99999974E-6 : f32
      %109 = vector.broadcast %cst_44 : f32 to vector<3x1xf32>
      %110 = arith.addf %108, %109 : vector<3x1xf32>
      %111 = math.rsqrt %110 : vector<3x1xf32>
      %112 = vector.broadcast %111 : vector<3x1xf32> to vector<3x16xf32>
      %113 = arith.mulf %103, %112 : vector<3x16xf32>
      %114 = vector.broadcast %96 : vector<1x16xf32> to vector<3x16xf32>
      %115 = arith.mulf %113, %114 : vector<3x16xf32>
      %116 = vector.broadcast %97 : vector<1x16xf32> to vector<3x16xf32>
      %117 = arith.addf %115, %116 : vector<3x16xf32>
      %c0_i32_45 = arith.constant 0 : i32
      %118 = arith.cmpi eq, %arg0, %c0_i32_45 : i32
      %119 = arith.extui %118 : i1 to i32
      %c0_i32_46 = arith.constant 0 : i32
      %120 = arith.cmpi ne, %119, %c0_i32_46 : i32
      scf.if %120 {
        %c0_49 = arith.constant 0 : index
        %c0_50 = arith.constant 0 : index
        %124 = vector.load %arg12[%c0_49, %c0_50] : memref<4x16xf32, #tpu.memory_space<vmem>>, vector<1x16xf32>
        %c1 = arith.constant 1 : index
        %c0_51 = arith.constant 0 : index
        %125 = vector.load %arg12[%c1, %c0_51] : memref<4x16xf32, #tpu.memory_space<vmem>>, vector<1x16xf32>
        %cst_52 = arith.constant dense<0.000000e+00> : vector<3xf32>
        %126 = vector.multi_reduction <add>, %117, %cst_52 [1] : vector<3x16xf32> to vector<3xf32>
        %127 = vector.shape_cast %126 : vector<3xf32> to vector<3x1xf32>
        %cst_53 = arith.constant 1.600000e+01 : f32
        %128 = vector.broadcast %cst_53 : f32 to vector<3x1xf32>
        %129 = arith.divf %127, %128 : vector<3x1xf32>
        %130 = vector.broadcast %129 : vector<3x1xf32> to vector<3x16xf32>
        %131 = arith.subf %117, %130 : vector<3x16xf32>
        %132 = arith.mulf %131, %131 : vector<3x16xf32>
        %cst_54 = arith.constant dense<0.000000e+00> : vector<3xf32>
        %133 = vector.multi_reduction <add>, %132, %cst_54 [1] : vector<3x16xf32> to vector<3xf32>
        %134 = vector.shape_cast %133 : vector<3xf32> to vector<3x1xf32>
        %cst_55 = arith.constant 1.600000e+01 : f32
        %135 = vector.broadcast %cst_55 : f32 to vector<3x1xf32>
        %136 = arith.divf %134, %135 : vector<3x1xf32>
        %cst_56 = arith.constant 9.99999974E-6 : f32
        %137 = vector.broadcast %cst_56 : f32 to vector<3x1xf32>
        %138 = arith.addf %136, %137 : vector<3x1xf32>
        %139 = math.rsqrt %138 : vector<3x1xf32>
        %140 = vector.broadcast %139 : vector<3x1xf32> to vector<3x16xf32>
        %141 = arith.mulf %131, %140 : vector<3x16xf32>
        %142 = vector.broadcast %124 : vector<1x16xf32> to vector<3x16xf32>
        %143 = arith.mulf %141, %142 : vector<3x16xf32>
        %144 = vector.broadcast %125 : vector<1x16xf32> to vector<3x16xf32>
        %145 = arith.addf %143, %144 : vector<3x16xf32>
        %c0_57 = arith.constant 0 : index
        %c0_58 = arith.constant 0 : index
        %146 = vector.load %arg14[%c0_57, %c0_58] : memref<3x16xf32, #tpu.memory_space<vmem>>, vector<3x16xf32>
        tpu.vector_store %arg14[%c0_57, %c0_58], %145 {strides = array<i32>} : memref<3x16xf32, #tpu.memory_space<vmem>>, vector<3x16xf32>,
      } else {
      }
      %c0_i32_47 = arith.constant 0 : i32
      %121 = arith.cmpi ne, %arg0, %c0_i32_47 : i32
      %122 = arith.extui %121 : i1 to i32
      %c0_i32_48 = arith.constant 0 : i32
      %123 = arith.cmpi ne, %122, %c0_i32_48 : i32
      scf.if %123 {
        %c0_49 = arith.constant 0 : index
        %c0_50 = arith.constant 0 : index
        %124 = vector.load %arg14[%c0_49, %c0_50] : memref<3x16xf32, #tpu.memory_space<vmem>>, vector<3x16xf32>
        tpu.vector_store %arg14[%c0_49, %c0_50], %117 {strides = array<i32>} : memref<3x16xf32, #tpu.memory_space<vmem>>, vector<3x16xf32>,
      } else {
      }
    } else {
    }
    %c1_i32_19 = arith.constant 1 : i32
    %18 = arith.cmpi sge, %arg0, %c1_i32_19 : i32
    %19 = arith.extui %18 : i1 to i32
    %c0_i32_20 = arith.constant 0 : i32
    %20 = arith.cmpi ne, %19, %c0_i32_20 : i32
    scf.if %20 {
      %c0_21 = arith.constant 0 : index
      %c0_22 = arith.constant 0 : index
      %21 = vector.load %arg13[%c0_21, %c0_22] : memref<1x16xf32, #tpu.memory_space<vmem>>, vector<1x16xf32>
      %c0_23 = arith.constant 0 : index
      %c0_24 = arith.constant 0 : index
      %22 = vector.load %arg14[%c0_23, %c0_24] : memref<3x16xf32, #tpu.memory_space<vmem>>, vector<3x16xf32>
      %23 = vector.extract_strided_slice %4 {offsets = [0, 32], sizes = [16, 16], strides = [1, 1]} : vector<16x128xf32> to vector<16x16xf32>
      %cst = arith.constant dense<0.000000e+00> : vector<1x16xf32>
      %24 = tpu.matmul %21, %23, %cst {dimension_numbers = #tpu.dot_dimension_numbers<[1], [0], [0], [1], [0, 0, 1, 1], [], []>} : vector<1x16xf32>, vector<16x16xf32>, vector<1x16xf32> -> vector<1x16xf32>
      %25 = vector.extract_strided_slice %10 {offsets = [0, 32], sizes = [1, 16], strides = [1, 1]} : vector<2x48xf32> to vector<1x16xf32>
      %26 = arith.addf %24, %25 : vector<1x16xf32>
      %27 = vector.extract_strided_slice %4 {offsets = [0, 48], sizes = [16, 16], strides = [1, 1]} : vector<16x128xf32> to vector<16x16xf32>
      %cst_25 = arith.constant dense<0.000000e+00> : vector<1x16xf32>
      %28 = tpu.matmul %26, %27, %cst_25 {dimension_numbers = #tpu.dot_dimension_numbers<[1], [0], [0], [1], [0, 0, 1, 1], [], []>} : vector<1x16xf32>, vector<16x16xf32>, vector<1x16xf32> -> vector<1x16xf32>
      %29 = vector.extract_strided_slice %12 {offsets = [0, 0], sizes = [1, 16], strides = [1, 1]} : vector<9x16xf32> to vector<1x16xf32>
      %30 = arith.addf %28, %29 : vector<1x16xf32>
      %31 = arith.addf %21, %30 : vector<1x16xf32>
      %32 = vector.extract_strided_slice %12 {offsets = [3, 0], sizes = [1, 16], strides = [1, 1]} : vector<9x16xf32> to vector<1x16xf32>
      %33 = vector.extract_strided_slice %12 {offsets = [4, 0], sizes = [1, 16], strides = [1, 1]} : vector<9x16xf32> to vector<1x16xf32>
      %cst_26 = arith.constant dense<0.000000e+00> : vector<1xf32>
      %34 = vector.multi_reduction <add>, %31, %cst_26 [1] : vector<1x16xf32> to vector<1xf32>
      %35 = vector.shape_cast %34 : vector<1xf32> to vector<1x1xf32>
      %cst_27 = arith.constant 1.600000e+01 : f32
      %36 = vector.broadcast %cst_27 : f32 to vector<1x1xf32>
      %37 = arith.divf %35, %36 : vector<1x1xf32>
      %38 = vector.broadcast %37 : vector<1x1xf32> to vector<1x16xf32>
      %39 = arith.subf %31, %38 : vector<1x16xf32>
      %40 = arith.mulf %39, %39 : vector<1x16xf32>
      %cst_28 = arith.constant dense<0.000000e+00> : vector<1xf32>
      %41 = vector.multi_reduction <add>, %40, %cst_28 [1] : vector<1x16xf32> to vector<1xf32>
      %42 = vector.shape_cast %41 : vector<1xf32> to vector<1x1xf32>
      %cst_29 = arith.constant 1.600000e+01 : f32
      %43 = vector.broadcast %cst_29 : f32 to vector<1x1xf32>
      %44 = arith.divf %42, %43 : vector<1x1xf32>
      %cst_30 = arith.constant 9.99999974E-6 : f32
      %45 = vector.broadcast %cst_30 : f32 to vector<1x1xf32>
      %46 = arith.addf %44, %45 : vector<1x1xf32>
      %47 = math.rsqrt %46 : vector<1x1xf32>
      %48 = vector.broadcast %47 : vector<1x1xf32> to vector<1x16xf32>
      %49 = arith.mulf %39, %48 : vector<1x16xf32>
      %50 = arith.mulf %49, %32 : vector<1x16xf32>
      %51 = arith.addf %50, %33 : vector<1x16xf32>
      %52 = vector.extract_strided_slice %4 {offsets = [0, 64], sizes = [16, 16], strides = [1, 1]} : vector<16x128xf32> to vector<16x16xf32>
      %cst_31 = arith.constant dense<0.000000e+00> : vector<1x16xf32>
      %53 = tpu.matmul %51, %52, %cst_31 {dimension_numbers = #tpu.dot_dimension_numbers<[1], [0], [0], [1], [0, 0, 1, 1], [], []>} : vector<1x16xf32>, vector<16x16xf32>, vector<1x16xf32> -> vector<1x16xf32>
      %54 = vector.extract_strided_slice %10 {offsets = [1, 0], sizes = [1, 16], strides = [1, 1]} : vector<2x48xf32> to vector<1x16xf32>
      %55 = arith.addf %53, %54 : vector<1x16xf32>
      %56 = vector.extract_strided_slice %4 {offsets = [0, 80], sizes = [16, 32], strides = [1, 1]} : vector<16x128xf32> to vector<16x32xf32>
      %cst_32 = arith.constant dense<0.000000e+00> : vector<3x32xf32>
      %57 = tpu.matmul %22, %56, %cst_32 {dimension_numbers = #tpu.dot_dimension_numbers<[1], [0], [0], [1], [0, 0, 1, 1], [], []>} : vector<3x16xf32>, vector<16x32xf32>, vector<3x32xf32> -> vector<3x32xf32>
      %58 = vector.extract_strided_slice %10 {offsets = [1, 16], sizes = [1, 32], strides = [1, 1]} : vector<2x48xf32> to vector<1x32xf32>
      %59 = vector.broadcast %58 : vector<1x32xf32> to vector<3x32xf32>
      %60 = arith.addf %57, %59 : vector<3x32xf32>
      %61 = vector.shape_cast %55 : vector<1x16xf32> to vector<1x1x16xf32>
      %62 = vector.shape_cast %60 : vector<3x32xf32> to vector<1x3x32xf32>
      %63 = vector.extract_strided_slice %61 {offsets = [0, 0, 0], sizes = [1, 1, 8], strides = [1, 1, 1]} : vector<1x1x16xf32> to vector<1x1x8xf32>
      %64 = vector.extract_strided_slice %62 {offsets = [0, 0, 0], sizes = [1, 3, 8], strides = [1, 1, 1]} : vector<1x3x32xf32> to vector<1x3x8xf32>
      %65 = vector.extract_strided_slice %62 {offsets = [0, 0, 16], sizes = [1, 3, 8], strides = [1, 1, 1]} : vector<1x3x32xf32> to vector<1x3x8xf32>
      %cst_33 = arith.constant dense<0.000000e+00> : vector<1x1x3xf32>
      %66 = tpu.matmul %63, %64, %cst_33 {dimension_numbers = #tpu.dot_dimension_numbers<[2], [2], [1], [1], [0, 0, 0, 1, 1, 1], [0], [0]>} : vector<1x1x8xf32>, vector<1x3x8xf32>, vector<1x1x3xf32> -> vector<1x1x3xf32>
      %cst_34 = arith.constant dense<0xFF800000> : vector<1x1xf32>
      %67 = vector.multi_reduction <maximumf>, %66, %cst_34 [2] : vector<1x1x3xf32> to vector<1x1xf32>
      %68 = vector.shape_cast %67 : vector<1x1xf32> to vector<1x1x1xf32>
      %69 = vector.broadcast %68 : vector<1x1x1xf32> to vector<1x1x3xf32>
      %70 = arith.subf %66, %69 : vector<1x1x3xf32>
      %71 = math.exp %70 : vector<1x1x3xf32>
      %cst_35 = arith.constant dense<0.000000e+00> : vector<1x1xf32>
      %72 = vector.multi_reduction <add>, %71, %cst_35 [2] : vector<1x1x3xf32> to vector<1x1xf32>
      %73 = vector.shape_cast %72 : vector<1x1xf32> to vector<1x1x1xf32>
      %74 = vector.broadcast %73 : vector<1x1x1xf32> to vector<1x1x3xf32>
      %75 = arith.divf %71, %74 : vector<1x1x3xf32>
      %cst_36 = arith.constant dense<0.000000e+00> : vector<1x1x8xf32>
      %76 = tpu.matmul %75, %65, %cst_36 {dimension_numbers = #tpu.dot_dimension_numbers<[2], [1], [1], [2], [0, 0, 0, 1, 1, 2], [0], [0]>} : vector<1x1x3xf32>, vector<1x3x8xf32>, vector<1x1x8xf32> -> vector<1x1x8xf32>
      %77 = vector.extract_strided_slice %61 {offsets = [0, 0, 8], sizes = [1, 1, 8], strides = [1, 1, 1]} : vector<1x1x16xf32> to vector<1x1x8xf32>
      %78 = vector.extract_strided_slice %62 {offsets = [0, 0, 8], sizes = [1, 3, 8], strides = [1, 1, 1]} : vector<1x3x32xf32> to vector<1x3x8xf32>
      %79 = vector.extract_strided_slice %62 {offsets = [0, 0, 24], sizes = [1, 3, 8], strides = [1, 1, 1]} : vector<1x3x32xf32> to vector<1x3x8xf32>
      %cst_37 = arith.constant dense<0.000000e+00> : vector<1x1x3xf32>
      %80 = tpu.matmul %77, %78, %cst_37 {dimension_numbers = #tpu.dot_dimension_numbers<[2], [2], [1], [1], [0, 0, 0, 1, 1, 1], [0], [0]>} : vector<1x1x8xf32>, vector<1x3x8xf32>, vector<1x1x3xf32> -> vector<1x1x3xf32>
      %cst_38 = arith.constant dense<0xFF800000> : vector<1x1xf32>
      %81 = vector.multi_reduction <maximumf>, %80, %cst_38 [2] : vector<1x1x3xf32> to vector<1x1xf32>
      %82 = vector.shape_cast %81 : vector<1x1xf32> to vector<1x1x1xf32>
      %83 = vector.broadcast %82 : vector<1x1x1xf32> to vector<1x1x3xf32>
      %84 = arith.subf %80, %83 : vector<1x1x3xf32>
      %85 = math.exp %84 : vector<1x1x3xf32>
      %cst_39 = arith.constant dense<0.000000e+00> : vector<1x1xf32>
      %86 = vector.multi_reduction <add>, %85, %cst_39 [2] : vector<1x1x3xf32> to vector<1x1xf32>
      %87 = vector.shape_cast %86 : vector<1x1xf32> to vector<1x1x1xf32>
      %88 = vector.broadcast %87 : vector<1x1x1xf32> to vector<1x1x3xf32>
      %89 = arith.divf %85, %88 : vector<1x1x3xf32>
      %cst_40 = arith.constant dense<0.000000e+00> : vector<1x1x8xf32>
      %90 = tpu.matmul %89, %79, %cst_40 {dimension_numbers = #tpu.dot_dimension_numbers<[2], [1], [1], [2], [0, 0, 0, 1, 1, 2], [0], [0]>} : vector<1x1x3xf32>, vector<1x3x8xf32>, vector<1x1x8xf32> -> vector<1x1x8xf32>
      %91 = tpu.concatenate %76, %90 in 2 : vector<1x1x8xf32>, vector<1x1x8xf32> -> vector<1x1x16xf32>
      %92 = vector.shape_cast %91 : vector<1x1x16xf32> to vector<1x16xf32>
      %93 = vector.extract_strided_slice %4 {offsets = [0, 112], sizes = [16, 16], strides = [1, 1]} : vector<16x128xf32> to vector<16x16xf32>
      %cst_41 = arith.constant dense<0.000000e+00> : vector<1x16xf32>
      %94 = tpu.matmul %92, %93, %cst_41 {dimension_numbers = #tpu.dot_dimension_numbers<[1], [0], [0], [1], [0, 0, 1, 1], [], []>} : vector<1x16xf32>, vector<16x16xf32>, vector<1x16xf32> -> vector<1x16xf32>
      %95 = vector.extract_strided_slice %12 {offsets = [1, 0], sizes = [1, 16], strides = [1, 1]} : vector<9x16xf32> to vector<1x16xf32>
      %96 = arith.addf %94, %95 : vector<1x16xf32>
      %97 = arith.addf %51, %96 : vector<1x16xf32>
      %98 = vector.extract_strided_slice %12 {offsets = [5, 0], sizes = [1, 16], strides = [1, 1]} : vector<9x16xf32> to vector<1x16xf32>
      %99 = vector.extract_strided_slice %12 {offsets = [6, 0], sizes = [1, 16], strides = [1, 1]} : vector<9x16xf32> to vector<1x16xf32>
      %cst_42 = arith.constant dense<0.000000e+00> : vector<1xf32>
      %100 = vector.multi_reduction <add>, %97, %cst_42 [1] : vector<1x16xf32> to vector<1xf32>
      %101 = vector.shape_cast %100 : vector<1xf32> to vector<1x1xf32>
      %cst_43 = arith.constant 1.600000e+01 : f32
      %102 = vector.broadcast %cst_43 : f32 to vector<1x1xf32>
      %103 = arith.divf %101, %102 : vector<1x1xf32>
      %104 = vector.broadcast %103 : vector<1x1xf32> to vector<1x16xf32>
      %105 = arith.subf %97, %104 : vector<1x16xf32>
      %106 = arith.mulf %105, %105 : vector<1x16xf32>
      %cst_44 = arith.constant dense<0.000000e+00> : vector<1xf32>
      %107 = vector.multi_reduction <add>, %106, %cst_44 [1] : vector<1x16xf32> to vector<1xf32>
      %108 = vector.shape_cast %107 : vector<1xf32> to vector<1x1xf32>
      %cst_45 = arith.constant 1.600000e+01 : f32
      %109 = vector.broadcast %cst_45 : f32 to vector<1x1xf32>
      %110 = arith.divf %108, %109 : vector<1x1xf32>
      %cst_46 = arith.constant 9.99999974E-6 : f32
      %111 = vector.broadcast %cst_46 : f32 to vector<1x1xf32>
      %112 = arith.addf %110, %111 : vector<1x1xf32>
      %113 = math.rsqrt %112 : vector<1x1xf32>
      %114 = vector.broadcast %113 : vector<1x1xf32> to vector<1x16xf32>
      %115 = arith.mulf %105, %114 : vector<1x16xf32>
      %116 = arith.mulf %115, %98 : vector<1x16xf32>
      %117 = arith.addf %116, %99 : vector<1x16xf32>
      %cst_47 = arith.constant dense<0.000000e+00> : vector<1x32xf32>
      %118 = tpu.matmul %117, %6, %cst_47 {dimension_numbers = #tpu.dot_dimension_numbers<[1], [0], [0], [1], [0, 0, 1, 1], [], []>} : vector<1x16xf32>, vector<16x32xf32>, vector<1x32xf32> -> vector<1x32xf32>
      %119 = arith.addf %118, %14 : vector<1x32xf32>
      %cst_48 = arith.constant 0.000000e+00 : f32
      %120 = vector.broadcast %cst_48 : f32 to vector<1x32xf32>
      %121 = arith.maximumf %119, %120 : vector<1x32xf32>
      %cst_49 = arith.constant dense<0.000000e+00> : vector<1x16xf32>
      %122 = tpu.matmul %121, %8, %cst_49 {dimension_numbers = #tpu.dot_dimension_numbers<[1], [0], [0], [1], [0, 0, 1, 1], [], []>} : vector<1x32xf32>, vector<32x16xf32>, vector<1x16xf32> -> vector<1x16xf32>
      %123 = vector.extract_strided_slice %12 {offsets = [2, 0], sizes = [1, 16], strides = [1, 1]} : vector<9x16xf32> to vector<1x16xf32>
      %124 = arith.addf %122, %123 : vector<1x16xf32>
      %125 = arith.addf %117, %124 : vector<1x16xf32>
      %126 = vector.extract_strided_slice %12 {offsets = [7, 0], sizes = [1, 16], strides = [1, 1]} : vector<9x16xf32> to vector<1x16xf32>
      %127 = vector.extract_strided_slice %12 {offsets = [8, 0], sizes = [1, 16], strides = [1, 1]} : vector<9x16xf32> to vector<1x16xf32>
      %cst_50 = arith.constant dense<0.000000e+00> : vector<1xf32>
      %128 = vector.multi_reduction <add>, %125, %cst_50 [1] : vector<1x16xf32> to vector<1xf32>
      %129 = vector.shape_cast %128 : vector<1xf32> to vector<1x1xf32>
      %cst_51 = arith.constant 1.600000e+01 : f32
      %130 = vector.broadcast %cst_51 : f32 to vector<1x1xf32>
      %131 = arith.divf %129, %130 : vector<1x1xf32>
      %132 = vector.broadcast %131 : vector<1x1xf32> to vector<1x16xf32>
      %133 = arith.subf %125, %132 : vector<1x16xf32>
      %134 = arith.mulf %133, %133 : vector<1x16xf32>
      %cst_52 = arith.constant dense<0.000000e+00> : vector<1xf32>
      %135 = vector.multi_reduction <add>, %134, %cst_52 [1] : vector<1x16xf32> to vector<1xf32>
      %136 = vector.shape_cast %135 : vector<1xf32> to vector<1x1xf32>
      %cst_53 = arith.constant 1.600000e+01 : f32
      %137 = vector.broadcast %cst_53 : f32 to vector<1x1xf32>
      %138 = arith.divf %136, %137 : vector<1x1xf32>
      %cst_54 = arith.constant 9.99999974E-6 : f32
      %139 = vector.broadcast %cst_54 : f32 to vector<1x1xf32>
      %140 = arith.addf %138, %139 : vector<1x1xf32>
      %141 = math.rsqrt %140 : vector<1x1xf32>
      %142 = vector.broadcast %141 : vector<1x1xf32> to vector<1x16xf32>
      %143 = arith.mulf %133, %142 : vector<1x16xf32>
      %144 = arith.mulf %143, %126 : vector<1x16xf32>
      %145 = arith.addf %144, %127 : vector<1x16xf32>
      %c1_i32_55 = arith.constant 1 : i32
      %146 = arith.cmpi eq, %arg0, %c1_i32_55 : i32
      %147 = arith.extui %146 : i1 to i32
      %c0_i32_56 = arith.constant 0 : i32
      %148 = arith.cmpi ne, %147, %c0_i32_56 : i32
      scf.if %148 {
        %c2 = arith.constant 2 : index
        %c0_59 = arith.constant 0 : index
        %152 = vector.load %arg12[%c2, %c0_59] : memref<4x16xf32, #tpu.memory_space<vmem>>, vector<1x16xf32>
        %c3 = arith.constant 3 : index
        %c0_60 = arith.constant 0 : index
        %153 = vector.load %arg12[%c3, %c0_60] : memref<4x16xf32, #tpu.memory_space<vmem>>, vector<1x16xf32>
        %cst_61 = arith.constant dense<0.000000e+00> : vector<1xf32>
        %154 = vector.multi_reduction <add>, %145, %cst_61 [1] : vector<1x16xf32> to vector<1xf32>
        %155 = vector.shape_cast %154 : vector<1xf32> to vector<1x1xf32>
        %cst_62 = arith.constant 1.600000e+01 : f32
        %156 = vector.broadcast %cst_62 : f32 to vector<1x1xf32>
        %157 = arith.divf %155, %156 : vector<1x1xf32>
        %158 = vector.broadcast %157 : vector<1x1xf32> to vector<1x16xf32>
        %159 = arith.subf %145, %158 : vector<1x16xf32>
        %160 = arith.mulf %159, %159 : vector<1x16xf32>
        %cst_63 = arith.constant dense<0.000000e+00> : vector<1xf32>
        %161 = vector.multi_reduction <add>, %160, %cst_63 [1] : vector<1x16xf32> to vector<1xf32>
        %162 = vector.shape_cast %161 : vector<1xf32> to vector<1x1xf32>
        %cst_64 = arith.constant 1.600000e+01 : f32
        %163 = vector.broadcast %cst_64 : f32 to vector<1x1xf32>
        %164 = arith.divf %162, %163 : vector<1x1xf32>
        %cst_65 = arith.constant 9.99999974E-6 : f32
        %165 = vector.broadcast %cst_65 : f32 to vector<1x1xf32>
        %166 = arith.addf %164, %165 : vector<1x1xf32>
        %167 = math.rsqrt %166 : vector<1x1xf32>
        %168 = vector.broadcast %167 : vector<1x1xf32> to vector<1x16xf32>
        %169 = arith.mulf %159, %168 : vector<1x16xf32>
        %170 = arith.mulf %169, %152 : vector<1x16xf32>
        %171 = arith.addf %170, %153 : vector<1x16xf32>
        %c0_66 = arith.constant 0 : index
        %c0_67 = arith.constant 0 : index
        %172 = vector.load %arg13[%c0_66, %c0_67] : memref<1x16xf32, #tpu.memory_space<vmem>>, vector<1x16xf32>
        tpu.vector_store %arg13[%c0_66, %c0_67], %171 {strides = array<i32>} : memref<1x16xf32, #tpu.memory_space<vmem>>, vector<1x16xf32>,
      } else {
      }
      %c1_i32_57 = arith.constant 1 : i32
      %149 = arith.cmpi ne, %arg0, %c1_i32_57 : i32
      %150 = arith.extui %149 : i1 to i32
      %c0_i32_58 = arith.constant 0 : i32
      %151 = arith.cmpi ne, %150, %c0_i32_58 : i32
      scf.if %151 {
        %c0_59 = arith.constant 0 : index
        %c0_60 = arith.constant 0 : index
        %152 = vector.load %arg13[%c0_59, %c0_60] : memref<1x16xf32, #tpu.memory_space<vmem>>, vector<1x16xf32>
        tpu.vector_store %arg13[%c0_59, %c0_60], %145 {strides = array<i32>} : memref<1x16xf32, #tpu.memory_space<vmem>>, vector<1x16xf32>,
      } else {
      }
    } else {
    }
    return
  }
  func.func @transform_0(%arg0: i32) -> (i32, i32) {
    %c0_i32 = arith.constant 0 : i32
    %c0_i32_0 = arith.constant 0 : i32
    %c0_i32_1 = arith.constant 0 : i32
    return %c0_i32, %c0_i32_0 : i32, i32
  }
  func.func @transform_1(%arg0: i32) -> (i32, i32) {
    %c0_i32 = arith.constant 0 : i32
    %c0_i32_0 = arith.constant 0 : i32
    %c0_i32_1 = arith.constant 0 : i32
    return %c0_i32, %c0_i32_0 : i32, i32
  }
  func.func @transform_2(%arg0: i32) -> (i32, i32) {
    %c0_i32 = arith.constant 0 : i32
    %c0_i32_0 = arith.constant 0 : i32
    %c0_i32_1 = arith.constant 0 : i32
    return %c0_i32, %c0_i32_0 : i32, i32
  }
  func.func @transform_3(%arg0: i32) -> (i32, i32) {
    %c0_i32 = arith.constant 0 : i32
    %c0_i32_0 = arith.constant 0 : i32
    %c0_i32_1 = arith.constant 0 : i32
    return %c0_i32, %c0_i32_0 : i32, i32
  }
  func.func @transform_4(%arg0: i32) -> (i32, i32) {
    %c0_i32 = arith.constant 0 : i32
    %c0_i32_0 = arith.constant 0 : i32
    %c0_i32_1 = arith.constant 0 : i32
    return %c0_i32, %c0_i32_0 : i32, i32
  }
  func.func @transform_5(%arg0: i32) -> (i32, i32, i32) {
    %c0_i32 = arith.constant 0 : i32
    %c0_i32_0 = arith.constant 0 : i32
    %c0_i32_1 = arith.constant 0 : i32
    return %arg0, %c0_i32, %c0_i32_0 : i32, i32, i32
  }
  func.func @transform_6(%arg0: i32) -> (i32, i32, i32) {
    %c0_i32 = arith.constant 0 : i32
    %c0_i32_0 = arith.constant 0 : i32
    %c0_i32_1 = arith.constant 0 : i32
    return %arg0, %c0_i32, %c0_i32_0 : i32, i32, i32
  }
  func.func @transform_7(%arg0: i32) -> (i32, i32, i32) {
    %c0_i32 = arith.constant 0 : i32
    %c0_i32_0 = arith.constant 0 : i32
    %c0_i32_1 = arith.constant 0 : i32
    return %arg0, %c0_i32, %c0_i32_0 : i32, i32, i32
  }
  func.func @transform_8(%arg0: i32) -> (i32, i32, i32) {
    %c0_i32 = arith.constant 0 : i32
    %c0_i32_0 = arith.constant 0 : i32
    %c0_i32_1 = arith.constant 0 : i32
    return %arg0, %c0_i32, %c0_i32_0 : i32, i32, i32
  }
  func.func @transform_9(%arg0: i32) -> (i32, i32, i32) {
    %c0_i32 = arith.constant 0 : i32
    %c0_i32_0 = arith.constant 0 : i32
    %c0_i32_1 = arith.constant 0 : i32
    return %arg0, %c0_i32, %c0_i32_0 : i32, i32, i32
  }
  func.func @transform_10(%arg0: i32) -> (i32, i32, i32) {
    %c0_i32 = arith.constant 0 : i32
    %c0_i32_0 = arith.constant 0 : i32
    %c0_i32_1 = arith.constant 0 : i32
    return %arg0, %c0_i32, %c0_i32_0 : i32, i32, i32
  }
  func.func @transform_11(%arg0: i32) -> (i32, i32) {
    %c0_i32 = arith.constant 0 : i32
    %c0_i32_0 = arith.constant 0 : i32
    %c0_i32_1 = arith.constant 0 : i32
    return %c0_i32, %c0_i32_0 : i32, i32
  }
  func.func @transform_12(%arg0: i32) -> (i32, i32) {
    %c0_i32 = arith.constant 0 : i32
    %c0_i32_0 = arith.constant 0 : i32
    %c0_i32_1 = arith.constant 0 : i32
    return %c0_i32, %c0_i32_0 : i32, i32
  }
}

module attributes {stable_mosaic.version = 11 : i64} {
  func.func @_col_stage_kernel(%arg0: i32, %arg1: memref<48x8xf32, #tpu.memory_space<vmem>>, %arg2: memref<12x8xf32, #tpu.memory_space<vmem>>, %arg3: memref<8x32xf32, #tpu.memory_space<vmem>>, %arg4: memref<1x32xf32, #tpu.memory_space<vmem>>, %arg5: memref<1x16x128xf32, #tpu.memory_space<vmem>>, %arg6: memref<1x16x32xf32, #tpu.memory_space<vmem>>, %arg7: memref<1x32x16xf32, #tpu.memory_space<vmem>>, %arg8: memref<1x2x48xf32, #tpu.memory_space<vmem>>, %arg9: memref<1x9x16xf32, #tpu.memory_space<vmem>>, %arg10: memref<1x1x32xf32, #tpu.memory_space<vmem>>, %arg11: memref<4x16xf32, #tpu.memory_space<vmem>>, %arg12: memref<12x16xf32, #tpu.memory_space<vmem>>, %arg13: memref<12x16xf32, #tpu.memory_space<vmem>>, %arg14: memref<48x16xf32, #tpu.memory_space<vmem>>) attributes {dimension_semantics = [#tpu.dimension_semantics<arbitrary>], iteration_bounds = array<i64: 3>, scalar_prefetch = 0 : i64, scratch_operands = 1 : i64, tpu.core_type = #tpu.core_type<tc>, window_params = [{pipeline_mode = #tpu.pipeline_mode<synchronous>, transform_indices = @transform_0, window_bounds = array<i64: 48, 8>}, {pipeline_mode = #tpu.pipeline_mode<synchronous>, transform_indices = @transform_1, window_bounds = array<i64: 12, 8>}, {pipeline_mode = #tpu.pipeline_mode<synchronous>, transform_indices = @transform_2, window_bounds = array<i64: 8, 32>}, {pipeline_mode = #tpu.pipeline_mode<synchronous>, transform_indices = @transform_3, window_bounds = array<i64: 1, 32>}, {transform_indices = @transform_4, window_bounds = array<i64: 1, 16, 128>}, {transform_indices = @transform_5, window_bounds = array<i64: 1, 16, 32>}, {transform_indices = @transform_6, window_bounds = array<i64: 1, 32, 16>}, {transform_indices = @transform_7, window_bounds = array<i64: 1, 2, 48>}, {transform_indices = @transform_8, window_bounds = array<i64: 1, 9, 16>}, {transform_indices = @transform_9, window_bounds = array<i64: 1, 1, 32>}, {pipeline_mode = #tpu.pipeline_mode<synchronous>, transform_indices = @transform_10, window_bounds = array<i64: 4, 16>}, {pipeline_mode = #tpu.pipeline_mode<synchronous>, transform_indices = @transform_11, window_bounds = array<i64: 12, 16>}, {pipeline_mode = #tpu.pipeline_mode<synchronous>, transform_indices = @transform_12, window_bounds = array<i64: 12, 16>}]} {
    %c0_i32 = arith.constant 0 : i32
    %0 = arith.cmpi eq, %arg0, %c0_i32 : i32
    %1 = arith.extui %0 : i1 to i32
    %c0_i32_0 = arith.constant 0 : i32
    %2 = arith.cmpi ne, %1, %c0_i32_0 : i32
    scf.if %2 {
      %c0_21 = arith.constant 0 : index
      %c0_22 = arith.constant 0 : index
      %21 = vector.load %arg3[%c0_21, %c0_22] : memref<8x32xf32, #tpu.memory_space<vmem>>, vector<8x32xf32>
      %c0_23 = arith.constant 0 : index
      %c0_24 = arith.constant 0 : index
      %22 = vector.load %arg4[%c0_23, %c0_24] : memref<1x32xf32, #tpu.memory_space<vmem>>, vector<1x32xf32>
      %c0_25 = arith.constant 0 : index
      %c0_26 = arith.constant 0 : index
      %23 = vector.load %arg1[%c0_25, %c0_26] : memref<48x8xf32, #tpu.memory_space<vmem>>, vector<48x8xf32>
      %24 = vector.extract_strided_slice %21 {offsets = [0, 0], sizes = [8, 16], strides = [1, 1]} : vector<8x32xf32> to vector<8x16xf32>
      %cst = arith.constant dense<0.000000e+00> : vector<48x16xf32>
      %25 = tpu.matmul %23, %24, %cst {dimension_numbers = #tpu.dot_dimension_numbers<[1], [0], [0], [1], [0, 0, 1, 1], [], []>} : vector<48x8xf32>, vector<8x16xf32>, vector<48x16xf32> -> vector<48x16xf32>
      %26 = vector.extract_strided_slice %22 {offsets = [0, 0], sizes = [1, 16], strides = [1, 1]} : vector<1x32xf32> to vector<1x16xf32>
      %27 = vector.broadcast %26 : vector<1x16xf32> to vector<48x16xf32>
      %28 = arith.addf %25, %27 : vector<48x16xf32>
      %cst_27 = arith.constant 0.000000e+00 : f32
      %29 = vector.broadcast %cst_27 : f32 to vector<48x16xf32>
      %30 = arith.maximumf %28, %29 : vector<48x16xf32>
      %c0_28 = arith.constant 0 : index
      %c0_29 = arith.constant 0 : index
      %31 = vector.load %arg14[%c0_28, %c0_29] : memref<48x16xf32, #tpu.memory_space<vmem>>, vector<48x16xf32>
      tpu.vector_store %arg14[%c0_28, %c0_29], %30 {strides = array<i32>} : memref<48x16xf32, #tpu.memory_space<vmem>>, vector<48x16xf32>,
      %c0_30 = arith.constant 0 : index
      %c0_31 = arith.constant 0 : index
      %32 = vector.load %arg2[%c0_30, %c0_31] : memref<12x8xf32, #tpu.memory_space<vmem>>, vector<12x8xf32>
      %33 = vector.extract_strided_slice %21 {offsets = [0, 16], sizes = [8, 16], strides = [1, 1]} : vector<8x32xf32> to vector<8x16xf32>
      %cst_32 = arith.constant dense<0.000000e+00> : vector<12x16xf32>
      %34 = tpu.matmul %32, %33, %cst_32 {dimension_numbers = #tpu.dot_dimension_numbers<[1], [0], [0], [1], [0, 0, 1, 1], [], []>} : vector<12x8xf32>, vector<8x16xf32>, vector<12x16xf32> -> vector<12x16xf32>
      %35 = vector.extract_strided_slice %22 {offsets = [0, 16], sizes = [1, 16], strides = [1, 1]} : vector<1x32xf32> to vector<1x16xf32>
      %36 = vector.broadcast %35 : vector<1x16xf32> to vector<12x16xf32>
      %37 = arith.addf %34, %36 : vector<12x16xf32>
      %cst_33 = arith.constant 0.000000e+00 : f32
      %38 = vector.broadcast %cst_33 : f32 to vector<12x16xf32>
      %39 = arith.maximumf %37, %38 : vector<12x16xf32>
      %c0_34 = arith.constant 0 : index
      %c0_35 = arith.constant 0 : index
      %40 = vector.load %arg13[%c0_34, %c0_35] : memref<12x16xf32, #tpu.memory_space<vmem>>, vector<12x16xf32>
      tpu.vector_store %arg13[%c0_34, %c0_35], %39 {strides = array<i32>} : memref<12x16xf32, #tpu.memory_space<vmem>>, vector<12x16xf32>,
      %c0_36 = arith.constant 0 : index
      %c0_37 = arith.constant 0 : index
      %41 = vector.load %arg12[%c0_36, %c0_37] : memref<12x16xf32, #tpu.memory_space<vmem>>, vector<12x16xf32>
      tpu.vector_store %arg12[%c0_36, %c0_37], %39 {strides = array<i32>} : memref<12x16xf32, #tpu.memory_space<vmem>>, vector<12x16xf32>,
    } else {
    }
    %c0 = arith.constant 0 : index
    %c0_1 = arith.constant 0 : index
    %c0_2 = arith.constant 0 : index
    %3 = vector.load %arg5[%c0, %c0_1, %c0_2] : memref<1x16x128xf32, #tpu.memory_space<vmem>>, vector<1x16x128xf32>
    %4 = vector.shape_cast %3 : vector<1x16x128xf32> to vector<16x128xf32>
    %c0_3 = arith.constant 0 : index
    %c0_4 = arith.constant 0 : index
    %c0_5 = arith.constant 0 : index
    %5 = vector.load %arg6[%c0_3, %c0_4, %c0_5] : memref<1x16x32xf32, #tpu.memory_space<vmem>>, vector<1x16x32xf32>
    %6 = vector.shape_cast %5 : vector<1x16x32xf32> to vector<16x32xf32>
    %c0_6 = arith.constant 0 : index
    %c0_7 = arith.constant 0 : index
    %c0_8 = arith.constant 0 : index
    %7 = vector.load %arg7[%c0_6, %c0_7, %c0_8] : memref<1x32x16xf32, #tpu.memory_space<vmem>>, vector<1x32x16xf32>
    %8 = vector.shape_cast %7 : vector<1x32x16xf32> to vector<32x16xf32>
    %c0_9 = arith.constant 0 : index
    %c0_10 = arith.constant 0 : index
    %c0_11 = arith.constant 0 : index
    %9 = vector.load %arg8[%c0_9, %c0_10, %c0_11] : memref<1x2x48xf32, #tpu.memory_space<vmem>>, vector<1x2x48xf32>
    %10 = vector.shape_cast %9 : vector<1x2x48xf32> to vector<2x48xf32>
    %c0_12 = arith.constant 0 : index
    %c0_13 = arith.constant 0 : index
    %c0_14 = arith.constant 0 : index
    %11 = vector.load %arg9[%c0_12, %c0_13, %c0_14] : memref<1x9x16xf32, #tpu.memory_space<vmem>>, vector<1x9x16xf32>
    %12 = vector.shape_cast %11 : vector<1x9x16xf32> to vector<9x16xf32>
    %c0_15 = arith.constant 0 : index
    %c0_16 = arith.constant 0 : index
    %c0_17 = arith.constant 0 : index
    %13 = vector.load %arg10[%c0_15, %c0_16, %c0_17] : memref<1x1x32xf32, #tpu.memory_space<vmem>>, vector<1x1x32xf32>
    %14 = vector.shape_cast %13 : vector<1x1x32xf32> to vector<1x32xf32>
    %c2_i32 = arith.constant 2 : i32
    %15 = arith.cmpi slt, %arg0, %c2_i32 : i32
    %16 = arith.extui %15 : i1 to i32
    %c0_i32_18 = arith.constant 0 : i32
    %17 = arith.cmpi ne, %16, %c0_i32_18 : i32
    scf.if %17 {
      %c0_21 = arith.constant 0 : index
      %c0_22 = arith.constant 0 : index
      %21 = vector.load %arg14[%c0_21, %c0_22] : memref<48x16xf32, #tpu.memory_space<vmem>>, vector<48x16xf32>
      %22 = vector.extract_strided_slice %4 {offsets = [0, 0], sizes = [16, 48], strides = [1, 1]} : vector<16x128xf32> to vector<16x48xf32>
      %cst = arith.constant dense<0.000000e+00> : vector<48x48xf32>
      %23 = tpu.matmul %21, %22, %cst {dimension_numbers = #tpu.dot_dimension_numbers<[1], [0], [0], [1], [0, 0, 1, 1], [], []>} : vector<48x16xf32>, vector<16x48xf32>, vector<48x48xf32> -> vector<48x48xf32>
      %24 = vector.extract_strided_slice %10 {offsets = [0, 0], sizes = [1, 48], strides = [1, 1]} : vector<2x48xf32> to vector<1x48xf32>
      %25 = vector.broadcast %24 : vector<1x48xf32> to vector<48x48xf32>
      %26 = arith.addf %23, %25 : vector<48x48xf32>
      %27 = vector.shape_cast %26 : vector<48x48xf32> to vector<12x4x48xf32>
      %28 = vector.extract_strided_slice %27 {offsets = [0, 0, 0], sizes = [12, 4, 8], strides = [1, 1, 1]} : vector<12x4x48xf32> to vector<12x4x8xf32>
      %29 = vector.extract_strided_slice %27 {offsets = [0, 0, 16], sizes = [12, 4, 8], strides = [1, 1, 1]} : vector<12x4x48xf32> to vector<12x4x8xf32>
      %30 = vector.extract_strided_slice %27 {offsets = [0, 0, 32], sizes = [12, 4, 8], strides = [1, 1, 1]} : vector<12x4x48xf32> to vector<12x4x8xf32>
      %cst_23 = arith.constant dense<0.000000e+00> : vector<12x4x4xf32>
      %31 = tpu.matmul %28, %29, %cst_23 {dimension_numbers = #tpu.dot_dimension_numbers<[2], [2], [1], [1], [0, 0, 0, 1, 1, 1], [0], [0]>} : vector<12x4x8xf32>, vector<12x4x8xf32>, vector<12x4x4xf32> -> vector<12x4x4xf32>
      %cst_24 = arith.constant dense<0xFF800000> : vector<12x4xf32>
      %32 = vector.multi_reduction <maximumf>, %31, %cst_24 [2] : vector<12x4x4xf32> to vector<12x4xf32>
      %33 = vector.shape_cast %32 : vector<12x4xf32> to vector<12x4x1xf32>
      %34 = vector.broadcast %33 : vector<12x4x1xf32> to vector<12x4x4xf32>
      %35 = arith.subf %31, %34 : vector<12x4x4xf32>
      %36 = math.exp %35 : vector<12x4x4xf32>
      %cst_25 = arith.constant dense<0.000000e+00> : vector<12x4xf32>
      %37 = vector.multi_reduction <add>, %36, %cst_25 [2] : vector<12x4x4xf32> to vector<12x4xf32>
      %38 = vector.shape_cast %37 : vector<12x4xf32> to vector<12x4x1xf32>
      %39 = vector.broadcast %38 : vector<12x4x1xf32> to vector<12x4x4xf32>
      %40 = arith.divf %36, %39 : vector<12x4x4xf32>
      %cst_26 = arith.constant dense<0.000000e+00> : vector<12x4x8xf32>
      %41 = tpu.matmul %40, %30, %cst_26 {dimension_numbers = #tpu.dot_dimension_numbers<[2], [1], [1], [2], [0, 0, 0, 1, 1, 2], [0], [0]>} : vector<12x4x4xf32>, vector<12x4x8xf32>, vector<12x4x8xf32> -> vector<12x4x8xf32>
      %42 = vector.extract_strided_slice %27 {offsets = [0, 0, 8], sizes = [12, 4, 8], strides = [1, 1, 1]} : vector<12x4x48xf32> to vector<12x4x8xf32>
      %43 = vector.extract_strided_slice %27 {offsets = [0, 0, 24], sizes = [12, 4, 8], strides = [1, 1, 1]} : vector<12x4x48xf32> to vector<12x4x8xf32>
      %44 = vector.extract_strided_slice %27 {offsets = [0, 0, 40], sizes = [12, 4, 8], strides = [1, 1, 1]} : vector<12x4x48xf32> to vector<12x4x8xf32>
      %cst_27 = arith.constant dense<0.000000e+00> : vector<12x4x4xf32>
      %45 = tpu.matmul %42, %43, %cst_27 {dimension_numbers = #tpu.dot_dimension_numbers<[2], [2], [1], [1], [0, 0, 0, 1, 1, 1], [0], [0]>} : vector<12x4x8xf32>, vector<12x4x8xf32>, vector<12x4x4xf32> -> vector<12x4x4xf32>
      %cst_28 = arith.constant dense<0xFF800000> : vector<12x4xf32>
      %46 = vector.multi_reduction <maximumf>, %45, %cst_28 [2] : vector<12x4x4xf32> to vector<12x4xf32>
      %47 = vector.shape_cast %46 : vector<12x4xf32> to vector<12x4x1xf32>
      %48 = vector.broadcast %47 : vector<12x4x1xf32> to vector<12x4x4xf32>
      %49 = arith.subf %45, %48 : vector<12x4x4xf32>
      %50 = math.exp %49 : vector<12x4x4xf32>
      %cst_29 = arith.constant dense<0.000000e+00> : vector<12x4xf32>
      %51 = vector.multi_reduction <add>, %50, %cst_29 [2] : vector<12x4x4xf32> to vector<12x4xf32>
      %52 = vector.shape_cast %51 : vector<12x4xf32> to vector<12x4x1xf32>
      %53 = vector.broadcast %52 : vector<12x4x1xf32> to vector<12x4x4xf32>
      %54 = arith.divf %50, %53 : vector<12x4x4xf32>
      %cst_30 = arith.constant dense<0.000000e+00> : vector<12x4x8xf32>
      %55 = tpu.matmul %54, %44, %cst_30 {dimension_numbers = #tpu.dot_dimension_numbers<[2], [1], [1], [2], [0, 0, 0, 1, 1, 2], [0], [0]>} : vector<12x4x4xf32>, vector<12x4x8xf32>, vector<12x4x8xf32> -> vector<12x4x8xf32>
      %56 = tpu.concatenate %41, %55 in 2 : vector<12x4x8xf32>, vector<12x4x8xf32> -> vector<12x4x16xf32>
      %57 = vector.shape_cast %56 : vector<12x4x16xf32> to vector<48x16xf32>
      %58 = vector.extract_strided_slice %4 {offsets = [0, 48], sizes = [16, 16], strides = [1, 1]} : vector<16x128xf32> to vector<16x16xf32>
      %cst_31 = arith.constant dense<0.000000e+00> : vector<48x16xf32>
      %59 = tpu.matmul %57, %58, %cst_31 {dimension_numbers = #tpu.dot_dimension_numbers<[1], [0], [0], [1], [0, 0, 1, 1], [], []>} : vector<48x16xf32>, vector<16x16xf32>, vector<48x16xf32> -> vector<48x16xf32>
      %60 = vector.extract_strided_slice %12 {offsets = [0, 0], sizes = [1, 16], strides = [1, 1]} : vector<9x16xf32> to vector<1x16xf32>
      %61 = vector.broadcast %60 : vector<1x16xf32> to vector<48x16xf32>
      %62 = arith.addf %59, %61 : vector<48x16xf32>
      %63 = arith.addf %21, %62 : vector<48x16xf32>
      %64 = vector.extract_strided_slice %12 {offsets = [3, 0], sizes = [1, 16], strides = [1, 1]} : vector<9x16xf32> to vector<1x16xf32>
      %65 = vector.extract_strided_slice %12 {offsets = [4, 0], sizes = [1, 16], strides = [1, 1]} : vector<9x16xf32> to vector<1x16xf32>
      %cst_32 = arith.constant dense<0.000000e+00> : vector<48xf32>
      %66 = vector.multi_reduction <add>, %63, %cst_32 [1] : vector<48x16xf32> to vector<48xf32>
      %67 = vector.shape_cast %66 : vector<48xf32> to vector<48x1xf32>
      %cst_33 = arith.constant 1.600000e+01 : f32
      %68 = vector.broadcast %cst_33 : f32 to vector<48x1xf32>
      %69 = arith.divf %67, %68 : vector<48x1xf32>
      %70 = vector.broadcast %69 : vector<48x1xf32> to vector<48x16xf32>
      %71 = arith.subf %63, %70 : vector<48x16xf32>
      %72 = arith.mulf %71, %71 : vector<48x16xf32>
      %cst_34 = arith.constant dense<0.000000e+00> : vector<48xf32>
      %73 = vector.multi_reduction <add>, %72, %cst_34 [1] : vector<48x16xf32> to vector<48xf32>
      %74 = vector.shape_cast %73 : vector<48xf32> to vector<48x1xf32>
      %cst_35 = arith.constant 1.600000e+01 : f32
      %75 = vector.broadcast %cst_35 : f32 to vector<48x1xf32>
      %76 = arith.divf %74, %75 : vector<48x1xf32>
      %cst_36 = arith.constant 9.99999974E-6 : f32
      %77 = vector.broadcast %cst_36 : f32 to vector<48x1xf32>
      %78 = arith.addf %76, %77 : vector<48x1xf32>
      %79 = math.rsqrt %78 : vector<48x1xf32>
      %80 = vector.broadcast %79 : vector<48x1xf32> to vector<48x16xf32>
      %81 = arith.mulf %71, %80 : vector<48x16xf32>
      %82 = vector.broadcast %64 : vector<1x16xf32> to vector<48x16xf32>
      %83 = arith.mulf %81, %82 : vector<48x16xf32>
      %84 = vector.broadcast %65 : vector<1x16xf32> to vector<48x16xf32>
      %85 = arith.addf %83, %84 : vector<48x16xf32>
      %cst_37 = arith.constant dense<0.000000e+00> : vector<48x32xf32>
      %86 = tpu.matmul %85, %6, %cst_37 {dimension_numbers = #tpu.dot_dimension_numbers<[1], [0], [0], [1], [0, 0, 1, 1], [], []>} : vector<48x16xf32>, vector<16x32xf32>, vector<48x32xf32> -> vector<48x32xf32>
      %87 = vector.broadcast %14 : vector<1x32xf32> to vector<48x32xf32>
      %88 = arith.addf %86, %87 : vector<48x32xf32>
      %cst_38 = arith.constant 0.000000e+00 : f32
      %89 = vector.broadcast %cst_38 : f32 to vector<48x32xf32>
      %90 = arith.maximumf %88, %89 : vector<48x32xf32>
      %cst_39 = arith.constant dense<0.000000e+00> : vector<48x16xf32>
      %91 = tpu.matmul %90, %8, %cst_39 {dimension_numbers = #tpu.dot_dimension_numbers<[1], [0], [0], [1], [0, 0, 1, 1], [], []>} : vector<48x32xf32>, vector<32x16xf32>, vector<48x16xf32> -> vector<48x16xf32>
      %92 = vector.extract_strided_slice %12 {offsets = [2, 0], sizes = [1, 16], strides = [1, 1]} : vector<9x16xf32> to vector<1x16xf32>
      %93 = vector.broadcast %92 : vector<1x16xf32> to vector<48x16xf32>
      %94 = arith.addf %91, %93 : vector<48x16xf32>
      %95 = arith.addf %85, %94 : vector<48x16xf32>
      %96 = vector.extract_strided_slice %12 {offsets = [5, 0], sizes = [1, 16], strides = [1, 1]} : vector<9x16xf32> to vector<1x16xf32>
      %97 = vector.extract_strided_slice %12 {offsets = [6, 0], sizes = [1, 16], strides = [1, 1]} : vector<9x16xf32> to vector<1x16xf32>
      %cst_40 = arith.constant dense<0.000000e+00> : vector<48xf32>
      %98 = vector.multi_reduction <add>, %95, %cst_40 [1] : vector<48x16xf32> to vector<48xf32>
      %99 = vector.shape_cast %98 : vector<48xf32> to vector<48x1xf32>
      %cst_41 = arith.constant 1.600000e+01 : f32
      %100 = vector.broadcast %cst_41 : f32 to vector<48x1xf32>
      %101 = arith.divf %99, %100 : vector<48x1xf32>
      %102 = vector.broadcast %101 : vector<48x1xf32> to vector<48x16xf32>
      %103 = arith.subf %95, %102 : vector<48x16xf32>
      %104 = arith.mulf %103, %103 : vector<48x16xf32>
      %cst_42 = arith.constant dense<0.000000e+00> : vector<48xf32>
      %105 = vector.multi_reduction <add>, %104, %cst_42 [1] : vector<48x16xf32> to vector<48xf32>
      %106 = vector.shape_cast %105 : vector<48xf32> to vector<48x1xf32>
      %cst_43 = arith.constant 1.600000e+01 : f32
      %107 = vector.broadcast %cst_43 : f32 to vector<48x1xf32>
      %108 = arith.divf %106, %107 : vector<48x1xf32>
      %cst_44 = arith.constant 9.99999974E-6 : f32
      %109 = vector.broadcast %cst_44 : f32 to vector<48x1xf32>
      %110 = arith.addf %108, %109 : vector<48x1xf32>
      %111 = math.rsqrt %110 : vector<48x1xf32>
      %112 = vector.broadcast %111 : vector<48x1xf32> to vector<48x16xf32>
      %113 = arith.mulf %103, %112 : vector<48x16xf32>
      %114 = vector.broadcast %96 : vector<1x16xf32> to vector<48x16xf32>
      %115 = arith.mulf %113, %114 : vector<48x16xf32>
      %116 = vector.broadcast %97 : vector<1x16xf32> to vector<48x16xf32>
      %117 = arith.addf %115, %116 : vector<48x16xf32>
      %c1_i32 = arith.constant 1 : i32
      %118 = arith.cmpi eq, %arg0, %c1_i32 : i32
      %119 = arith.extui %118 : i1 to i32
      %c0_i32_45 = arith.constant 0 : i32
      %120 = arith.cmpi ne, %119, %c0_i32_45 : i32
      scf.if %120 {
        %c0_48 = arith.constant 0 : index
        %c0_49 = arith.constant 0 : index
        %124 = vector.load %arg11[%c0_48, %c0_49] : memref<4x16xf32, #tpu.memory_space<vmem>>, vector<1x16xf32>
        %c1 = arith.constant 1 : index
        %c0_50 = arith.constant 0 : index
        %125 = vector.load %arg11[%c1, %c0_50] : memref<4x16xf32, #tpu.memory_space<vmem>>, vector<1x16xf32>
        %cst_51 = arith.constant dense<0.000000e+00> : vector<48xf32>
        %126 = vector.multi_reduction <add>, %117, %cst_51 [1] : vector<48x16xf32> to vector<48xf32>
        %127 = vector.shape_cast %126 : vector<48xf32> to vector<48x1xf32>
        %cst_52 = arith.constant 1.600000e+01 : f32
        %128 = vector.broadcast %cst_52 : f32 to vector<48x1xf32>
        %129 = arith.divf %127, %128 : vector<48x1xf32>
        %130 = vector.broadcast %129 : vector<48x1xf32> to vector<48x16xf32>
        %131 = arith.subf %117, %130 : vector<48x16xf32>
        %132 = arith.mulf %131, %131 : vector<48x16xf32>
        %cst_53 = arith.constant dense<0.000000e+00> : vector<48xf32>
        %133 = vector.multi_reduction <add>, %132, %cst_53 [1] : vector<48x16xf32> to vector<48xf32>
        %134 = vector.shape_cast %133 : vector<48xf32> to vector<48x1xf32>
        %cst_54 = arith.constant 1.600000e+01 : f32
        %135 = vector.broadcast %cst_54 : f32 to vector<48x1xf32>
        %136 = arith.divf %134, %135 : vector<48x1xf32>
        %cst_55 = arith.constant 9.99999974E-6 : f32
        %137 = vector.broadcast %cst_55 : f32 to vector<48x1xf32>
        %138 = arith.addf %136, %137 : vector<48x1xf32>
        %139 = math.rsqrt %138 : vector<48x1xf32>
        %140 = vector.broadcast %139 : vector<48x1xf32> to vector<48x16xf32>
        %141 = arith.mulf %131, %140 : vector<48x16xf32>
        %142 = vector.broadcast %124 : vector<1x16xf32> to vector<48x16xf32>
        %143 = arith.mulf %141, %142 : vector<48x16xf32>
        %144 = vector.broadcast %125 : vector<1x16xf32> to vector<48x16xf32>
        %145 = arith.addf %143, %144 : vector<48x16xf32>
        %c0_56 = arith.constant 0 : index
        %c0_57 = arith.constant 0 : index
        %146 = vector.load %arg14[%c0_56, %c0_57] : memref<48x16xf32, #tpu.memory_space<vmem>>, vector<48x16xf32>
        tpu.vector_store %arg14[%c0_56, %c0_57], %145 {strides = array<i32>} : memref<48x16xf32, #tpu.memory_space<vmem>>, vector<48x16xf32>,
      } else {
      }
      %c1_i32_46 = arith.constant 1 : i32
      %121 = arith.cmpi ne, %arg0, %c1_i32_46 : i32
      %122 = arith.extui %121 : i1 to i32
      %c0_i32_47 = arith.constant 0 : i32
      %123 = arith.cmpi ne, %122, %c0_i32_47 : i32
      scf.if %123 {
        %c0_48 = arith.constant 0 : index
        %c0_49 = arith.constant 0 : index
        %124 = vector.load %arg14[%c0_48, %c0_49] : memref<48x16xf32, #tpu.memory_space<vmem>>, vector<48x16xf32>
        tpu.vector_store %arg14[%c0_48, %c0_49], %117 {strides = array<i32>} : memref<48x16xf32, #tpu.memory_space<vmem>>, vector<48x16xf32>,
      } else {
      }
    } else {
    }
    %c2_i32_19 = arith.constant 2 : i32
    %18 = arith.cmpi sge, %arg0, %c2_i32_19 : i32
    %19 = arith.extui %18 : i1 to i32
    %c0_i32_20 = arith.constant 0 : i32
    %20 = arith.cmpi ne, %19, %c0_i32_20 : i32
    scf.if %20 {
      %c0_21 = arith.constant 0 : index
      %c0_22 = arith.constant 0 : index
      %21 = vector.load %arg12[%c0_21, %c0_22] : memref<12x16xf32, #tpu.memory_space<vmem>>, vector<12x16xf32>
      %c0_23 = arith.constant 0 : index
      %c0_24 = arith.constant 0 : index
      %22 = vector.load %arg14[%c0_23, %c0_24] : memref<48x16xf32, #tpu.memory_space<vmem>>, vector<48x16xf32>
      %23 = vector.extract_strided_slice %4 {offsets = [0, 32], sizes = [16, 16], strides = [1, 1]} : vector<16x128xf32> to vector<16x16xf32>
      %cst = arith.constant dense<0.000000e+00> : vector<12x16xf32>
      %24 = tpu.matmul %21, %23, %cst {dimension_numbers = #tpu.dot_dimension_numbers<[1], [0], [0], [1], [0, 0, 1, 1], [], []>} : vector<12x16xf32>, vector<16x16xf32>, vector<12x16xf32> -> vector<12x16xf32>
      %25 = vector.extract_strided_slice %10 {offsets = [0, 32], sizes = [1, 16], strides = [1, 1]} : vector<2x48xf32> to vector<1x16xf32>
      %26 = vector.broadcast %25 : vector<1x16xf32> to vector<12x16xf32>
      %27 = arith.addf %24, %26 : vector<12x16xf32>
      %28 = vector.extract_strided_slice %4 {offsets = [0, 48], sizes = [16, 16], strides = [1, 1]} : vector<16x128xf32> to vector<16x16xf32>
      %cst_25 = arith.constant dense<0.000000e+00> : vector<12x16xf32>
      %29 = tpu.matmul %27, %28, %cst_25 {dimension_numbers = #tpu.dot_dimension_numbers<[1], [0], [0], [1], [0, 0, 1, 1], [], []>} : vector<12x16xf32>, vector<16x16xf32>, vector<12x16xf32> -> vector<12x16xf32>
      %30 = vector.extract_strided_slice %12 {offsets = [0, 0], sizes = [1, 16], strides = [1, 1]} : vector<9x16xf32> to vector<1x16xf32>
      %31 = vector.broadcast %30 : vector<1x16xf32> to vector<12x16xf32>
      %32 = arith.addf %29, %31 : vector<12x16xf32>
      %33 = arith.addf %21, %32 : vector<12x16xf32>
      %34 = vector.extract_strided_slice %12 {offsets = [3, 0], sizes = [1, 16], strides = [1, 1]} : vector<9x16xf32> to vector<1x16xf32>
      %35 = vector.extract_strided_slice %12 {offsets = [4, 0], sizes = [1, 16], strides = [1, 1]} : vector<9x16xf32> to vector<1x16xf32>
      %cst_26 = arith.constant dense<0.000000e+00> : vector<12xf32>
      %36 = vector.multi_reduction <add>, %33, %cst_26 [1] : vector<12x16xf32> to vector<12xf32>
      %37 = vector.shape_cast %36 : vector<12xf32> to vector<12x1xf32>
      %cst_27 = arith.constant 1.600000e+01 : f32
      %38 = vector.broadcast %cst_27 : f32 to vector<12x1xf32>
      %39 = arith.divf %37, %38 : vector<12x1xf32>
      %40 = vector.broadcast %39 : vector<12x1xf32> to vector<12x16xf32>
      %41 = arith.subf %33, %40 : vector<12x16xf32>
      %42 = arith.mulf %41, %41 : vector<12x16xf32>
      %cst_28 = arith.constant dense<0.000000e+00> : vector<12xf32>
      %43 = vector.multi_reduction <add>, %42, %cst_28 [1] : vector<12x16xf32> to vector<12xf32>
      %44 = vector.shape_cast %43 : vector<12xf32> to vector<12x1xf32>
      %cst_29 = arith.constant 1.600000e+01 : f32
      %45 = vector.broadcast %cst_29 : f32 to vector<12x1xf32>
      %46 = arith.divf %44, %45 : vector<12x1xf32>
      %cst_30 = arith.constant 9.99999974E-6 : f32
      %47 = vector.broadcast %cst_30 : f32 to vector<12x1xf32>
      %48 = arith.addf %46, %47 : vector<12x1xf32>
      %49 = math.rsqrt %48 : vector<12x1xf32>
      %50 = vector.broadcast %49 : vector<12x1xf32> to vector<12x16xf32>
      %51 = arith.mulf %41, %50 : vector<12x16xf32>
      %52 = vector.broadcast %34 : vector<1x16xf32> to vector<12x16xf32>
      %53 = arith.mulf %51, %52 : vector<12x16xf32>
      %54 = vector.broadcast %35 : vector<1x16xf32> to vector<12x16xf32>
      %55 = arith.addf %53, %54 : vector<12x16xf32>
      %56 = vector.extract_strided_slice %4 {offsets = [0, 64], sizes = [16, 16], strides = [1, 1]} : vector<16x128xf32> to vector<16x16xf32>
      %cst_31 = arith.constant dense<0.000000e+00> : vector<12x16xf32>
      %57 = tpu.matmul %55, %56, %cst_31 {dimension_numbers = #tpu.dot_dimension_numbers<[1], [0], [0], [1], [0, 0, 1, 1], [], []>} : vector<12x16xf32>, vector<16x16xf32>, vector<12x16xf32> -> vector<12x16xf32>
      %58 = vector.extract_strided_slice %10 {offsets = [1, 0], sizes = [1, 16], strides = [1, 1]} : vector<2x48xf32> to vector<1x16xf32>
      %59 = vector.broadcast %58 : vector<1x16xf32> to vector<12x16xf32>
      %60 = arith.addf %57, %59 : vector<12x16xf32>
      %61 = vector.extract_strided_slice %4 {offsets = [0, 80], sizes = [16, 32], strides = [1, 1]} : vector<16x128xf32> to vector<16x32xf32>
      %cst_32 = arith.constant dense<0.000000e+00> : vector<48x32xf32>
      %62 = tpu.matmul %22, %61, %cst_32 {dimension_numbers = #tpu.dot_dimension_numbers<[1], [0], [0], [1], [0, 0, 1, 1], [], []>} : vector<48x16xf32>, vector<16x32xf32>, vector<48x32xf32> -> vector<48x32xf32>
      %63 = vector.extract_strided_slice %10 {offsets = [1, 16], sizes = [1, 32], strides = [1, 1]} : vector<2x48xf32> to vector<1x32xf32>
      %64 = vector.broadcast %63 : vector<1x32xf32> to vector<48x32xf32>
      %65 = arith.addf %62, %64 : vector<48x32xf32>
      %66 = vector.shape_cast %60 : vector<12x16xf32> to vector<12x1x16xf32>
      %67 = vector.shape_cast %65 : vector<48x32xf32> to vector<12x4x32xf32>
      %68 = vector.extract_strided_slice %66 {offsets = [0, 0, 0], sizes = [12, 1, 8], strides = [1, 1, 1]} : vector<12x1x16xf32> to vector<12x1x8xf32>
      %69 = vector.extract_strided_slice %67 {offsets = [0, 0, 0], sizes = [12, 4, 8], strides = [1, 1, 1]} : vector<12x4x32xf32> to vector<12x4x8xf32>
      %70 = vector.extract_strided_slice %67 {offsets = [0, 0, 16], sizes = [12, 4, 8], strides = [1, 1, 1]} : vector<12x4x32xf32> to vector<12x4x8xf32>
      %cst_33 = arith.constant dense<0.000000e+00> : vector<12x1x4xf32>
      %71 = tpu.matmul %68, %69, %cst_33 {dimension_numbers = #tpu.dot_dimension_numbers<[2], [2], [1], [1], [0, 0, 0, 1, 1, 1], [0], [0]>} : vector<12x1x8xf32>, vector<12x4x8xf32>, vector<12x1x4xf32> -> vector<12x1x4xf32>
      %cst_34 = arith.constant dense<0xFF800000> : vector<12x1xf32>
      %72 = vector.multi_reduction <maximumf>, %71, %cst_34 [2] : vector<12x1x4xf32> to vector<12x1xf32>
      %73 = vector.shape_cast %72 : vector<12x1xf32> to vector<12x1x1xf32>
      %74 = vector.broadcast %73 : vector<12x1x1xf32> to vector<12x1x4xf32>
      %75 = arith.subf %71, %74 : vector<12x1x4xf32>
      %76 = math.exp %75 : vector<12x1x4xf32>
      %cst_35 = arith.constant dense<0.000000e+00> : vector<12x1xf32>
      %77 = vector.multi_reduction <add>, %76, %cst_35 [2] : vector<12x1x4xf32> to vector<12x1xf32>
      %78 = vector.shape_cast %77 : vector<12x1xf32> to vector<12x1x1xf32>
      %79 = vector.broadcast %78 : vector<12x1x1xf32> to vector<12x1x4xf32>
      %80 = arith.divf %76, %79 : vector<12x1x4xf32>
      %cst_36 = arith.constant dense<0.000000e+00> : vector<12x1x8xf32>
      %81 = tpu.matmul %80, %70, %cst_36 {dimension_numbers = #tpu.dot_dimension_numbers<[2], [1], [1], [2], [0, 0, 0, 1, 1, 2], [0], [0]>} : vector<12x1x4xf32>, vector<12x4x8xf32>, vector<12x1x8xf32> -> vector<12x1x8xf32>
      %82 = vector.extract_strided_slice %66 {offsets = [0, 0, 8], sizes = [12, 1, 8], strides = [1, 1, 1]} : vector<12x1x16xf32> to vector<12x1x8xf32>
      %83 = vector.extract_strided_slice %67 {offsets = [0, 0, 8], sizes = [12, 4, 8], strides = [1, 1, 1]} : vector<12x4x32xf32> to vector<12x4x8xf32>
      %84 = vector.extract_strided_slice %67 {offsets = [0, 0, 24], sizes = [12, 4, 8], strides = [1, 1, 1]} : vector<12x4x32xf32> to vector<12x4x8xf32>
      %cst_37 = arith.constant dense<0.000000e+00> : vector<12x1x4xf32>
      %85 = tpu.matmul %82, %83, %cst_37 {dimension_numbers = #tpu.dot_dimension_numbers<[2], [2], [1], [1], [0, 0, 0, 1, 1, 1], [0], [0]>} : vector<12x1x8xf32>, vector<12x4x8xf32>, vector<12x1x4xf32> -> vector<12x1x4xf32>
      %cst_38 = arith.constant dense<0xFF800000> : vector<12x1xf32>
      %86 = vector.multi_reduction <maximumf>, %85, %cst_38 [2] : vector<12x1x4xf32> to vector<12x1xf32>
      %87 = vector.shape_cast %86 : vector<12x1xf32> to vector<12x1x1xf32>
      %88 = vector.broadcast %87 : vector<12x1x1xf32> to vector<12x1x4xf32>
      %89 = arith.subf %85, %88 : vector<12x1x4xf32>
      %90 = math.exp %89 : vector<12x1x4xf32>
      %cst_39 = arith.constant dense<0.000000e+00> : vector<12x1xf32>
      %91 = vector.multi_reduction <add>, %90, %cst_39 [2] : vector<12x1x4xf32> to vector<12x1xf32>
      %92 = vector.shape_cast %91 : vector<12x1xf32> to vector<12x1x1xf32>
      %93 = vector.broadcast %92 : vector<12x1x1xf32> to vector<12x1x4xf32>
      %94 = arith.divf %90, %93 : vector<12x1x4xf32>
      %cst_40 = arith.constant dense<0.000000e+00> : vector<12x1x8xf32>
      %95 = tpu.matmul %94, %84, %cst_40 {dimension_numbers = #tpu.dot_dimension_numbers<[2], [1], [1], [2], [0, 0, 0, 1, 1, 2], [0], [0]>} : vector<12x1x4xf32>, vector<12x4x8xf32>, vector<12x1x8xf32> -> vector<12x1x8xf32>
      %96 = tpu.concatenate %81, %95 in 2 : vector<12x1x8xf32>, vector<12x1x8xf32> -> vector<12x1x16xf32>
      %97 = vector.shape_cast %96 : vector<12x1x16xf32> to vector<12x16xf32>
      %98 = vector.extract_strided_slice %4 {offsets = [0, 112], sizes = [16, 16], strides = [1, 1]} : vector<16x128xf32> to vector<16x16xf32>
      %cst_41 = arith.constant dense<0.000000e+00> : vector<12x16xf32>
      %99 = tpu.matmul %97, %98, %cst_41 {dimension_numbers = #tpu.dot_dimension_numbers<[1], [0], [0], [1], [0, 0, 1, 1], [], []>} : vector<12x16xf32>, vector<16x16xf32>, vector<12x16xf32> -> vector<12x16xf32>
      %100 = vector.extract_strided_slice %12 {offsets = [1, 0], sizes = [1, 16], strides = [1, 1]} : vector<9x16xf32> to vector<1x16xf32>
      %101 = vector.broadcast %100 : vector<1x16xf32> to vector<12x16xf32>
      %102 = arith.addf %99, %101 : vector<12x16xf32>
      %103 = arith.addf %55, %102 : vector<12x16xf32>
      %104 = vector.extract_strided_slice %12 {offsets = [5, 0], sizes = [1, 16], strides = [1, 1]} : vector<9x16xf32> to vector<1x16xf32>
      %105 = vector.extract_strided_slice %12 {offsets = [6, 0], sizes = [1, 16], strides = [1, 1]} : vector<9x16xf32> to vector<1x16xf32>
      %cst_42 = arith.constant dense<0.000000e+00> : vector<12xf32>
      %106 = vector.multi_reduction <add>, %103, %cst_42 [1] : vector<12x16xf32> to vector<12xf32>
      %107 = vector.shape_cast %106 : vector<12xf32> to vector<12x1xf32>
      %cst_43 = arith.constant 1.600000e+01 : f32
      %108 = vector.broadcast %cst_43 : f32 to vector<12x1xf32>
      %109 = arith.divf %107, %108 : vector<12x1xf32>
      %110 = vector.broadcast %109 : vector<12x1xf32> to vector<12x16xf32>
      %111 = arith.subf %103, %110 : vector<12x16xf32>
      %112 = arith.mulf %111, %111 : vector<12x16xf32>
      %cst_44 = arith.constant dense<0.000000e+00> : vector<12xf32>
      %113 = vector.multi_reduction <add>, %112, %cst_44 [1] : vector<12x16xf32> to vector<12xf32>
      %114 = vector.shape_cast %113 : vector<12xf32> to vector<12x1xf32>
      %cst_45 = arith.constant 1.600000e+01 : f32
      %115 = vector.broadcast %cst_45 : f32 to vector<12x1xf32>
      %116 = arith.divf %114, %115 : vector<12x1xf32>
      %cst_46 = arith.constant 9.99999974E-6 : f32
      %117 = vector.broadcast %cst_46 : f32 to vector<12x1xf32>
      %118 = arith.addf %116, %117 : vector<12x1xf32>
      %119 = math.rsqrt %118 : vector<12x1xf32>
      %120 = vector.broadcast %119 : vector<12x1xf32> to vector<12x16xf32>
      %121 = arith.mulf %111, %120 : vector<12x16xf32>
      %122 = vector.broadcast %104 : vector<1x16xf32> to vector<12x16xf32>
      %123 = arith.mulf %121, %122 : vector<12x16xf32>
      %124 = vector.broadcast %105 : vector<1x16xf32> to vector<12x16xf32>
      %125 = arith.addf %123, %124 : vector<12x16xf32>
      %cst_47 = arith.constant dense<0.000000e+00> : vector<12x32xf32>
      %126 = tpu.matmul %125, %6, %cst_47 {dimension_numbers = #tpu.dot_dimension_numbers<[1], [0], [0], [1], [0, 0, 1, 1], [], []>} : vector<12x16xf32>, vector<16x32xf32>, vector<12x32xf32> -> vector<12x32xf32>
      %127 = vector.broadcast %14 : vector<1x32xf32> to vector<12x32xf32>
      %128 = arith.addf %126, %127 : vector<12x32xf32>
      %cst_48 = arith.constant 0.000000e+00 : f32
      %129 = vector.broadcast %cst_48 : f32 to vector<12x32xf32>
      %130 = arith.maximumf %128, %129 : vector<12x32xf32>
      %cst_49 = arith.constant dense<0.000000e+00> : vector<12x16xf32>
      %131 = tpu.matmul %130, %8, %cst_49 {dimension_numbers = #tpu.dot_dimension_numbers<[1], [0], [0], [1], [0, 0, 1, 1], [], []>} : vector<12x32xf32>, vector<32x16xf32>, vector<12x16xf32> -> vector<12x16xf32>
      %132 = vector.extract_strided_slice %12 {offsets = [2, 0], sizes = [1, 16], strides = [1, 1]} : vector<9x16xf32> to vector<1x16xf32>
      %133 = vector.broadcast %132 : vector<1x16xf32> to vector<12x16xf32>
      %134 = arith.addf %131, %133 : vector<12x16xf32>
      %135 = arith.addf %125, %134 : vector<12x16xf32>
      %136 = vector.extract_strided_slice %12 {offsets = [7, 0], sizes = [1, 16], strides = [1, 1]} : vector<9x16xf32> to vector<1x16xf32>
      %137 = vector.extract_strided_slice %12 {offsets = [8, 0], sizes = [1, 16], strides = [1, 1]} : vector<9x16xf32> to vector<1x16xf32>
      %cst_50 = arith.constant dense<0.000000e+00> : vector<12xf32>
      %138 = vector.multi_reduction <add>, %135, %cst_50 [1] : vector<12x16xf32> to vector<12xf32>
      %139 = vector.shape_cast %138 : vector<12xf32> to vector<12x1xf32>
      %cst_51 = arith.constant 1.600000e+01 : f32
      %140 = vector.broadcast %cst_51 : f32 to vector<12x1xf32>
      %141 = arith.divf %139, %140 : vector<12x1xf32>
      %142 = vector.broadcast %141 : vector<12x1xf32> to vector<12x16xf32>
      %143 = arith.subf %135, %142 : vector<12x16xf32>
      %144 = arith.mulf %143, %143 : vector<12x16xf32>
      %cst_52 = arith.constant dense<0.000000e+00> : vector<12xf32>
      %145 = vector.multi_reduction <add>, %144, %cst_52 [1] : vector<12x16xf32> to vector<12xf32>
      %146 = vector.shape_cast %145 : vector<12xf32> to vector<12x1xf32>
      %cst_53 = arith.constant 1.600000e+01 : f32
      %147 = vector.broadcast %cst_53 : f32 to vector<12x1xf32>
      %148 = arith.divf %146, %147 : vector<12x1xf32>
      %cst_54 = arith.constant 9.99999974E-6 : f32
      %149 = vector.broadcast %cst_54 : f32 to vector<12x1xf32>
      %150 = arith.addf %148, %149 : vector<12x1xf32>
      %151 = math.rsqrt %150 : vector<12x1xf32>
      %152 = vector.broadcast %151 : vector<12x1xf32> to vector<12x16xf32>
      %153 = arith.mulf %143, %152 : vector<12x16xf32>
      %154 = vector.broadcast %136 : vector<1x16xf32> to vector<12x16xf32>
      %155 = arith.mulf %153, %154 : vector<12x16xf32>
      %156 = vector.broadcast %137 : vector<1x16xf32> to vector<12x16xf32>
      %157 = arith.addf %155, %156 : vector<12x16xf32>
      %c2_i32_55 = arith.constant 2 : i32
      %158 = arith.cmpi eq, %arg0, %c2_i32_55 : i32
      %159 = arith.extui %158 : i1 to i32
      %c0_i32_56 = arith.constant 0 : i32
      %160 = arith.cmpi ne, %159, %c0_i32_56 : i32
      scf.if %160 {
        %c2 = arith.constant 2 : index
        %c0_59 = arith.constant 0 : index
        %164 = vector.load %arg11[%c2, %c0_59] : memref<4x16xf32, #tpu.memory_space<vmem>>, vector<1x16xf32>
        %c3 = arith.constant 3 : index
        %c0_60 = arith.constant 0 : index
        %165 = vector.load %arg11[%c3, %c0_60] : memref<4x16xf32, #tpu.memory_space<vmem>>, vector<1x16xf32>
        %cst_61 = arith.constant dense<0.000000e+00> : vector<12xf32>
        %166 = vector.multi_reduction <add>, %157, %cst_61 [1] : vector<12x16xf32> to vector<12xf32>
        %167 = vector.shape_cast %166 : vector<12xf32> to vector<12x1xf32>
        %cst_62 = arith.constant 1.600000e+01 : f32
        %168 = vector.broadcast %cst_62 : f32 to vector<12x1xf32>
        %169 = arith.divf %167, %168 : vector<12x1xf32>
        %170 = vector.broadcast %169 : vector<12x1xf32> to vector<12x16xf32>
        %171 = arith.subf %157, %170 : vector<12x16xf32>
        %172 = arith.mulf %171, %171 : vector<12x16xf32>
        %cst_63 = arith.constant dense<0.000000e+00> : vector<12xf32>
        %173 = vector.multi_reduction <add>, %172, %cst_63 [1] : vector<12x16xf32> to vector<12xf32>
        %174 = vector.shape_cast %173 : vector<12xf32> to vector<12x1xf32>
        %cst_64 = arith.constant 1.600000e+01 : f32
        %175 = vector.broadcast %cst_64 : f32 to vector<12x1xf32>
        %176 = arith.divf %174, %175 : vector<12x1xf32>
        %cst_65 = arith.constant 9.99999974E-6 : f32
        %177 = vector.broadcast %cst_65 : f32 to vector<12x1xf32>
        %178 = arith.addf %176, %177 : vector<12x1xf32>
        %179 = math.rsqrt %178 : vector<12x1xf32>
        %180 = vector.broadcast %179 : vector<12x1xf32> to vector<12x16xf32>
        %181 = arith.mulf %171, %180 : vector<12x16xf32>
        %182 = vector.broadcast %164 : vector<1x16xf32> to vector<12x16xf32>
        %183 = arith.mulf %181, %182 : vector<12x16xf32>
        %184 = vector.broadcast %165 : vector<1x16xf32> to vector<12x16xf32>
        %185 = arith.addf %183, %184 : vector<12x16xf32>
        %c0_66 = arith.constant 0 : index
        %c0_67 = arith.constant 0 : index
        %186 = vector.load %arg12[%c0_66, %c0_67] : memref<12x16xf32, #tpu.memory_space<vmem>>, vector<12x16xf32>
        tpu.vector_store %arg12[%c0_66, %c0_67], %185 {strides = array<i32>} : memref<12x16xf32, #tpu.memory_space<vmem>>, vector<12x16xf32>,
      } else {
      }
      %c2_i32_57 = arith.constant 2 : i32
      %161 = arith.cmpi ne, %arg0, %c2_i32_57 : i32
      %162 = arith.extui %161 : i1 to i32
      %c0_i32_58 = arith.constant 0 : i32
      %163 = arith.cmpi ne, %162, %c0_i32_58 : i32
      scf.if %163 {
        %c0_59 = arith.constant 0 : index
        %c0_60 = arith.constant 0 : index
        %164 = vector.load %arg12[%c0_59, %c0_60] : memref<12x16xf32, #tpu.memory_space<vmem>>, vector<12x16xf32>
        tpu.vector_store %arg12[%c0_59, %c0_60], %157 {strides = array<i32>} : memref<12x16xf32, #tpu.memory_space<vmem>>, vector<12x16xf32>,
      } else {
      }
    } else {
    }
    return
  }
  func.func @transform_0(%arg0: i32) -> (i32, i32) {
    %c0_i32 = arith.constant 0 : i32
    %c0_i32_0 = arith.constant 0 : i32
    %c0_i32_1 = arith.constant 0 : i32
    return %c0_i32, %c0_i32_0 : i32, i32
  }
  func.func @transform_1(%arg0: i32) -> (i32, i32) {
    %c0_i32 = arith.constant 0 : i32
    %c0_i32_0 = arith.constant 0 : i32
    %c0_i32_1 = arith.constant 0 : i32
    return %c0_i32, %c0_i32_0 : i32, i32
  }
  func.func @transform_2(%arg0: i32) -> (i32, i32) {
    %c0_i32 = arith.constant 0 : i32
    %c0_i32_0 = arith.constant 0 : i32
    %c0_i32_1 = arith.constant 0 : i32
    return %c0_i32, %c0_i32_0 : i32, i32
  }
  func.func @transform_3(%arg0: i32) -> (i32, i32) {
    %c0_i32 = arith.constant 0 : i32
    %c0_i32_0 = arith.constant 0 : i32
    %c0_i32_1 = arith.constant 0 : i32
    return %c0_i32, %c0_i32_0 : i32, i32
  }
  func.func @transform_4(%arg0: i32) -> (i32, i32, i32) {
    %c0_i32 = arith.constant 0 : i32
    %c0_i32_0 = arith.constant 0 : i32
    %c0_i32_1 = arith.constant 0 : i32
    return %arg0, %c0_i32, %c0_i32_0 : i32, i32, i32
  }
  func.func @transform_5(%arg0: i32) -> (i32, i32, i32) {
    %c0_i32 = arith.constant 0 : i32
    %c0_i32_0 = arith.constant 0 : i32
    %c0_i32_1 = arith.constant 0 : i32
    return %arg0, %c0_i32, %c0_i32_0 : i32, i32, i32
  }
  func.func @transform_6(%arg0: i32) -> (i32, i32, i32) {
    %c0_i32 = arith.constant 0 : i32
    %c0_i32_0 = arith.constant 0 : i32
    %c0_i32_1 = arith.constant 0 : i32
    return %arg0, %c0_i32, %c0_i32_0 : i32, i32, i32
  }
  func.func @transform_7(%arg0: i32) -> (i32, i32, i32) {
    %c0_i32 = arith.constant 0 : i32
    %c0_i32_0 = arith.constant 0 : i32
    %c0_i32_1 = arith.constant 0 : i32
    return %arg0, %c0_i32, %c0_i32_0 : i32, i32, i32
  }
  func.func @transform_8(%arg0: i32) -> (i32, i32, i32) {
    %c0_i32 = arith.constant 0 : i32
    %c0_i32_0 = arith.constant 0 : i32
    %c0_i32_1 = arith.constant 0 : i32
    return %arg0, %c0_i32, %c0_i32_0 : i32, i32, i32
  }
  func.func @transform_9(%arg0: i32) -> (i32, i32, i32) {
    %c0_i32 = arith.constant 0 : i32
    %c0_i32_0 = arith.constant 0 : i32
    %c0_i32_1 = arith.constant 0 : i32
    return %arg0, %c0_i32, %c0_i32_0 : i32, i32, i32
  }
  func.func @transform_10(%arg0: i32) -> (i32, i32) {
    %c0_i32 = arith.constant 0 : i32
    %c0_i32_0 = arith.constant 0 : i32
    %c0_i32_1 = arith.constant 0 : i32
    return %c0_i32, %c0_i32_0 : i32, i32
  }
  func.func @transform_11(%arg0: i32) -> (i32, i32) {
    %c0_i32 = arith.constant 0 : i32
    %c0_i32_0 = arith.constant 0 : i32
    %c0_i32_1 = arith.constant 0 : i32
    return %c0_i32, %c0_i32_0 : i32, i32
  }
  func.func @transform_12(%arg0: i32) -> (i32, i32) {
    %c0_i32 = arith.constant 0 : i32
    %c0_i32_0 = arith.constant 0 : i32
    %c0_i32_1 = arith.constant 0 : i32
    return %c0_i32, %c0_i32_0 : i32, i32
  }
}

</mosaic_0001>

<bundles_post_ra>
// kernel: squeeze.2
= control target key start
LH: loop header
LB: loop body
LE: loop exit
PB: predicated region body
PF: predicated region fallthrough
CT: control target
= control target key end

     0   :  { %vm16_vm0 = vcmask 64512   ;;  %s61_s0 = inlined_call_operand.vmem [shape: f32[1,3,4,8], index: 0, kind: input, shape index: {}]   ;;  %s62_s1 = inlined_call_operand.vmem [shape: f32[12,8], index: 1, kind: output, shape index: {}]  }
   0x1   :  { %v29_v0 = vld [vmem:[%s61_s0 + $0x8] sm:$0xf]  ;;  %v30_v1 = vld [vmem:[%s61_s0 + $0x4] sm:$0xf]  ;;  %v13_v2 = vld [vmem:[%s61_s0] sm:$0xf] }
   0x2   :  { %8 = vst [vmem:[#allocation0 + $0x10] sm:$0xf] %v29_v0  ;;  %12 = vst [vmem:[#allocation0 + $0x8] sm:$0xf] %v30_v1 }
   0x3   :  { %14 = vst [vmem:[#allocation0] sm:$0xf] %v13_v2 }
   0x9   :  { %v19_v4 = vld [vmem:[#allocation0 + $0x8] sm:$0xf]   ;;  %v24_v5 = vld [vmem:[#allocation0 + $0x10] sm:$0xf]  }
   0xa   :  { %v15_v3 = vld [vmem:[#allocation0] sm:$0xf]   ;;  %31 = vst.msk [vmem:[%s62_s1 + $0x4] sm:$0xf] %vm16_vm0, %v19_v4   ;;  %32 = vst.msk [vmem:[%s62_s1 + $0x8] sm:$0xf] %vm16_vm0, %v24_v5  }
   0xb   :  { %17 = vst.msk [vmem:[%s62_s1] sm:$0xf] %vm16_vm0, %v15_v3  }

// kernel: forward.5
= control target key start
LH: loop header
LB: loop body
LE: loop exit
PB: predicated region body
PF: predicated region fallthrough
CT: control target
= control target key end

     0   :  { %s3763_s0 = inlined_call_operand.vmem [shape: f32[3,16], index: 0, kind: input, shape index: {}]   ;;  %s3764_s1 = inlined_call_operand.vmem [shape: f32[3,16], index: 1, kind: input, shape index: {}]   ;;  %s3765_s2 = inlined_call_operand.vmem [shape: f32[16,32], index: 2, kind: input, shape index: {}]   ;;  %s3766_s3 = inlined_call_operand.vmem [shape: f32[48,16], index: 3, kind: input, shape index: {}]   ;;  %s3767_s4 = inlined_call_operand.vmem [shape: f32[1,64], index: 4, kind: input, shape index: {}]   ;;  %s3768_s5 = inlined_call_operand.vmem [shape: f32[2,16,128], index: 5, kind: input, shape index: {}]   ;;  %s3769_s6 = inlined_call_operand.vmem [shape: f32[2,16,32], index: 6, kind: input, shape index: {}]   ;;  %s3770_s7 = inlined_call_operand.vmem [shape: f32[2,32,16], index: 7, kind: input, shape index: {}]   ;;  %s3771_s8 = inlined_call_operand.vmem [shape: f32[2,2,48], index: 8, kind: input, shape index: {}]   ;;  %s3772_s9 = inlined_call_operand.vmem [shape: f32[2,9,16], index: 9, kind: input, shape index: {}]   ;;  %s3773_s10 = inlined_call_operand.vmem [shape: f32[2,1,32], index: 10, kind: input, shape index: {}]   ;;  %s3774_s11 = inlined_call_operand.vmem [shape: f32[4,16], index: 11, kind: input, shape index: {}]   ;;  %s3775_s12 = inlined_call_operand.hbm [shape: f32[1,16], index: 12, kind: output, shape index: {}]  }
   0x1   :  { %3777 = sst [smem:[#allocation7_spill]] %s3768_s5 }
   0x2   :  { %17 = vsyncpa [#allocation4], 0  ;;  %s3398_s21 = smov 0  }
   0x3 LB: > { %3778 = sst [smem:[#allocation6_spill]] %s3301_s21  ;;  %s3404_s22 = sadd.s32 4294967295, %s3301_s21   ;;  %s3301_s21 = sphi %s3398_s21, %s23_s21  }
   0x4   : > { %p2814_p0 = scmp.ge.s32.totalorder %s3301_s21, 1  ;;  %p405_p1 = scmp.lt.s32.totalorder %s3301_s21, 3 }
   0x6   : > { %p406_p2 = pnand %p2814_p0, %p405_p1 }
   0x7   : > { %p464_p3 = scmp.lt.s32.totalorder (!%p406_p2), %s3404_s22, 1  ;;  %s3779_s5 = sld [smem:[#allocation7_spill]] (!%p406_p2) }
   0x8   : > { %409 = sbr.rel (%p406_p2) target bundleno = 7058 (0x1b92), region = 68  ;;  %p2824_p4 = scmp.ne.s32.totalorder (!%p406_p2), %s3404_s22, 0 }
   0xf   : > { %s3412_s23 = scalar_select %p464_p3, %s3404_s22, 1 }
  0x10   : > { %494 = sbr.rel (%p2824_p4) target bundleno = 592 (0x250), region = 72  ;;  %v495_v0 = vld [vmem:[%s3765_s2] sm:$0xff] (!%p2824_p4)  ;;  %v496_v1 = vld [vmem:[%s3765_s2 + $0x8] sm:$0xff] (!%p2824_p4)  ;;  %v3303_v3 = vmov (!%p2824_p4), 0.0|0.0   ;;  %vm3304_vm0 = vmmov (!%p2824_p4), 0   ;;  %v3305_v6 = vmov (!%p2824_p4), 0.0  }
  0x11   : > { %s2870_s24 = sshll.u32 %s3412_s23, 4  ;;  %s2872_s25 = sshll.u32 %s3412_s23, 5  ;;  %v3200_v2 = vpack.i.bf16 (!%p2824_p4), %v496_v1, %v495_v0  ;;  %3102 = vmatprep.subr.bf16.mxu0 (!%p2824_p4), %v3303_v3  ;;  %3105 = vmatprep.subr.bf16.mxu1 (!%p2824_p4), %v3303_v3  ;;  %v3103_v4 = vpack.c.bf16 (!%p2824_p4), %v496_v1, %v495_v0  ;;  %v504_v5 = vld [vmem:[%s3763_s0] sm:$0x7] (!%p2824_p4)  ;;  %vm512_vm1 = vcmask (!%p2824_p4), 130048   ;;  %v499_v14 = vld [vmem:[%s3766_s3 + $0x10] sm:$0xff] (!%p2824_p4) }
  0x12   : > { %s3419_s28 = scalar_lea.vmem %s3779_s5, %s2870_s24  ;;  %s3424_s13 = scalar_lea.vmem %s3769_s6, %s2870_s24  ;;  %2946 = vmatprep.mubr.msk.f32.mxu0 (!%p2824_p4), %vm3304_vm0, %v3305_v6  ;;  %2953 = vmatprep.mubr.msk.f32.mxu1 (!%p2824_p4), %vm3304_vm0, %v3305_v6  ;;  %v505_v7 = vmax.f32 (!%p2824_p4), %v504_v5, 0.0  ;;  %v2825_v8 = vld [vmem:[%s3767_s4] ss:$0 sm:$0xff] (!%p2824_p4)  ;;  %v500_v15 = vld [vmem:[%s3766_s3 + $0x18] sm:$0xff] (!%p2824_p4)  ;;  %v498_v18 = vld [vmem:[%s3766_s3 + $0x8] sm:$0xff] (!%p2824_p4)  ;;  %vm823_vm2 = vcmask (!%p2824_p4), 124928  }
  0x13   : > { %s3429_s16 = scalar_lea.vmem %s3770_s7, %s2872_s25  ;;  %s2821_s17 = sshll.u32 %s3412_s23, 1  ;;  %3104 = vmatpush3.bf16.msra.mxu0 (!%p2824_p4), %v3103_v4  ;;  %v587_v13 = vld [vmem:[%s3764_s1] sm:$0x7] (!%p2824_p4)  ;;  %v3109_v17 = vpack.c.bf16 (!%p2824_p4), %v500_v15, %v499_v14  ;;  %v502_v26 = vld [vmem:[%s3766_s3 + $0x28] sm:$0xff] (!%p2824_p4)  ;;  %vm911_vm3 = vcmask (!%p2824_p4), 122880  }
  0x14   : > { %s3435_s20 = scalar_lea.vmem %s3771_s8, %s2821_s17  ;;  %s3440_s27 = scalar_lea.vmem %s3772_s9, %s2870_s24  ;;  %3108 = vmatprep.subr.bf16.mxu0 (!%p2824_p4), %v3303_v3  ;;  %v497_v16 = vld [vmem:[%s3766_s3] sm:$0xff] (!%p2824_p4) }
  0x15   : > { %s490_s30 = scalar_lea.vmem %s3773_s10, %s3412_s23  ;;  %s3306_s24 = smov (!%p2824_p4), 112   ;;  %v3112_v19 = vpack.c.bf16 (!%p2824_p4), %v498_v18, %v497_v16  ;;  %v501_v25 = vld [vmem:[%s3766_s3 + $0x20] sm:$0xff] (!%p2824_p4) }
  0x16   : > { %3201 = vrot.lane.b32.xlu0 (!%p2824_p4), %v3200_v2, %s3306_s24  ;;  %2947 = vmatmul.mubr.msk.f32.vlgmr.msra.gmra.mrb[0].mxu0 (!%p2824_p4), %vm512_vm1, %v505_v7  ;;  %s3307_s19 = smov (!%p2824_p4), 80   ;;  %s3308_s26 = smov (!%p2824_p4), 96   ;;  %v3115_v30 = vpack.c.bf16 (!%p2824_p4), %v502_v26, %v501_v25 }
  0x17   : > { %2960 = vmatprep.mubr.msk.f32.mxu0 %vm3304_vm0, %v3305_v6  ;;  %3110 = vmatpush3.bf16.msra.mxu0 %v3109_v17 }
  0x18   : > { %3114 = vmatprep.subr.bf16.mxu0 %v3303_v3  ;;  %834 = vrot.lane.b32.xlu1 %v2825_v8, %s3307_s19 }
  0x1a   : > { %596 = vrot.lane.b32.xlu0 %v2825_v8, %s3306_s24 }
  0x1c   : > { %819 = vrot.lane.b32.xlu1 %v2825_v8, %s3308_s26 }
  0x88   : > { %v3202_v9 = vpop.permute.xlu0 %3201 }
  0x89   : > { %v3204_v10 = vunpack.i.h.bf16 %v3202_v9  ;;  %v3203_v11 = vunpack.i.l.bf16 %v3202_v9 }
  0x8a   : > { %v835_v42 = vpop.permute.xlu1 %834 }
  0x8b   : > { %v3106_v12 = vpack.c.bf16 %v3204_v10, %v3203_v11 }
  0x8c   : > { %v597_v24 = vpop.permute.xlu0 %596 }
  0x8d   : > { %3107 = vmatpush3.bf16.msra.mxu1 %v3106_v12 }
  0x8e   : > { %3111 = vmatprep.subr.bf16.mxu1 %v3303_v3  ;;  %v820_v44 = vpop.permute.xlu1 %819 }
  0x90   : > { %2954 = vmatmul.mubr.msk.f32.vlgmr.msra.gmra.mrb[0].mxu1 %vm512_vm1, %v587_v13 }
  0x91   : > { %2967 = vmatprep.mubr.msk.f32.mxu1 %vm3304_vm0, %v3305_v6  ;;  %3113 = vmatpush3.bf16.msra.mxu1 %v3112_v19 }
  0xe9   : > { %v582_v20 = vpop.f32.mrb[0].mxu0 }
  0xea   : > { %v583_v21 = vadd.f32 %v2825_v8, %v582_v20  ;;  %v2948_v22 = vpop.f32.mrb[1].mxu0 }
  0xec   : > { %v586_v23 = vmax.f32 %v583_v21, 0.0 }
  0xee   : > { %2968 = vmatmul.mubr.msk.f32.vlgmr.msra.gmra.mrb[2].mxu1 %vm512_vm1, %v586_v23 }
 0x163   : > { %v668_v27 = vpop.f32.mrb[0].mxu1 }
 0x164   : > { %v669_v28 = vadd.f32 %v668_v27, %v597_v24  ;;  %v2955_v29 = vpop.f32.mrb[1].mxu1 }
 0x166   : > { %v672_v31 = vmax.f32 %v669_v28, 0.0 }
 0x168   : > { %v825_v32 = vsel %vm823_vm2, %v672_v31, 0.0  ;;  %2961 = vmatmul.mubr.msk.f32.vlgmr.msra.gmra.mrb[2].mxu0 %vm512_vm1, %v672_v31 }
 0x169   : > { %v826_v33 = vrot.slane %v825_v32, 4  ;;  %3116 = vmatpush3.bf16.msra.mxu0 %v3115_v30  ;;  %2974 = vmatprep.mubr.msk.f32.mxu0 %vm3304_vm0, %v3305_v6 }
 0x16b   : > { %v827_v34 = vadd.f32 %v826_v33, %v825_v32 }
 0x16d   : > { %v828_v35 = vrot.slane %v827_v34, 2 }
 0x16f   : > { %v829_v36 = vadd.f32 %v828_v35, %v827_v34 }
 0x171   : > { %v830_v37 = vrot.slane %v829_v36, 1 }
 0x173   : > { %v831_v38 = vadd.f32 %v830_v37, %v829_v36 }
 0x175   : > { %v833_v39 = vmul.f32 0.33333334, %v831_v38 }
 0x177   : > { %2975 = vmatmul.mubr.msk.f32.vlgmr.msra.gmra.mrb[4].mxu0 %vm512_vm1, %v833_v39 }
 0x1c1   : > { %v815_v40 = vpop.f32.mrb[2].mxu1 }
 0x1c2   : > { %v2969_v41 = vpop.f32.mrb[3].mxu1 }
 0x23b   : > { %v742_v43 = vpop.f32.mrb[2].mxu0 }
 0x23c   : > { %v816_v45 = vadd.f32 %v815_v40, %v742_v43  ;;  %v2962_v46 = vpop.f32.mrb[3].mxu0 }
 0x23e   : > { %v822_v47 = vadd.f32 %v820_v44, %v816_v45 }
 0x240   : > { %824 = vst.msk [vmem:[#allocation2] sm:$0x7] %vm823_vm2, %v822_v47 }
 0x24a   : > { %v906_v48 = vpop.f32.mrb[4].mxu0 }
 0x24b   : > { %v907_v49 = vadd.f32 %v906_v48, %v835_v42  ;;  %v2976_v50 = vpop.f32.mrb[5].mxu0 }
 0x24d   : > { %v910_v51 = vmax.f32 %v907_v49, 0.0 }
 0x24f   : > { %912 = vst.msk [vmem:[#allocation3] sm:$0x1] %vm911_vm3, %v910_v51 }
 0x250 PF: > { %v3495_v52 = vld [vmem:[%s3419_s28] sm:$0xff]  ;;  %v3498_v53 = vld [vmem:[%s3419_s28 + $0x8] sm:$0xff]  ;;  %v3513_v58 = vld [vmem:[%s3429_s16 + $0x10] sm:$0xff]  ;;  %p2831_p5 = scmp.ge.s32.totalorder %s3404_s22, 1 }
 0x251   : > { %v3501_v54 = vld [vmem:[%s3424_s13] sm:$0xff]  ;;  %v3504_v55 = vld [vmem:[%s3424_s13 + $0x8] sm:$0xff]  ;;  %v3516_v59 = vld [vmem:[%s3429_s16 + $0x18] sm:$0xff]  ;;  %v3118_v0 = vpack.c.bf16 (!%p2831_p5), %v3498_v53, %v3495_v52  ;;  %v3309_v1 = vmov (!%p2831_p5), 0.0|0.0   ;;  %vm3310_vm4 = vmmov (!%p2831_p5), 0   ;;  %v3311_v2 = vmov (!%p2831_p5), 0.0  }
 0x252   : > { %v3507_v56 = vld [vmem:[%s3429_s16] sm:$0xff]  ;;  %v3510_v57 = vld [vmem:[%s3429_s16 + $0x8] sm:$0xff]  ;;  %928 = sbr.rel (%p2831_p5) target bundleno = 3386 (0xd3a), region = 76  ;;  %3117 = vmatprep.subr.bf16.mxu0 (!%p2831_p5), %v3309_v1  ;;  %2981 = vmatprep.mubr.msk.f32.mxu0 (!%p2831_p5), %vm3310_vm4, %v3311_v2  ;;  %vm934_vm5 = vcmask (!%p2831_p5), 130048   ;;  %v930_v4 = vlaneseq (!%p2831_p5)  ;;  %s3312_s23 = smov (!%p2831_p5), 120   ;;  %vm1011_vm6 = vcmask (!%p2831_p5), 64512   ;;  %v3205_v30 = vpack.i.bf16 (!%p2831_p5), %v3498_v53, %v3495_v52 }
 0x253   : > { %v3519_v60 = vld [vmem:[%s3435_s20] sm:$0x3]  ;;  %v3525_v62 = vld [vmem:[%s3440_s27 + $0x8] sm:$0x1]  ;;  %3119 = vmatpush3.bf16.msra.mxu0 (!%p2831_p5), %v3118_v0  ;;  %2984 = vmatprep.subr.mxu1 (!%p2831_p5), %v3311_v2  ;;  %s3313_s13 = smov (!%p2831_p5), 112   ;;  %s3314_s16 = smov (!%p2831_p5), 104  }
 0x254   : > { %v3522_v61 = vld [vmem:[%s3440_s27] sm:$0xff]  ;;  %2986 = vmatprep.mubr.msk.f32.mxu1 (!%p2831_p5), %vm3310_vm4, %v3311_v2  ;;  %2989 = vmatprep.subr.mxu0 (!%p2831_p5), %v3311_v2  ;;  %v3550_v5 = vshrl.u32 (!%p2831_p5), %v930_v4, 7  ;;  %vm1086_vm7 = vcmask (!%p2831_p5), 18432   ;;  %s3315_s20 = smov (!%p2831_p5), 88   ;;  %s3316_s27 = smov (!%p2831_p5), 96   ;;  %vm1104_vm8 = vcmask (!%p2831_p5), 1042432  }
 0x255   : > { %v3532_v63 = vld [vmem:[%s490_s30] sm:$0x1]  ;;  %s3317_s30 = smov (!%p2831_p5), 80   ;;  %vm1100_vm9 = vcmask (!%p2831_p5), 23552   ;;  %s3318_s5 = smov (!%p2831_p5), 8   ;;  %vm1434_vm10 = vcmask (!%p2831_p5), 124928  }
 0x256   : > { %v3540_v3 = vld [vmem:[#allocation2] sm:$0x7] (!%p2831_p5)  ;;  %v3553_v6 = vsub.s32 (!%p2831_p5), 0, %v3550_v5  ;;  %vm1543_vm11 = vcmask (!%p2831_p5), 261120  }
 0x257   : > { %2982 = vmatmul.mubr.msk.f32.vlgmr.msra.gmra.mrb[0].mxu0 (!%p2831_p5), %vm934_vm5, %v3540_v3 }
 0x258   : > { %2991 = vmatprep.mubr.msk.f32.mxu0 (!%p2831_p5), %vm3310_vm4, %v3311_v2  ;;  %v933_v7 = vrot.slane (!%p2831_p5), %v3519_v60, %v3553_v6  ;;  %v1351_v49 = vrot.slane (!%p2831_p5), %v3522_v61, %v3553_v6 }
 0x32a   : > { %v1004_v8 = vpop.f32.mrb[0].mxu0 }
 0x32b   : > { %v1005_v9 = vadd.f32 %v1004_v8, %v933_v7  ;;  %v2983_v10 = vpop.f32.mrb[1].mxu0 }
 0x32d   : > { %1177 = vrot.lane.b32.xlu1 %v1005_v9, %s3312_s23  ;;  %1009 = vrot.lane.b32.xlu0 %v1005_v9, %s3313_s13 }
 0x331   : > { %1179 = vrot.lane.b32.xlu0 %v1005_v9, %s3314_s16 }
 0x39f   : > { %v1010_v11 = vpop.permute.xlu0 %1009  ;;  %v1178_v13 = vpop.permute.xlu1 %1177 }
 0x3a0   : > { %2985 = vmatpush3.xpose.msk.msra.mxu1 %vm1011_vm6, %v1010_v11 }
 0x3a1   : > { %2994 = vmatprep.subr.mxu1 %v3311_v2 }
 0x3a3   : > { %2987 = vmatmul.mubr.msk.f32.vlgmr.msra.gmra.mrb[0].mxu1 %vm1011_vm6, %v1005_v9  ;;  %v1180_v12 = vpop.permute.xlu0 %1179 }
 0x3a4   : > { %2995 = vmatpush3.xpose.msk.msra.mxu1 %vm1011_vm6, %v1180_v12  ;;  %2996 = vmatprep.mubr.msk.f32.mxu1 %vm3310_vm4, %v3311_v2 }
 0x3a5   : > { %3120 = vmatprep.subr.bf16.mxu1 %v3309_v1 }
 0x3a7   : > { %2997 = vmatmul.mubr.msk.f32.vlgmr.msra.gmra.mrb[2].mxu1 %vm1011_vm6, %v1178_v13  ;;  %v3127_v13 = vpack.c.bf16 %v3510_v57, %v3507_v56 }
 0x3a8   : > { %3008 = vmatprep.mubr.msk.f32.mxu1 %vm3310_vm4, %v3311_v2 }
 0x476   : > { %v1082_v14 = vpop.f32.mrb[0].mxu1 }
 0x477   : > { %v2988_v15 = vpop.f32.mrb[1].mxu1  ;;  %v1087_v16 = vsel %vm1086_vm7, %v1082_v14, -inf }
 0x478   : > { %1088 = vmax.xlane.f32.xlu1 %v1087_v16  ;;  %v1451_v16 = vsub.s32 3, %v3550_v5 }
 0x47a   : > { %v1251_v17 = vpop.f32.mrb[2].mxu1 }
 0x47b   : > { %v2998_v18 = vpop.f32.mrb[3].mxu1  ;;  %v1255_v19 = vsel %vm1086_vm7, %v1251_v17, -inf }
 0x47c   : > { %1256 = vmax.xlane.f32.xlu0 %v1255_v19  ;;  %v1452_v18 = vrot.slane %v3522_v61, %v1451_v16 }
 0x505   : > { %v1089_v20 = vpop.xlane.xlu1 %1088 }
 0x506   : > { %v1090_v21 = vsub.f32 %v1082_v14, %v1089_v20 }
 0x508   : > { %v1091_v22 = vmul.f32 1.442695, %v1090_v21 }
 0x509   : > { %v1257_v23 = vpop.xlane.xlu0 %1256 }
 0x50a   : > { %3210 = vpow2.f32 %v1091_v22  ;;  %v1258_v24 = vsub.f32 %v1251_v17, %v1257_v23  ;;  %v1456_v17 = vsub.s32 4, %v3550_v5 }
 0x50c   : > { %v1259_v25 = vmul.f32 1.442695, %v1258_v24  ;;  %v1457_v21 = vrot.slane %v3522_v61, %v1456_v17  ;;  %v1463_v24 = vrot.slane %v3532_v63, %v3553_v6 }
 0x50e   : > { %3212 = vpow2.f32 %v1259_v25 }
 0x514   : > { %v3211_v26 = vpop.eup %3210 }
 0x515   : > { %v1093_v27 = vsel %vm1086_vm7, %v3211_v26, 0.0 }
 0x516   : > { %1094 = vadd.xlane.f32.xlu0 %v1093_v27 }
 0x518   : > { %v3213_v28 = vpop.eup %3212 }
 0x519   : > { %v1261_v29 = vsel %vm1086_vm7, %v3213_v28, 0.0 }
 0x51a   : > { %1262 = vadd.xlane.f32.xlu1 %v1261_v29  ;;  %v1541_v29 = vsub.s32 2, %v3550_v5 }
 0x52b   : > { %1266 = vrot.lane.b32.xlu1 %v1005_v9, %s3315_s20 }
 0x52c   : > { %1098 = vrot.lane.b32.xlu0 %v1005_v9, %s3316_s27 }
 0x52f   : > { %3206 = vrot.lane.b32.xlu1 %v3205_v30, %s3317_s30  ;;  %v1542_v30 = vrot.slane %v3522_v61, %v1541_v29 }
 0x5a3   : > { %v1095_v31 = vpop.xlane.xlu0 %1094 }
 0x5a4   : > { %3214 = vrcp.f32 %v1095_v31 }
 0x5a7   : > { %v1263_v32 = vpop.xlane.xlu1 %1262  ;;  %v1099_v33 = vpop.permute.xlu0 %1098 }
 0x5a8   : > { %3216 = vrcp.f32 %v1263_v32  ;;  %2990 = vmatpush3.msk.msra.mxu0 %vm1104_vm8, %v1099_v33 }
 0x5a9   : > { %2999 = vmatprep.subr.mxu0 %v3311_v2 }
 0x5ab   : > { %v1267_v36 = vpop.permute.xlu1 %1266 }
 0x5ae   : > { %v3215_v34 = vpop.eup %3214 }
 0x5af   : > { %v1097_v35 = vmul.f32 %v3215_v34, %v3211_v26  ;;  %v3207_v39 = vpop.permute.xlu1 %3206 }
 0x5b0   : > { %v3209_v40 = vunpack.i.h.bf16 %v3207_v39  ;;  %v3208_v41 = vunpack.i.l.bf16 %v3207_v39 }
 0x5b1   : > { %2992 = vmatmul.mubr.msk.f32.vlgmr.msra.gmra.mrb[2].mxu0 %vm1100_vm9, %v1097_v35 }
 0x5b2   : > { %v3217_v37 = vpop.eup %3216  ;;  %3000 = vmatpush3.msk.msra.mxu0 %vm1104_vm8, %v1267_v36  ;;  %3001 = vmatprep.mubr.msk.f32.mxu0 %vm3310_vm4, %v3311_v2  ;;  %v3121_v42 = vpack.c.bf16 %v3209_v40, %v3208_v41 }
 0x5b3   : > { %v1265_v38 = vmul.f32 %v3217_v37, %v3213_v28  ;;  %3123 = vmatprep.subr.bf16.mxu0 %v3309_v1 }
 0x5b4   : > { %3122 = vmatpush3.bf16.msra.mxu1 %v3121_v42 }
 0x5b5   : > { %3002 = vmatmul.mubr.msk.f32.vlgmr.msra.gmra.mrb[4].mxu0 %vm1100_vm9, %v1265_v38  ;;  %3126 = vmatprep.subr.bf16.mxu1 %v3309_v1 }
 0x5b6   : > { %3015 = vmatprep.mubr.msk.f32.mxu0 %vm3310_vm4, %v3311_v2 }
 0x684   : > { %v1173_v43 = vpop.f32.mrb[2].mxu0 }
 0x685   : > { %v2993_v44 = vpop.f32.mrb[3].mxu0 }
 0x686   : > { %v1638_v44 = vsub.s32 6, %v3550_v5 }
 0x688   : > { %v1339_v45 = vpop.f32.mrb[4].mxu0 }
 0x689   : > { %1344 = vrot.lane.b32.xlu0 %v1339_v45, %s3318_s5  ;;  %v3003_v46 = vpop.f32.mrb[5].mxu0 }
 0x6fb   : > { %v1345_v47 = vpop.permute.xlu0 %1344 }
 0x6fc   : > { %v1347_v48 = vsel %vm1011_vm6, %v1173_v43, %v1345_v47  ;;  %v1633_v43 = vsub.s32 5, %v3550_v5  ;;  %v1639_v47 = vrot.slane %v3522_v61, %v1638_v44 }
 0x6fd   : > { %3009 = vmatmul.mubr.msk.f32.vlgmr.msra.gmra.mrb[4].mxu1 %vm934_vm5, %v1347_v48 }
 0x6fe   : > { %3026 = vmatprep.mubr.msk.f32.mxu1 %vm3310_vm4, %v3311_v2  ;;  %v3124_v2 = vpack.c.bf16 %v3504_v55, %v3501_v54  ;;  %3128 = vmatpush3.bf16.msra.mxu1 %v3127_v13  ;;  %v1634_v45 = vrot.slane %v3522_v61, %v1633_v43 }
 0x6ff   : > { %3129 = vmatprep.subr.bf16.mxu1 %v3309_v1  ;;  %v3130_v1 = vpack.c.bf16 %v3516_v59, %v3513_v58 }
 0x700   : > { %3125 = vmatpush3.bf16.msra.mxu0 %v3124_v2  ;;  %v2845_v2 = vld [vmem:[%s3774_s11] ss:$0 sm:$0xff] (!%p2824_p4) }
 0x702   : > { %3131 = vmatpush3.bf16.msra.mxu1 %v3130_v1 }
 0x7d0   : > { %v1429_v50 = vpop.f32.mrb[4].mxu1 }
 0x7d1   : > { %v1430_v51 = vadd.f32 %v1429_v50, %v1351_v49  ;;  %v3010_v0 = vpop.f32.mrb[5].mxu1 }
 0x7d3   : > { %v1433_v4 = vadd.f32 %v1430_v51, %v3540_v3 }
 0x7d5   : > { %v1435_v7 = vsel %vm1434_vm10, %v1433_v4, 0.0 }
 0x7d6   : > { %1436 = vadd.xlane.f32.xlu1 %v1435_v7 }
 0x863   : > { %v1437_v8 = vpop.xlane.xlu1 %1436 }
 0x864   : > { %v1439_v9 = vmul.f32 0.0625, %v1437_v8 }
 0x866   : > { %v1440_v10 = vsub.f32 %v1433_v4, %v1439_v9 }
 0x868   : > { %v1441_v11 = vmul.f32 %v1440_v10, %v1440_v10 }
 0x86a   : > { %v1442_v12 = vsel %vm1434_vm10, %v1441_v11, 0.0 }
 0x86b   : > { %1443 = vadd.xlane.f32.xlu0 %v1442_v12 }
 0x8f8   : > { %v1444_v3 = vpop.xlane.xlu0 %1443 }
 0x8f9   : > { %v1445_v14 = vmul.f32 0.0625, %v1444_v3  ;;  %v2846_v3 = vld [vmem:[%s3774_s11 + $0x1] ss:$0 sm:$0xff] (!%p2824_p4) }
 0x8fb   : > { %v1446_v15 = vadd.f32 1e-05, %v1445_v14 }
 0x8fd   : > { %3218 = vrsqrt.f32 %v1446_v15 }
 0x907   : > { %v3219_v19 = vpop.eup %3218 }
 0x908   : > { %v1448_v20 = vmul.f32 %v3219_v19, %v1440_v10 }
 0x90a   : > { %v1453_v22 = vmul.f32 %v1452_v18, %v1448_v20 }
 0x90c   : > { %v1458_v23 = vadd.f32 %v1457_v21, %v1453_v22 }
 0x90e   : > { %3016 = vmatmul.mubr.msk.f32.vlgmr.msra.gmra.mrb[6].mxu0 %vm934_vm5, %v1458_v23 }
 0x9e1   : > { %v1534_v25 = vpop.f32.mrb[6].mxu0 }
 0x9e2   : > { %v1535_v26 = vadd.f32 %v1534_v25, %v1463_v24  ;;  %v3017_v27 = vpop.f32.mrb[7].mxu0 }
 0x9e4   : > { %v1538_v28 = vmax.f32 %v1535_v26, 0.0 }
 0x9e6   : > { %3027 = vmatmul.mubr.msk.f32.vlgmr.msra.gmra.mrb[6].mxu1 %vm1543_vm11, %v1538_v28 }
 0xab9   : > { %v1613_v31 = vpop.f32.mrb[6].mxu1 }
 0xaba   : > { %v1614_v32 = vadd.f32 %v1613_v31, %v1542_v30  ;;  %v3028_v33 = vpop.f32.mrb[7].mxu1 }
 0xabc   : > { %v1617_v34 = vadd.f32 %v1614_v32, %v1458_v23 }
 0xabe   : > { %v1618_v35 = vsel %vm1434_vm10, %v1617_v34, 0.0 }
 0xabf   : > { %1619 = vadd.xlane.f32.xlu0 %v1618_v35 }
 0xb4c   : > { %v1620_v36 = vpop.xlane.xlu0 %1619 }
 0xb4d   : > { %v1621_v37 = vmul.f32 0.0625, %v1620_v36 }
 0xb4f   : > { %v1622_v6 = vsub.f32 %v1617_v34, %v1621_v37 }
 0xb51   : > { %v1623_v38 = vmul.f32 %v1622_v6, %v1622_v6 }
 0xb53   : > { %v1624_v39 = vsel %vm1434_vm10, %v1623_v38, 0.0 }
 0xb54   : > { %1625 = vadd.xlane.f32.xlu1 %v1624_v39 }
 0xbe1   : > { %v1626_v40 = vpop.xlane.xlu1 %1625 }
 0xbe2   : > { %v1627_v41 = vmul.f32 0.0625, %v1626_v40 }
 0xbe4   : > { %v1628_v42 = vadd.f32 1e-05, %v1627_v41 }
 0xbe6   : > { %3220 = vrsqrt.f32 %v1628_v42 }
 0xbef   : > { %1643 = sbr.rel (%p2824_p4) target bundleno = 3377 (0xd31), region = 80 }
 0xbf0   : > { %v3221_v46 = vpop.eup %3220 }
 0xbf1   : > { %v1630_v48 = vmul.f32 %v3221_v46, %v1622_v6 }
 0xbf3   : > { %v1635_v49 = vmul.f32 %v1634_v45, %v1630_v48 }
 0xbf5   : > { %v1640_v50 = vadd.f32 %v1639_v47, %v1635_v49 }
 0xbf7   : > { %v1646_v51 = vsel %vm1434_vm10, %v1640_v50, 0.0 }
 0xbf8   : > { %1647 = vadd.xlane.f32.xlu0 %v1646_v51 }
 0xc85   : > { %v1648_v0 = vpop.xlane.xlu0 %1647 }
 0xc86   : > { %v1649_v4 = vmul.f32 0.0625, %v1648_v0 }
 0xc88   : > { %v1650_v7 = vsub.f32 %v1640_v50, %v1649_v4 }
 0xc8a   : > { %v1651_v8 = vmul.f32 %v1650_v7, %v1650_v7 }
 0xc8c   : > { %v1652_v5 = vsel %vm1434_vm10, %v1651_v8, 0.0 }
 0xc8d   : > { %1653 = vadd.xlane.f32.xlu0 %v1652_v5 }
 0xd1a   : > { %v1654_v9 = vpop.xlane.xlu0 %1653 }
 0xd1b   : > { %v1655_v10 = vmul.f32 0.0625, %v1654_v9 }
 0xd1d   : > { %v1656_v11 = vadd.f32 1e-05, %v1655_v10 }
 0xd1f   : > { %3222 = vrsqrt.f32 %v1656_v11 }
 0xd29   : > { %v3223_v12 = vpop.eup %3222 }
 0xd2a   : > { %v1658_v13 = vmul.f32 %v3223_v12, %v1650_v7 }
 0xd2c   : > { %v1663_v14 = vmul.f32 %v2845_v2, %v1658_v13 }
 0xd2e   : > { %v1668_v15 = vadd.f32 %v2846_v3, %v1663_v14 }
 0xd30   : > { %1669 = vst.msk [vmem:[#allocation2] sm:$0x7] %vm1434_vm10, %v1668_v15 }
 0xd31 PF: > { %p2847_p6 = scmp.eq.s32.totalorder %s3404_s22, 0 }
 0xd32   : > { %1674 = vst.msk [vmem:[#allocation2] sm:$0x7] (!%p2847_p6), %vm1434_vm10, %v1640_v50 }
 0xd33   : > { %1673 = sbr.rel (%p2847_p6) target bundleno = 3386 (0xd3a), region = 84 }
 0xd3a PF: > { %1678 = sbr.rel (%p464_p3) target bundleno = 7033 (0x1b79), region = 88  ;;  %v3628_v16 = vpack.i.bf16 (!%p464_p3), %v3498_v53, %v3495_v52  ;;  %v3319_v17 = vmov (!%p464_p3), 0.0|0.0   ;;  %vm3320_vm12 = vmmov (!%p464_p3), 0   ;;  %v3321_v18 = vmov (!%p464_p3), 0.0   ;;  %s3322_s26 = smov (!%p464_p3), 96  }
 0xd3b   : > { %3132 = vmatprep.subr.bf16.mxu1 (!%p464_p3), %v3319_v17  ;;  %3033 = vmatprep.mubr.msk.f32.mxu1 (!%p464_p3), %vm3320_vm12, %v3321_v18  ;;  %s3323_s29 = smov (!%p464_p3), 80   ;;  %v1679_v22 = vld [vmem:[#allocation3] sm:$0x1] (!%p464_p3)  ;;  %vm1693_vm13 = vcmask (!%p464_p3), 130048   ;;  %vm1847_vm14 = vcmask (!%p464_p3), 122880   ;;  %s3324_s25 = smov (!%p464_p3), 64   ;;  %v1866_v43 = vlaneseq (!%p464_p3)  ;;  %v1881_v47 = vcombine.high (!%p464_p3), %v3522_v61, %v3522_v61 }
 0xd3c   : > { %3225 = vrot.lane.b32.xlu0 (!%p464_p3), %v3628_v16, %s3322_s26  ;;  %1690 = vrot.lane.b32.xlu1 (!%p464_p3), %v3519_v60, %s3322_s26  ;;  %s3325_s14 = smov (!%p464_p3), 48   ;;  %v3326_v41 = vmov (!%p464_p3), 1966171168   ;;  %s3327_s15 = smov (!%p464_p3), 112   ;;  %v1680_v3 = vld [vmem:[#allocation2] sm:$0x7] (!%p464_p3) }
 0xd3d   : > { %3138 = vmatprep.subr.bf16.mxu0 (!%p464_p3), %v3319_v17  ;;  %3047 = vmatprep.mubr.msk.f32.mxu0 (!%p464_p3), %vm3320_vm12, %v3321_v18  ;;  %v1864_v42 = vunpack.c.l.s4 (!%p464_p3), %v3326_v41  ;;  %v1867_v46 = vshrl.u32 (!%p464_p3), %v1866_v43, 7  ;;  %vm2066_vm15 = vcmask (!%p464_p3), 64512   ;;  %s3328_s28 = smov (!%p464_p3), 120   ;;  %vm2143_vm0 = vcmask (!%p464_p3), 16384   ;;  %s3329_s17 = smov (!%p464_p3), 104  }
 0xd3e   : > { %vm2161_vm1 = vcmask (!%p464_p3), 1042432   ;;  %vm2157_vm2 = vcmask (!%p464_p3), 23552   ;;  %s3330_s23 = smov (!%p464_p3), 16   ;;  %s3331_s13 = smov (!%p464_p3), 8   ;;  %vm2589_vm3 = vcmask (!%p464_p3), 261120  }
 0xd3f   : > { %v1865_v45 = vunpack.c.0.s8 (!%p464_p3), %v1864_v42  ;;  %v1981_v51 = vsub.s32 (!%p464_p3), 1, %v1867_v46  ;;  %p2864_p7 = scmp.ne.s32.totalorder (!%p464_p3), %s3404_s22, 1 }
 0xd40   : > { %3230 = vrot.lane.b32.xlu0 (!%p464_p3), %v3628_v16, %s3323_s29 }
 0xd41   : > { %v1868_v48 = vsub.s32 %v1865_v45, %v1867_v46  ;;  %v1982_v4 = vrot.slane %v3519_v60, %v1981_v51 }
 0xd43   : > { %v1888_v49 = vrot.slane %v1881_v47, %v1868_v48  ;;  %v1869_v5 = vrot.slane %v3522_v61, %v1868_v48 }
 0xd45   : > { %v2500_v50 = vcombine.high %v1888_v49, %v1888_v49  ;;  %v1870_v2 = vcombine.high %v1869_v5, %v1869_v5 }
 0xd47   : > { %v3655_v0 = vrot.slane %v2500_v50, %v1868_v48  ;;  %v1877_v14 = vrot.slane %v1870_v2, %v1868_v48 }
 0xd49   : > { %v1878_v15 = vcombine.high %v1877_v14, %v1877_v14 }
 0xdae   : > { %v3226_v52 = vpop.permute.xlu0 %3225  ;;  %v1691_v25 = vpop.permute.xlu1 %1690 }
 0xdaf   : > { %v3228_v53 = vunpack.i.h.bf16 %v3226_v52  ;;  %v3227_v19 = vunpack.i.l.bf16 %v3226_v52 }
 0xdb1   : > { %v3133_v20 = vpack.c.bf16 %v3228_v53, %v3227_v19  ;;  %v3664_v19 = vrot.slane %v1888_v49, %v1868_v48 }
 0xdb2   : > { %v3231_v21 = vpop.permute.xlu0 %3230 }
 0xdb3   : > { %3134 = vmatpush3.bf16.msra.mxu1 %v3133_v20  ;;  %v3233_v23 = vunpack.i.h.bf16 %v3231_v21  ;;  %v3232_v1 = vunpack.i.l.bf16 %v3231_v21 }
 0xdb4   : > { %3135 = vmatprep.subr.bf16.mxu1 %v3319_v17 }
 0xdb5   : > { %v3136_v24 = vpack.c.bf16 %v3233_v23, %v3232_v1 }
 0xdb6   : > { %3034 = vmatmul.mubr.msk.f32.vlgmr.msra.gmra.mrb[0].mxu1 %vm1693_vm13, %v1679_v22 }
 0xdb7   : > { %3137 = vmatpush3.bf16.msra.mxu1 %v3136_v24  ;;  %3040 = vmatprep.mubr.msk.f32.mxu1 %vm3320_vm12, %v3321_v18 }
 0xdb8   : > { %3141 = vmatprep.subr.bf16.mxu1 %v3319_v17 }
 0xe89   : > { %v1763_v26 = vpop.f32.mrb[0].mxu1 }
 0xe8a   : > { %v1764_v27 = vadd.f32 %v1763_v26, %v1691_v25  ;;  %v3035_v28 = vpop.f32.mrb[1].mxu1  ;;  %v1904_v25 = vrot.slane %v3519_v60, 1 }
 0xe8c   : > { %3041 = vmatmul.mubr.msk.f32.vlgmr.msra.gmra.mrb[2].mxu1 %vm1693_vm13, %v1764_v27 }
 0xe8d   : > { %3054 = vmatprep.mubr.msk.f32.mxu1 %vm3320_vm12, %v3321_v18 }
 0xf5f   : > { %v1842_v29 = vpop.f32.mrb[2].mxu1 }
 0xf60   : > { %v1843_v30 = vadd.f32 %v1842_v29, %v3522_v61  ;;  %v3042_v31 = vpop.f32.mrb[3].mxu1 }
 0xf62   : > { %v1846_v32 = vadd.f32 %v1843_v30, %v1679_v22 }
 0xf64   : > { %v1848_v33 = vsel %vm1847_vm14, %v1846_v32, 0.0 }
 0xf65   : > { %1849 = vadd.xlane.f32.xlu1 %v1848_v33 }
 0xf76   : > { %3240 = vrot.lane.b32.xlu1 %v3628_v16, %s3324_s25 }
 0xf7a   : > { %1990 = vrot.lane.b32.xlu1 %v1982_v4, %s3327_s15 }
 0xff2   : > { %v1850_v34 = vpop.xlane.xlu1 %1849 }
 0xff3   : > { %v1852_v35 = vmul.f32 0.0625, %v1850_v34 }
 0xff5   : > { %v1853_v36 = vsub.f32 %v1846_v32, %v1852_v35 }
 0xff6   : > { %v3241_v38 = vpop.permute.xlu1 %3240 }
 0xff7   : > { %v1854_v37 = vmul.f32 %v1853_v36, %v1853_v36  ;;  %v3243_v39 = vunpack.i.h.bf16 %v3241_v38  ;;  %v3242_v40 = vunpack.i.l.bf16 %v3241_v38 }
 0xff9   : > { %v1855_v6 = vsel %vm1847_vm14, %v1854_v37, 0.0  ;;  %v3139_v44 = vpack.c.bf16 %v3243_v39, %v3242_v40 }
 0xffa   : > { %1856 = vadd.xlane.f32.xlu0 %v1855_v6  ;;  %v1991_v22 = vpop.permute.xlu1 %1990 }
 0xffb   : > { %3140 = vmatpush3.bf16.msra.mxu0 %v3139_v44 }
 0xffc   : > { %3057 = vmatprep.subr.mxu0 %v3321_v18 }
0x1010   : > { %3235 = vrot.lane.b32.xlu0 %v3628_v16, %s3325_s14 }
0x1087   : > { %v1857_v7 = vpop.xlane.xlu0 %1856 }
0x1088   : > { %v1858_v8 = vmul.f32 0.0625, %v1857_v7 }
0x108a   : > { %v1859_v9 = vadd.f32 1e-05, %v1858_v8 }
0x108b   : > { %v3236_v10 = vpop.permute.xlu0 %3235 }
0x108c   : > { %3249 = vrsqrt.f32 %v1859_v9  ;;  %v3238_v11 = vunpack.i.h.bf16 %v3236_v10  ;;  %v3237_v12 = vunpack.i.l.bf16 %v3236_v10 }
0x108e   : > { %v3142_v13 = vpack.c.bf16 %v3238_v11, %v3237_v12 }
0x1090   : > { %3143 = vmatpush3.bf16.msra.mxu1 %v3142_v13 }
0x1091   : > { %3062 = vmatprep.subr.mxu1 %v3321_v18 }
0x1093   : > { %3055 = vmatmul.mubr.msk.f32.vlgmr.msra.gmra.mrb[4].mxu1 %vm1693_vm13, %v1680_v3  ;;  %v2411_v3 = vrot.slane %v3522_v61, 1 }
0x1094   : > { %3064 = vmatprep.mubr.msk.f32.mxu1 %vm3320_vm12, %v3321_v18 }
0x1096   : > { %v3250_v52 = vpop.eup %3249 }
0x1097   : > { %v1861_v53 = vmul.f32 %v3250_v52, %v1853_v36 }
0x1099   : > { %v1880_v20 = vmul.f32 %v1878_v15, %v1861_v53 }
0x109b   : > { %v3667_v21 = vadd.f32 %v3664_v19, %v1880_v20 }
0x109d   : > { %3048 = vmatmul.mubr.msk.f32.vlgmr.msra.gmra.mrb[0].mxu0 %vm1693_vm13, %v3667_v21 }
0x109e   : > { %3059 = vmatprep.mubr.msk.f32.mxu0 %vm3320_vm12, %v3321_v18 }
0x1166   : > { %v2062_v23 = vpop.f32.mrb[4].mxu1 }
0x1167   : > { %v2063_v1 = vadd.f32 %v2062_v23, %v1991_v22  ;;  %v3056_v24 = vpop.f32.mrb[5].mxu1 }
0x1169   : > { %2236 = vrot.lane.b32.xlu0 %v2063_v1, %s3328_s28  ;;  %3058 = vmatpush3.xpose.msk.msra.mxu0 %vm2066_vm15, %v2063_v1 }
0x116a   : > { %3067 = vmatprep.subr.mxu0 %v3321_v18 }
0x1170   : > { %v1975_v26 = vpop.f32.mrb[0].mxu0 }
0x1171   : > { %v1976_v27 = vadd.f32 %v1975_v26, %v1904_v25  ;;  %v3049_v28 = vpop.f32.mrb[1].mxu0  ;;  %v3151_v26 = vpack.c.bf16 %v3510_v57, %v3507_v56 }
0x1173   : > { %2234 = vrot.lane.b32.xlu1 %v1976_v27, %s3328_s28  ;;  %3060 = vmatmul.mubr.msk.f32.vlgmr.msra.gmra.mrb[2].mxu0 %vm2066_vm15, %v1976_v27 }
0x1174   : > { %3069 = vmatprep.mubr.msk.f32.mxu0 %vm3320_vm12, %v3321_v18 }
0x11db   : > { %v2237_v29 = vpop.permute.xlu0 %2236 }
0x11dc   : > { %3068 = vmatpush3.xpose.msk.msra.mxu0 %vm2066_vm15, %v2237_v29 }
0x11dd   : > { %3144 = vmatprep.subr.bf16.mxu0 %v3319_v17 }
0x11e5   : > { %v2235_v30 = vpop.permute.xlu1 %2234 }
0x11e6   : > { %3070 = vmatmul.mubr.msk.f32.vlgmr.msra.gmra.mrb[4].mxu0 %vm2066_vm15, %v2235_v30  ;;  %v2510_v30 = vcombine.high %v3664_v19, %v3664_v19 }
0x11e7   : > { %3081 = vmatprep.mubr.msk.f32.mxu0 %vm3320_vm12, %v3321_v18 }
0x1246   : > { %v2139_v60 = vpop.f32.mrb[2].mxu0 }
0x1247   : > { %v3061_v31 = vpop.f32.mrb[3].mxu0  ;;  %v2144_v32 = vsel %vm2143_vm0, %v2139_v60, -inf }
0x1248   : > { %2145 = vmax.xlane.f32.xlu0 %v2144_v32 }
0x12b9   : > { %v2308_v33 = vpop.f32.mrb[4].mxu0 }
0x12ba   : > { %v3071_v34 = vpop.f32.mrb[5].mxu0  ;;  %v2312_v35 = vsel %vm2143_vm0, %v2308_v33, -inf }
0x12bb   : > { %2313 = vmax.xlane.f32.xlu1 %v2312_v35 }
0x12cc   : > { %2155 = vrot.lane.b32.xlu1 %v2063_v1, %s3327_s15 }
0x12d0   : > { %3245 = vrot.lane.b32.xlu1 %v3628_v16, %s3330_s23 }
0x12d5   : > { %v2146_v36 = vpop.xlane.xlu0 %2145 }
0x12d6   : > { %v2147_v37 = vsub.f32 %v2139_v60, %v2146_v36 }
0x12d8   : > { %v2148_v6 = vmul.f32 1.442695, %v2147_v37 }
0x12da   : > { %3251 = vpow2.f32 %v2148_v6 }
0x12e4   : > { %v3252_v38 = vpop.eup %3251 }
0x12e5   : > { %v2150_v39 = vsel %vm2143_vm0, %v3252_v38, 0.0 }
0x12e6   : > { %2151 = vadd.xlane.f32.xlu0 %v2150_v39 }
0x1348   : > { %v2314_v40 = vpop.xlane.xlu1 %2313 }
0x1349   : > { %v2315_v41 = vsub.f32 %v2308_v33, %v2314_v40  ;;  %v2587_v33 = vrot.slane %v3522_v61, 2  ;;  %v2677_v61 = vcombine.high %v3655_v0, %v3655_v0 }
0x134b   : > { %v2316_v42 = vmul.f32 1.442695, %v2315_v41 }
0x134c   : > { %v2156_v43 = vpop.permute.xlu1 %2155 }
0x134d   : > { %3253 = vpow2.f32 %v2316_v42  ;;  %3063 = vmatpush3.msk.msra.mxu1 %vm2161_vm1, %v2156_v43 }
0x134e   : > { %3072 = vmatprep.subr.mxu1 %v3321_v18 }
0x1350   : > { %v3246_v7 = vpop.permute.xlu1 %3245 }
0x1351   : > { %v3248_v8 = vunpack.i.h.bf16 %v3246_v7  ;;  %v3247_v5 = vunpack.i.l.bf16 %v3246_v7 }
0x1353   : > { %v3145_v9 = vpack.c.bf16 %v3248_v8, %v3247_v5 }
0x1355   : > { %3146 = vmatpush3.bf16.msra.mxu0 %v3145_v9  ;;  %v2686_v9 = vld [vmem:[%s3774_s11 + $0x3] sm:$0x1] (!%p2864_p7) }
0x1356   : > { %3150 = vmatprep.subr.bf16.mxu0 %v3319_v17 }
0x1357   : > { %v3254_v44 = vpop.eup %3253 }
0x1358   : > { %v2318_v45 = vsel %vm2143_vm0, %v3254_v44, 0.0 }
0x1359   : > { %2319 = vadd.xlane.f32.xlu0 %v2318_v45 }
0x136f   : > { %2323 = vrot.lane.b32.xlu0 %v2063_v1, %s3329_s17 }
0x1373   : > { %v2152_v46 = vpop.xlane.xlu0 %2151 }
0x1374   : > { %3255 = vrcp.f32 %v2152_v46 }
0x137e   : > { %v3256_v47 = vpop.eup %3255 }
0x137f   : > { %v2154_v48 = vmul.f32 %v3256_v47, %v3252_v38 }
0x1381   : > { %3065 = vmatmul.mubr.msk.f32.vlgmr.msra.gmra.mrb[6].mxu1 %vm2157_vm2, %v2154_v48 }
0x1382   : > { %3074 = vmatprep.mubr.msk.f32.mxu1 %vm3320_vm12, %v3321_v18 }
0x13e6   : > { %v2320_v49 = vpop.xlane.xlu0 %2319 }
0x13e7   : > { %3257 = vrcp.f32 %v2320_v49 }
0x13ea   : > { %v2324_v50 = vpop.permute.xlu0 %2323 }
0x13eb   : > { %3073 = vmatpush3.msk.msra.mxu1 %vm2161_vm1, %v2324_v50 }
0x13ec   : > { %3147 = vmatprep.subr.bf16.mxu1 %v3319_v17 }
0x13f1   : > { %v3258_v51 = vpop.eup %3257 }
0x13f2   : > { %v2322_v4 = vmul.f32 %v3258_v51, %v3254_v44 }
0x13f4   : > { %3075 = vmatmul.mubr.msk.f32.vlgmr.msra.gmra.mrb[8].mxu1 %vm2157_vm2, %v2322_v4 }
0x13f5   : > { %3088 = vmatprep.mubr.msk.f32.mxu1 %vm3320_vm12, %v3321_v18 }
0x1454   : > { %v2230_v16 = vpop.f32.mrb[6].mxu1 }
0x1455   : > { %v3066_v10 = vpop.f32.mrb[7].mxu1 }
0x14c7   : > { %v2396_v11 = vpop.f32.mrb[8].mxu1 }
0x14c8   : > { %2401 = vrot.lane.b32.xlu1 %v2396_v11, %s3331_s13  ;;  %v3076_v12 = vpop.f32.mrb[9].mxu1 }
0x153a   : > { %v2402_v2 = vpop.permute.xlu1 %2401 }
0x153b   : > { %v2404_v13 = vsel %vm2066_vm15, %v2230_v16, %v2402_v2 }
0x153c   : > { %3082 = vmatmul.mubr.msk.f32.vlgmr.msra.gmra.mrb[6].mxu0 %vm1693_vm13, %v2404_v13 }
0x153d   : > { %3099 = vmatprep.mubr.msk.f32.mxu0 %vm3320_vm12, %v3321_v18  ;;  %v3148_v18 = vpack.c.bf16 %v3504_v55, %v3501_v54  ;;  %3152 = vmatpush3.bf16.msra.mxu0 %v3151_v26  ;;  %v3154_v54 = vpack.c.bf16 %v3516_v59, %v3513_v58 }
0x153e   : > { %3153 = vmatprep.subr.bf16.mxu0 %v3319_v17 }
0x153f   : > { %3149 = vmatpush3.bf16.msra.mxu1 %v3148_v18 }
0x1541   : > { %3155 = vmatpush3.bf16.msra.mxu0 %v3154_v54 }
0x160f   : > { %v2482_v14 = vpop.f32.mrb[6].mxu0 }
0x1610   : > { %v2483_v15 = vadd.f32 %v2482_v14, %v2411_v3  ;;  %v3083_v52 = vpop.f32.mrb[7].mxu0 }
0x1612   : > { %v2486_v53 = vadd.f32 %v2483_v15, %v3667_v21 }
0x1614   : > { %v2487_v20 = vsel %vm1847_vm14, %v2486_v53, 0.0 }
0x1615   : > { %2488 = vadd.xlane.f32.xlu0 %v2487_v20 }
0x16a2   : > { %v2489_v22 = vpop.xlane.xlu0 %2488 }
0x16a3   : > { %v2490_v23 = vmul.f32 0.0625, %v2489_v22 }
0x16a5   : > { %v2491_v1 = vsub.f32 %v2486_v53, %v2490_v23 }
0x16a7   : > { %v2492_v24 = vmul.f32 %v2491_v1, %v2491_v1 }
0x16a9   : > { %v2493_v25 = vsel %vm1847_vm14, %v2492_v24, 0.0 }
0x16aa   : > { %2494 = vadd.xlane.f32.xlu1 %v2493_v25 }
0x1737   : > { %v2495_v21 = vpop.xlane.xlu1 %2494 }
0x1738   : > { %v2496_v27 = vmul.f32 0.0625, %v2495_v21 }
0x173a   : > { %v2497_v28 = vadd.f32 1e-05, %v2496_v27 }
0x173c   : > { %3259 = vrsqrt.f32 %v2497_v28 }
0x1746   : > { %v3260_v29 = vpop.eup %3259 }
0x1747   : > { %v2499_v60 = vmul.f32 %v3260_v29, %v2491_v1 }
0x1749   : > { %v2509_v31 = vmul.f32 %v3655_v0, %v2499_v60 }
0x174b   : > { %v2512_v32 = vadd.f32 %v2510_v30, %v2509_v31 }
0x174d   : > { %3089 = vmatmul.mubr.msk.f32.vlgmr.msra.gmra.mrb[10].mxu1 %vm1693_vm13, %v2512_v32 }
0x1820   : > { %v2582_v55 = vpop.f32.mrb[10].mxu1 }
0x1821   : > { %v2583_v56 = vadd.f32 %v2582_v55, %v3532_v63  ;;  %v3090_v57 = vpop.f32.mrb[11].mxu1 }
0x1823   : > { %v2586_v17 = vmax.f32 %v2583_v56, 0.0 }
0x1825   : > { %3100 = vmatmul.mubr.msk.f32.vlgmr.msra.gmra.mrb[8].mxu0 %vm2589_vm3, %v2586_v17 }
0x18f8   : > { %v2659_v19 = vpop.f32.mrb[8].mxu0 }
0x18f9   : > { %v2660_v34 = vadd.f32 %v2659_v19, %v2587_v33  ;;  %v3101_v35 = vpop.f32.mrb[9].mxu0 }
0x18fb   : > { %v2663_v36 = vadd.f32 %v2660_v34, %v2512_v32 }
0x18fd   : > { %v2664_v37 = vsel %vm1847_vm14, %v2663_v36, 0.0 }
0x18fe   : > { %2665 = vadd.xlane.f32.xlu0 %v2664_v37 }
0x198b   : > { %v2666_v6 = vpop.xlane.xlu0 %2665 }
0x198c   : > { %v2667_v38 = vmul.f32 0.0625, %v2666_v6 }
0x198e   : > { %v2668_v58 = vsub.f32 %v2663_v36, %v2667_v38 }
0x1990   : > { %v2669_v59 = vmul.f32 %v2668_v58, %v2668_v58 }
0x1992   : > { %v2670_v39 = vsel %vm1847_vm14, %v2669_v59, 0.0 }
0x1993   : > { %2671 = vadd.xlane.f32.xlu0 %v2670_v39 }
0x1a20   : > { %v2672_v63 = vpop.xlane.xlu0 %2671 }
0x1a21   : > { %v2673_v40 = vmul.f32 0.0625, %v2672_v63 }
0x1a23   : > { %v2674_v41 = vadd.f32 1e-05, %v2673_v40 }
0x1a25   : > { %3261 = vrsqrt.f32 %v2674_v41 }
0x1a2e   : > { %2684 = sbr.rel (%p2864_p7) target bundleno = 7024 (0x1b70), region = 92 }
0x1a2f   : > { %v3262_v42 = vpop.eup %3261 }
0x1a30   : > { %v2676_v43 = vmul.f32 %v3262_v42, %v2668_v58 }
0x1a32   : > { %v2679_v44 = vmul.f32 %v2677_v61, %v2676_v43 }
0x1a34   : > { %v2680_v45 = vadd.f32 %v2679_v44, %v3525_v62  ;;  %v2685_v62 = vld [vmem:[%s3774_s11 + $0x2] sm:$0x1] (!%p2864_p7) }
0x1a36   : > { %v2687_v46 = vsel %vm1847_vm14, %v2680_v45, 0.0 }
0x1a37   : > { %2688 = vadd.xlane.f32.xlu0 %v2687_v46 }
0x1ac4   : > { %v2689_v47 = vpop.xlane.xlu0 %2688 }
0x1ac5   : > { %v2690_v48 = vmul.f32 0.0625, %v2689_v47 }
0x1ac7   : > { %v2691_v49 = vsub.f32 %v2680_v45, %v2690_v48 }
0x1ac9   : > { %v2692_v50 = vmul.f32 %v2691_v49, %v2691_v49 }
0x1acb   : > { %v2693_v51 = vsel %vm1847_vm14, %v2692_v50, 0.0 }
0x1acc   : > { %2694 = vadd.xlane.f32.xlu0 %v2693_v51 }
0x1b59   : > { %v2695_v4 = vpop.xlane.xlu0 %2694 }
0x1b5a   : > { %v2696_v0 = vmul.f32 0.0625, %v2695_v4 }
0x1b5c   : > { %v2697_v7 = vadd.f32 1e-05, %v2696_v0 }
0x1b5e   : > { %3263 = vrsqrt.f32 %v2697_v7 }
0x1b68   : > { %v3264_v8 = vpop.eup %3263 }
0x1b69   : > { %v2699_v5 = vmul.f32 %v3264_v8, %v2691_v49 }
0x1b6b   : > { %v2700_v16 = vmul.f32 %v2699_v5, %v2685_v62 }
0x1b6d   : > { %v2701_v10 = vadd.f32 %v2700_v16, %v2686_v9 }
0x1b6f   : > { %2702 = vst.msk [vmem:[#allocation3] sm:$0x1] %vm1847_vm14, %v2701_v10 }
0x1b70 PF: > { %p2865_p8 = scmp.eq.s32.totalorder %s3404_s22, 1 }
0x1b71   : > { %2707 = vst.msk [vmem:[#allocation3] sm:$0x1] (!%p2865_p8), %vm1847_vm14, %v2680_v45 }
0x1b72   : > { %2706 = sbr.rel (%p2865_p8) target bundleno = 7033 (0x1b79), region = 96 }
0x1b79 PF: > { %p3160_p9 = scmp.eq.s32.totalorder %s3404_s22, 1  ;;  %s3332_s5 = smov [#allocation3]  }
0x1b7a   : > { %s2715_s21 = sshll.u32 %s3332_s5, 4  ;;  %s2716_s21 = int_to_ptr.vmem [resolvable:$true] %s2715_s21 }
0x1b7b   : > { %s3265_s24 = scalar_lea.vmem %s2716_s21, 16  ;;  %s3271_s18 = scalar_lea.vmem %s2716_s21, 32 }
0x1b7c   : > { %p3266_p10 = scmp.ne.s32.totalorder %s2716_s21, %s3265_s24  ;;  %p3272_p13 = scmp.lt.s32.totalorder %s2716_s21, %s2716_s21 }
0x1b7d   : > { %p3273_p0 = scmp.lt.s32.totalorder %s3271_s18, %s3265_s24 }
0x1b7e   : > { %p3267_p11 = pnand %p3266_p10, %p3160_p9 }
0x1b7f   : > { %p3274_p1 = por %p3273_p0, %p3272_p13 }
0x1b80   : > { %p3268_p12 = pneg %p3267_p11 }
0x1b82   : > { %p3275_p2 = pnand %p3274_p1, %p3268_p12 }
0x1b84   : > { %3278 = shalt.err (!%p3275_p2)
}
0x1b85   : > { %s3279_s29 = scalar_lea.hbm %s3775_s12, 16 }
0x1b86   : > { %p3280_p3 = scmp.ne.s32.totalorder %s3775_s12, %s3279_s29  ;;  %p3285_p6 = scmp.lt.u32.totalorder %s3279_s29, %s3775_s12 }
0x1b88   : > { %p3281_p4 = pnand %p3280_p3, %p3160_p9 }
0x1b8a   : > { %p3282_p5 = pneg %p3281_p4 }
0x1b8c   : > { %p3287_p7 = pnand %p3285_p6, %p3282_p5 }
0x1b8e   : > { %3290 = shalt.err (!%p3287_p7)
}
0x1b8f   : > { %3157 = dma.vmem_to_hbm [thread:$0]  (%p3160_p9), %s2716_s21, 16, %s3775_s12, [#allocation4]  }
0x1b90   : > { %3296 = dma.done.wait (%p3160_p9), [#allocation4], 16  }
0x1b91   : > { %3298 = vsyncadd (%p3160_p9), [#allocation4], 4294967280 }
0x1b92 PF: > { %s3780_s13 = sld [smem:[#allocation6_spill]] }
0x1b98   : > { %s23_s21 = sadd.s32 1, %s3780_s13  }
0x1b99   : > { %p20_p8 = scmp.ge.s32.totalorder %s23_s21, 4  }
0x1b9b   :  { %22 = sbr.rel (!%p20_p8) target bundleno = 3 (0x3), region = 138 }
0x1ba2   :  { %2728 = vsyncpa [#allocation4], 1 }
0x1ba3   :  { %2730 = vsyncpa [#allocation4 + $0x1], 1 }

// kernel: forward.4
= control target key start
LH: loop header
LB: loop body
LE: loop exit
PB: predicated region body
PF: predicated region fallthrough
CT: control target
= control target key end

     0   :  { %s5021_s29 = smov 0   ;;  %s5618_s0 = inlined_call_operand.vmem [shape: f32[12,16], index: 0, kind: input, shape index: {}]   ;;  %s5619_s1 = inlined_call_operand.vmem [shape: f32[12,16], index: 1, kind: input, shape index: {}]   ;;  %s5620_s2 = inlined_call_operand.vmem [shape: f32[2,3,4], index: 2, kind: input, shape index: {}]   ;;  %s5621_s3 = inlined_call_operand.vmem [shape: f32[16,32], index: 3, kind: input, shape index: {}]   ;;  %s5622_s4 = inlined_call_operand.vmem [shape: f32[16,16], index: 4, kind: input, shape index: {}]   ;;  %s5623_s5 = inlined_call_operand.vmem [shape: f32[1,48], index: 5, kind: input, shape index: {}]   ;;  %s5624_s6 = inlined_call_operand.vmem [shape: f32[2,16,128], index: 6, kind: input, shape index: {}]   ;;  %s5625_s7 = inlined_call_operand.vmem [shape: f32[2,16,32], index: 7, kind: input, shape index: {}]   ;;  %s5626_s8 = inlined_call_operand.vmem [shape: f32[2,32,16], index: 8, kind: input, shape index: {}]   ;;  %s5627_s9 = inlined_call_operand.vmem [shape: f32[2,2,48], index: 9, kind: input, shape index: {}]   ;;  %s5628_s10 = inlined_call_operand.vmem [shape: f32[2,9,16], index: 10, kind: input, shape index: {}]   ;;  %s5629_s11 = inlined_call_operand.vmem [shape: f32[2,1,32], index: 11, kind: input, shape index: {}]   ;;  %s5630_s12 = inlined_call_operand.vmem [shape: f32[4,16], index: 12, kind: input, shape index: {}]   ;;  %s5631_s13 = inlined_call_operand.vmem [shape: f32[3,16], index: 13, kind: output, shape index: {0}]   ;;  %s5632_s14 = inlined_call_operand.vmem [shape: f32[3,16], index: 14, kind: output, shape index: {1}]  }
   0x1   :  { %5634 = sst [smem:[#allocation4_spill]] %s5624_s6 }
   0x2   :  { %5635 = sst [smem:[#allocation5_spill]] %s5625_s7 }
   0x3 LB: > { %5636 = sst [smem:[#allocation3_spill]] %s4917_s29  ;;  %s5027_s30 = sadd.s32 4294967295, %s4917_s29   ;;  %s4917_s29 = sphi %s5021_s29, %s25_s29  }
   0x4   : > { %p4290_p0 = scmp.ge.s32.totalorder %s4917_s29, 1  ;;  %p452_p1 = scmp.lt.s32.totalorder %s4917_s29, 3 }
   0x6   : > { %p453_p2 = pnand %p4290_p0, %p452_p1 }
   0x7   : > { %p515_p3 = scmp.lt.s32.totalorder (!%p453_p2), %s5027_s30, 1  ;;  %v555_v0 = vlaneseq (!%p453_p2)  ;;  %v4300_v1 = vld.sshfl [vmem:[%s5620_s2] sm:$0x13 pattern:$0x75316420] (!%p453_p2)  ;;  %s5637_s6 = sld [smem:[#allocation4_spill]] (!%p453_p2) }
   0x8   : > { %456 = sbr.rel (%p453_p2) target bundleno = 8117 (0x1fb5), region = 72  ;;  %v4919_v2 = vmov (!%p453_p2), 1966171168   ;;  %v551_v5 = vcombine.high (!%p453_p2), %v4300_v1, %v4300_v1  ;;  %s5638_s7 = sld [smem:[#allocation5_spill]] (!%p453_p2) }
   0x9   : > { %v553_v3 = vunpack.c.l.s4 (!%p453_p2), %v4919_v2  ;;  %v5040_v4 = vshrl.u32 (!%p453_p2), %v555_v0, 7  ;;  %p4301_p4 = scmp.ne.s32.totalorder (!%p453_p2), %s5027_s30, 0 }
   0xb   : > { %v554_v6 = vunpack.c.0.s8 (!%p453_p2), %v553_v3 }
   0xd   : > { %v5061_v7 = vsub.s32 (!%p453_p2), %v554_v6, %v5040_v4 }
   0xf   : > { %s5038_s17 = scalar_select %p515_p3, %s5027_s30, 1  ;;  %v5078_v8 = vrot.slane %v4300_v1, %v5061_v7  ;;  %v5081_v9 = vrot.slane %v551_v5, %v5061_v7 }
  0x10   : > { %573 = sbr.rel (%p4301_p4) target bundleno = 598 (0x256), region = 76  ;;  %v574_v11 = vld [vmem:[%s5621_s3] sm:$0xff] (!%p4301_p4)  ;;  %v575_v12 = vld [vmem:[%s5621_s3 + $0x8] sm:$0xff] (!%p4301_p4)  ;;  %vm587_vm0 = vcmask (!%p4301_p4), 130048   ;;  %v777_v14 = vsub.s32 (!%p4301_p4), 0, %v5040_v4  ;;  %v784_v18 = vsub.s32 (!%p4301_p4), 1, %v5040_v4 }
  0x11   : > { %s4386_s18 = sshll.u32 %s5038_s17, 4  ;;  %s4388_s19 = sshll.u32 %s5038_s17, 5  ;;  %v5085_v10 = vcombine.high %v5078_v8, %v5078_v8  ;;  %v674_v13 = vld [vmem:[%s5619_s1] sm:$0xff] (!%p4301_p4)  ;;  %v4808_v15 = vpack.i.bf16 (!%p4301_p4), %v575_v12, %v574_v11  ;;  %v791_v19 = vsub.s32 (!%p4301_p4), 2, %v5040_v4  ;;  %v675_v27 = vld [vmem:[%s5619_s1 + $0x8] sm:$0xf] (!%p4301_p4)  ;;  %v4717_v28 = vpack.c.bf16 (!%p4301_p4), %v575_v12, %v574_v11 }
  0x12   : > { %s5047_s22 = scalar_lea.vmem %s5637_s6, %s4386_s18  ;;  %s5052_s25 = scalar_lea.vmem %s5638_s7, %s4386_s18  ;;  %4502 = vmatprep.mubr.msk.f32.mxu1 (!%p4301_p4), %vm587_vm0, %v674_v13  ;;  %v4307_v16 = vld [vmem:[%s5620_s2 + $0x4] sm:$0x7] (!%p4301_p4)  ;;  %v5109_v20 = vld [vmem:[%s5623_s5] ss:$0 sm:$0xff] (!%p4301_p4)  ;;  %v578_v31 = vld [vmem:[%s5618_s0 + $0x8] sm:$0xf] (!%p4301_p4) }
  0x13   : > { %s5057_s28 = scalar_lea.vmem %s5626_s8, %s4388_s19  ;;  %s4297_s15 = sshll.u32 %s5038_s17, 1  ;;  %v778_v17 = vrot.slane (!%p4301_p4), %v4307_v16, %v777_v14  ;;  %v785_v21 = vrot.slane (!%p4301_p4), %v4307_v16, %v784_v18  ;;  %v792_v22 = vrot.slane (!%p4301_p4), %v4307_v16, %v791_v19  ;;  %4718 = vmatprep.subr.bf16.mxu0 (!%p4301_p4), %v4717_v28  ;;  %v577_v29 = vld [vmem:[%s5618_s0] sm:$0xff] (!%p4301_p4)  ;;  %v580_v32 = vmax.f32 (!%p4301_p4), %v578_v31, 0.0  ;;  %v821_v34 = vld [vmem:[%s5622_s4 + $0x8] sm:$0xff] (!%p4301_p4) }
  0x14   : > { %s5066_s20 = scalar_lea.vmem %s5627_s9, %s4297_s15  ;;  %s5071_s23 = scalar_lea.vmem %s5628_s10, %s4386_s18  ;;  %4720 = vmatpush3.bf16.msra.mxu0 (!%p4301_p4), %v4717_v28  ;;  %v579_v30 = vmax.f32 (!%p4301_p4), %v577_v29, 0.0  ;;  %v820_v33 = vld [vmem:[%s5622_s4] sm:$0xff] (!%p4301_p4)  ;;  %v4921_v36 = vmov (!%p4301_p4), 0.0|0.0   ;;  %vm4922_vm1 = vmmov (!%p4301_p4), 0   ;;  %v4923_v37 = vmov (!%p4301_p4), 0.0  }
  0x15   : > { %s541_s26 = scalar_lea.vmem %s5629_s11, %s5038_s17  ;;  %s4920_s21 = smov (!%p4301_p4), 112   ;;  %780 = vbcast.lane.b32.xlu1 (!%p4301_p4), %v778_v17, 256  ;;  %v4726_v35 = vpack.c.bf16 (!%p4301_p4), %v821_v34, %v820_v33  ;;  %4725 = vmatprep.subr.bf16.mxu0 (!%p4301_p4), %v4921_v36  ;;  %vm672_vm2 = vcmask (!%p4301_p4), 125952   ;;  %vm825_vm3 = vcmask (!%p4301_p4), 1041409   ;;  %vm827_vm4 = vcmask (!%p4301_p4), 1042434  }
  0x16   : > { %4809 = vrot.lane.b32.xlu0 (!%p4301_p4), %v4808_v15, %s4920_s21  ;;  %4495 = vmatprep.mubr.msk.f32.mxu0 (!%p4301_p4), %vm587_vm0, %v579_v30  ;;  %s4924_s29 = smov (!%p4301_p4), 96   ;;  %vm905_vm5 = vcmask (!%p4301_p4), 124928  }
  0x17   : > { %4496 = vmatmul.mubr.msk.f32.vlgmr.msra.gmra.mrb[0].mxu0 %vm587_vm0, %v580_v32 }
  0x18   : > { %4727 = vmatpush3.bf16.msra.mxu0 %v4726_v35  ;;  %4509 = vmatprep.mubr.msk.f32.mxu0 %vm4922_vm1, %v4923_v37 }
  0x19   : > { %787 = vbcast.lane.b32.xlu1 %v785_v21, 256 }
  0x1a   : > { %684 = vrot.lane.b32.xlu0 %v5109_v20, %s4920_s21 }
  0x1d   : > { %829 = vrot.lane.b32.xlu1 %v5109_v20, %s4924_s29 }
  0x1e   : > { %794 = vbcast.lane.b32.xlu0 %v792_v22, 256 }
  0x87   : > { %v781_v39 = vpop.permute.xlu1 %780 }
  0x88   : > { %v4810_v23 = vpop.permute.xlu0 %4809 }
  0x89   : > { %v4812_v24 = vunpack.i.h.bf16 %v4810_v23  ;;  %v4811_v25 = vunpack.i.l.bf16 %v4810_v23 }
  0x8b   : > { %v4721_v26 = vpack.c.bf16 %v4812_v24, %v4811_v25  ;;  %v788_v48 = vpop.permute.xlu1 %787 }
  0x8c   : > { %v685_v38 = vpop.permute.xlu0 %684 }
  0x8d   : > { %4722 = vmatprep.subr.bf16.mxu1 %v4721_v26 }
  0x8e   : > { %4724 = vmatpush3.bf16.msra.mxu1 %v4721_v26 }
  0x8f   : > { %v830_v23 = vpop.permute.xlu1 %829 }
  0x90   : > { %v795_v44 = vpop.permute.xlu0 %794 }
  0x91   : > { %4503 = vmatmul.mubr.msk.f32.vlgmr.msra.gmra.mrb[0].mxu1 %vm587_vm0, %v675_v27 }
  0xea   : > { %v4497_v16 = vpop.f32.mrb[0].mxu0 }
  0xeb   : > { %v666_v17 = vadd.f32 %v4497_v16, %v5109_v20  ;;  %v660_v18 = vpop.f32.mrb[1].mxu0 }
  0xec   : > { %v661_v19 = vadd.f32 %v5109_v20, %v660_v18 }
  0xed   : > { %v670_v21 = vmax.f32 %v666_v17, 0.0 }
  0xee   : > { %v669_v22 = vmax.f32 %v661_v19, 0.0 }
  0xef   : > { %673 = vst.msk [vmem:[#allocation2 + $0x8] sm:$0xf] %vm672_vm2, %v670_v21 }
  0xf0   : > { %671 = vst.msk [vmem:[#allocation2] sm:$0xff] %vm587_vm0, %v669_v22 }
 0x164   : > { %v4504_v40 = vpop.f32.mrb[0].mxu1 }
 0x165   : > { %v765_v41 = vadd.f32 %v4504_v40, %v685_v38  ;;  %v759_v42 = vpop.f32.mrb[1].mxu1 }
 0x166   : > { %v760_v43 = vadd.f32 %v759_v42, %v685_v38 }
 0x167   : > { %v769_v45 = vmax.f32 %v765_v41, 0.0 }
 0x168   : > { %v768_v46 = vmax.f32 %v760_v43, 0.0 }
 0x169   : > { %v798_v47 = vmul.f32 %v795_v44, %v769_v45 }
 0x16a   : > { %v796_v49 = vmul.f32 %v781_v39, %v768_v46  ;;  %v773_v50 = vcombine.high %v768_v46, %v768_v46 }
 0x16b   : > { %v813_v51 = vsel %vm672_vm2, %v798_v47, 0.0 }
 0x16c   : > { %v799_v52 = vsel %vm672_vm2, %v796_v49, 0.0  ;;  %v814_v53 = vrot.slane %v813_v51, 4  ;;  %v797_v54 = vmul.f32 %v788_v48, %v773_v50 }
 0x16d   : > { %v800_v55 = vrot.slane %v799_v52, 4 }
 0x16e   : > { %v815_v56 = vadd.f32 %v814_v53, %v813_v51  ;;  %v806_v57 = vsel %vm672_vm2, %v797_v54, 0.0 }
 0x16f   : > { %v801_v58 = vadd.f32 %v800_v55, %v799_v52  ;;  %v807_v59 = vrot.slane %v806_v57, 4 }
 0x170   : > { %v816_v60 = vrot.slane %v815_v56, 2 }
 0x171   : > { %v802_v61 = vrot.slane %v801_v58, 2  ;;  %v808_v62 = vadd.f32 %v807_v59, %v806_v57 }
 0x172   : > { %v817_v63 = vadd.f32 %v816_v60, %v815_v56 }
 0x173   : > { %v803_v0 = vadd.f32 %v802_v61, %v801_v58  ;;  %v809_v1 = vrot.slane %v808_v62, 2 }
 0x174   : > { %v818_v5 = vrot.slane %v817_v63, 1 }
 0x175   : > { %v804_v2 = vrot.slane %v803_v0, 1  ;;  %v810_v3 = vadd.f32 %v809_v1, %v808_v62 }
 0x176   : > { %v819_v13 = vadd.f32 %v818_v5, %v817_v63 }
 0x177   : > { %v811_v6 = vrot.slane %v810_v3, 1  ;;  %v805_v11 = vadd.f32 %v804_v2, %v803_v0 }
 0x179   : > { %v812_v12 = vadd.f32 %v811_v6, %v810_v3 }
 0x17b   : > { %v826_v14 = vsel %vm825_vm3, %v812_v12, %v805_v11 }
 0x17c   : > { %v828_v15 = vsel %vm827_vm4, %v819_v13, %v826_v14 }
 0x17d   : > { %4510 = vmatmul.mubr.msk.f32.vlgmr.msra.gmra.mrb[2].mxu0 %vm587_vm0, %v828_v15 }
 0x250   : > { %v900_v24 = vpop.f32.mrb[2].mxu0 }
 0x251   : > { %v901_v25 = vadd.f32 %v900_v24, %v830_v23  ;;  %v4511_v26 = vpop.f32.mrb[3].mxu0 }
 0x253   : > { %v904_v27 = vmax.f32 %v901_v25, 0.0 }
 0x255   : > { %906 = vst.msk [vmem:[%s5632_s14] sm:$0x7] %vm905_vm5, %v904_v27  ;;  %907 = vst.msk [vmem:[%s5631_s13] sm:$0x7] %vm905_vm5, %v904_v27 }
 0x256 PF: > { %v5146_v20 = vld [vmem:[%s5047_s22] sm:$0xff]  ;;  %v5149_v28 = vld [vmem:[%s5047_s22 + $0x8] sm:$0xff]  ;;  %v5164_v33 = vld [vmem:[%s5057_s28 + $0x10] sm:$0xff]  ;;  %p4309_p5 = scmp.ge.s32.totalorder %s5027_s30, 1 }
 0x257   : > { %v5152_v29 = vld [vmem:[%s5052_s25] sm:$0xff]  ;;  %v5155_v30 = vld [vmem:[%s5052_s25 + $0x8] sm:$0xff]  ;;  %v5167_v34 = vld [vmem:[%s5057_s28 + $0x18] sm:$0xff]  ;;  %v4728_v39 = vpack.c.bf16 (!%p4309_p5), %v5149_v28, %v5146_v20  ;;  %vm930_vm6 = vcmask (!%p4309_p5), 130048   ;;  %v4925_v42 = vmov (!%p4309_p5), 0.0   ;;  %vm4926_vm7 = vmmov (!%p4309_p5), 0  }
 0x258   : > { %v5158_v31 = vld [vmem:[%s5057_s28] sm:$0xff]  ;;  %v5161_v32 = vld [vmem:[%s5057_s28 + $0x8] sm:$0xff]  ;;  %923 = sbr.rel (%p4309_p5) target bundleno = 3989 (0xf95), region = 80  ;;  %4519 = vmatprep.subr.mxu1 (!%p4309_p5), %v4925_v42  ;;  %4521 = vmatprep.mubr.msk.f32.mxu1 (!%p4309_p5), %vm4926_vm7, %v4925_v42  ;;  %v5203_v43 = vsub.s32 (!%p4309_p5), 0, %v5040_v4  ;;  %s4927_s17 = smov (!%p4309_p5), 112   ;;  %vm1032_vm8 = vcmask (!%p4309_p5), 64512  }
 0x259   : > { %v5170_v35 = vld [vmem:[%s5066_s20] sm:$0x3]  ;;  %v5176_v37 = vld [vmem:[%s5071_s23 + $0x8] ss:$0 sm:$0xff]  ;;  %4729 = vmatprep.subr.bf16.mxu0 (!%p4309_p5), %v4728_v39  ;;  %vm1259_vm9 = vcmask (!%p4309_p5), 27648   ;;  %s4928_s25 = smov (!%p4309_p5), 96  }
 0x25a   : > { %v5173_v36 = vld [vmem:[%s5071_s23] sm:$0xff]  ;;  %4731 = vmatpush3.bf16.msra.mxu0 (!%p4309_p5), %v4728_v39  ;;  %v5192_v41 = vld [vmem:[#allocation2 + $0x8] sm:$0xf] (!%p4309_p5)  ;;  %v929_v44 = vrot.slane (!%p4309_p5), %v5170_v35, %v5203_v43  ;;  %v5238_v53 = vrot.slane (!%p4309_p5), %v5078_v8, %v5203_v43  ;;  %v5243_v57 = vrot.slane (!%p4309_p5), %v5081_v9, %v5203_v43  ;;  %v5248_v59 = vrot.slane (!%p4309_p5), %v5085_v10, %v5203_v43  ;;  %s4929_s28 = smov (!%p4309_p5), 104   ;;  %s4930_s20 = smov (!%p4309_p5), 120  }
 0x25b   : > { %v5183_v38 = vld [vmem:[%s541_s26] sm:$0x1]  ;;  %4524 = vmatprep.subr.mxu0 (!%p4309_p5), %v4925_v42  ;;  %vm1299_vm10 = vcmask (!%p4309_p5), 1043456   ;;  %vm1295_vm11 = vcmask (!%p4309_p5), 31744   ;;  %s4931_s23 = smov (!%p4309_p5), 88   ;;  %s4932_s26 = smov (!%p4309_p5), 80  }
 0x25c   : > { %v5188_v40 = vld [vmem:[#allocation2] sm:$0xff] (!%p4309_p5)  ;;  %s4933_s16 = smov (!%p4309_p5), 8   ;;  %vm2139_vm12 = vcmask (!%p4309_p5), 125952   ;;  %vm2269_vm13 = vcmask (!%p4309_p5), 261120  }
 0x25d   : > { %4516 = vmatprep.mubr.msk.f32.mxu0 (!%p4309_p5), %vm930_vm6, %v5188_v40 }
 0x25e   : > { %4517 = vmatmul.mubr.msk.f32.vlgmr.msra.gmra.mrb[0].mxu0 (!%p4309_p5), %vm930_vm6, %v5192_v41 }
 0x25f   : > { %4526 = vmatprep.mubr.msk.f32.mxu0 %vm4926_vm7, %v4925_v42 }
 0x331   : > { %v4518_v45 = vpop.f32.mrb[0].mxu0 }
 0x332   : > { %v5207_v46 = vadd.f32 %v4518_v45, %v929_v44  ;;  %v1003_v47 = vpop.f32.mrb[1].mxu0 }
 0x333   : > { %v5209_v48 = vadd.f32 %v1003_v47, %v929_v44 }
 0x334   : > { %1183 = vrot.lane.b32.xlu1 %v5207_v46, %s4927_s17 }
 0x335   : > { %1030 = vrot.lane.b32.xlu0 %v5209_v48, %s4927_s17  ;;  %v5215_v49 = vcombine.high %v5209_v48, %v5209_v48 }
 0x339   : > { %1107 = vrot.lane.b32.xlu0 %v5215_v49, %s4927_s17 }
 0x3a6   : > { %v1184_v51 = vpop.permute.xlu1 %1183 }
 0x3a7   : > { %v1031_v50 = vpop.permute.xlu0 %1030 }
 0x3a8   : > { %4520 = vmatpush3.xpose.msk.msra.mxu1 %vm1032_vm8, %v1031_v50 }
 0x3a9   : > { %4529 = vmatprep.subr.mxu1 %v4925_v42 }
 0x3ab   : > { %4522 = vmatmul.mubr.msk.f32.vlgmr.msra.gmra.mrb[0].mxu1 %vm1032_vm8, %v5209_v48  ;;  %v1108_v52 = vpop.permute.xlu0 %1107 }
 0x3ac   : > { %4525 = vmatpush3.xpose.msk.msra.mxu0 %vm1032_vm8, %v1108_v52  ;;  %4530 = vmatpush3.xpose.msk.msra.mxu1 %vm1032_vm8, %v1184_v51 }
 0x3ad   : > { %4531 = vmatprep.mubr.msk.f32.mxu1 %vm4926_vm7, %v4925_v42  ;;  %4539 = vmatprep.subr.mxu1 %v4925_v42 }
 0x3ae   : > { %4534 = vmatprep.subr.mxu0 %v4925_v42 }
 0x3af   : > { %4527 = vmatmul.mubr.msk.f32.vlgmr.msra.gmra.mrb[2].mxu0 %vm1032_vm8, %v5215_v49  ;;  %4532 = vmatmul.mubr.msk.f32.vlgmr.msra.gmra.mrb[2].mxu1 %vm1032_vm8, %v5207_v46 }
 0x3b0   : > { %4536 = vmatprep.mubr.msk.f32.mxu0 %vm4926_vm7, %v4925_v42  ;;  %4541 = vmatprep.mubr.msk.f32.mxu1 %vm4926_vm7, %v4925_v42 }
 0x47e   : > { %v1103_v54 = vpop.f32.mrb[0].mxu1 }
 0x47f   : > { %v1104_v55 = vadd.f32 %v1103_v54, %v5238_v53  ;;  %v4523_v56 = vpop.f32.mrb[1].mxu1 }
 0x481   : > { %v1260_v58 = vsel %vm1259_vm9, %v1104_v55, -inf }
 0x482   : > { %1261 = vmax.xlane.f32.xlu1 %v1260_v58  ;;  %v1179_v60 = vpop.f32.mrb[2].mxu0  ;;  %v1255_v61 = vpop.f32.mrb[2].mxu1 }
 0x483   : > { %v1180_v62 = vadd.f32 %v1179_v60, %v5243_v57  ;;  %v4528_v63 = vpop.f32.mrb[3].mxu0  ;;  %v4533_v0 = vpop.f32.mrb[3].mxu1  ;;  %v1256_v1 = vadd.f32 %v1255_v61, %v5248_v59 }
 0x485   : > { %v1263_v2 = vsel %vm1259_vm9, %v1180_v62, -inf  ;;  %v1266_v3 = vsel %vm1259_vm9, %v1256_v1, -inf }
 0x486   : > { %1264 = vmax.xlane.f32.xlu0 %v1263_v2 }
 0x48a   : > { %1267 = vmax.xlane.f32.xlu0 %v1266_v3 }
 0x493   : > { %1372 = vrot.lane.b32.xlu1 %v5215_v49, %s4928_s25 }
 0x497   : > { %1449 = vrot.lane.b32.xlu1 %v5207_v46, %s4928_s25 }
 0x49b   : > { %1606 = vrot.lane.b32.xlu1 %v5215_v49, %s4929_s28 }
 0x4a0   : > { %1293 = vrot.lane.b32.xlu0 %v5209_v48, %s4928_s25 }
 0x4a4   : > { %1528 = vrot.lane.b32.xlu0 %v5209_v48, %s4929_s28 }
 0x50f   : > { %v1262_v5 = vpop.xlane.xlu1 %1261 }
 0x510   : > { %v1269_v6 = vsub.f32 %v1104_v55, %v1262_v5 }
 0x512   : > { %v1272_v11 = vmul.f32 1.442695, %v1269_v6 }
 0x513   : > { %v1373_v12 = vpop.permute.xlu1 %1372  ;;  %v1265_v13 = vpop.xlane.xlu0 %1264 }
 0x514   : > { %4818 = vpow2.f32 %v1272_v11  ;;  %v1270_v14 = vsub.f32 %v1180_v62, %v1265_v13  ;;  %4540 = vmatpush3.msk.msra.mxu1 %vm1299_vm10, %v1373_v12 }
 0x515   : > { %4549 = vmatprep.subr.mxu1 %v4925_v42 }
 0x516   : > { %v1274_v15 = vmul.f32 1.442695, %v1270_v14 }
 0x517   : > { %v1268_v16 = vpop.xlane.xlu0 %1267  ;;  %v1450_v27 = vpop.permute.xlu1 %1449 }
 0x518   : > { %4820 = vpow2.f32 %v1274_v15  ;;  %v1271_v23 = vsub.f32 %v1256_v1, %v1268_v16 }
 0x51a   : > { %v1276_v24 = vmul.f32 1.442695, %v1271_v23 }
 0x51b   : > { %v1294_v17 = vpop.permute.xlu0 %1293  ;;  %v1607_v39 = vpop.permute.xlu1 %1606 }
 0x51c   : > { %4535 = vmatpush3.msk.msra.mxu0 %vm1299_vm10, %v1294_v17  ;;  %4822 = vpow2.f32 %v1276_v24 }
 0x51d   : > { %4544 = vmatprep.subr.mxu0 %v4925_v42 }
 0x51e   : > { %v4819_v18 = vpop.eup %4818 }
 0x51f   : > { %v1278_v19 = vsel %vm1259_vm9, %v4819_v18, 0.0  ;;  %v1529_v44 = vpop.permute.xlu0 %1528 }
 0x520   : > { %1279 = vadd.xlane.f32.xlu1 %v1278_v19 }
 0x522   : > { %v4821_v21 = vpop.eup %4820 }
 0x523   : > { %v1281_v22 = vsel %vm1259_vm9, %v4821_v21, 0.0 }
 0x524   : > { %1282 = vadd.xlane.f32.xlu0 %v1281_v22 }
 0x526   : > { %v4823_v25 = vpop.eup %4822 }
 0x527   : > { %v1284_v26 = vsel %vm1259_vm9, %v4823_v25, 0.0 }
 0x531   : > { %1604 = vrot.lane.b32.xlu1 %v5215_v49, %s4930_s20 }
 0x53a   : > { %1526 = vrot.lane.b32.xlu0 %v5209_v48, %s4930_s20 }
 0x53e   : > { %1684 = vrot.lane.b32.xlu0 %v5207_v46, %s4929_s28 }
 0x555   : > { %1285 = vadd.xlane.f32.xlu1 %v1284_v26 }
 0x566   : > { %1682 = vrot.lane.b32.xlu1 %v5207_v46, %s4930_s20 }
 0x5ad   : > { %v1280_v45 = vpop.xlane.xlu1 %1279 }
 0x5ae   : > { %4824 = vrcp.f32 %v1280_v45 }
 0x5b1   : > { %v1283_v47 = vpop.xlane.xlu0 %1282  ;;  %v1605_v58 = vpop.permute.xlu1 %1604 }
 0x5b2   : > { %4826 = vrcp.f32 %v1283_v47 }
 0x5b5   : > { %v1527_v55 = vpop.permute.xlu0 %1526 }
 0x5b8   : > { %v4825_v50 = vpop.eup %4824 }
 0x5b9   : > { %v1288_v51 = vmul.f32 %v4825_v50, %v4819_v18  ;;  %v1685_v56 = vpop.permute.xlu0 %1684 }
 0x5bb   : > { %4537 = vmatmul.mubr.msk.f32.vlgmr.msra.gmra.mrb[4].mxu0 %vm1295_vm11, %v1288_v51 }
 0x5bc   : > { %v4827_v52 = vpop.eup %4826  ;;  %4545 = vmatpush3.msk.msra.mxu0 %vm1299_vm10, %v1450_v27  ;;  %4546 = vmatprep.mubr.msk.f32.mxu0 %vm4926_vm7, %v4925_v42 }
 0x5bd   : > { %v1290_v54 = vmul.f32 %v4827_v52, %v4821_v21  ;;  %4554 = vmatprep.subr.mxu0 %v4925_v42 }
 0x5bf   : > { %4542 = vmatmul.mubr.msk.f32.vlgmr.msra.gmra.mrb[4].mxu1 %vm1295_vm11, %v1290_v54 }
 0x5c0   : > { %4550 = vmatpush3.xpose.msk.msra.mxu1 %vm1032_vm8, %v1529_v44  ;;  %4551 = vmatprep.mubr.msk.f32.mxu1 %vm4926_vm7, %v4925_v42 }
 0x5c1   : > { %4559 = vmatprep.subr.mxu1 %v4925_v42 }
 0x5c3   : > { %4552 = vmatmul.mubr.msk.f32.vlgmr.msra.gmra.mrb[6].mxu1 %vm1032_vm8, %v1527_v55 }
 0x5c4   : > { %4560 = vmatpush3.xpose.msk.msra.mxu1 %vm1032_vm8, %v1685_v56  ;;  %4561 = vmatprep.mubr.msk.f32.mxu1 %vm4926_vm7, %v4925_v42 }
 0x5c5   : > { %4569 = vmatprep.subr.mxu1 %v4925_v42 }
 0x5e2   : > { %v1286_v60 = vpop.xlane.xlu1 %1285 }
 0x5e3   : > { %4828 = vrcp.f32 %v1286_v60 }
 0x5e6   : > { %v1683_v61 = vpop.permute.xlu1 %1682 }
 0x5e7   : > { %4562 = vmatmul.mubr.msk.f32.vlgmr.msra.gmra.mrb[8].mxu1 %vm1032_vm8, %v1683_v61 }
 0x5e8   : > { %4571 = vmatprep.mubr.msk.f32.mxu1 %vm4926_vm7, %v4925_v42 }
 0x5ed   : > { %v4829_v62 = vpop.eup %4828 }
 0x5ee   : > { %v1292_v63 = vmul.f32 %v4829_v62, %v4823_v25 }
 0x5f0   : > { %4547 = vmatmul.mubr.msk.f32.vlgmr.msra.gmra.mrb[6].mxu0 %vm1295_vm11, %v1292_v63 }
 0x5f1   : > { %4555 = vmatpush3.xpose.msk.msra.mxu0 %vm1032_vm8, %v1607_v39  ;;  %4556 = vmatprep.mubr.msk.f32.mxu0 %vm4926_vm7, %v4925_v42 }
 0x5f2   : > { %4564 = vmatprep.subr.mxu0 %v4925_v42 }
 0x5f4   : > { %4557 = vmatmul.mubr.msk.f32.vlgmr.msra.gmra.mrb[8].mxu0 %vm1032_vm8, %v1605_v58 }
 0x5f5   : > { %4566 = vmatprep.mubr.msk.f32.mxu0 %vm4926_vm7, %v4925_v42 }
 0x68e   : > { %v5296_v0 = vpop.f32.mrb[4].mxu0 }
 0x68f   : > { %v4538_v1 = vpop.f32.mrb[5].mxu0 }
 0x692   : > { %v5298_v2 = vpop.f32.mrb[4].mxu1 }
 0x693   : > { %v4543_v3 = vpop.f32.mrb[5].mxu1 }
 0x696   : > { %v1600_v5 = vpop.f32.mrb[6].mxu1 }
 0x697   : > { %v1601_v6 = vadd.f32 %v1600_v5, %v5238_v53  ;;  %v4553_v11 = vpop.f32.mrb[7].mxu1 }
 0x699   : > { %v1760_v12 = vsel %vm1259_vm9, %v1601_v6, -inf }
 0x69a   : > { %1761 = vmax.xlane.f32.xlu0 %v1760_v12 }
 0x6ba   : > { %v1756_v13 = vpop.f32.mrb[8].mxu1 }
 0x6bb   : > { %v1757_v14 = vadd.f32 %v1756_v13, %v5248_v59  ;;  %v4563_v15 = vpop.f32.mrb[9].mxu1 }
 0x6bd   : > { %v1766_v16 = vsel %vm1259_vm9, %v1757_v14, -inf }
 0x6be   : > { %1767 = vmax.xlane.f32.xlu0 %v1766_v16 }
 0x6c3   : > { %v5304_v17 = vpop.f32.mrb[6].mxu0 }
 0x6c4   : > { %v4548_v18 = vpop.f32.mrb[7].mxu0 }
 0x6c7   : > { %v1678_v19 = vpop.f32.mrb[8].mxu0 }
 0x6c8   : > { %v1679_v21 = vadd.f32 %v1678_v19, %v5243_v57  ;;  %v4558_v22 = vpop.f32.mrb[9].mxu0 }
 0x6ca   : > { %v1763_v53 = vsel %vm1259_vm9, %v1679_v21, -inf }
 0x6cb   : > { %1764 = vmax.xlane.f32.xlu1 %v1763_v53 }
 0x6dc   : > { %1793 = vrot.lane.b32.xlu1 %v5209_v48, %s4931_s23 }
 0x727   : > { %v1762_v23 = vpop.xlane.xlu0 %1761 }
 0x728   : > { %v1769_v24 = vsub.f32 %v1601_v6, %v1762_v23 }
 0x72a   : > { %v1772_v59 = vmul.f32 1.442695, %v1769_v24 }
 0x72c   : > { %4830 = vpow2.f32 %v1772_v59 }
 0x736   : > { %v4831_v25 = vpop.eup %4830 }
 0x737   : > { %v1778_v26 = vsel %vm1259_vm9, %v4831_v25, 0.0 }
 0x738   : > { %1779 = vadd.xlane.f32.xlu0 %v1778_v26  ;;  %v2042_v26 = vrot.slane %v5173_v36, %v5203_v43 }
 0x74b   : > { %v1768_v27 = vpop.xlane.xlu0 %1767 }
 0x74c   : > { %v1771_v39 = vsub.f32 %v1757_v14, %v1768_v27 }
 0x74e   : > { %v1776_v44 = vmul.f32 1.442695, %v1771_v39 }
 0x750   : > { %4832 = vpow2.f32 %v1776_v44 }
 0x758   : > { %v1765_v57 = vpop.xlane.xlu1 %1764 }
 0x759   : > { %v1770_v45 = vsub.f32 %v1679_v21, %v1765_v57 }
 0x75a   : > { %v4833_v47 = vpop.eup %4832 }
 0x75b   : > { %v1774_v50 = vmul.f32 1.442695, %v1770_v45  ;;  %v1784_v51 = vsel %vm1259_vm9, %v4833_v47, 0.0 }
 0x75c   : > { %1785 = vadd.xlane.f32.xlu0 %v1784_v51  ;;  %v1794_v48 = vpop.permute.xlu1 %1793 }
 0x75d   : > { %4834 = vpow2.f32 %v1774_v50  ;;  %4565 = vmatpush3.msk.msra.mxu0 %vm1299_vm10, %v1794_v48 }
 0x75e   : > { %4574 = vmatprep.subr.mxu0 %v4925_v42 }
 0x767   : > { %v4835_v52 = vpop.eup %4834 }
 0x768   : > { %v1781_v54 = vsel %vm1259_vm9, %v4835_v52, 0.0 }
 0x769   : > { %1782 = vadd.xlane.f32.xlu1 %v1781_v54 }
 0x772   : > { %1870 = vrot.lane.b32.xlu0 %v5215_v49, %s4931_s23 }
 0x77a   : > { %1947 = vrot.lane.b32.xlu1 %v5207_v46, %s4931_s23 }
 0x7c5   : > { %v1780_v55 = vpop.xlane.xlu0 %1779 }
 0x7c6   : > { %4836 = vrcp.f32 %v1780_v55 }
 0x7d0   : > { %v4837_v56 = vpop.eup %4836 }
 0x7d1   : > { %v1788_v58 = vmul.f32 %v4837_v56, %v4831_v25 }
 0x7d3   : > { %4567 = vmatmul.mubr.msk.f32.vlgmr.msra.gmra.mrb[10].mxu0 %vm1295_vm11, %v1788_v58 }
 0x7d4   : > { %4576 = vmatprep.mubr.msk.f32.mxu0 %vm4926_vm7, %v4925_v42  ;;  %v4813_v42 = vpack.i.bf16 %v5149_v28, %v5146_v20 }
 0x7d6   : > { %4814 = vrot.lane.b32.xlu1 %v4813_v42, %s4932_s26  ;;  %v2172_v42 = vsub.s32 4, %v5040_v4 }
 0x7e9   : > { %v1786_v60 = vpop.xlane.xlu0 %1785 }
 0x7ea   : > { %4838 = vrcp.f32 %v1786_v60  ;;  %v4740_v60 = vpack.c.bf16 %v5161_v32, %v5158_v31 }
 0x7ed   : > { %v1871_v61 = vpop.permute.xlu0 %1870 }
 0x7ee   : > { %4570 = vmatpush3.msk.msra.mxu1 %vm1299_vm10, %v1871_v61 }
 0x7f4   : > { %v4839_v63 = vpop.eup %4838 }
 0x7f5   : > { %v1792_v49 = vmul.f32 %v4839_v63, %v4833_v47 }
 0x7f6   : > { %v1783_v62 = vpop.xlane.xlu1 %1782 }
 0x7f7   : > { %4840 = vrcp.f32 %v1783_v62 }
 0x7fa   : > { %v1948_v1 = vpop.permute.xlu1 %1947 }
 0x7fb   : > { %4575 = vmatpush3.msk.msra.mxu0 %vm1299_vm10, %v1948_v1 }
 0x7fc   : > { %4577 = vmatmul.mubr.msk.f32.vlgmr.msra.gmra.mrb[12].mxu0 %vm1295_vm11, %v1792_v49 }
 0x801   : > { %v4841_v46 = vpop.eup %4840 }
 0x802   : > { %v1790_v3 = vmul.f32 %v4841_v46, %v4835_v52 }
 0x804   : > { %4572 = vmatmul.mubr.msk.f32.vlgmr.msra.gmra.mrb[10].mxu1 %vm1295_vm11, %v1790_v3  ;;  %v2166_v3 = vsub.s32 3, %v5040_v4 }
 0x848   : > { %v4815_v11 = vpop.permute.xlu1 %4814 }
 0x849   : > { %v4817_v12 = vunpack.i.h.bf16 %v4815_v11  ;;  %v4816_v13 = vunpack.i.l.bf16 %v4815_v11 }
 0x84b   : > { %v4732_v14 = vpack.c.bf16 %v4817_v12, %v4816_v13 }
 0x84d   : > { %4733 = vmatprep.subr.bf16.mxu1 %v4732_v14 }
 0x84e   : > { %4735 = vmatpush3.bf16.msra.mxu1 %v4732_v14  ;;  %v2173_v14 = vrot.slane %v5173_v36, %v2172_v42 }
 0x84f   : > { %4741 = vmatprep.subr.bf16.mxu1 %v4740_v60 }
 0x8a6   : > { %v1866_v5 = vpop.f32.mrb[10].mxu0 }
 0x8a7   : > { %2027 = vrot.lane.b32.xlu0 %v1866_v5, %s4933_s16  ;;  %v4568_v6 = vpop.f32.mrb[11].mxu0  ;;  %v2167_v5 = vrot.slane %v5173_v36, %v2166_v3  ;;  %v2387_v3 = vsub.s32 6, %v5040_v4 }
 0x8cf   : > { %v2020_v15 = vpop.f32.mrb[12].mxu0 }
 0x8d0   : > { %2031 = vrot.lane.b32.xlu0 %v2020_v15, %s4933_s16  ;;  %v4578_v16 = vpop.f32.mrb[13].mxu0 }
 0x8d7   : > { %v1943_v18 = vpop.f32.mrb[10].mxu1 }
 0x8d8   : > { %2029 = vrot.lane.b32.xlu1 %v1943_v18, %s4933_s16  ;;  %v4573_v19 = vpop.f32.mrb[11].mxu1 }
 0x919   : > { %v2028_v21 = vpop.permute.xlu0 %2027 }
 0x91a   : > { %v2036_v53 = vsel %vm1032_vm8, %v5296_v0, %v2028_v21  ;;  %v4744_v21 = vpack.c.bf16 %v5167_v34, %v5164_v33 }
 0x942   : > { %v2032_v23 = vpop.permute.xlu0 %2031 }
 0x943   : > { %v2038_v25 = vsel %vm1032_vm8, %v5304_v17, %v2032_v23 }
 0x94a   : > { %v2030_v22 = vpop.permute.xlu1 %2029 }
 0x94b   : > { %v2037_v24 = vsel %vm1032_vm8, %v5298_v2, %v2030_v22  ;;  %v2180_v22 = vrot.slane %v5183_v38, %v5203_v43 }
 0x94c   : > { %v2046_v59 = vcombine.low %v2036_v53, %v2037_v24 }
 0x94e   : > { %4583 = vmatprep.mubr.msk.f32.mxu1 %vm930_vm6, %v2046_v59 }
 0x94f   : > { %4584 = vmatmul.mubr.msk.f32.vlgmr.msra.gmra.mrb[12].mxu1 %vm930_vm6, %v2038_v25 }
 0x950   : > { %4743 = vmatpush3.bf16.msra.mxu1 %v4740_v60 }
 0x951   : > { %4745 = vmatprep.subr.bf16.mxu1 %v4744_v21 }
 0x954   : > { %4747 = vmatpush3.bf16.msra.mxu1 %v4744_v21 }
 0xa22   : > { %v4585_v27 = vpop.f32.mrb[12].mxu1 }
 0xa23   : > { %v2131_v39 = vadd.f32 %v4585_v27, %v2042_v26  ;;  %v2125_v44 = vpop.f32.mrb[13].mxu1  ;;  %v2267_v27 = vsub.s32 2, %v5040_v4 }
 0xa24   : > { %v2126_v57 = vadd.f32 %v2125_v44, %v2042_v26 }
 0xa25   : > { %v2135_v0 = vadd.f32 %v2131_v39, %v5192_v41  ;;  %v2268_v39 = vrot.slane %v5173_v36, %v2267_v27 }
 0xa26   : > { %v2134_v2 = vadd.f32 %v2126_v57, %v5188_v40  ;;  %v4736_v40 = vpack.c.bf16 %v5155_v30, %v5152_v29 }
 0xa27   : > { %v2140_v45 = vsel %vm2139_vm12, %v2135_v0, 0.0 }
 0xa28   : > { %2141 = vadd.xlane.f32.xlu0 %v2140_v45  ;;  %v2136_v17 = vsel %vm930_vm6, %v2134_v2, 0.0  ;;  %4737 = vmatprep.subr.bf16.mxu0 %v4736_v40 }
 0xa29   : > { %2137 = vadd.xlane.f32.xlu1 %v2136_v17  ;;  %4739 = vmatpush3.bf16.msra.mxu0 %v4736_v40 }
 0xab5   : > { %v2142_v47 = vpop.xlane.xlu0 %2141 }
 0xab6   : > { %v2145_v50 = vmul.f32 0.0625, %v2142_v47  ;;  %v2138_v51 = vpop.xlane.xlu1 %2137 }
 0xab7   : > { %v2144_v48 = vmul.f32 0.0625, %v2138_v51 }
 0xab8   : > { %v2147_v52 = vsub.f32 %v2135_v0, %v2145_v50 }
 0xab9   : > { %v2146_v54 = vsub.f32 %v2134_v2, %v2144_v48 }
 0xaba   : > { %v2149_v55 = vmul.f32 %v2147_v52, %v2147_v52 }
 0xabb   : > { %v2148_v56 = vmul.f32 %v2146_v54, %v2146_v54 }
 0xabc   : > { %v2153_v58 = vsel %vm2139_vm12, %v2149_v55, 0.0 }
 0xabd   : > { %2154 = vadd.xlane.f32.xlu1 %v2153_v58  ;;  %v2150_v41 = vsel %vm930_vm6, %v2148_v56, 0.0 }
 0xabe   : > { %2151 = vadd.xlane.f32.xlu0 %v2150_v41 }
 0xb4a   : > { %v2155_v61 = vpop.xlane.xlu1 %2154 }
 0xb4b   : > { %v2157_v62 = vmul.f32 0.0625, %v2155_v61  ;;  %v2152_v63 = vpop.xlane.xlu0 %2151 }
 0xb4c   : > { %v2156_v49 = vmul.f32 0.0625, %v2152_v63 }
 0xb4d   : > { %v2159_v1 = vadd.f32 1e-05, %v2157_v62 }
 0xb4e   : > { %v2158_v46 = vadd.f32 1e-05, %v2156_v49 }
 0xb4f   : > { %4842 = vrsqrt.f32 %v2159_v1 }
 0xb50   : > { %4844 = vrsqrt.f32 %v2158_v46  ;;  %v2381_v46 = vsub.s32 5, %v5040_v4 }
 0xb52   : > { %v2382_v42 = vrot.slane %v5173_v36, %v2381_v46 }
 0xb59   : > { %v4843_v6 = vpop.eup %4842 }
 0xb5a   : > { %v4845_v11 = vpop.eup %4844  ;;  %v2163_v12 = vmul.f32 %v4843_v6, %v2147_v52 }
 0xb5b   : > { %v2162_v13 = vmul.f32 %v4845_v11, %v2146_v54  ;;  %v2388_v11 = vrot.slane %v5173_v36, %v2387_v3 }
 0xb5c   : > { %v2169_v15 = vmul.f32 %v2167_v5, %v2163_v12 }
 0xb5d   : > { %v2168_v16 = vmul.f32 %v2167_v5, %v2162_v13 }
 0xb5e   : > { %v2175_v19 = vadd.f32 %v2173_v14, %v2169_v15 }
 0xb5f   : > { %v2174_v18 = vadd.f32 %v2173_v14, %v2168_v16 }
 0xb61   : > { %4590 = vmatprep.mubr.msk.f32.mxu0 %vm930_vm6, %v2174_v18 }
 0xb62   : > { %4591 = vmatmul.mubr.msk.f32.vlgmr.msra.gmra.mrb[14].mxu0 %vm930_vm6, %v2175_v19 }
 0xc35   : > { %v4592_v53 = vpop.f32.mrb[14].mxu0 }
 0xc36   : > { %v2260_v23 = vadd.f32 %v4592_v53, %v2180_v22  ;;  %v2254_v24 = vpop.f32.mrb[15].mxu0 }
 0xc37   : > { %v2255_v59 = vadd.f32 %v2254_v24, %v2180_v22 }
 0xc38   : > { %v2264_v26 = vmax.f32 %v2260_v23, 0.0 }
 0xc39   : > { %v2263_v25 = vmax.f32 %v2255_v59, 0.0 }
 0xc3b   : > { %4601 = vmatprep.mubr.msk.f32.mxu1 %vm2269_vm13, %v2263_v25 }
 0xc3c   : > { %4602 = vmatmul.mubr.msk.f32.vlgmr.msra.gmra.mrb[14].mxu1 %vm2269_vm13, %v2264_v26 }
 0xd0f   : > { %v4603_v44 = vpop.f32.mrb[14].mxu1 }
 0xd10   : > { %v2348_v57 = vadd.f32 %v4603_v44, %v2268_v39  ;;  %v2342_v0 = vpop.f32.mrb[15].mxu1 }
 0xd11   : > { %v2343_v2 = vadd.f32 %v2342_v0, %v2268_v39 }
 0xd12   : > { %v2352_v45 = vadd.f32 %v2348_v57, %v2175_v19 }
 0xd13   : > { %v2351_v17 = vadd.f32 %v2343_v2, %v2174_v18 }
 0xd14   : > { %v2356_v43 = vsel %vm2139_vm12, %v2352_v45, 0.0 }
 0xd15   : > { %2357 = vadd.xlane.f32.xlu1 %v2356_v43  ;;  %v2353_v47 = vsel %vm930_vm6, %v2351_v17, 0.0 }
 0xd16   : > { %2354 = vadd.xlane.f32.xlu0 %v2353_v47 }
 0xda2   : > { %v2358_v50 = vpop.xlane.xlu1 %2357 }
 0xda3   : > { %v2360_v51 = vmul.f32 0.0625, %v2358_v50  ;;  %v2355_v48 = vpop.xlane.xlu0 %2354  ;;  %v4343_v50 = vld [vmem:[%s5630_s12] ss:$0 sm:$0xff] (!%p4301_p4) }
 0xda4   : > { %v2359_v52 = vmul.f32 0.0625, %v2355_v48  ;;  %v4344_v48 = vld [vmem:[%s5630_s12 + $0x1] ss:$0 sm:$0xff] (!%p4301_p4) }
 0xda5   : > { %v2362_v54 = vsub.f32 %v2352_v45, %v2360_v51 }
 0xda6   : > { %v2361_v55 = vsub.f32 %v2351_v17, %v2359_v52 }
 0xda7   : > { %v2364_v56 = vmul.f32 %v2362_v54, %v2362_v54 }
 0xda8   : > { %v2363_v58 = vmul.f32 %v2361_v55, %v2361_v55 }
 0xda9   : > { %v2368_v41 = vsel %vm2139_vm12, %v2364_v56, 0.0 }
 0xdaa   : > { %2369 = vadd.xlane.f32.xlu1 %v2368_v41  ;;  %v2365_v40 = vsel %vm930_vm6, %v2363_v58, 0.0 }
 0xdab   : > { %2366 = vadd.xlane.f32.xlu0 %v2365_v40 }
 0xe37   : > { %v2370_v60 = vpop.xlane.xlu1 %2369 }
 0xe38   : > { %v2372_v61 = vmul.f32 0.0625, %v2370_v60  ;;  %v2367_v62 = vpop.xlane.xlu0 %2366 }
 0xe39   : > { %v2371_v63 = vmul.f32 0.0625, %v2367_v62 }
 0xe3a   : > { %v2374_v49 = vadd.f32 1e-05, %v2372_v61 }
 0xe3b   : > { %v2373_v1 = vadd.f32 1e-05, %v2371_v63 }
 0xe3c   : > { %4846 = vrsqrt.f32 %v2374_v49 }
 0xe3d   : > { %4848 = vrsqrt.f32 %v2373_v1 }
 0xe46   : > { %v4847_v5 = vpop.eup %4846  ;;  %2393 = sbr.rel (%p4301_p4) target bundleno = 3980 (0xf8c), region = 84 }
 0xe47   : > { %v4849_v6 = vpop.eup %4848  ;;  %v2378_v12 = vmul.f32 %v4847_v5, %v2362_v54 }
 0xe48   : > { %v2377_v13 = vmul.f32 %v4849_v6, %v2361_v55 }
 0xe49   : > { %v2384_v14 = vmul.f32 %v2382_v42, %v2378_v12 }
 0xe4a   : > { %v2383_v15 = vmul.f32 %v2382_v42, %v2377_v13 }
 0xe4b   : > { %v2390_v16 = vadd.f32 %v2388_v11, %v2384_v14 }
 0xe4c   : > { %v2389_v18 = vadd.f32 %v2388_v11, %v2383_v15 }
 0xe4d   : > { %v2399_v21 = vsel %vm2139_vm12, %v2390_v16, 0.0 }
 0xe4e   : > { %v2396_v19 = vsel %vm930_vm6, %v2389_v18, 0.0 }
 0xe4f   : > { %2397 = vadd.xlane.f32.xlu0 %v2396_v19 }
 0xe53   : > { %2400 = vadd.xlane.f32.xlu0 %v2399_v21 }
 0xedc   : > { %v2398_v22 = vpop.xlane.xlu0 %2397 }
 0xedd   : > { %v2402_v53 = vmul.f32 0.0625, %v2398_v22 }
 0xedf   : > { %v2404_v23 = vsub.f32 %v2389_v18, %v2402_v53 }
 0xee0   : > { %v2401_v24 = vpop.xlane.xlu0 %2400 }
 0xee1   : > { %v2403_v59 = vmul.f32 0.0625, %v2401_v24  ;;  %v2406_v25 = vmul.f32 %v2404_v23, %v2404_v23 }
 0xee3   : > { %v2405_v26 = vsub.f32 %v2390_v16, %v2403_v59  ;;  %v2408_v27 = vsel %vm930_vm6, %v2406_v25, 0.0 }
 0xee4   : > { %2409 = vadd.xlane.f32.xlu1 %v2408_v27 }
 0xee5   : > { %v2407_v39 = vmul.f32 %v2405_v26, %v2405_v26 }
 0xee7   : > { %v2411_v44 = vsel %vm2139_vm12, %v2407_v39, 0.0 }
 0xee8   : > { %2412 = vadd.xlane.f32.xlu1 %v2411_v44 }
 0xf71   : > { %v2410_v57 = vpop.xlane.xlu1 %2409 }
 0xf72   : > { %v2414_v0 = vmul.f32 0.0625, %v2410_v57 }
 0xf74   : > { %v2416_v2 = vadd.f32 1e-05, %v2414_v0 }
 0xf75   : > { %v2413_v45 = vpop.xlane.xlu1 %2412 }
 0xf76   : > { %4850 = vrsqrt.f32 %v2416_v2  ;;  %v2415_v17 = vmul.f32 0.0625, %v2413_v45 }
 0xf78   : > { %v2417_v43 = vadd.f32 1e-05, %v2415_v17 }
 0xf7a   : > { %4852 = vrsqrt.f32 %v2417_v43 }
 0xf80   : > { %v4851_v47 = vpop.eup %4850 }
 0xf81   : > { %v2420_v51 = vmul.f32 %v4851_v47, %v2404_v23 }
 0xf83   : > { %v2426_v52 = vmul.f32 %v4343_v50, %v2420_v51 }
 0xf84   : > { %v4853_v54 = vpop.eup %4852 }
 0xf85   : > { %v2432_v55 = vadd.f32 %v4344_v48, %v2426_v52  ;;  %v2421_v56 = vmul.f32 %v4853_v54, %v2405_v26 }
 0xf87   : > { %2434 = vst.msk [vmem:[#allocation2] sm:$0xff] %vm930_vm6, %v2432_v55  ;;  %v2427_v58 = vmul.f32 %v4343_v50, %v2421_v56 }
 0xf89   : > { %v2433_v41 = vadd.f32 %v4344_v48, %v2427_v58 }
 0xf8b   : > { %2435 = vst.msk [vmem:[#allocation2 + $0x8] sm:$0xf] %vm2139_vm12, %v2433_v41 }
 0xf8c PF: > { %p4345_p6 = scmp.eq.s32.totalorder %s5027_s30, 0 }
 0xf8d   : > { %2440 = vst.msk [vmem:[#allocation2] sm:$0xff] (!%p4345_p6), %vm930_vm6, %v2389_v18 }
 0xf8e   : > { %2439 = sbr.rel (%p4345_p6) target bundleno = 3989 (0xf95), region = 88  ;;  %2441 = vst.msk [vmem:[#allocation2 + $0x8] sm:$0xf] (!%p4345_p6), %vm2139_vm12, %v2390_v16 }
 0xf95 PF: > { %2445 = sbr.rel (%p515_p3) target bundleno = 8117 (0x1fb5), region = 92  ;;  %v5386_v40 = vpack.i.bf16 (!%p515_p3), %v5149_v28, %v5146_v20  ;;  %v4934_v60 = vmov (!%p515_p3), 0.0|0.0   ;;  %vm4935_vm14 = vmmov (!%p515_p3), 0   ;;  %v4936_v61 = vmov (!%p515_p3), 0.0   ;;  %s4937_s7 = smov (!%p515_p3), 96   ;;  %v2447_v57 = vld [vmem:[#allocation2] sm:$0xff] (!%p515_p3) }
 0xf96   : > { %4748 = vmatprep.subr.bf16.mxu1 (!%p515_p3), %v4934_v60  ;;  %4608 = vmatprep.mubr.msk.f32.mxu1 (!%p515_p3), %vm4935_vm14, %v4936_v61  ;;  %v5392_v62 = vsub.s32 (!%p515_p3), 0, %v5040_v4  ;;  %s4938_s18 = smov (!%p515_p3), 80   ;;  %v2446_v3 = vld [vmem:[%s5631_s13] sm:$0x7] (!%p515_p3)  ;;  %vm2465_vm15 = vcmask (!%p515_p3), 130048   ;;  %vm2623_vm0 = vcmask (!%p515_p3), 124928  }
 0xf97   : > { %4855 = vrot.lane.b32.xlu0 (!%p515_p3), %v5386_v40, %s4937_s7  ;;  %4754 = vmatprep.subr.bf16.mxu0 (!%p515_p3), %v4934_v60  ;;  %s4939_s22 = smov (!%p515_p3), 64   ;;  %s4940_s15 = smov (!%p515_p3), 48   ;;  %v2650_v0 = vsub.s32 (!%p515_p3), 1, %v5040_v4  ;;  %v2448_v52 = vld [vmem:[#allocation2 + $0x8] sm:$0xf] (!%p515_p3)  ;;  %v2640_v54 = vsub.s32 (!%p515_p3), 3, %v5040_v4 }
 0xf98   : > { %v2452_v20 = vrot.slane (!%p515_p3), %v5170_v35, %v5392_v62  ;;  %4622 = vmatprep.mubr.msk.f32.mxu0 (!%p515_p3), %vm4935_vm14, %v4936_v61  ;;  %v2542_v15 = vrot.slane (!%p515_p3), %v5173_v36, %v5392_v62  ;;  %s4941_s17 = smov (!%p515_p3), 112   ;;  %vm2849_vm1 = vcmask (!%p515_p3), 64512   ;;  %vm3072_vm2 = vcmask (!%p515_p3), 24576   ;;  %s4942_s25 = smov (!%p515_p3), 120  }
 0xf99   : > { %v2651_v2 = vrot.slane (!%p515_p3), %v5170_v35, %v2650_v0  ;;  %v2645_v35 = vsub.s32 (!%p515_p3), 4, %v5040_v4  ;;  %v2641_v55 = vrot.slane (!%p515_p3), %v5173_v36, %v2640_v54  ;;  %vm3112_vm3 = vcmask (!%p515_p3), 1043456   ;;  %s4943_s28 = smov (!%p515_p3), 104   ;;  %s4944_s20 = smov (!%p515_p3), 16  }
 0xf9a   : > { %2462 = vrot.lane.b32.xlu1 (!%p515_p3), %v2452_v20, %s4937_s7  ;;  %vm3108_vm4 = vcmask (!%p515_p3), 31744   ;;  %s4945_s23 = smov (!%p515_p3), 8   ;;  %vm3872_vm5 = vcmask (!%p515_p3), 1041409   ;;  %vm3875_vm6 = vcmask (!%p515_p3), 1042434   ;;  %vm4063_vm7 = vcmask (!%p515_p3), 261120   ;;  %p4380_p7 = scmp.ne.s32.totalorder (!%p515_p3), %s5027_s30, 1 }
 0xf9b   : > { %4860 = vrot.lane.b32.xlu0 (!%p515_p3), %v5386_v40, %s4938_s18  ;;  %v2646_v41 = vrot.slane (!%p515_p3), %v5173_v36, %v2645_v35 }
0x1009   : > { %v4856_v28 = vpop.permute.xlu0 %4855 }
0x100a   : > { %v4858_v63 = vunpack.i.h.bf16 %v4856_v28  ;;  %v4857_v49 = vunpack.i.l.bf16 %v4856_v28 }
0x100c   : > { %v4749_v1 = vpack.c.bf16 %v4858_v63, %v4857_v49  ;;  %v2463_v11 = vpop.permute.xlu1 %2462 }
0x100d   : > { %v4861_v46 = vpop.permute.xlu0 %4860 }
0x100e   : > { %4750 = vmatpush3.bf16.msra.mxu1 %v4749_v1  ;;  %v4863_v42 = vunpack.i.h.bf16 %v4861_v46  ;;  %v4862_v5 = vunpack.i.l.bf16 %v4861_v46 }
0x100f   : > { %4751 = vmatprep.subr.bf16.mxu1 %v4934_v60 }
0x1010   : > { %v4752_v6 = vpack.c.bf16 %v4863_v42, %v4862_v5 }
0x1011   : > { %4609 = vmatmul.mubr.msk.f32.vlgmr.msra.gmra.mrb[0].mxu1 %vm2465_vm15, %v2446_v3 }
0x1012   : > { %4753 = vmatpush3.bf16.msra.mxu1 %v4752_v6  ;;  %4615 = vmatprep.mubr.msk.f32.mxu1 %vm4935_vm14, %v4936_v61 }
0x10e4   : > { %v2535_v12 = vpop.f32.mrb[0].mxu1 }
0x10e5   : > { %v2536_v13 = vadd.f32 %v2535_v12, %v2463_v11  ;;  %v4610_v14 = vpop.f32.mrb[1].mxu1 }
0x10e7   : > { %4616 = vmatmul.mubr.msk.f32.vlgmr.msra.gmra.mrb[2].mxu1 %vm2465_vm15, %v2536_v13 }
0x10e8   : > { %4629 = vmatprep.mubr.msk.f32.mxu1 %vm2465_vm15, %v2447_v57 }
0x11ba   : > { %v2618_v16 = vpop.f32.mrb[2].mxu1 }
0x11bb   : > { %v2619_v18 = vadd.f32 %v2618_v16, %v2542_v15  ;;  %v4617_v19 = vpop.f32.mrb[3].mxu1 }
0x11bd   : > { %v2622_v21 = vadd.f32 %v2619_v18, %v2446_v3 }
0x11bf   : > { %v2624_v22 = vsel %vm2623_vm0, %v2622_v21, 0.0 }
0x11c0   : > { %2625 = vadd.xlane.f32.xlu1 %v2624_v22 }
0x11d1   : > { %4870 = vrot.lane.b32.xlu1 %v5386_v40, %s4939_s22 }
0x11d5   : > { %2738 = vrot.lane.b32.xlu1 %v2651_v2, %s4941_s17 }
0x124d   : > { %v2626_v53 = vpop.xlane.xlu1 %2625 }
0x124e   : > { %v2628_v23 = vmul.f32 0.0625, %v2626_v53 }
0x1250   : > { %v2629_v24 = vsub.f32 %v2622_v21, %v2628_v23 }
0x1251   : > { %v4871_v26 = vpop.permute.xlu1 %4870 }
0x1252   : > { %v2630_v59 = vmul.f32 %v2629_v24, %v2629_v24  ;;  %v4873_v27 = vunpack.i.h.bf16 %v4871_v26  ;;  %v4872_v39 = vunpack.i.l.bf16 %v4871_v26 }
0x1254   : > { %v2631_v25 = vsel %vm2623_vm0, %v2630_v59, 0.0  ;;  %v4755_v44 = vpack.c.bf16 %v4873_v27, %v4872_v39 }
0x1255   : > { %2632 = vadd.xlane.f32.xlu0 %v2631_v25  ;;  %v2739_v63 = vpop.permute.xlu1 %2738 }
0x1256   : > { %4756 = vmatpush3.bf16.msra.mxu0 %v4755_v44 }
0x1257   : > { %4632 = vmatprep.subr.mxu0 %v4936_v61 }
0x126b   : > { %4865 = vrot.lane.b32.xlu0 %v5386_v40, %s4940_s15 }
0x12e2   : > { %v2633_v45 = vpop.xlane.xlu0 %2632 }
0x12e3   : > { %v2634_v17 = vmul.f32 0.0625, %v2633_v45 }
0x12e5   : > { %v2635_v43 = vadd.f32 1e-05, %v2634_v17 }
0x12e6   : > { %v4866_v47 = vpop.permute.xlu0 %4865 }
0x12e7   : > { %4879 = vrsqrt.f32 %v2635_v43  ;;  %v4868_v50 = vunpack.i.h.bf16 %v4866_v47  ;;  %v4867_v51 = vunpack.i.l.bf16 %v4866_v47 }
0x12e9   : > { %v4757_v48 = vpack.c.bf16 %v4868_v50, %v4867_v51 }
0x12eb   : > { %4758 = vmatprep.subr.bf16.mxu1 %v4757_v48 }
0x12ec   : > { %4760 = vmatpush3.bf16.msra.mxu1 %v4757_v48 }
0x12ed   : > { %4637 = vmatprep.subr.mxu1 %v4936_v61 }
0x12ef   : > { %4630 = vmatmul.mubr.msk.f32.vlgmr.msra.gmra.mrb[4].mxu1 %vm2465_vm15, %v2448_v52 }
0x12f0   : > { %4639 = vmatprep.mubr.msk.f32.mxu1 %vm4935_vm14, %v4936_v61 }
0x12f1   : > { %v4880_v56 = vpop.eup %4879 }
0x12f2   : > { %v2637_v58 = vmul.f32 %v4880_v56, %v2629_v24 }
0x12f4   : > { %v2642_v20 = vmul.f32 %v2641_v55, %v2637_v58 }
0x12f6   : > { %v5430_v28 = vadd.f32 %v2646_v41, %v2642_v20 }
0x12f8   : > { %4623 = vmatmul.mubr.msk.f32.vlgmr.msra.gmra.mrb[0].mxu0 %vm2465_vm15, %v5430_v28 }
0x12f9   : > { %4634 = vmatprep.mubr.msk.f32.mxu0 %vm4935_vm14, %v4936_v61 }
0x13c2   : > { %v4631_v49 = vpop.f32.mrb[4].mxu1 }
0x13c3   : > { %v2813_v1 = vpop.f32.mrb[5].mxu1  ;;  %v5450_v14 = vadd.f32 %v4631_v49, %v2739_v63 }
0x13c4   : > { %v5436_v46 = vadd.f32 %v2813_v1, %v2739_v63 }
0x13c6   : > { %4633 = vmatpush3.xpose.msk.msra.mxu0 %vm2849_vm1, %v5436_v46  ;;  %v5442_v3 = vcombine.high %v5436_v46, %v5436_v46 }
0x13c7   : > { %4642 = vmatprep.subr.mxu0 %v4936_v61 }
0x13c8   : > { %4638 = vmatpush3.xpose.msk.msra.mxu1 %vm2849_vm1, %v5442_v3 }
0x13c9   : > { %4647 = vmatprep.subr.mxu1 %v4936_v61 }
0x13cb   : > { %v2727_v42 = vpop.f32.mrb[0].mxu0 }
0x13cc   : > { %v2728_v5 = vadd.f32 %v2727_v42, %v2651_v2  ;;  %v4624_v6 = vpop.f32.mrb[1].mxu0 }
0x13ce   : > { %v2829_v11 = vrot.slane %v2728_v5, %v5061_v7 }
0x13d0   : > { %v2830_v12 = vcombine.high %v2829_v11, %v2829_v11  ;;  %v2837_v13 = vrot.slane %v2829_v11, %v5061_v7 }
0x13d2   : > { %v5453_v15 = vrot.slane %v2830_v12, %v5061_v7  ;;  %4635 = vmatmul.mubr.msk.f32.vlgmr.msra.gmra.mrb[2].mxu0 %vm2849_vm1, %v2837_v13  ;;  %v2845_v16 = vcombine.high %v2837_v13, %v2837_v13  ;;  %v3342_v39 = vrot.slane %v2837_v13, %v5392_v62 }
0x13d3   : > { %4643 = vmatpush3.xpose.msk.msra.mxu0 %vm2849_vm1, %v5450_v14  ;;  %4644 = vmatprep.mubr.msk.f32.mxu0 %vm4935_vm14, %v4936_v61 }
0x13d4   : > { %4640 = vmatmul.mubr.msk.f32.vlgmr.msra.gmra.mrb[6].mxu1 %vm2849_vm1, %v5453_v15  ;;  %4652 = vmatprep.subr.mxu0 %v4936_v61  ;;  %v3424_v20 = vrot.slane %v5453_v15, %v5392_v62  ;;  %v3506_v63 = vrot.slane %v2845_v16, %v5392_v62 }
0x13d5   : > { %4649 = vmatprep.mubr.msk.f32.mxu1 %vm4935_vm14, %v4936_v61 }
0x13d6   : > { %4645 = vmatmul.mubr.msk.f32.vlgmr.msra.gmra.mrb[4].mxu0 %vm2849_vm1, %v2845_v16 }
0x13d7   : > { %4654 = vmatprep.mubr.msk.f32.mxu0 %vm4935_vm14, %v4936_v61 }
0x14a5   : > { %v2920_v7 = vpop.f32.mrb[2].mxu0 }
0x14a6   : > { %v2921_v18 = vadd.f32 %v2920_v7, %v5078_v8  ;;  %v4636_v19 = vpop.f32.mrb[3].mxu0 }
0x14a7   : > { %v2994_v21 = vpop.f32.mrb[6].mxu1 }
0x14a8   : > { %v2995_v22 = vadd.f32 %v2994_v21, %v5081_v9  ;;  %v4641_v53 = vpop.f32.mrb[7].mxu1  ;;  %v3073_v23 = vsel %vm3072_vm2, %v2921_v18, -inf }
0x14a9   : > { %3074 = vmax.xlane.f32.xlu0 %v3073_v23  ;;  %v3068_v24 = vpop.f32.mrb[4].mxu0 }
0x14aa   : > { %v3069_v59 = vadd.f32 %v3068_v24, %v5085_v10  ;;  %v4646_v25 = vpop.f32.mrb[5].mxu0  ;;  %v3076_v26 = vsel %vm3072_vm2, %v2995_v22, -inf }
0x14ab   : > { %3077 = vmax.xlane.f32.xlu1 %v3076_v26 }
0x14ac   : > { %v3079_v27 = vsel %vm3072_vm2, %v3069_v59, -inf }
0x14ad   : > { %3080 = vmax.xlane.f32.xlu0 %v3079_v27 }
0x14bc   : > { %3185 = vrot.lane.b32.xlu1 %v5442_v3, %s4941_s17 }
0x14c0   : > { %3262 = vrot.lane.b32.xlu1 %v5450_v14, %s4941_s17 }
0x14c3   : > { %3106 = vrot.lane.b32.xlu0 %v5436_v46, %s4941_s17 }
0x14c4   : > { %3345 = vrot.lane.b32.xlu1 %v5436_v46, %s4942_s25 }
0x14c7   : > { %3343 = vrot.lane.b32.xlu0 %v3342_v39, %s4942_s25 }
0x14c8   : > { %3427 = vrot.lane.b32.xlu1 %v5442_v3, %s4942_s25 }
0x1536   : > { %v3075_v44 = vpop.xlane.xlu0 %3074 }
0x1537   : > { %v3082_v57 = vsub.f32 %v2921_v18, %v3075_v44 }
0x1538   : > { %v3078_v2 = vpop.xlane.xlu1 %3077 }
0x1539   : > { %v3085_v45 = vmul.f32 1.442695, %v3082_v57  ;;  %v3083_v17 = vsub.f32 %v2995_v22, %v3078_v2 }
0x153a   : > { %v3081_v43 = vpop.xlane.xlu0 %3080 }
0x153b   : > { %4881 = vpow2.f32 %v3085_v45  ;;  %v3087_v47 = vmul.f32 1.442695, %v3083_v17  ;;  %v3084_v50 = vsub.f32 %v3069_v59, %v3081_v43 }
0x153c   : > { %v3186_v51 = vpop.permute.xlu1 %3185 }
0x153d   : > { %4883 = vpow2.f32 %v3087_v47  ;;  %v3089_v48 = vmul.f32 1.442695, %v3084_v50  ;;  %4653 = vmatpush3.msk.msra.mxu0 %vm3112_vm3, %v3186_v51 }
0x153e   : > { %v3107_v52 = vpop.permute.xlu0 %3106  ;;  %4662 = vmatprep.subr.mxu0 %v4936_v61 }
0x153f   : > { %4885 = vpow2.f32 %v3089_v48  ;;  %4648 = vmatpush3.msk.msra.mxu1 %vm3112_vm3, %v3107_v52 }
0x1540   : > { %4657 = vmatprep.subr.mxu1 %v4936_v61  ;;  %v3263_v49 = vpop.permute.xlu1 %3262 }
0x1542   : > { %v3344_v42 = vpop.permute.xlu0 %3343 }
0x1544   : > { %v3346_v1 = vpop.permute.xlu1 %3345 }
0x1545   : > { %v4882_v54 = vpop.eup %4881 }
0x1546   : > { %v3091_v35 = vsel %vm3072_vm2, %v4882_v54, 0.0 }
0x1547   : > { %v4884_v55 = vpop.eup %4883  ;;  %3092 = vadd.xlane.f32.xlu0 %v3091_v35 }
0x1548   : > { %v3094_v56 = vsel %vm3072_vm2, %v4884_v55, 0.0  ;;  %v3428_v5 = vpop.permute.xlu1 %3427 }
0x1549   : > { %v4886_v58 = vpop.eup %4885  ;;  %3095 = vadd.xlane.f32.xlu1 %v3094_v56 }
0x154a   : > { %v3097_v41 = vsel %vm3072_vm2, %v4886_v58, 0.0 }
0x154b   : > { %3098 = vadd.xlane.f32.xlu0 %v3097_v41 }
0x155a   : > { %3425 = vrot.lane.b32.xlu1 %v3424_v20, %s4942_s25 }
0x1561   : > { %3509 = vrot.lane.b32.xlu0 %v5450_v14, %s4942_s25 }
0x1565   : > { %3507 = vrot.lane.b32.xlu0 %v3506_v63, %s4942_s25 }
0x15d4   : > { %v3093_v6 = vpop.xlane.xlu0 %3092 }
0x15d5   : > { %4887 = vrcp.f32 %v3093_v6 }
0x15d6   : > { %v3096_v11 = vpop.xlane.xlu1 %3095 }
0x15d7   : > { %4889 = vrcp.f32 %v3096_v11 }
0x15d8   : > { %v3099_v12 = vpop.xlane.xlu0 %3098 }
0x15d9   : > { %4891 = vrcp.f32 %v3099_v12 }
0x15da   : > { %v3426_v53 = vpop.permute.xlu1 %3425 }
0x15dc   : > { %v3510_v21 = vpop.permute.xlu0 %3509 }
0x15df   : > { %v4888_v13 = vpop.eup %4887 }
0x15e0   : > { %v3101_v15 = vmul.f32 %v4888_v13, %v4882_v54  ;;  %v3508_v22 = vpop.permute.xlu0 %3507 }
0x15e1   : > { %v4890_v7 = vpop.eup %4889 }
0x15e2   : > { %v3103_v18 = vmul.f32 %v4890_v7, %v4884_v55  ;;  %4650 = vmatmul.mubr.msk.f32.vlgmr.msra.gmra.mrb[8].mxu1 %vm3108_vm4, %v3101_v15 }
0x15e3   : > { %v4892_v16 = vpop.eup %4891  ;;  %4658 = vmatpush3.msk.msra.mxu1 %vm3112_vm3, %v3263_v49  ;;  %4659 = vmatprep.mubr.msk.f32.mxu1 %vm4935_vm14, %v4936_v61 }
0x15e4   : > { %v3105_v19 = vmul.f32 %v4892_v16, %v4886_v58  ;;  %4655 = vmatmul.mubr.msk.f32.vlgmr.msra.gmra.mrb[6].mxu0 %vm3108_vm4, %v3103_v18  ;;  %4667 = vmatprep.subr.mxu1 %v4936_v61 }
0x15e5   : > { %4663 = vmatpush3.xpose.msk.msra.mxu0 %vm2849_vm1, %v3346_v1  ;;  %4664 = vmatprep.mubr.msk.f32.mxu0 %vm4935_vm14, %v4936_v61 }
0x15e6   : > { %4660 = vmatmul.mubr.msk.f32.vlgmr.msra.gmra.mrb[10].mxu1 %vm3108_vm4, %v3105_v19  ;;  %4672 = vmatprep.subr.mxu0 %v4936_v61 }
0x15e7   : > { %4669 = vmatprep.mubr.msk.f32.mxu1 %vm4935_vm14, %v4936_v61 }
0x15e8   : > { %4665 = vmatmul.mubr.msk.f32.vlgmr.msra.gmra.mrb[8].mxu0 %vm2849_vm1, %v3344_v42 }
0x15e9   : > { %4673 = vmatpush3.xpose.msk.msra.mxu0 %vm2849_vm1, %v3510_v21  ;;  %4674 = vmatprep.mubr.msk.f32.mxu0 %vm4935_vm14, %v4936_v61 }
0x15ea   : > { %4668 = vmatpush3.xpose.msk.msra.mxu1 %vm2849_vm1, %v3428_v5  ;;  %4682 = vmatprep.subr.mxu0 %v4936_v61 }
0x15eb   : > { %4677 = vmatprep.subr.mxu1 %v4936_v61 }
0x15ec   : > { %4675 = vmatmul.mubr.msk.f32.vlgmr.msra.gmra.mrb[10].mxu0 %vm2849_vm1, %v3508_v22 }
0x15ed   : > { %4670 = vmatmul.mubr.msk.f32.vlgmr.msra.gmra.mrb[12].mxu1 %vm2849_vm1, %v3426_v53  ;;  %4684 = vmatprep.mubr.msk.f32.mxu0 %vm4935_vm14, %v4936_v61 }
0x15ee   : > { %4679 = vmatprep.mubr.msk.f32.mxu1 %vm4935_vm14, %v4936_v61 }
0x16b5   : > { %v5526_v23 = vpop.f32.mrb[8].mxu1 }
0x16b6   : > { %v4651_v24 = vpop.f32.mrb[9].mxu1 }
0x16b7   : > { %v5528_v59 = vpop.f32.mrb[6].mxu0 }
0x16b8   : > { %v4656_v25 = vpop.f32.mrb[7].mxu0 }
0x16b9   : > { %v5530_v26 = vpop.f32.mrb[10].mxu1 }
0x16ba   : > { %v4661_v27 = vpop.f32.mrb[11].mxu1 }
0x16bb   : > { %v3417_v39 = vpop.f32.mrb[8].mxu0 }
0x16bc   : > { %v3418_v44 = vadd.f32 %v3417_v39, %v5078_v8  ;;  %v4666_v57 = vpop.f32.mrb[9].mxu0 }
0x16be   : > { %v3585_v2 = vsel %vm3072_vm2, %v3418_v44, -inf }
0x16bf   : > { %3586 = vmax.xlane.f32.xlu1 %v3585_v2  ;;  %v3581_v45 = vpop.f32.mrb[10].mxu0 }
0x16c0   : > { %v3499_v17 = vpop.f32.mrb[12].mxu1  ;;  %v4676_v43 = vpop.f32.mrb[11].mxu0  ;;  %v3582_v51 = vadd.f32 %v3581_v45, %v5085_v10 }
0x16c1   : > { %v3500_v47 = vadd.f32 %v3499_v17, %v5081_v9  ;;  %v4671_v50 = vpop.f32.mrb[13].mxu1 }
0x16c2   : > { %v3591_v52 = vsel %vm3072_vm2, %v3582_v51, -inf }
0x16c3   : > { %v3588_v48 = vsel %vm3072_vm2, %v3500_v47, -inf }
0x16c4   : > { %3589 = vmax.xlane.f32.xlu0 %v3588_v48 }
0x16c8   : > { %3592 = vmax.xlane.f32.xlu0 %v3591_v52 }
0x174c   : > { %v3587_v54 = vpop.xlane.xlu1 %3586 }
0x174d   : > { %v3594_v8 = vsub.f32 %v3418_v44, %v3587_v54 }
0x174f   : > { %v3597_v35 = vmul.f32 1.442695, %v3594_v8 }
0x1751   : > { %4893 = vpow2.f32 %v3597_v35  ;;  %v3590_v55 = vpop.xlane.xlu0 %3589 }
0x1752   : > { %v3595_v56 = vsub.f32 %v3500_v47, %v3590_v55 }
0x1754   : > { %v3599_v58 = vmul.f32 1.442695, %v3595_v56 }
0x1755   : > { %v3593_v63 = vpop.xlane.xlu0 %3592 }
0x1756   : > { %4895 = vpow2.f32 %v3599_v58  ;;  %v3596_v49 = vsub.f32 %v3582_v51, %v3593_v63 }
0x1758   : > { %v3601_v1 = vmul.f32 1.442695, %v3596_v49  ;;  %v3971_v49 = vsub.s32 5, %v5040_v4 }
0x175a   : > { %4897 = vpow2.f32 %v3601_v1  ;;  %v3976_v1 = vsub.s32 6, %v5040_v4 }
0x175b   : > { %v4894_v41 = vpop.eup %4893 }
0x175c   : > { %v3603_v9 = vsel %vm3072_vm2, %v4894_v41, 0.0 }
0x175d   : > { %3604 = vadd.xlane.f32.xlu1 %v3603_v9 }
0x1760   : > { %v4896_v20 = vpop.eup %4895 }
0x1761   : > { %v3606_v10 = vsel %vm3072_vm2, %v4896_v20, 0.0 }
0x1762   : > { %3607 = vadd.xlane.f32.xlu0 %v3606_v10 }
0x1764   : > { %v4898_v42 = vpop.eup %4897 }
0x1765   : > { %v3609_v5 = vsel %vm3072_vm2, %v4898_v42, 0.0 }
0x176e   : > { %3695 = vrot.lane.b32.xlu1 %v5442_v3, %s4943_s28 }
0x1778   : > { %3618 = vrot.lane.b32.xlu0 %v5436_v46, %s4943_s28 }
0x1792   : > { %3610 = vadd.xlane.f32.xlu1 %v3609_v5 }
0x17a3   : > { %3772 = vrot.lane.b32.xlu1 %v5450_v14, %s4943_s28 }
0x17a7   : > { %4875 = vrot.lane.b32.xlu1 %v5386_v40, %s4944_s20 }
0x17ea   : > { %v3605_v6 = vpop.xlane.xlu1 %3604 }
0x17eb   : > { %4899 = vrcp.f32 %v3605_v6 }
0x17ee   : > { %v3696_v11 = vpop.permute.xlu1 %3695 }
0x17ef   : > { %v3608_v12 = vpop.xlane.xlu0 %3607  ;;  %4683 = vmatpush3.msk.msra.mxu0 %vm3112_vm3, %v3696_v11 }
0x17f0   : > { %4901 = vrcp.f32 %v3608_v12  ;;  %4761 = vmatprep.subr.bf16.mxu0 %v4934_v60 }
0x17f3   : > { %v3619_v46 = vpop.permute.xlu0 %3618 }
0x17f4   : > { %4678 = vmatpush3.msk.msra.mxu1 %vm3112_vm3, %v3619_v46 }
0x17f5   : > { %v4900_v3 = vpop.eup %4899  ;;  %4687 = vmatprep.subr.mxu1 %v4936_v61 }
0x17f6   : > { %v3613_v13 = vmul.f32 %v4900_v3, %v4894_v41 }
0x17f8   : > { %4680 = vmatmul.mubr.msk.f32.vlgmr.msra.gmra.mrb[14].mxu1 %vm3108_vm4, %v3613_v13  ;;  %v4061_v13 = vsub.s32 2, %v5040_v4 }
0x17f9   : > { %4689 = vmatprep.mubr.msk.f32.mxu1 %vm4935_vm14, %v4936_v61 }
0x17fa   : > { %v4902_v40 = vpop.eup %4901 }
0x17fb   : > { %v3615_v14 = vmul.f32 %v4902_v40, %v4896_v20  ;;  %v4062_v40 = vrot.slane %v5173_v36, %v4061_v13 }
0x17fd   : > { %4685 = vmatmul.mubr.msk.f32.vlgmr.msra.gmra.mrb[12].mxu0 %vm3108_vm4, %v3615_v14 }
0x17fe   : > { %4696 = vmatprep.mubr.msk.f32.mxu0 %vm4935_vm14, %v4936_v61 }
0x181f   : > { %v3611_v15 = vpop.xlane.xlu1 %3610 }
0x1820   : > { %4903 = vrcp.f32 %v3611_v15 }
0x1823   : > { %v3773_v7 = vpop.permute.xlu1 %3772 }
0x1824   : > { %4688 = vmatpush3.msk.msra.mxu1 %vm3112_vm3, %v3773_v7 }
0x1825   : > { %4764 = vmatprep.subr.bf16.mxu1 %v4934_v60 }
0x1827   : > { %v4876_v19 = vpop.permute.xlu1 %4875 }
0x1828   : > { %v4878_v21 = vunpack.i.h.bf16 %v4876_v19  ;;  %v4877_v22 = vunpack.i.l.bf16 %v4876_v19 }
0x182a   : > { %v4904_v18 = vpop.eup %4903  ;;  %v4762_v53 = vpack.c.bf16 %v4878_v21, %v4877_v22 }
0x182b   : > { %v3617_v16 = vmul.f32 %v4904_v18, %v4898_v42  ;;  %v3972_v42 = vrot.slane %v5173_v36, %v3971_v49 }
0x182c   : > { %4763 = vmatpush3.bf16.msra.mxu0 %v4762_v53 }
0x182d   : > { %4690 = vmatmul.mubr.msk.f32.vlgmr.msra.gmra.mrb[16].mxu1 %vm3108_vm4, %v3617_v16  ;;  %4767 = vmatprep.subr.bf16.mxu0 %v4934_v60 }
0x182e   : > { %4703 = vmatprep.mubr.msk.f32.mxu1 %vm4935_vm14, %v4936_v61 }
0x18cb   : > { %v3691_v24 = vpop.f32.mrb[14].mxu1 }
0x18cc   : > { %3852 = vrot.lane.b32.xlu1 %v3691_v24, %s4945_s23  ;;  %v4681_v25 = vpop.f32.mrb[15].mxu1  ;;  %v4153_v24 = vsub.s32 7, %v5040_v4 }
0x18ce   : > { %v4154_v25 = vrot.slane %v5173_v36, %v4153_v24 }
0x18d0   : > { %v3768_v27 = vpop.f32.mrb[12].mxu0 }
0x18d1   : > { %3854 = vrot.lane.b32.xlu0 %v3768_v27, %s4945_s23  ;;  %v4686_v39 = vpop.f32.mrb[13].mxu0 }
0x1900   : > { %v3845_v44 = vpop.f32.mrb[16].mxu1 }
0x1901   : > { %3856 = vrot.lane.b32.xlu0 %v3845_v44, %s4945_s23  ;;  %v4691_v57 = vpop.f32.mrb[17].mxu1 }
0x193e   : > { %v3853_v2 = vpop.permute.xlu1 %3852 }
0x193f   : > { %v3861_v47 = vsel %vm2849_vm1, %v5526_v23, %v3853_v2 }
0x1943   : > { %v3855_v45 = vpop.permute.xlu0 %3854 }
0x1944   : > { %v3862_v17 = vsel %vm2849_vm1, %v5528_v59, %v3855_v45  ;;  %v3867_v59 = vrot.slane %v5173_v36, %v2650_v0  ;;  %v4768_v0 = vpack.c.bf16 %v5161_v32, %v5158_v31  ;;  %v4771_v31 = vpack.c.bf16 %v5167_v34, %v5164_v33 }
0x1945   : > { %v3871_v43 = vrot.slane %v3862_v17, 7  ;;  %v3983_v32 = vrot.slane %v5183_v38, %v5392_v62 }
0x1947   : > { %v3873_v50 = vsel %vm3872_vm5, %v3871_v43, %v3861_v47 }
0x1973   : > { %v3857_v51 = vpop.permute.xlu0 %3856 }
0x1974   : > { %v3863_v48 = vsel %vm2849_vm1, %v5530_v26, %v3857_v51 }
0x1975   : > { %v3874_v52 = vrot.slane %v3863_v48, 6 }
0x1977   : > { %v3876_v54 = vsel %vm3875_vm6, %v3874_v52, %v3873_v50 }
0x1978   : > { %4697 = vmatmul.mubr.msk.f32.vlgmr.msra.gmra.mrb[14].mxu0 %vm2465_vm15, %v3876_v54  ;;  %v4382_v54 = vld [vmem:[%s5630_s12 + $0x3] ss:$0 sm:$0xff] (!%p4380_p7) }
0x1979   : > { %4714 = vmatprep.mubr.msk.f32.mxu0 %vm4935_vm14, %v4936_v61  ;;  %v4765_v61 = vpack.c.bf16 %v5155_v30, %v5152_v29  ;;  %4769 = vmatpush3.bf16.msra.mxu0 %v4768_v0  ;;  %v3977_v29 = vrot.slane %v5173_v36, %v3976_v1 }
0x197a   : > { %4770 = vmatprep.subr.bf16.mxu0 %v4934_v60 }
0x197b   : > { %4766 = vmatpush3.bf16.msra.mxu1 %v4765_v61 }
0x197d   : > { %4772 = vmatpush3.bf16.msra.mxu0 %v4771_v31 }
0x1a4b   : > { %v3951_v8 = vpop.f32.mrb[14].mxu0 }
0x1a4c   : > { %v3952_v35 = vadd.f32 %v3951_v8, %v3867_v59  ;;  %v4698_v23 = vpop.f32.mrb[15].mxu0 }
0x1a4e   : > { %v3955_v55 = vadd.f32 %v3952_v35, %v5430_v28 }
0x1a50   : > { %v3956_v56 = vsel %vm2623_vm0, %v3955_v55, 0.0 }
0x1a51   : > { %3957 = vadd.xlane.f32.xlu0 %v3956_v56 }
0x1ade   : > { %v3958_v26 = vpop.xlane.xlu0 %3957 }
0x1adf   : > { %v3959_v58 = vmul.f32 0.0625, %v3958_v26 }
0x1ae1   : > { %v3960_v41 = vsub.f32 %v3955_v55, %v3959_v58 }
0x1ae3   : > { %v3961_v9 = vmul.f32 %v3960_v41, %v3960_v41 }
0x1ae5   : > { %v3962_v20 = vsel %vm2623_vm0, %v3961_v9, 0.0 }
0x1ae6   : > { %3963 = vadd.xlane.f32.xlu1 %v3962_v20 }
0x1b73   : > { %v3964_v28 = vpop.xlane.xlu1 %3963 }
0x1b74   : > { %v3965_v10 = vmul.f32 0.0625, %v3964_v28 }
0x1b76   : > { %v3966_v63 = vadd.f32 1e-05, %v3965_v10 }
0x1b78   : > { %4905 = vrsqrt.f32 %v3966_v63 }
0x1b82   : > { %v4906_v5 = vpop.eup %4905 }
0x1b83   : > { %v3968_v6 = vmul.f32 %v4906_v5, %v3960_v41 }
0x1b85   : > { %v3973_v30 = vmul.f32 %v3972_v42, %v3968_v6 }
0x1b87   : > { %v3978_v11 = vadd.f32 %v3977_v29, %v3973_v30 }
0x1b89   : > { %4704 = vmatmul.mubr.msk.f32.vlgmr.msra.gmra.mrb[18].mxu1 %vm2465_vm15, %v3978_v11 }
0x1c5c   : > { %v4054_v60 = vpop.f32.mrb[18].mxu1 }
0x1c5d   : > { %v4055_v12 = vadd.f32 %v4054_v60, %v3983_v32  ;;  %v4705_v46 = vpop.f32.mrb[19].mxu1 }
0x1c5f   : > { %v4058_v3 = vmax.f32 %v4055_v12, 0.0 }
0x1c61   : > { %4715 = vmatmul.mubr.msk.f32.vlgmr.msra.gmra.mrb[16].mxu0 %vm4063_vm7, %v4058_v3 }
0x1d34   : > { %v4133_v14 = vpop.f32.mrb[16].mxu0 }
0x1d35   : > { %v4134_v15 = vadd.f32 %v4133_v14, %v4062_v40  ;;  %v4716_v7 = vpop.f32.mrb[17].mxu0 }
0x1d37   : > { %v4137_v18 = vadd.f32 %v4134_v15, %v3978_v11 }
0x1d39   : > { %v4138_v33 = vsel %vm2623_vm0, %v4137_v18, 0.0 }
0x1d3a   : > { %4139 = vadd.xlane.f32.xlu0 %v4138_v33 }
0x1dc7   : > { %v4140_v34 = vpop.xlane.xlu0 %4139 }
0x1dc8   : > { %v4141_v16 = vmul.f32 0.0625, %v4140_v34 }
0x1dca   : > { %v4142_v38 = vsub.f32 %v4137_v18, %v4141_v16 }
0x1dcc   : > { %v4143_v62 = vmul.f32 %v4142_v38, %v4142_v38 }
0x1dce   : > { %v4144_v19 = vsel %vm2623_vm0, %v4143_v62, 0.0 }
0x1dcf   : > { %4145 = vadd.xlane.f32.xlu0 %v4144_v19 }
0x1e5c   : > { %v4146_v21 = vpop.xlane.xlu0 %4145 }
0x1e5d   : > { %v4147_v22 = vmul.f32 0.0625, %v4146_v21 }
0x1e5f   : > { %v4148_v53 = vadd.f32 1e-05, %v4147_v22 }
0x1e61   : > { %4907 = vrsqrt.f32 %v4148_v53 }
0x1e6a   : > { %4164 = sbr.rel (%p4380_p7) target bundleno = 8108 (0x1fac), region = 96 }
0x1e6b   : > { %v4908_v27 = vpop.eup %4907 }
0x1e6c   : > { %v4150_v39 = vmul.f32 %v4908_v27, %v4142_v38 }
0x1e6e   : > { %v4155_v44 = vmul.f32 %v4154_v25, %v4150_v39 }
0x1e70   : > { %v4160_v57 = vadd.f32 %v5176_v37, %v4155_v44  ;;  %v4381_v37 = vld [vmem:[%s5630_s12 + $0x2] ss:$0 sm:$0xff] (!%p4380_p7) }
0x1e72   : > { %v4167_v2 = vsel %vm2623_vm0, %v4160_v57, 0.0 }
0x1e73   : > { %4168 = vadd.xlane.f32.xlu0 %v4167_v2 }
0x1f00   : > { %v4169_v45 = vpop.xlane.xlu0 %4168 }
0x1f01   : > { %v4170_v17 = vmul.f32 0.0625, %v4169_v45 }
0x1f03   : > { %v4171_v43 = vsub.f32 %v4160_v57, %v4170_v17 }
0x1f05   : > { %v4172_v47 = vmul.f32 %v4171_v43, %v4171_v43 }
0x1f07   : > { %v4173_v50 = vsel %vm2623_vm0, %v4172_v47, 0.0 }
0x1f08   : > { %4174 = vadd.xlane.f32.xlu0 %v4173_v50 }
0x1f95   : > { %v4175_v4 = vpop.xlane.xlu0 %4174 }
0x1f96   : > { %v4176_v36 = vmul.f32 0.0625, %v4175_v4 }
0x1f98   : > { %v4177_v51 = vadd.f32 1e-05, %v4176_v36 }
0x1f9a   : > { %4909 = vrsqrt.f32 %v4177_v51 }
0x1fa4   : > { %v4910_v48 = vpop.eup %4909 }
0x1fa5   : > { %v4179_v52 = vmul.f32 %v4910_v48, %v4171_v43 }
0x1fa7   : > { %v4184_v59 = vmul.f32 %v4381_v37, %v4179_v52 }
0x1fa9   : > { %v4189_v8 = vadd.f32 %v4382_v54, %v4184_v59 }
0x1fab   : > { %4190 = vst.msk [vmem:[%s5631_s13] sm:$0x7] %vm2623_vm0, %v4189_v8 }
0x1fac PF: > { %p4383_p8 = scmp.eq.s32.totalorder %s5027_s30, 1 }
0x1fad   : > { %4195 = vst.msk [vmem:[%s5631_s13] sm:$0x7] (!%p4383_p8), %vm2623_vm0, %v4160_v57 }
0x1fae   : > { %4194 = sbr.rel (%p4383_p8) target bundleno = 8117 (0x1fb5), region = 100 }
0x1fb5 PF: > { %s5639_s19 = sld [smem:[#allocation3_spill]] }
0x1fbb   : > { %s25_s29 = sadd.s32 1, %s5639_s19  }
0x1fbc   : > { %p22_p9 = scmp.ge.s32.totalorder %s25_s29, 4  }
0x1fbe   :  { %24 = sbr.rel (!%p22_p9) target bundleno = 3 (0x3), region = 150 }

// kernel: forward.3
= control target key start
LH: loop header
LB: loop body
LE: loop exit
PB: predicated region body
PF: predicated region fallthrough
CT: control target
= control target key end

     0   :  { %s12347_s21 = smov 0   ;;  %s14324_s0 = inlined_call_operand.vmem [shape: f32[48,8], index: 0, kind: input, shape index: {}]   ;;  %s14325_s1 = inlined_call_operand.vmem [shape: f32[12,8], index: 1, kind: input, shape index: {}]   ;;  %s14326_s2 = inlined_call_operand.vmem [shape: f32[8,32], index: 2, kind: input, shape index: {}]   ;;  %s14327_s3 = inlined_call_operand.vmem [shape: f32[1,32], index: 3, kind: input, shape index: {}]   ;;  %s14328_s4 = inlined_call_operand.vmem [shape: f32[3,16,128], index: 4, kind: input, shape index: {}]   ;;  %s14329_s5 = inlined_call_operand.vmem [shape: f32[3,16,32], index: 5, kind: input, shape index: {}]   ;;  %s14330_s6 = inlined_call_operand.vmem [shape: f32[3,32,16], index: 6, kind: input, shape index: {}]   ;;  %s14331_s7 = inlined_call_operand.vmem [shape: f32[3,2,48], index: 7, kind: input, shape index: {}]   ;;  %s14332_s8 = inlined_call_operand.vmem [shape: f32[3,9,16], index: 8, kind: input, shape index: {}]   ;;  %s14333_s9 = inlined_call_operand.vmem [shape: f32[3,1,32], index: 9, kind: input, shape index: {}]   ;;  %s14334_s10 = inlined_call_operand.vmem [shape: f32[4,16], index: 10, kind: input, shape index: {}]   ;;  %s14335_s11 = inlined_call_operand.vmem [shape: f32[12,16], index: 11, kind: output, shape index: {0}]   ;;  %s14336_s12 = inlined_call_operand.vmem [shape: f32[12,16], index: 12, kind: output, shape index: {1}]  }
   0x1   :  { %14359 = sst [smem:[#allocation19_spill]] %s14328_s4 }
   0x2 LB: > { %14360 = sst [smem:[#allocation3_spill]] %s12258_s21  ;;  %s12353_s22 = sadd.s32 4294967295, %s12258_s21   ;;  %s12258_s21 = sphi %s12347_s21, %s23_s21  }
   0x3   : > { %p10736_p0 = scmp.ge.s32.totalorder %s12258_s21, 1  ;;  %p402_p1 = scmp.lt.s32.totalorder %s12258_s21, 4 }
   0x5   : > { %p403_p2 = pnand %p10736_p0, %p402_p1 }
   0x7   : > { %406 = sbr.rel (%p403_p2) target bundleno = 8083 (0x1f93), region = 64 }
   0xe   : > { %p461_p3 = scmp.lt.s32.totalorder %s12353_s22, 2  ;;  %s14361_s4 = sld [smem:[#allocation19_spill]] }
   0xf   : > { %p10746_p4 = scmp.ne.s32.totalorder %s12353_s22, 0 }
  0x10   : > { %s12361_s23 = scalar_select %p461_p3, %s12353_s22, 2 }
  0x11   : > { %491 = sbr.rel (%p10746_p4) target bundleno = 358 (0x166), region = 68  ;;  %v492_v0 = vld [vmem:[%s14326_s2] sm:$0xff] (!%p10746_p4)  ;;  %vm506_vm0 = vcmask (!%p10746_p4), 64512   ;;  %v495_v3 = vld [vmem:[%s14324_s0 + $0x8] sm:$0xff] (!%p10746_p4)  ;;  %v496_v5 = vld [vmem:[%s14324_s0 + $0x10] sm:$0xff] (!%p10746_p4)  ;;  %vm626_vm1 = vcmask (!%p10746_p4), 130048  }
  0x12   : > { %s11003_s24 = sshll.u32 %s12361_s23, 4  ;;  %s11005_s25 = sshll.u32 %s12361_s23, 5  ;;  %v494_v1 = vld [vmem:[%s14324_s0] sm:$0xff] (!%p10746_p4)  ;;  %11277 = vmatprep.subr.mxu0 (!%p10746_p4), %v492_v0  ;;  %11940 = vmatprep.subr.mxu1 (!%p10746_p4), %v492_v0  ;;  %v499_v4 = vld [vmem:[%s14324_s0 + $0x28] sm:$0xff] (!%p10746_p4)  ;;  %v497_v8 = vld [vmem:[%s14324_s0 + $0x18] sm:$0xff] (!%p10746_p4)  ;;  %vm726_vm2 = vcmask (!%p10746_p4), 125952  }
  0x13   : > { %s12373_s13 = scalar_lea.vmem %s14329_s5, %s11003_s24  ;;  %s12378_s16 = scalar_lea.vmem %s14330_s6, %s11005_s25  ;;  %v498_v2 = vld [vmem:[%s14324_s0 + $0x20] sm:$0xff] (!%p10746_p4)  ;;  %11279 = vmatprep.mubr.msk.f32.mxu0 (!%p10746_p4), %vm506_vm0, %v494_v1  ;;  %11278 = vmatpush3.msra.mxu0 (!%p10746_p4), %v492_v0  ;;  %v634_v10 = vld [vmem:[%s14325_s1 + $0x8] sm:$0xf] (!%p10746_p4) }
  0x14   : > { %s12368_s28 = scalar_lea.vmem %s14361_s4, %s11003_s24  ;;  %s10743_s17 = sshll.u32 %s12361_s23, 1  ;;  %11285 = vmatprep.mubr.msk.f32.mxu1 (!%p10746_p4), %vm506_vm0, %v498_v2  ;;  %v633_v6 = vld [vmem:[%s14325_s1] sm:$0xff] (!%p10746_p4)  ;;  %11941 = vmatpush3.msra.mxu1 (!%p10746_p4), %v492_v0 }
  0x15   : > { %s12384_s20 = scalar_lea.vmem %s14331_s7, %s10743_s17  ;;  %s12389_s27 = scalar_lea.vmem %s14332_s8, %s11003_s24  ;;  %v10747_v7 = vld [vmem:[%s14327_s3] ss:$0 sm:$0xff] (!%p10746_p4)  ;;  %11280 = vmatmul.mubr.msk.f32.vlgmr.msra.gmra.mrb[0].mxu0 (!%p10746_p4), %vm506_vm0, %v495_v3  ;;  %11286 = vmatmul.mubr.msk.f32.vlgmr.msra.gmra.mrb[0].mxu1 (!%p10746_p4), %vm506_vm0, %v499_v4 }
  0x16   : > { %s487_s30 = scalar_lea.vmem %s14333_s9, %s12361_s23  ;;  %s12260_s24 = smov (!%p10746_p4), 112   ;;  %11282 = vmatprep.mubr.msk.f32.mxu0 (!%p10746_p4), %vm506_vm0, %v496_v5  ;;  %11290 = vmatprep.mubr.msk.f32.mxu1 (!%p10746_p4), %vm506_vm0, %v633_v6 }
  0x17   : > { %636 = vrot.lane.b32.xlu0 (!%p10746_p4), %v492_v0, %s12260_s24 }
  0x19   : > { %11283 = vmatmul.mubr.msk.f32.gmra.mrb[2].mxu0 %vm506_vm0, %v497_v8 }
  0x1b   : > { %639 = vrot.lane.b32.xlu0 %v10747_v7, %s12260_s24 }
  0x89   : > { %v637_v9 = vpop.permute.xlu0 %636 }
  0x8a   : > { %11288 = vmatprep.subr.mxu1 %v637_v9 }
  0x8b   : > { %11289 = vmatpush3.msra.mxu1 %v637_v9 }
  0x8c   : > { %11291 = vmatmul.mubr.msk.f32.vlgmr.msra.gmra.mrb[2].mxu1 %vm506_vm0, %v634_v10 }
  0x8d   : > { %v640_v29 = vpop.permute.xlu0 %639 }
  0xe8   : > { %v11281_v11 = vpop.f32.mrb[0].mxu0  ;;  %v11287_v13 = vpop.f32.mrb[0].mxu1 }
  0xe9   : > { %v597_v12 = vadd.f32 %v11281_v11, %v10747_v7  ;;  %v591_v14 = vpop.f32.mrb[1].mxu0  ;;  %v617_v15 = vadd.f32 %v11287_v13, %v10747_v7  ;;  %v611_v17 = vpop.f32.mrb[1].mxu1 }
  0xea   : > { %v592_v16 = vadd.f32 %v10747_v7, %v591_v14  ;;  %v612_v19 = vadd.f32 %v10747_v7, %v611_v17 }
  0xeb   : > { %v621_v18 = vmax.f32 %v597_v12, 0.0  ;;  %v625_v20 = vmax.f32 %v617_v15, 0.0 }
  0xec   : > { %v620_v21 = vmax.f32 %v592_v16, 0.0  ;;  %v11284_v22 = vpop.f32.mrb[2].mxu0  ;;  %v624_v23 = vmax.f32 %v612_v19, 0.0 }
  0xed   : > { %628 = vst.msk [vmem:[#allocation2 + $0x8] sm:$0xff] %vm626_vm1, %v621_v18  ;;  %v607_v24 = vadd.f32 %v11284_v22, %v10747_v7  ;;  %v601_v25 = vpop.f32.mrb[3].mxu0  ;;  %632 = vst.msk [vmem:[#allocation2 + $0x28] sm:$0xff] %vm626_vm1, %v625_v20 }
  0xee   : > { %627 = vst.msk [vmem:[#allocation2] sm:$0xff] %vm626_vm1, %v620_v21  ;;  %v602_v26 = vadd.f32 %v10747_v7, %v601_v25  ;;  %631 = vst.msk [vmem:[#allocation2 + $0x20] sm:$0xff] %vm626_vm1, %v624_v23 }
  0xef   : > { %v623_v27 = vmax.f32 %v607_v24, 0.0 }
  0xf0   : > { %v622_v28 = vmax.f32 %v602_v26, 0.0 }
  0xf1   : > { %630 = vst.msk [vmem:[#allocation2 + $0x18] sm:$0xff] %vm626_vm1, %v623_v27 }
  0xf2   : > { %629 = vst.msk [vmem:[#allocation2 + $0x10] sm:$0xff] %vm626_vm1, %v622_v28 }
 0x15f   : > { %v11292_v30 = vpop.f32.mrb[2].mxu1 }
 0x160   : > { %v720_v31 = vadd.f32 %v11292_v30, %v640_v29  ;;  %v714_v32 = vpop.f32.mrb[3].mxu1 }
 0x161   : > { %v715_v33 = vadd.f32 %v714_v32, %v640_v29 }
 0x162   : > { %v724_v34 = vmax.f32 %v720_v31, 0.0 }
 0x163   : > { %v723_v35 = vmax.f32 %v715_v33, 0.0 }
 0x164   : > { %727 = vst.msk [vmem:[%s14336_s12 + $0x8] sm:$0xf] %vm726_vm2, %v724_v34  ;;  %729 = vst.msk [vmem:[%s14335_s11 + $0x8] sm:$0xf] %vm726_vm2, %v724_v34 }
 0x165   : > { %725 = vst.msk [vmem:[%s14336_s12] sm:$0xff] %vm626_vm1, %v723_v35  ;;  %728 = vst.msk [vmem:[%s14335_s11] sm:$0xff] %vm626_vm1, %v723_v35 }
 0x166 PF: > { %v12455_v36 = vld [vmem:[%s12368_s28] sm:$0xff]  ;;  %v12458_v37 = vld [vmem:[%s12368_s28 + $0x8] sm:$0xff]  ;;  %v12473_v42 = vld [vmem:[%s12378_s16 + $0x10] sm:$0xff]  ;;  %p10756_p5 = scmp.ge.s32.totalorder %s12353_s22, 2 }
 0x167   : > { %v12461_v38 = vld [vmem:[%s12373_s13] sm:$0xff]  ;;  %v12464_v39 = vld [vmem:[%s12373_s13 + $0x8] sm:$0xff]  ;;  %14366 = vst [vmem:[#allocation8_spill] sm:$0xff] %v12473_v42  ;;  %v12476_v43 = vld [vmem:[%s12378_s16 + $0x18] sm:$0xff] }
 0x168   : > { %14362 = vst [vmem:[#allocation4_spill] sm:$0xff] %v12461_v38  ;;  %14363 = vst [vmem:[#allocation5_spill] sm:$0xff] %v12464_v39  ;;  %v12467_v40 = vld [vmem:[%s12378_s16] sm:$0xff]  ;;  %v12470_v41 = vld [vmem:[%s12378_s16 + $0x8] sm:$0xff]  ;;  %745 = sbr.rel (%p10756_p5) target bundleno = 3842 (0xf02), region = 72 }
 0x169   : > { %14364 = vst [vmem:[#allocation6_spill] sm:$0xff] %v12467_v40  ;;  %14365 = vst [vmem:[#allocation7_spill] sm:$0xff] %v12470_v41  ;;  %v12479_v44 = vld [vmem:[%s12384_s20] sm:$0x3]  ;;  %v12485_v46 = vld [vmem:[%s12389_s27 + $0x8] ss:$0 sm:$0xff] }
 0x16a   : > { %14367 = vst [vmem:[#allocation9_spill] sm:$0xff] %v12476_v43  ;;  %14368 = vst [vmem:[#allocation10_spill] sm:$0xff] %v12479_v44  ;;  %v12482_v45 = vld [vmem:[%s12389_s27] sm:$0xff] }
 0x16b   : > { %14369 = vst [vmem:[#allocation11_spill] sm:$0xff] %v12482_v45  ;;  %14370 = vst [vmem:[#allocation12_spill] sm:$0xff] %v12485_v46  ;;  %v12492_v47 = vld [vmem:[%s487_s30] sm:$0x1] }
 0x16c   : > { %14371 = vst [vmem:[#allocation13_spill] sm:$0xff] %v12492_v47 }
 0x16f   : > { %v11888_v48 = vpack.c.bf16 %v12458_v37, %v12455_v36  ;;  %v746_v49 = vld [vmem:[#allocation2] sm:$0xff]  ;;  %vm756_vm3 = vcmask 130048   ;;  %v747_v50 = vld [vmem:[#allocation2 + $0x8] sm:$0xff]  ;;  %v748_v51 = vld [vmem:[#allocation2 + $0x10] sm:$0xff]  ;;  %v752_v55 = vlaneseq  ;;  %v14338_v57 = vmov 0.0   ;;  %s12263_s23 = smov 112  }
 0x170   : > { %11297 = vmatprep.mubr.msk.f32.mxu0 %vm756_vm3, %v746_v49  ;;  %v749_v52 = vld [vmem:[#allocation2 + $0x18] sm:$0xff]  ;;  %v750_v53 = vld [vmem:[#allocation2 + $0x20] sm:$0xff]  ;;  %v751_v54 = vld [vmem:[#allocation2 + $0x28] sm:$0xff]  ;;  %11311 = vmatprep.subr.mxu1 %v14338_v57  ;;  %vm12262_vm4 = vmmov 0   ;;  %s12264_s13 = smov 96   ;;  %s12265_s16 = smov 104  }
 0x171   : > { %11889 = vmatprep.subr.bf16.mxu0 %v11888_v48  ;;  %v12503_v56 = vshrl.u32 %v752_v55, 7  ;;  %11313 = vmatprep.mubr.msk.f32.mxu1 %vm12262_vm4, %v14338_v57  ;;  %s12266_s20 = smov 120   ;;  %vm884_vm5 = vcmask 64512   ;;  %vm1934_vm6 = vcmask 1043456   ;;  %vm1795_vm7 = vcmask 27648   ;;  %s12267_s27 = smov 88  }
 0x172   : > { %11891 = vmatpush3.bf16.msra.mxu0 %v11888_v48  ;;  %vm1930_vm8 = vcmask 31744   ;;  %s12268_s30 = smov 80   ;;  %s12269_s26 = smov 8   ;;  %vm5277_vm9 = vcmask 261120  }
 0x173   : > { %14372 = vst [vmem:[#allocation14_spill] sm:$0xff] %v12503_v56  ;;  %11306 = vmatprep.subr.mxu0 %v14338_v57  ;;  %v12512_v58 = vsub.s32 0, %v12503_v56  ;;  %p10877_p6 = scmp.ne.s32.totalorder %s12353_s22, 1 }
 0x175   : > { %11298 = vmatmul.mubr.msk.f32.vlgmr.msra.gmra.mrb[0].mxu0 %vm756_vm3, %v747_v50  ;;  %v755_v59 = vrot.slane %v12479_v44, %v12512_v58 }
 0x176   : > { %11300 = vmatprep.mubr.msk.f32.mxu0 %vm756_vm3, %v748_v51 }
 0x179   : > { %11301 = vmatmul.mubr.msk.f32.gmra.mrb[2].mxu0 %vm756_vm3, %v749_v52 }
 0x17a   : > { %11303 = vmatprep.mubr.msk.f32.mxu0 %vm756_vm3, %v750_v53 }
 0x17d   : > { %11304 = vmatmul.mubr.msk.f32.gmra.mrb[4].mxu0 %vm756_vm3, %v751_v54 }
 0x17e   : > { %11308 = vmatprep.mubr.msk.f32.mxu0 %vm12262_vm4, %v14338_v57 }
 0x248   : > { %v11299_v60 = vpop.f32.mrb[0].mxu0 }
 0x249   : > { %v12516_v61 = vadd.f32 %v11299_v60, %v755_v59  ;;  %v841_v62 = vpop.f32.mrb[1].mxu0 }
 0x24a   : > { %v12518_v63 = vadd.f32 %v841_v62, %v755_v59 }
 0x24b   : > { %1035 = vrot.lane.b32.xlu1 %v12516_v61, %s12263_s23  ;;  %v12524_v2 = vcombine.high %v12516_v61, %v12516_v61 }
 0x24c   : > { %882 = vrot.lane.b32.xlu0 %v12518_v63, %s12263_s23  ;;  %v11302_v0 = vpop.f32.mrb[2].mxu0  ;;  %v12530_v4 = vcombine.high %v12518_v63, %v12518_v63 }
 0x24d   : > { %v851_v1 = vpop.f32.mrb[3].mxu0  ;;  %v12532_v5 = vadd.f32 %v11302_v0, %v755_v59 }
 0x24e   : > { %v12526_v3 = vadd.f32 %v851_v1, %v755_v59 }
 0x24f   : > { %1111 = vrot.lane.b32.xlu1 %v12524_v2, %s12263_s23  ;;  %v12545_v10 = vcombine.high %v12532_v5, %v12532_v5 }
 0x250   : > { %959 = vrot.lane.b32.xlu0 %v12530_v4, %s12263_s23  ;;  %v12538_v6 = vcombine.high %v12526_v3, %v12526_v3  ;;  %v11305_v7 = vpop.f32.mrb[4].mxu0 }
 0x251   : > { %v861_v8 = vpop.f32.mrb[5].mxu0  ;;  %v12548_v11 = vadd.f32 %v11305_v7, %v755_v59 }
 0x252   : > { %v12541_v9 = vadd.f32 %v861_v8, %v755_v59 }
 0x253   : > { %1263 = vrot.lane.b32.xlu1 %v12538_v6, %s12263_s23  ;;  %v12559_v13 = vcombine.high %v12548_v11, %v12548_v11 }
 0x254   : > { %1187 = vrot.lane.b32.xlu0 %v12526_v3, %s12263_s23  ;;  %v12553_v12 = vcombine.high %v12541_v9, %v12541_v9 }
 0x257   : > { %1415 = vrot.lane.b32.xlu1 %v12545_v10, %s12263_s23 }
 0x258   : > { %1339 = vrot.lane.b32.xlu0 %v12532_v5, %s12263_s23 }
 0x25b   : > { %1567 = vrot.lane.b32.xlu1 %v12553_v12, %s12263_s23 }
 0x25c   : > { %1491 = vrot.lane.b32.xlu0 %v12541_v9, %s12263_s23 }
 0x25f   : > { %1719 = vrot.lane.b32.xlu1 %v12559_v13, %s12263_s23 }
 0x260   : > { %1643 = vrot.lane.b32.xlu0 %v12548_v11, %s12263_s23 }
 0x263   : > { %1928 = vrot.lane.b32.xlu1 %v12518_v63, %s12264_s13 }
 0x264   : > { %2007 = vrot.lane.b32.xlu0 %v12530_v4, %s12264_s13 }
 0x267   : > { %2084 = vrot.lane.b32.xlu1 %v12516_v61, %s12264_s13 }
 0x268   : > { %2238 = vrot.lane.b32.xlu0 %v12526_v3, %s12264_s13 }
 0x26b   : > { %2161 = vrot.lane.b32.xlu1 %v12524_v2, %s12264_s13 }
 0x26c   : > { %2392 = vrot.lane.b32.xlu0 %v12532_v5, %s12264_s13 }
 0x26f   : > { %2315 = vrot.lane.b32.xlu1 %v12538_v6, %s12264_s13 }
 0x270   : > { %2546 = vrot.lane.b32.xlu0 %v12541_v9, %s12264_s13 }
 0x273   : > { %2469 = vrot.lane.b32.xlu1 %v12545_v10, %s12264_s13 }
 0x274   : > { %2700 = vrot.lane.b32.xlu0 %v12548_v11, %s12264_s13 }
 0x277   : > { %2777 = vrot.lane.b32.xlu1 %v12559_v13, %s12264_s13 }
 0x278   : > { %2856 = vrot.lane.b32.xlu0 %v12518_v63, %s12265_s16 }
 0x27b   : > { %2934 = vrot.lane.b32.xlu1 %v12530_v4, %s12265_s16 }
 0x27c   : > { %2854 = vrot.lane.b32.xlu0 %v12518_v63, %s12266_s20 }
 0x27f   : > { %2932 = vrot.lane.b32.xlu1 %v12530_v4, %s12266_s20 }
 0x280   : > { %3012 = vrot.lane.b32.xlu0 %v12516_v61, %s12265_s16 }
 0x283   : > { %3090 = vrot.lane.b32.xlu1 %v12524_v2, %s12265_s16 }
 0x284   : > { %3010 = vrot.lane.b32.xlu0 %v12516_v61, %s12266_s20 }
 0x287   : > { %3088 = vrot.lane.b32.xlu1 %v12524_v2, %s12266_s20 }
 0x28b   : > { %2623 = vrot.lane.b32.xlu1 %v12553_v12, %s12264_s13 }
 0x2bd   : > { %v1036_v14 = vpop.permute.xlu1 %1035 }
 0x2be   : > { %v883_v15 = vpop.permute.xlu0 %882 }
 0x2bf   : > { %11307 = vmatpush3.xpose.msk.msra.mxu0 %vm884_vm5, %v883_v15 }
 0x2c0   : > { %11321 = vmatprep.subr.mxu0 %v14338_v57 }
 0x2c1   : > { %v1112_v16 = vpop.permute.xlu1 %1111 }
 0x2c2   : > { %11309 = vmatmul.mubr.msk.f32.vlgmr.msra.gmra.mrb[6].mxu0 %vm884_vm5, %v12518_v63  ;;  %v960_v17 = vpop.permute.xlu0 %959 }
 0x2c3   : > { %11312 = vmatpush3.xpose.msk.msra.mxu1 %vm884_vm5, %v960_v17  ;;  %11322 = vmatpush3.xpose.msk.msra.mxu0 %vm884_vm5, %v1112_v16 }
 0x2c4   : > { %11323 = vmatprep.mubr.msk.f32.mxu0 %vm12262_vm4, %v14338_v57  ;;  %11316 = vmatprep.subr.mxu1 %v14338_v57 }
 0x2c5   : > { %v1264_v18 = vpop.permute.xlu1 %1263  ;;  %11331 = vmatprep.subr.mxu0 %v14338_v57 }
 0x2c6   : > { %11314 = vmatmul.mubr.msk.f32.vlgmr.msra.gmra.mrb[0].mxu1 %vm884_vm5, %v12530_v4  ;;  %11324 = vmatmul.mubr.msk.f32.vlgmr.msra.gmra.mrb[8].mxu0 %vm884_vm5, %v12524_v2  ;;  %v1188_v19 = vpop.permute.xlu0 %1187 }
 0x2c7   : > { %11317 = vmatpush3.xpose.msk.msra.mxu1 %vm884_vm5, %v1036_v14  ;;  %11332 = vmatpush3.xpose.msk.msra.mxu0 %vm884_vm5, %v1264_v18 }
 0x2c8   : > { %11318 = vmatprep.mubr.msk.f32.mxu1 %vm12262_vm4, %v14338_v57  ;;  %11333 = vmatprep.mubr.msk.f32.mxu0 %vm12262_vm4, %v14338_v57 }
 0x2c9   : > { %v1416_v20 = vpop.permute.xlu1 %1415  ;;  %11326 = vmatprep.subr.mxu1 %v14338_v57  ;;  %11341 = vmatprep.subr.mxu0 %v14338_v57 }
 0x2ca   : > { %11319 = vmatmul.mubr.msk.f32.vlgmr.msra.gmra.mrb[2].mxu1 %vm884_vm5, %v12516_v61  ;;  %11334 = vmatmul.mubr.msk.f32.vlgmr.msra.gmra.mrb[10].mxu0 %vm884_vm5, %v12538_v6  ;;  %v1340_v21 = vpop.permute.xlu0 %1339 }
 0x2cb   : > { %11327 = vmatpush3.xpose.msk.msra.mxu1 %vm884_vm5, %v1188_v19  ;;  %11342 = vmatpush3.xpose.msk.msra.mxu0 %vm884_vm5, %v1416_v20 }
 0x2cc   : > { %11328 = vmatprep.mubr.msk.f32.mxu1 %vm12262_vm4, %v14338_v57  ;;  %11343 = vmatprep.mubr.msk.f32.mxu0 %vm12262_vm4, %v14338_v57 }
 0x2cd   : > { %v1568_v22 = vpop.permute.xlu1 %1567  ;;  %11336 = vmatprep.subr.mxu1 %v14338_v57  ;;  %11351 = vmatprep.subr.mxu0 %v14338_v57 }
 0x2ce   : > { %11329 = vmatmul.mubr.msk.f32.vlgmr.msra.gmra.mrb[4].mxu1 %vm884_vm5, %v12526_v3  ;;  %11344 = vmatmul.mubr.msk.f32.vlgmr.msra.gmra.mrb[12].mxu0 %vm884_vm5, %v12545_v10  ;;  %v1492_v23 = vpop.permute.xlu0 %1491 }
 0x2cf   : > { %11337 = vmatpush3.xpose.msk.msra.mxu1 %vm884_vm5, %v1340_v21  ;;  %11352 = vmatpush3.xpose.msk.msra.mxu0 %vm884_vm5, %v1568_v22 }
 0x2d0   : > { %11338 = vmatprep.mubr.msk.f32.mxu1 %vm12262_vm4, %v14338_v57  ;;  %11353 = vmatprep.mubr.msk.f32.mxu0 %vm12262_vm4, %v14338_v57 }
 0x2d1   : > { %v1720_v24 = vpop.permute.xlu1 %1719  ;;  %11346 = vmatprep.subr.mxu1 %v14338_v57  ;;  %11361 = vmatprep.subr.mxu0 %v14338_v57 }
 0x2d2   : > { %11339 = vmatmul.mubr.msk.f32.vlgmr.msra.gmra.mrb[6].mxu1 %vm884_vm5, %v12532_v5  ;;  %11354 = vmatmul.mubr.msk.f32.vlgmr.msra.gmra.mrb[14].mxu0 %vm884_vm5, %v12553_v12  ;;  %v1644_v25 = vpop.permute.xlu0 %1643 }
 0x2d3   : > { %11347 = vmatpush3.xpose.msk.msra.mxu1 %vm884_vm5, %v1492_v23  ;;  %11362 = vmatpush3.xpose.msk.msra.mxu0 %vm884_vm5, %v1720_v24 }
 0x2d4   : > { %11348 = vmatprep.mubr.msk.f32.mxu1 %vm12262_vm4, %v14338_v57  ;;  %11363 = vmatprep.mubr.msk.f32.mxu0 %vm12262_vm4, %v14338_v57 }
 0x2d5   : > { %11356 = vmatprep.subr.mxu1 %v14338_v57  ;;  %11371 = vmatprep.subr.mxu0 %v14338_v57  ;;  %v1929_v27 = vpop.permute.xlu1 %1928 }
 0x2d6   : > { %11349 = vmatmul.mubr.msk.f32.vlgmr.msra.gmra.mrb[8].mxu1 %vm884_vm5, %v12541_v9  ;;  %11364 = vmatmul.mubr.msk.f32.vlgmr.msra.gmra.mrb[16].mxu0 %vm884_vm5, %v12559_v13  ;;  %v2008_v26 = vpop.permute.xlu0 %2007 }
 0x2d7   : > { %11357 = vmatpush3.xpose.msk.msra.mxu1 %vm884_vm5, %v1644_v25  ;;  %11372 = vmatpush3.msk.msra.mxu0 %vm1934_vm6, %v2008_v26 }
 0x2d8   : > { %11358 = vmatprep.mubr.msk.f32.mxu1 %vm12262_vm4, %v14338_v57  ;;  %11366 = vmatprep.subr.mxu1 %v14338_v57 }
 0x2d9   : > { %11373 = vmatprep.mubr.msk.f32.mxu0 %vm12262_vm4, %v14338_v57  ;;  %11381 = vmatprep.subr.mxu0 %v14338_v57 }
 0x2da   : > { %11359 = vmatmul.mubr.msk.f32.vlgmr.msra.gmra.mrb[10].mxu1 %vm884_vm5, %v12548_v11 }
 0x2db   : > { %11367 = vmatpush3.msk.msra.mxu1 %vm1934_vm6, %v1929_v27  ;;  %11368 = vmatprep.mubr.msk.f32.mxu1 %vm12262_vm4, %v14338_v57  ;;  %v12720_v27 = vpop.permute.xlu1 %2084 }
 0x2dc   : > { %11376 = vmatprep.subr.mxu1 %v14338_v57 }
 0x395   : > { %v12668_v28 = vpop.f32.mrb[6].mxu0 }
 0x396   : > { %v11310_v29 = vpop.f32.mrb[7].mxu0  ;;  %v1796_v30 = vsel %vm1795_vm7, %v12668_v28, -inf }
 0x397   : > { %1797 = vmax.xlane.f32.xlu0 %v1796_v30  ;;  %v12722_v29 = vpop.permute.xlu0 %2238  ;;  %v12724_v30 = vpop.permute.xlu1 %2161 }
 0x399   : > { %v12672_v31 = vpop.f32.mrb[0].mxu1  ;;  %v12674_v32 = vpop.f32.mrb[8].mxu0 }
 0x39a   : > { %v11315_v33 = vpop.f32.mrb[1].mxu1  ;;  %v11325_v34 = vpop.f32.mrb[9].mxu0  ;;  %v1805_v35 = vsel %vm1795_vm7, %v12674_v32, -inf  ;;  %v1799_v48 = vsel %vm1795_vm7, %v12672_v31, -inf }
 0x39b   : > { %1806 = vmax.xlane.f32.xlu0 %v1805_v35  ;;  %1800 = vmax.xlane.f32.xlu1 %v1799_v48  ;;  %v12726_v33 = vpop.permute.xlu0 %2392  ;;  %v12728_v34 = vpop.permute.xlu1 %2315 }
 0x39d   : > { %v12680_v49 = vpop.f32.mrb[2].mxu1  ;;  %v12682_v50 = vpop.f32.mrb[10].mxu0 }
 0x39e   : > { %v11320_v51 = vpop.f32.mrb[3].mxu1  ;;  %v11335_v52 = vpop.f32.mrb[11].mxu0  ;;  %v1802_v53 = vsel %vm1795_vm7, %v12680_v49, -inf  ;;  %v1811_v62 = vsel %vm1795_vm7, %v12682_v50, -inf }
 0x39f   : > { %1803 = vmax.xlane.f32.xlu0 %v1802_v53  ;;  %v12730_v35 = vpop.permute.xlu0 %2546  ;;  %v12732_v48 = vpop.permute.xlu1 %2469 }
 0x3a1   : > { %v12686_v54 = vpop.f32.mrb[4].mxu1  ;;  %v12688_v55 = vpop.f32.mrb[12].mxu0 }
 0x3a2   : > { %v11330_v59 = vpop.f32.mrb[5].mxu1  ;;  %v11345_v60 = vpop.f32.mrb[13].mxu0  ;;  %v1808_v0 = vsel %vm1795_vm7, %v12686_v54, -inf  ;;  %v1817_v15 = vsel %vm1795_vm7, %v12688_v55, -inf }
 0x3a3   : > { %1812 = vmax.xlane.f32.xlu0 %v1811_v62  ;;  %1809 = vmax.xlane.f32.xlu1 %v1808_v0  ;;  %v12734_v51 = vpop.permute.xlu0 %2700  ;;  %v12736_v52 = vpop.permute.xlu1 %2777 }
 0x3a5   : > { %v12694_v1 = vpop.f32.mrb[6].mxu1  ;;  %v12696_v7 = vpop.f32.mrb[14].mxu0 }
 0x3a6   : > { %v11340_v8 = vpop.f32.mrb[7].mxu1  ;;  %v11355_v14 = vpop.f32.mrb[15].mxu0  ;;  %v1814_v16 = vsel %vm1795_vm7, %v12694_v1, -inf  ;;  %v1823_v21 = vsel %vm1795_vm7, %v12696_v7, -inf }
 0x3a7   : > { %1818 = vmax.xlane.f32.xlu0 %v1817_v15  ;;  %1815 = vmax.xlane.f32.xlu1 %v1814_v16  ;;  %v12738_v53 = vpop.permute.xlu0 %2856  ;;  %v12740_v59 = vpop.permute.xlu1 %2934 }
 0x3a9   : > { %v12702_v17 = vpop.f32.mrb[8].mxu1  ;;  %v12704_v18 = vpop.f32.mrb[16].mxu0 }
 0x3aa   : > { %v11350_v19 = vpop.f32.mrb[9].mxu1  ;;  %v11365_v20 = vpop.f32.mrb[17].mxu0  ;;  %v1820_v22 = vsel %vm1795_vm7, %v12702_v17, -inf  ;;  %v1829_v25 = vsel %vm1795_vm7, %v12704_v18, -inf }
 0x3ab   : > { %1824 = vmax.xlane.f32.xlu0 %v1823_v21  ;;  %1821 = vmax.xlane.f32.xlu1 %v1820_v22  ;;  %v12742_v60 = vpop.permute.xlu0 %2854  ;;  %v12744_v62 = vpop.permute.xlu1 %2932 }
 0x3ad   : > { %v12710_v23 = vpop.f32.mrb[10].mxu1 }
 0x3ae   : > { %v11360_v24 = vpop.f32.mrb[11].mxu1  ;;  %v1826_v26 = vsel %vm1795_vm7, %v12710_v23, -inf }
 0x3af   : > { %1830 = vmax.xlane.f32.xlu0 %v1829_v25  ;;  %v12746_v0 = vpop.permute.xlu0 %3012  ;;  %v12748_v8 = vpop.permute.xlu1 %3090 }
 0x3b3   : > { %v12750_v14 = vpop.permute.xlu0 %3010  ;;  %v12752_v15 = vpop.permute.xlu1 %3088 }
 0x3b7   : > { %v12754_v16 = vpop.permute.xlu1 %2623 }
 0x3bc   : > { %3246 = vrot.lane.b32.xlu1 %v12538_v6, %s12265_s16 }
 0x3c5   : > { %3168 = vrot.lane.b32.xlu0 %v12526_v3, %s12265_s16 }
 0x3e0   : > { %1827 = vmax.xlane.f32.xlu1 %v1826_v26 }
 0x424   : > { %v1798_v19 = vpop.xlane.xlu0 %1797 }
 0x425   : > { %v1832_v20 = vsub.f32 %v12668_v28, %v1798_v19 }
 0x427   : > { %v1844_v21 = vmul.f32 1.442695, %v1832_v20 }
 0x428   : > { %v1801_v22 = vpop.xlane.xlu1 %1800  ;;  %v1807_v24 = vpop.xlane.xlu0 %1806 }
 0x429   : > { %11977 = vpow2.f32 %v1844_v21  ;;  %v1833_v25 = vsub.f32 %v12672_v31, %v1801_v22  ;;  %v1835_v26 = vsub.f32 %v12674_v32, %v1807_v24 }
 0x42b   : > { %v1846_v57 = vmul.f32 1.442695, %v1833_v25  ;;  %v1850_v46 = vmul.f32 1.442695, %v1835_v26 }
 0x42c   : > { %v1804_v44 = vpop.xlane.xlu0 %1803 }
 0x42d   : > { %11979 = vpow2.f32 %v1846_v57  ;;  %v1834_v47 = vsub.f32 %v12680_v49, %v1804_v44 }
 0x42e   : > { %11981 = vpow2.f32 %v1850_v46 }
 0x42f   : > { %v1848_v43 = vmul.f32 1.442695, %v1834_v47 }
 0x430   : > { %v1810_v42 = vpop.xlane.xlu1 %1809  ;;  %v1813_v56 = vpop.xlane.xlu0 %1812 }
 0x431   : > { %11983 = vpow2.f32 %v1848_v43  ;;  %v1836_v28 = vsub.f32 %v12686_v54, %v1810_v42  ;;  %v1837_v19 = vsub.f32 %v12682_v50, %v1813_v56 }
 0x433   : > { %v12762_v20 = vpop.eup %11977  ;;  %v1852_v31 = vmul.f32 1.442695, %v1836_v28  ;;  %v1854_v21 = vmul.f32 1.442695, %v1837_v19 }
 0x434   : > { %v1816_v32 = vpop.xlane.xlu1 %1815  ;;  %v1819_v22 = vpop.xlane.xlu0 %1818  ;;  %v1868_v57 = vsel %vm1795_vm7, %v12762_v20, 0.0 }
 0x435   : > { %11985 = vpow2.f32 %v1852_v31  ;;  %v1838_v44 = vsub.f32 %v12694_v1, %v1816_v32  ;;  %v1839_v46 = vsub.f32 %v12688_v55, %v1819_v22  ;;  %1869 = vadd.xlane.f32.xlu1 %v1868_v57 }
 0x436   : > { %11987 = vpow2.f32 %v1854_v21 }
 0x437   : > { %v12768_v43 = vpop.eup %11979  ;;  %v1856_v42 = vmul.f32 1.442695, %v1838_v44  ;;  %v1858_v47 = vmul.f32 1.442695, %v1839_v46 }
 0x438   : > { %v1825_v56 = vpop.xlane.xlu0 %1824  ;;  %v1871_v49 = vsel %vm1795_vm7, %v12768_v43, 0.0  ;;  %v12772_v50 = vpop.eup %11981 }
 0x439   : > { %11989 = vpow2.f32 %v1856_v42  ;;  %v1841_v54 = vsub.f32 %v12696_v7, %v1825_v56  ;;  %1872 = vadd.xlane.f32.xlu0 %v1871_v49  ;;  %v1877_v24 = vsel %vm1795_vm7, %v12772_v50, 0.0  ;;  %v1822_v46 = vpop.xlane.xlu1 %1821 }
 0x43a   : > { %11991 = vpow2.f32 %v1858_v47  ;;  %v1840_v42 = vsub.f32 %v12702_v17, %v1822_v46 }
 0x43b   : > { %v12775_v1 = vpop.eup %11983  ;;  %v1862_v55 = vmul.f32 1.442695, %v1841_v54 }
 0x43c   : > { %v1874_v25 = vsel %vm1795_vm7, %v12775_v1, 0.0  ;;  %v1831_v47 = vpop.xlane.xlu0 %1830  ;;  %v1860_v56 = vmul.f32 1.442695, %v1840_v42 }
 0x43d   : > { %1878 = vadd.xlane.f32.xlu0 %v1877_v24  ;;  %1875 = vadd.xlane.f32.xlu1 %v1874_v25  ;;  %11993 = vpow2.f32 %v1862_v55  ;;  %v1843_v49 = vsub.f32 %v12704_v18, %v1831_v47  ;;  %v12817_v17 = vpop.permute.xlu1 %3246 }
 0x43e   : > { %11995 = vpow2.f32 %v1860_v56 }
 0x43f   : > { %v12781_v26 = vpop.eup %11985  ;;  %v1866_v54 = vmul.f32 1.442695, %v1843_v49 }
 0x440   : > { %v12783_v28 = vpop.eup %11987  ;;  %v1880_v7 = vsel %vm1795_vm7, %v12781_v26, 0.0 }
 0x441   : > { %1881 = vadd.xlane.f32.xlu1 %v1880_v7  ;;  %v1883_v19 = vsel %vm1795_vm7, %v12783_v28, 0.0  ;;  %11997 = vpow2.f32 %v1866_v54 }
 0x442   : > { %1884 = vadd.xlane.f32.xlu0 %v1883_v19 }
 0x443   : > { %v12789_v31 = vpop.eup %11989 }
 0x444   : > { %v12791_v21 = vpop.eup %11991  ;;  %v1886_v32 = vsel %vm1795_vm7, %v12789_v31, 0.0 }
 0x445   : > { %1887 = vadd.xlane.f32.xlu1 %v1886_v32  ;;  %v1889_v22 = vsel %vm1795_vm7, %v12791_v21, 0.0 }
 0x446   : > { %1890 = vadd.xlane.f32.xlu0 %v1889_v22 }
 0x447   : > { %v12797_v57 = vpop.eup %11993 }
 0x448   : > { %v1895_v44 = vsel %vm1795_vm7, %v12797_v57, 0.0  ;;  %v12807_v55 = vpop.eup %11995 }
 0x449   : > { %v1892_v24 = vsel %vm1795_vm7, %v12807_v55, 0.0 }
 0x44a   : > { %1896 = vadd.xlane.f32.xlu0 %v1895_v44  ;;  %v12838_v44 = vpop.permute.xlu0 %3168 }
 0x44b   : > { %v12811_v25 = vpop.eup %11997 }
 0x44c   : > { %v1901_v7 = vsel %vm1795_vm7, %v12811_v25, 0.0 }
 0x456   : > { %3244 = vrot.lane.b32.xlu1 %v12538_v6, %s12266_s20 }
 0x460   : > { %3166 = vrot.lane.b32.xlu0 %v12526_v3, %s12266_s20 }
 0x46d   : > { %v1828_v18 = vpop.xlane.xlu1 %1827 }
 0x46e   : > { %v1842_v19 = vsub.f32 %v12710_v23, %v1828_v18 }
 0x470   : > { %v1864_v32 = vmul.f32 1.442695, %v1842_v19  ;;  %v14373_v19 = vmov 0.0  }
 0x472   : > { %11999 = vpow2.f32 %v1864_v32 }
 0x47a   : > { %1893 = vadd.xlane.f32.xlu1 %v1892_v24 }
 0x47c   : > { %v12832_v22 = vpop.eup %11999 }
 0x47d   : > { %v1898_v23 = vsel %vm1795_vm7, %v12832_v22, 0.0 }
 0x47f   : > { %1902 = vadd.xlane.f32.xlu0 %v1901_v7 }
 0x48b   : > { %3402 = vrot.lane.b32.xlu1 %v12545_v10, %s12265_s16 }
 0x495   : > { %3324 = vrot.lane.b32.xlu0 %v12532_v5, %s12265_s16 }
 0x499   : > { %3322 = vrot.lane.b32.xlu0 %v12532_v5, %s12266_s20 }
 0x49d   : > { %3480 = vrot.lane.b32.xlu0 %v12541_v9, %s12265_s16 }
 0x4a1   : > { %3478 = vrot.lane.b32.xlu0 %v12541_v9, %s12266_s20 }
 0x4a5   : > { %3636 = vrot.lane.b32.xlu0 %v12548_v11, %s12265_s16 }
 0x4a9   : > { %3634 = vrot.lane.b32.xlu0 %v12548_v11, %s12266_s20 }
 0x4af   : > { %1899 = vadd.xlane.f32.xlu1 %v1898_v23 }
 0x4c0   : > { %3400 = vrot.lane.b32.xlu1 %v12545_v10, %s12266_s20 }
 0x4c2   : > { %v1870_v46 = vpop.xlane.xlu1 %1869 }
 0x4c3   : > { %12001 = vrcp.f32 %v1870_v46 }
 0x4c4   : > { %3558 = vrot.lane.b32.xlu1 %v12553_v12, %s12265_s16 }
 0x4c6   : > { %v1873_v42 = vpop.xlane.xlu0 %1872 }
 0x4c7   : > { %12003 = vrcp.f32 %v1873_v42 }
 0x4c8   : > { %3556 = vrot.lane.b32.xlu1 %v12553_v12, %s12266_s20 }
 0x4ca   : > { %v1876_v47 = vpop.xlane.xlu1 %1875  ;;  %v1879_v56 = vpop.xlane.xlu0 %1878 }
 0x4cb   : > { %12005 = vrcp.f32 %v1876_v47 }
 0x4cc   : > { %12007 = vrcp.f32 %v1879_v56  ;;  %3714 = vrot.lane.b32.xlu1 %v12559_v13, %s12265_s16 }
 0x4cd   : > { %v12002_v49 = vpop.eup %12001 }
 0x4ce   : > { %v1905_v54 = vmul.f32 %v12002_v49, %v12762_v20  ;;  %v1882_v24 = vpop.xlane.xlu1 %1881 }
 0x4cf   : > { %12009 = vrcp.f32 %v1882_v24  ;;  %v1885_v7 = vpop.xlane.xlu0 %1884 }
 0x4d0   : > { %12011 = vrcp.f32 %v1885_v7  ;;  %11369 = vmatmul.mubr.msk.f32.vlgmr.msra.gmra.mrb[12].mxu1 %vm1930_vm8, %v1905_v54  ;;  %3712 = vrot.lane.b32.xlu1 %v12559_v13, %s12266_s20 }
 0x4d1   : > { %v12004_v18 = vpop.eup %12003  ;;  %11377 = vmatpush3.msk.msra.mxu1 %vm1934_vm6, %v12720_v27  ;;  %11378 = vmatprep.mubr.msk.f32.mxu1 %vm12262_vm4, %v14373_v19 }
 0x4d2   : > { %v1888_v32 = vpop.xlane.xlu1 %1887  ;;  %v1907_v23 = vmul.f32 %v12004_v18, %v12768_v43  ;;  %11386 = vmatprep.subr.mxu1 %v14373_v19 }
 0x4d3   : > { %12013 = vrcp.f32 %v1888_v32  ;;  %v1891_v20 = vpop.xlane.xlu0 %1890 }
 0x4d4   : > { %12015 = vrcp.f32 %v1891_v20  ;;  %3922 = vrot.lane.b32.xlu1 %v12518_v63, %s12267_s27  ;;  %11374 = vmatmul.mubr.msk.f32.vlgmr.msra.gmra.mrb[18].mxu0 %vm1930_vm8, %v1907_v23 }
 0x4d5   : > { %v12006_v46 = vpop.eup %12005  ;;  %11382 = vmatpush3.msk.msra.mxu0 %vm1934_vm6, %v12724_v30  ;;  %11383 = vmatprep.mubr.msk.f32.mxu0 %vm12262_vm4, %v14373_v19 }
 0x4d6   : > { %v12008_v27 = vpop.eup %12007  ;;  %v1909_v43 = vmul.f32 %v12006_v46, %v12775_v1  ;;  %11391 = vmatprep.subr.mxu0 %v14373_v19 }
 0x4d7   : > { %v1911_v42 = vmul.f32 %v12008_v27, %v12772_v50  ;;  %v1897_v47 = vpop.xlane.xlu0 %1896 }
 0x4d8   : > { %12017 = vrcp.f32 %v1897_v47  ;;  %11379 = vmatmul.mubr.msk.f32.vlgmr.msra.gmra.mrb[14].mxu1 %vm1930_vm8, %v1909_v43 }
 0x4d9   : > { %v12010_v63 = vpop.eup %12009  ;;  %11384 = vmatmul.mubr.msk.f32.vlgmr.msra.gmra.mrb[20].mxu0 %vm1930_vm8, %v1911_v42  ;;  %11387 = vmatpush3.msk.msra.mxu1 %vm1934_vm6, %v12722_v29 }
 0x4da   : > { %v12012_v30 = vpop.eup %12011  ;;  %v1913_v56 = vmul.f32 %v12010_v63, %v12781_v26  ;;  %11392 = vmatpush3.msk.msra.mxu0 %vm1934_vm6, %v12728_v34  ;;  %11388 = vmatprep.mubr.msk.f32.mxu1 %vm12262_vm4, %v14373_v19 }
 0x4db   : > { %v1915_v50 = vmul.f32 %v12012_v30, %v12783_v28  ;;  %11393 = vmatprep.mubr.msk.f32.mxu0 %vm12262_vm4, %v14373_v19  ;;  %11396 = vmatprep.subr.mxu1 %v14373_v19  ;;  %v12913_v28 = vpop.permute.xlu0 %3166 }
 0x4dc   : > { %11401 = vmatprep.subr.mxu0 %v14373_v19  ;;  %11389 = vmatmul.mubr.msk.f32.vlgmr.msra.gmra.mrb[16].mxu1 %vm1930_vm8, %v1913_v56 }
 0x4dd   : > { %v12014_v29 = vpop.eup %12013  ;;  %11394 = vmatmul.mubr.msk.f32.vlgmr.msra.gmra.mrb[22].mxu0 %vm1930_vm8, %v1915_v50  ;;  %11397 = vmatpush3.msk.msra.mxu1 %vm1934_vm6, %v12726_v33 }
 0x4de   : > { %v12016_v34 = vpop.eup %12015  ;;  %v1917_v1 = vmul.f32 %v12014_v29, %v12789_v31  ;;  %11402 = vmatpush3.msk.msra.mxu0 %vm1934_vm6, %v12732_v48  ;;  %11398 = vmatprep.mubr.msk.f32.mxu1 %vm12262_vm4, %v14373_v19 }
 0x4df   : > { %v1919_v26 = vmul.f32 %v12016_v34, %v12791_v21  ;;  %11403 = vmatprep.mubr.msk.f32.mxu0 %vm12262_vm4, %v14373_v19  ;;  %11406 = vmatprep.subr.mxu1 %v14373_v19 }
 0x4e0   : > { %11411 = vmatprep.subr.mxu0 %v14373_v19  ;;  %11399 = vmatmul.mubr.msk.f32.vlgmr.msra.gmra.mrb[18].mxu1 %vm1930_vm8, %v1917_v1 }
 0x4e1   : > { %11404 = vmatmul.mubr.msk.f32.vlgmr.msra.gmra.mrb[24].mxu0 %vm1930_vm8, %v1919_v26  ;;  %11407 = vmatpush3.msk.msra.mxu1 %vm1934_vm6, %v12730_v35  ;;  %v3245_v35 = vpop.permute.xlu1 %3244 }
 0x4e2   : > { %v12018_v33 = vpop.eup %12017  ;;  %11412 = vmatpush3.msk.msra.mxu0 %vm1934_vm6, %v12754_v16  ;;  %11413 = vmatprep.mubr.msk.f32.mxu0 %vm12262_vm4, %v14373_v19 }
 0x4e3   : > { %v1923_v48 = vmul.f32 %v12018_v33, %v12797_v57  ;;  %11421 = vmatprep.subr.mxu0 %v14373_v19  ;;  %11408 = vmatprep.mubr.msk.f32.mxu1 %vm12262_vm4, %v14373_v19 }
 0x4e4   : > { %11416 = vmatprep.subr.mxu1 %v14373_v19 }
 0x4e5   : > { %11414 = vmatmul.mubr.msk.f32.vlgmr.msra.gmra.mrb[26].mxu0 %vm1930_vm8, %v1923_v48 }
 0x4e6   : > { %11422 = vmatpush3.msk.msra.mxu0 %vm1934_vm6, %v12736_v52  ;;  %11423 = vmatprep.mubr.msk.f32.mxu0 %vm12262_vm4, %v14373_v19 }
 0x4e7   : > { %11431 = vmatprep.subr.mxu0 %v14373_v19 }
 0x507   : > { %v1894_v16 = vpop.xlane.xlu1 %1893 }
 0x508   : > { %12019 = vrcp.f32 %v1894_v16 }
 0x50c   : > { %v1903_v31 = vpop.xlane.xlu0 %1902 }
 0x50d   : > { %12021 = vrcp.f32 %v1903_v31 }
 0x512   : > { %v12020_v21 = vpop.eup %12019 }
 0x513   : > { %v1921_v57 = vmul.f32 %v12020_v21, %v12807_v55 }
 0x515   : > { %11409 = vmatmul.mubr.msk.f32.vlgmr.msra.gmra.mrb[20].mxu1 %vm1930_vm8, %v1921_v57 }
 0x516   : > { %11417 = vmatpush3.msk.msra.mxu1 %vm1934_vm6, %v12734_v51  ;;  %11418 = vmatprep.mubr.msk.f32.mxu1 %vm12262_vm4, %v14373_v19  ;;  %v3403_v51 = vpop.permute.xlu1 %3402 }
 0x517   : > { %v12022_v52 = vpop.eup %12021  ;;  %11426 = vmatprep.subr.mxu1 %v14373_v19 }
 0x518   : > { %v1927_v49 = vmul.f32 %v12022_v52, %v12811_v25 }
 0x51a   : > { %11424 = vmatmul.mubr.msk.f32.vlgmr.msra.gmra.mrb[28].mxu0 %vm1930_vm8, %v1927_v49 }
 0x51b   : > { %11432 = vmatpush3.xpose.msk.msra.mxu0 %vm884_vm5, %v12740_v59  ;;  %11433 = vmatprep.mubr.msk.f32.mxu0 %vm12262_vm4, %v14373_v19 }
 0x51c   : > { %11441 = vmatprep.subr.mxu0 %v14373_v19 }
 0x51e   : > { %11434 = vmatmul.mubr.msk.f32.vlgmr.msra.gmra.mrb[30].mxu0 %vm884_vm5, %v12744_v62 }
 0x51f   : > { %11442 = vmatpush3.xpose.msk.msra.mxu0 %vm884_vm5, %v12748_v8  ;;  %11443 = vmatprep.mubr.msk.f32.mxu0 %vm12262_vm4, %v14373_v19  ;;  %v3325_v8 = vpop.permute.xlu0 %3324 }
 0x520   : > { %11451 = vmatprep.subr.mxu0 %v14373_v19 }
 0x522   : > { %11444 = vmatmul.mubr.msk.f32.vlgmr.msra.gmra.mrb[32].mxu0 %vm884_vm5, %v12752_v15 }
 0x523   : > { %11452 = vmatpush3.xpose.msk.msra.mxu0 %vm884_vm5, %v12817_v17  ;;  %11453 = vmatprep.mubr.msk.f32.mxu0 %vm12262_vm4, %v14373_v19  ;;  %v3323_v54 = vpop.permute.xlu0 %3322 }
 0x524   : > { %11461 = vmatprep.subr.mxu0 %v14373_v19 }
 0x526   : > { %11454 = vmatmul.mubr.msk.f32.vlgmr.msra.gmra.mrb[34].mxu0 %vm884_vm5, %v3245_v35 }
 0x527   : > { %11462 = vmatpush3.xpose.msk.msra.mxu0 %vm884_vm5, %v3403_v51  ;;  %11463 = vmatprep.mubr.msk.f32.mxu0 %vm12262_vm4, %v14373_v19 }
 0x528   : > { %11471 = vmatprep.subr.mxu0 %v14373_v19 }
 0x53c   : > { %v1900_v59 = vpop.xlane.xlu1 %1899 }
 0x53d   : > { %12023 = vrcp.f32 %v1900_v59 }
 0x540   : > { %v3401_v62 = vpop.permute.xlu1 %3400 }
 0x541   : > { %11464 = vmatmul.mubr.msk.f32.vlgmr.msra.gmra.mrb[36].mxu0 %vm884_vm5, %v3401_v62 }
 0x542   : > { %11473 = vmatprep.mubr.msk.f32.mxu0 %vm12262_vm4, %v14373_v19 }
 0x544   : > { %v3559_v15 = vpop.permute.xlu1 %3558 }
 0x545   : > { %11472 = vmatpush3.xpose.msk.msra.mxu0 %vm884_vm5, %v3559_v15 }
 0x546   : > { %11481 = vmatprep.subr.mxu0 %v14373_v19 }
 0x547   : > { %v12024_v55 = vpop.eup %12023 }
 0x548   : > { %v1925_v25 = vmul.f32 %v12024_v55, %v12832_v22  ;;  %v3557_v17 = vpop.permute.xlu1 %3556  ;;  %v3481_v22 = vpop.permute.xlu0 %3480 }
 0x549   : > { %11474 = vmatmul.mubr.msk.f32.vlgmr.msra.gmra.mrb[38].mxu0 %vm884_vm5, %v3557_v17 }
 0x54a   : > { %11419 = vmatmul.mubr.msk.f32.vlgmr.msra.gmra.mrb[22].mxu1 %vm1930_vm8, %v1925_v25  ;;  %11483 = vmatprep.mubr.msk.f32.mxu0 %vm12262_vm4, %v14373_v19 }
 0x54b   : > { %11427 = vmatpush3.xpose.msk.msra.mxu1 %vm884_vm5, %v12738_v53  ;;  %11428 = vmatprep.mubr.msk.f32.mxu1 %vm12262_vm4, %v14373_v19 }
 0x54c   : > { %v3715_v24 = vpop.permute.xlu1 %3714  ;;  %11436 = vmatprep.subr.mxu1 %v14373_v19 }
 0x54d   : > { %11482 = vmatpush3.xpose.msk.msra.mxu0 %vm884_vm5, %v3715_v24 }
 0x54e   : > { %11429 = vmatmul.mubr.msk.f32.vlgmr.msra.gmra.mrb[24].mxu1 %vm884_vm5, %v12742_v60  ;;  %11491 = vmatprep.subr.mxu0 %v14373_v19  ;;  %v3479_v60 = vpop.permute.xlu0 %3478 }
 0x54f   : > { %11437 = vmatpush3.xpose.msk.msra.mxu1 %vm884_vm5, %v12746_v0  ;;  %11438 = vmatprep.mubr.msk.f32.mxu1 %vm12262_vm4, %v14373_v19 }
 0x550   : > { %v3713_v53 = vpop.permute.xlu1 %3712  ;;  %11446 = vmatprep.subr.mxu1 %v14373_v19 }
 0x551   : > { %11484 = vmatmul.mubr.msk.f32.vlgmr.msra.gmra.mrb[40].mxu0 %vm884_vm5, %v3713_v53 }
 0x552   : > { %11439 = vmatmul.mubr.msk.f32.vlgmr.msra.gmra.mrb[26].mxu1 %vm884_vm5, %v12750_v14  ;;  %11493 = vmatprep.mubr.msk.f32.mxu0 %vm12262_vm4, %v14373_v19  ;;  %v3637_v0 = vpop.permute.xlu0 %3636 }
 0x553   : > { %11447 = vmatpush3.xpose.msk.msra.mxu1 %vm884_vm5, %v12838_v44  ;;  %11448 = vmatprep.mubr.msk.f32.mxu1 %vm12262_vm4, %v14373_v19 }
 0x554   : > { %11456 = vmatprep.subr.mxu1 %v14373_v19  ;;  %v3923_v44 = vpop.permute.xlu1 %3922 }
 0x556   : > { %11449 = vmatmul.mubr.msk.f32.vlgmr.msra.gmra.mrb[28].mxu1 %vm884_vm5, %v12913_v28  ;;  %v3635_v14 = vpop.permute.xlu0 %3634 }
 0x557   : > { %11457 = vmatpush3.xpose.msk.msra.mxu1 %vm884_vm5, %v3325_v8  ;;  %11458 = vmatprep.mubr.msk.f32.mxu1 %vm12262_vm4, %v14373_v19 }
 0x558   : > { %11466 = vmatprep.subr.mxu1 %v14373_v19 }
 0x55a   : > { %11459 = vmatmul.mubr.msk.f32.vlgmr.msra.gmra.mrb[30].mxu1 %vm884_vm5, %v3323_v54 }
 0x55b   : > { %11467 = vmatpush3.xpose.msk.msra.mxu1 %vm884_vm5, %v3481_v22  ;;  %11468 = vmatprep.mubr.msk.f32.mxu1 %vm12262_vm4, %v14373_v19 }
 0x55c   : > { %11476 = vmatprep.subr.mxu1 %v14373_v19 }
 0x55e   : > { %11469 = vmatmul.mubr.msk.f32.vlgmr.msra.gmra.mrb[32].mxu1 %vm884_vm5, %v3479_v60 }
 0x55f   : > { %11477 = vmatpush3.xpose.msk.msra.mxu1 %vm884_vm5, %v3637_v0  ;;  %11478 = vmatprep.mubr.msk.f32.mxu1 %vm12262_vm4, %v14373_v19 }
 0x560   : > { %11486 = vmatprep.subr.mxu1 %v14373_v19 }
 0x562   : > { %11479 = vmatmul.mubr.msk.f32.vlgmr.msra.gmra.mrb[34].mxu1 %vm884_vm5, %v3635_v14 }
 0x563   : > { %11487 = vmatpush3.msk.msra.mxu1 %vm1934_vm6, %v3923_v44  ;;  %11488 = vmatprep.mubr.msk.f32.mxu1 %vm12262_vm4, %v14373_v19 }
 0x564   : > { %11496 = vmatprep.subr.mxu1 %v14373_v19 }
 0x5a3   : > { %v13003_v7 = vpop.f32.mrb[12].mxu1 }
 0x5a4   : > { %v11370_v18 = vpop.f32.mrb[13].mxu1 }
 0x5a7   : > { %v13005_v32 = vpop.f32.mrb[18].mxu0 }
 0x5a8   : > { %v11375_v23 = vpop.f32.mrb[19].mxu0 }
 0x5ab   : > { %v13007_v20 = vpop.f32.mrb[14].mxu1 }
 0x5ac   : > { %v13009_v46 = vpop.f32.mrb[20].mxu0  ;;  %v11380_v27 = vpop.f32.mrb[15].mxu1 }
 0x5ad   : > { %v11385_v43 = vpop.f32.mrb[21].mxu0 }
 0x5af   : > { %v13011_v42 = vpop.f32.mrb[16].mxu1 }
 0x5b0   : > { %v13013_v47 = vpop.f32.mrb[22].mxu0  ;;  %v11390_v63 = vpop.f32.mrb[17].mxu1 }
 0x5b1   : > { %v11395_v30 = vpop.f32.mrb[23].mxu0 }
 0x5b3   : > { %v13015_v56 = vpop.f32.mrb[18].mxu1 }
 0x5b4   : > { %v13017_v50 = vpop.f32.mrb[24].mxu0  ;;  %v11400_v29 = vpop.f32.mrb[19].mxu1 }
 0x5b5   : > { %v11405_v34 = vpop.f32.mrb[25].mxu0 }
 0x5b8   : > { %v13019_v1 = vpop.f32.mrb[26].mxu0 }
 0x5b9   : > { %v11415_v26 = vpop.f32.mrb[27].mxu0 }
 0x5e8   : > { %v13021_v33 = vpop.f32.mrb[20].mxu1 }
 0x5e9   : > { %v11410_v48 = vpop.f32.mrb[21].mxu1 }
 0x5ed   : > { %v13023_v35 = vpop.f32.mrb[28].mxu0 }
 0x5ee   : > { %v11425_v16 = vpop.f32.mrb[29].mxu0 }
 0x5f1   : > { %v3006_v28 = vpop.f32.mrb[30].mxu0 }
 0x5f2   : > { %v11435_v31 = vpop.f32.mrb[31].mxu0  ;;  %v3793_v21 = vsel %vm1795_vm7, %v3006_v28, -inf }
 0x5f3   : > { %3794 = vmax.xlane.f32.xlu1 %v3793_v21 }
 0x5f5   : > { %v13026_v57 = vpop.f32.mrb[32].mxu0 }
 0x5f6   : > { %v11445_v52 = vpop.f32.mrb[33].mxu0  ;;  %v3799_v27 = vsel %vm1795_vm7, %v13026_v57, -inf }
 0x5f9   : > { %v13028_v49 = vpop.f32.mrb[34].mxu0 }
 0x5fa   : > { %v11455_v51 = vpop.f32.mrb[35].mxu0  ;;  %v3805_v30 = vsel %vm1795_vm7, %v13028_v49, -inf }
 0x614   : > { %v13030_v59 = vpop.f32.mrb[36].mxu0 }
 0x615   : > { %v11465_v62 = vpop.f32.mrb[37].mxu0  ;;  %v3811_v48 = vsel %vm1795_vm7, %v13030_v59, -inf }
 0x61c   : > { %v13032_v8 = vpop.f32.mrb[38].mxu0 }
 0x61d   : > { %v13034_v15 = vpop.f32.mrb[22].mxu1  ;;  %v11475_v55 = vpop.f32.mrb[39].mxu0  ;;  %v3817_v52 = vsel %vm1795_vm7, %v13032_v8, -inf }
 0x61e   : > { %v11420_v25 = vpop.f32.mrb[23].mxu1 }
 0x621   : > { %v2928_v17 = vpop.f32.mrb[24].mxu1 }
 0x622   : > { %v11430_v54 = vpop.f32.mrb[25].mxu1  ;;  %v3790_v24 = vsel %vm1795_vm7, %v2928_v17, -inf }
 0x623   : > { %3791 = vmax.xlane.f32.xlu0 %v3790_v24 }
 0x624   : > { %v13037_v22 = vpop.f32.mrb[40].mxu0 }
 0x625   : > { %v3084_v53 = vpop.f32.mrb[26].mxu1  ;;  %v11485_v60 = vpop.f32.mrb[41].mxu0  ;;  %v3823_v62 = vsel %vm1795_vm7, %v13037_v22, -inf }
 0x626   : > { %v11440_v0 = vpop.f32.mrb[27].mxu1  ;;  %v3796_v14 = vsel %vm1795_vm7, %v3084_v53, -inf }
 0x627   : > { %3797 = vmax.xlane.f32.xlu0 %v3796_v14 }
 0x629   : > { %v3240_v44 = vpop.f32.mrb[28].mxu1 }
 0x62a   : > { %v11450_v18 = vpop.f32.mrb[29].mxu1  ;;  %v3802_v23 = vsel %vm1795_vm7, %v3240_v44, -inf }
 0x62b   : > { %3803 = vmax.xlane.f32.xlu1 %v3802_v23  ;;  %3800 = vmax.xlane.f32.xlu0 %v3799_v27 }
 0x62d   : > { %v3396_v43 = vpop.f32.mrb[30].mxu1 }
 0x62e   : > { %v11460_v63 = vpop.f32.mrb[31].mxu1  ;;  %v3808_v29 = vsel %vm1795_vm7, %v3396_v43, -inf }
 0x62f   : > { %3806 = vmax.xlane.f32.xlu0 %v3805_v30  ;;  %3809 = vmax.xlane.f32.xlu1 %v3808_v29 }
 0x631   : > { %v3552_v34 = vpop.f32.mrb[32].mxu1 }
 0x632   : > { %v11470_v26 = vpop.f32.mrb[33].mxu1  ;;  %v3814_v16 = vsel %vm1795_vm7, %v3552_v34, -inf }
 0x633   : > { %3812 = vmax.xlane.f32.xlu0 %v3811_v48  ;;  %3815 = vmax.xlane.f32.xlu1 %v3814_v16 }
 0x635   : > { %v13049_v31 = vpop.f32.mrb[34].mxu1 }
 0x636   : > { %v11480_v21 = vpop.f32.mrb[35].mxu1  ;;  %v3820_v51 = vsel %vm1795_vm7, %v13049_v31, -inf }
 0x637   : > { %3818 = vmax.xlane.f32.xlu0 %v3817_v52  ;;  %3821 = vmax.xlane.f32.xlu1 %v3820_v51 }
 0x63b   : > { %3824 = vmax.xlane.f32.xlu0 %v3823_v62 }
 0x648   : > { %4076 = vrot.lane.b32.xlu1 %v12516_v61, %s12267_s27 }
 0x64c   : > { %4153 = vrot.lane.b32.xlu1 %v12524_v2, %s12267_s27 }
 0x650   : > { %4307 = vrot.lane.b32.xlu1 %v12538_v6, %s12267_s27 }
 0x651   : > { %3999 = vrot.lane.b32.xlu0 %v12530_v4, %s12267_s27 }
 0x654   : > { %4461 = vrot.lane.b32.xlu1 %v12545_v10, %s12267_s27 }
 0x655   : > { %4230 = vrot.lane.b32.xlu0 %v12526_v3, %s12267_s27 }
 0x658   : > { %4615 = vrot.lane.b32.xlu1 %v12553_v12, %s12267_s27 }
 0x659   : > { %4384 = vrot.lane.b32.xlu0 %v12532_v5, %s12267_s27 }
 0x65d   : > { %4538 = vrot.lane.b32.xlu0 %v12541_v9, %s12267_s27 }
 0x680   : > { %v3795_v61 = vpop.xlane.xlu1 %3794 }
 0x681   : > { %v3827_v2 = vsub.f32 %v3006_v28, %v3795_v61 }
 0x683   : > { %v3840_v6 = vmul.f32 1.442695, %v3827_v2 }
 0x685   : > { %12025 = vpow2.f32 %v3840_v6 }
 0x68f   : > { %v13075_v4 = vpop.eup %12025 }
 0x690   : > { %v3865_v10 = vsel %vm1795_vm7, %v13075_v4, 0.0 }
 0x691   : > { %3866 = vadd.xlane.f32.xlu0 %v3865_v10 }
 0x6b0   : > { %v3792_v3 = vpop.xlane.xlu0 %3791 }
 0x6b1   : > { %v3826_v55 = vsub.f32 %v2928_v17, %v3792_v3 }
 0x6b3   : > { %v3838_v25 = vmul.f32 1.442695, %v3826_v55 }
 0x6b4   : > { %v3798_v12 = vpop.xlane.xlu0 %3797 }
 0x6b5   : > { %12027 = vpow2.f32 %v3838_v25  ;;  %v3828_v54 = vsub.f32 %v3084_v53, %v3798_v12 }
 0x6b7   : > { %v3842_v5 = vmul.f32 1.442695, %v3828_v54 }
 0x6b8   : > { %v3804_v24 = vpop.xlane.xlu1 %3803  ;;  %v3801_v60 = vpop.xlane.xlu0 %3800 }
 0x6b9   : > { %12029 = vpow2.f32 %v3842_v5  ;;  %v3830_v9 = vsub.f32 %v3240_v44, %v3804_v24  ;;  %v3829_v28 = vsub.f32 %v13026_v57, %v3801_v60 }
 0x6bb   : > { %v3846_v0 = vmul.f32 1.442695, %v3830_v9  ;;  %v3844_v14 = vmul.f32 1.442695, %v3829_v28 }
 0x6bc   : > { %v3810_v18 = vpop.xlane.xlu1 %3809  ;;  %v3807_v23 = vpop.xlane.xlu0 %3806 }
 0x6bd   : > { %12031 = vpow2.f32 %v3846_v0  ;;  %v3832_v27 = vsub.f32 %v3396_v43, %v3810_v18  ;;  %v3831_v63 = vsub.f32 %v13028_v49, %v3807_v23 }
 0x6be   : > { %12033 = vpow2.f32 %v3844_v14 }
 0x6bf   : > { %v13081_v17 = vpop.eup %12027  ;;  %v3850_v30 = vmul.f32 1.442695, %v3832_v27  ;;  %v3848_v53 = vmul.f32 1.442695, %v3831_v63 }
 0x6c0   : > { %v3816_v29 = vpop.xlane.xlu1 %3815  ;;  %v3813_v26 = vpop.xlane.xlu0 %3812  ;;  %v3862_v44 = vsel %vm1795_vm7, %v13081_v17, 0.0 }
 0x6c1   : > { %12035 = vpow2.f32 %v3850_v30  ;;  %v3834_v57 = vsub.f32 %v3552_v34, %v3816_v29  ;;  %v3833_v48 = vsub.f32 %v13030_v59, %v3813_v26  ;;  %3863 = vadd.xlane.f32.xlu1 %v3862_v44  ;;  %v11972_v30 = vpack.i.bf16 %v12458_v37, %v12455_v36 }
 0x6c2   : > { %12037 = vpow2.f32 %v3848_v53 }
 0x6c3   : > { %v13086_v16 = vpop.eup %12029  ;;  %v3854_v43 = vmul.f32 1.442695, %v3834_v57  ;;  %v3852_v49 = vmul.f32 1.442695, %v3833_v48 }
 0x6c4   : > { %v3822_v21 = vpop.xlane.xlu1 %3821  ;;  %v3819_v52 = vpop.xlane.xlu0 %3818  ;;  %v3868_v51 = vsel %vm1795_vm7, %v13086_v16, 0.0 }
 0x6c5   : > { %12039 = vpow2.f32 %v3854_v43  ;;  %v3836_v62 = vsub.f32 %v13049_v31, %v3822_v21  ;;  %v3835_v61 = vsub.f32 %v13032_v8, %v3819_v52  ;;  %3869 = vadd.xlane.f32.xlu1 %v3868_v51 }
 0x6c6   : > { %12041 = vpow2.f32 %v3852_v49 }
 0x6c7   : > { %v13092_v34 = vpop.eup %12031  ;;  %v3858_v59 = vmul.f32 1.442695, %v3836_v62  ;;  %v3856_v2 = vmul.f32 1.442695, %v3835_v61 }
 0x6c8   : > { %v13094_v6 = vpop.eup %12033  ;;  %v3825_v10 = vpop.xlane.xlu0 %3824  ;;  %v3874_v3 = vsel %vm1795_vm7, %v13092_v34, 0.0 }
 0x6c9   : > { %12043 = vpow2.f32 %v3858_v59  ;;  %v3837_v55 = vsub.f32 %v13037_v22, %v3825_v10  ;;  %3875 = vadd.xlane.f32.xlu1 %v3874_v3  ;;  %v3871_v31 = vsel %vm1795_vm7, %v13094_v6, 0.0  ;;  %v4077_v57 = vpop.permute.xlu1 %4076 }
 0x6ca   : > { %12045 = vpow2.f32 %v3856_v2  ;;  %3872 = vadd.xlane.f32.xlu0 %v3871_v31 }
 0x6cb   : > { %v13101_v8 = vpop.eup %12035  ;;  %v3860_v25 = vmul.f32 1.442695, %v3837_v55 }
 0x6cc   : > { %v13103_v12 = vpop.eup %12037  ;;  %v4000_v54 = vpop.permute.xlu0 %3999  ;;  %v3880_v5 = vsel %vm1795_vm7, %v13101_v8, 0.0 }
 0x6cd   : > { %12047 = vpow2.f32 %v3860_v25  ;;  %3881 = vadd.xlane.f32.xlu1 %v3880_v5  ;;  %v3877_v22 = vsel %vm1795_vm7, %v13103_v12, 0.0  ;;  %11492 = vmatpush3.msk.msra.mxu0 %vm1934_vm6, %v4000_v54  ;;  %v4154_v49 = vpop.permute.xlu1 %4153 }
 0x6ce   : > { %3878 = vadd.xlane.f32.xlu0 %v3877_v22  ;;  %11501 = vmatprep.subr.mxu0 %v14373_v19 }
 0x6cf   : > { %v13111_v24 = vpop.eup %12039 }
 0x6d0   : > { %v13113_v60 = vpop.eup %12041  ;;  %v3886_v9 = vsel %vm1795_vm7, %v13111_v24, 0.0  ;;  %v4231_v53 = vpop.permute.xlu0 %4230 }
 0x6d1   : > { %3887 = vadd.xlane.f32.xlu1 %v3886_v9  ;;  %v3883_v28 = vsel %vm1795_vm7, %v13113_v60, 0.0 }
 0x6d2   : > { %3884 = vadd.xlane.f32.xlu0 %v3883_v28 }
 0x6d3   : > { %v13119_v0 = vpop.eup %12043 }
 0x6d4   : > { %v13121_v14 = vpop.eup %12045  ;;  %v3892_v18 = vsel %vm1795_vm7, %v13119_v0, 0.0  ;;  %v4385_v29 = vpop.permute.xlu0 %4384 }
 0x6d5   : > { %3893 = vadd.xlane.f32.xlu1 %v3892_v18  ;;  %v3889_v23 = vsel %vm1795_vm7, %v13121_v14, 0.0 }
 0x6d6   : > { %3890 = vadd.xlane.f32.xlu0 %v3889_v23 }
 0x6d7   : > { %v13127_v27 = vpop.eup %12047 }
 0x6d8   : > { %v3895_v63 = vsel %vm1795_vm7, %v13127_v27, 0.0  ;;  %v13137_v26 = vpop.permute.xlu0 %4538 }
 0x6da   : > { %3896 = vadd.xlane.f32.xlu0 %v3895_v63 }
 0x6e6   : > { %4769 = vrot.lane.b32.xlu1 %v12559_v13, %s12267_s27 }
 0x6f0   : > { %4692 = vrot.lane.b32.xlu0 %v12548_v11, %s12267_s27  ;;  %v4308_v11 = vpop.permute.xlu1 %4307 }
 0x6f4   : > { %11973 = vrot.lane.b32.xlu0 %v11972_v30, %s12268_s30  ;;  %v4462_v13 = vpop.permute.xlu1 %4461 }
 0x6f8   : > { %v13145_v21 = vpop.permute.xlu1 %4615 }
 0x71e   : > { %v3867_v44 = vpop.xlane.xlu0 %3866 }
 0x71f   : > { %12049 = vrcp.f32 %v3867_v44 }
 0x729   : > { %v12050_v48 = vpop.eup %12049 }
 0x72a   : > { %v3901_v43 = vmul.f32 %v12050_v48, %v13075_v4 }
 0x72c   : > { %11494 = vmatmul.mubr.msk.f32.vlgmr.msra.gmra.mrb[42].mxu0 %vm1930_vm8, %v3901_v43 }
 0x72d   : > { %11502 = vmatpush3.msk.msra.mxu0 %vm1934_vm6, %v4154_v49  ;;  %11503 = vmatprep.mubr.msk.f32.mxu0 %vm12262_vm4, %v14373_v19 }
 0x72e   : > { %11511 = vmatprep.subr.mxu0 %v14373_v19 }
 0x74e   : > { %v3864_v52 = vpop.xlane.xlu1 %3863 }
 0x74f   : > { %12051 = vrcp.f32 %v3864_v52 }
 0x752   : > { %v3870_v51 = vpop.xlane.xlu1 %3869 }
 0x753   : > { %12053 = vrcp.f32 %v3870_v51 }
 0x756   : > { %v3876_v62 = vpop.xlane.xlu1 %3875 }
 0x757   : > { %12055 = vrcp.f32 %v3876_v62  ;;  %v3873_v4 = vpop.xlane.xlu0 %3872 }
 0x758   : > { %12057 = vrcp.f32 %v3873_v4 }
 0x759   : > { %v12052_v61 = vpop.eup %12051 }
 0x75a   : > { %v3899_v59 = vmul.f32 %v12052_v61, %v13081_v17  ;;  %v3882_v2 = vpop.xlane.xlu1 %3881 }
 0x75b   : > { %12059 = vrcp.f32 %v3882_v2  ;;  %v3879_v10 = vpop.xlane.xlu0 %3878 }
 0x75c   : > { %12061 = vrcp.f32 %v3879_v10  ;;  %11489 = vmatmul.mubr.msk.f32.vlgmr.msra.gmra.mrb[36].mxu1 %vm1930_vm8, %v3899_v59 }
 0x75d   : > { %v12054_v3 = vpop.eup %12053  ;;  %11497 = vmatpush3.msk.msra.mxu1 %vm1934_vm6, %v4077_v57  ;;  %11498 = vmatprep.mubr.msk.f32.mxu1 %vm12262_vm4, %v14373_v19 }
 0x75e   : > { %v3903_v55 = vmul.f32 %v12054_v3, %v13086_v16  ;;  %v3888_v31 = vpop.xlane.xlu1 %3887  ;;  %11506 = vmatprep.subr.mxu1 %v14373_v19 }
 0x75f   : > { %12063 = vrcp.f32 %v3888_v31  ;;  %v3885_v25 = vpop.xlane.xlu0 %3884 }
 0x760   : > { %12065 = vrcp.f32 %v3885_v25  ;;  %11499 = vmatmul.mubr.msk.f32.vlgmr.msra.gmra.mrb[38].mxu1 %vm1930_vm8, %v3903_v55 }
 0x761   : > { %v12056_v17 = vpop.eup %12055  ;;  %11507 = vmatpush3.msk.msra.mxu1 %vm1934_vm6, %v4231_v53  ;;  %11508 = vmatprep.mubr.msk.f32.mxu1 %vm12262_vm4, %v14373_v19 }
 0x762   : > { %v12058_v54 = vpop.eup %12057  ;;  %v3907_v5 = vmul.f32 %v12056_v17, %v13092_v34  ;;  %v3894_v22 = vpop.xlane.xlu1 %3893  ;;  %11516 = vmatprep.subr.mxu1 %v14373_v19 }
 0x763   : > { %v3905_v16 = vmul.f32 %v12058_v54, %v13094_v6  ;;  %12067 = vrcp.f32 %v3894_v22  ;;  %v3891_v9 = vpop.xlane.xlu0 %3890 }
 0x764   : > { %12069 = vrcp.f32 %v3891_v9  ;;  %11509 = vmatmul.mubr.msk.f32.vlgmr.msra.gmra.mrb[40].mxu1 %vm1930_vm8, %v3907_v5 }
 0x765   : > { %v12060_v28 = vpop.eup %12059  ;;  %11504 = vmatmul.mubr.msk.f32.vlgmr.msra.gmra.mrb[44].mxu0 %vm1930_vm8, %v3905_v16  ;;  %11517 = vmatpush3.msk.msra.mxu1 %vm1934_vm6, %v4385_v29 }
 0x766   : > { %v12062_v18 = vpop.eup %12061  ;;  %v3911_v23 = vmul.f32 %v12060_v28, %v13101_v8  ;;  %11512 = vmatpush3.msk.msra.mxu0 %vm1934_vm6, %v4308_v11  ;;  %11513 = vmatprep.mubr.msk.f32.mxu0 %vm12262_vm4, %v14373_v19  ;;  %v4770_v44 = vpop.permute.xlu1 %4769 }
 0x767   : > { %v3909_v34 = vmul.f32 %v12062_v18, %v13103_v12  ;;  %v3897_v6 = vpop.xlane.xlu0 %3896  ;;  %11518 = vmatprep.mubr.msk.f32.mxu1 %vm12262_vm4, %v14373_v19  ;;  %11521 = vmatprep.subr.mxu0 %v14373_v19 }
 0x768   : > { %12071 = vrcp.f32 %v3897_v6  ;;  %11526 = vmatprep.subr.mxu1 %v14373_v19  ;;  %11519 = vmatmul.mubr.msk.f32.vlgmr.msra.gmra.mrb[42].mxu1 %vm1930_vm8, %v3911_v23 }
 0x769   : > { %v12064_v63 = vpop.eup %12063  ;;  %11514 = vmatmul.mubr.msk.f32.vlgmr.msra.gmra.mrb[46].mxu0 %vm1930_vm8, %v3909_v34  ;;  %11527 = vmatpush3.msk.msra.mxu1 %vm1934_vm6, %v13137_v26 }
 0x76a   : > { %v12066_v8 = vpop.eup %12065  ;;  %v3915_v12 = vmul.f32 %v12064_v63, %v13111_v24  ;;  %11522 = vmatpush3.msk.msra.mxu0 %vm1934_vm6, %v4462_v13  ;;  %11523 = vmatprep.mubr.msk.f32.mxu0 %vm12262_vm4, %v14373_v19 }
 0x76b   : > { %v3913_v30 = vmul.f32 %v12066_v8, %v13113_v60  ;;  %v4693_v53 = vpop.permute.xlu0 %4692  ;;  %11528 = vmatprep.mubr.msk.f32.mxu1 %vm12262_vm4, %v14373_v19  ;;  %11531 = vmatprep.subr.mxu0 %v14373_v19 }
 0x76c   : > { %11536 = vmatprep.subr.mxu1 %v14373_v19  ;;  %11529 = vmatmul.mubr.msk.f32.vlgmr.msra.gmra.mrb[44].mxu1 %vm1930_vm8, %v3915_v12 }
 0x76d   : > { %v12068_v29 = vpop.eup %12067  ;;  %11524 = vmatmul.mubr.msk.f32.vlgmr.msra.gmra.mrb[48].mxu0 %vm1930_vm8, %v3913_v30  ;;  %11537 = vmatpush3.msk.msra.mxu1 %vm1934_vm6, %v4693_v53 }
 0x76e   : > { %v12070_v24 = vpop.eup %12069  ;;  %v3919_v26 = vmul.f32 %v12068_v29, %v13119_v0  ;;  %11532 = vmatpush3.msk.msra.mxu0 %vm1934_vm6, %v13145_v21  ;;  %11533 = vmatprep.mubr.msk.f32.mxu0 %vm12262_vm4, %v14373_v19 }
 0x76f   : > { %v3917_v60 = vmul.f32 %v12070_v24, %v13121_v14  ;;  %11538 = vmatprep.mubr.msk.f32.mxu1 %vm12262_vm4, %v14373_v19  ;;  %11541 = vmatprep.subr.mxu0 %v14373_v19  ;;  %v11974_v14 = vpop.permute.xlu0 %11973 }
 0x770   : > { %11539 = vmatmul.mubr.msk.f32.vlgmr.msra.gmra.mrb[46].mxu1 %vm1930_vm8, %v3919_v26  ;;  %v11976_v48 = vunpack.i.h.bf16 %v11974_v14  ;;  %v11975_v43 = vunpack.i.l.bf16 %v11974_v14 }
 0x771   : > { %11534 = vmatmul.mubr.msk.f32.vlgmr.msra.gmra.mrb[50].mxu0 %vm1930_vm8, %v3917_v60 }
 0x772   : > { %v12072_v57 = vpop.eup %12071  ;;  %11542 = vmatpush3.msk.msra.mxu0 %vm1934_vm6, %v4770_v44  ;;  %11543 = vmatprep.mubr.msk.f32.mxu0 %vm12262_vm4, %v14373_v19  ;;  %v11892_v49 = vpack.c.bf16 %v11976_v48, %v11975_v43 }
 0x773   : > { %v3921_v0 = vmul.f32 %v12072_v57, %v13127_v27 }
 0x774   : > { %11893 = vmatprep.subr.bf16.mxu1 %v11892_v49 }
 0x775   : > { %11544 = vmatmul.mubr.msk.f32.vlgmr.msra.gmra.mrb[52].mxu0 %vm1930_vm8, %v3921_v0  ;;  %11895 = vmatpush3.bf16.msra.mxu1 %v11892_v49 }
 0x7ff   : > { %v4072_v11 = vpop.f32.mrb[42].mxu0 }
 0x800   : > { %4860 = vrot.lane.b32.xlu0 %v4072_v11, %s12269_s26  ;;  %v11495_v13 = vpop.f32.mrb[43].mxu0 }
 0x82f   : > { %v3995_v21 = vpop.f32.mrb[36].mxu1 }
 0x830   : > { %v11490_v52 = vpop.f32.mrb[37].mxu1  ;;  %4858 = vrot.lane.b32.xlu1 %v3995_v21, %s12269_s26 }
 0x833   : > { %v4149_v19 = vpop.f32.mrb[38].mxu1 }
 0x834   : > { %4862 = vrot.lane.b32.xlu1 %v4149_v19, %s12269_s26  ;;  %v11500_v27 = vpop.f32.mrb[39].mxu1 }
 0x835   : > { %v12097_v27 = vld [vmem:[#allocation2 + $0x8] sm:$0xff] }
 0x837   : > { %v4303_v51 = vpop.f32.mrb[40].mxu1 }
 0x838   : > { %v4226_v62 = vpop.f32.mrb[44].mxu0  ;;  %4866 = vrot.lane.b32.xlu1 %v4303_v51, %s12269_s26  ;;  %v11510_v4 = vpop.f32.mrb[41].mxu1 }
 0x839   : > { %4864 = vrot.lane.b32.xlu0 %v4226_v62, %s12269_s26  ;;  %v11505_v61 = vpop.f32.mrb[45].mxu0  ;;  %v12098_v62 = vld [vmem:[#allocation2] sm:$0xff] }
 0x83b   : > { %v4457_v59 = vpop.f32.mrb[42].mxu1 }
 0x83c   : > { %v4380_v2 = vpop.f32.mrb[46].mxu0  ;;  %4870 = vrot.lane.b32.xlu1 %v4457_v59, %s12269_s26  ;;  %v11520_v10 = vpop.f32.mrb[43].mxu1 }
 0x83d   : > { %4868 = vrot.lane.b32.xlu0 %v4380_v2, %s12269_s26  ;;  %v11515_v3 = vpop.f32.mrb[47].mxu0 }
 0x83e   : > { %v12099_v3 = vld [vmem:[#allocation2 + $0x18] sm:$0xff] }
 0x83f   : > { %v4611_v55 = vpop.f32.mrb[44].mxu1 }
 0x840   : > { %v4534_v31 = vpop.f32.mrb[48].mxu0  ;;  %4874 = vrot.lane.b32.xlu1 %v4611_v55, %s12269_s26  ;;  %v11530_v25 = vpop.f32.mrb[45].mxu1 }
 0x841   : > { %4872 = vrot.lane.b32.xlu0 %v4534_v31, %s12269_s26  ;;  %v11525_v17 = vpop.f32.mrb[49].mxu0  ;;  %v12100_v31 = vld [vmem:[#allocation2 + $0x10] sm:$0xff] }
 0x843   : > { %v4765_v54 = vpop.f32.mrb[46].mxu1 }
 0x844   : > { %v4688_v5 = vpop.f32.mrb[50].mxu0  ;;  %4878 = vrot.lane.b32.xlu1 %v4765_v54, %s12269_s26  ;;  %v11540_v22 = vpop.f32.mrb[47].mxu1 }
 0x845   : > { %4876 = vrot.lane.b32.xlu0 %v4688_v5, %s12269_s26  ;;  %v11535_v16 = vpop.f32.mrb[51].mxu0 }
 0x848   : > { %v4842_v9 = vpop.f32.mrb[52].mxu0 }
 0x849   : > { %4880 = vrot.lane.b32.xlu0 %v4842_v9, %s12269_s26  ;;  %v11545_v28 = vpop.f32.mrb[53].mxu0 }
 0x84a   : > { %v12101_v28 = vld [vmem:[#allocation2 + $0x28] sm:$0xff] }
 0x872   : > { %v4861_v18 = vpop.permute.xlu0 %4860 }
 0x873   : > { %v4895_v34 = vsel %vm884_vm5, %v13005_v32, %v4861_v18 }
 0x8a2   : > { %v4859_v23 = vpop.permute.xlu1 %4858 }
 0x8a3   : > { %v4894_v6 = vsel %vm884_vm5, %v13003_v7, %v4859_v23  ;;  %v12102_v23 = vld [vmem:[#allocation2 + $0x20] sm:$0xff] }
 0x8a4   : > { %v4922_v63 = vcombine.low %v4894_v6, %v4895_v34 }
 0x8a6   : > { %v4863_v8 = vpop.permute.xlu1 %4862  ;;  %11550 = vmatprep.mubr.msk.f32.mxu1 %vm756_vm3, %v4922_v63 }
 0x8a7   : > { %v4896_v53 = vsel %vm884_vm5, %v13007_v20, %v4863_v8 }
 0x8aa   : > { %v4867_v12 = vpop.permute.xlu1 %4866 }
 0x8ab   : > { %v4865_v30 = vpop.permute.xlu0 %4864  ;;  %v4898_v7 = vsel %vm884_vm5, %v13011_v42, %v4867_v12 }
 0x8ac   : > { %v4897_v29 = vsel %vm884_vm5, %v13009_v46, %v4865_v30 }
 0x8ad   : > { %v4923_v24 = vcombine.low %v4896_v53, %v4897_v29 }
 0x8ae   : > { %v4871_v26 = vpop.permute.xlu1 %4870 }
 0x8af   : > { %v4869_v60 = vpop.permute.xlu0 %4868  ;;  %11551 = vmatmul.mubr.msk.f32.vlgmr.msra.gmra.mrb[48].mxu1 %vm756_vm3, %v4923_v24  ;;  %v4900_v20 = vsel %vm884_vm5, %v13015_v56, %v4871_v26 }
 0x8b0   : > { %v4899_v32 = vsel %vm884_vm5, %v13013_v47, %v4869_v60 }
 0x8b1   : > { %v4924_v44 = vcombine.low %v4898_v7, %v4899_v32 }
 0x8b2   : > { %v4875_v57 = vpop.permute.xlu1 %4874 }
 0x8b3   : > { %v4873_v0 = vpop.permute.xlu0 %4872  ;;  %11553 = vmatprep.mubr.msk.f32.mxu1 %vm756_vm3, %v4924_v44  ;;  %v4902_v42 = vsel %vm884_vm5, %v13021_v33, %v4875_v57  ;;  %v4909_v33 = vrot.slane %v12482_v45, %v12512_v58 }
 0x8b4   : > { %v4901_v46 = vsel %vm884_vm5, %v13017_v50, %v4873_v0 }
 0x8b5   : > { %v4925_v14 = vcombine.low %v4900_v20, %v4901_v46 }
 0x8b6   : > { %v4879_v43 = vpop.permute.xlu1 %4878 }
 0x8b7   : > { %v4877_v48 = vpop.permute.xlu0 %4876  ;;  %11554 = vmatmul.mubr.msk.f32.gmra.mrb[50].mxu1 %vm756_vm3, %v4925_v14  ;;  %v4904_v56 = vsel %vm884_vm5, %v13034_v15, %v4879_v43 }
 0x8b8   : > { %v4903_v47 = vsel %vm884_vm5, %v13019_v1, %v4877_v48 }
 0x8b9   : > { %v4926_v49 = vcombine.low %v4902_v42, %v4903_v47 }
 0x8bb   : > { %v4881_v11 = vpop.permute.xlu0 %4880  ;;  %11556 = vmatprep.mubr.msk.f32.mxu1 %vm756_vm3, %v4926_v49 }
 0x8bc   : > { %v4905_v50 = vsel %vm884_vm5, %v13023_v35, %v4881_v11 }
 0x8bd   : > { %v4927_v13 = vcombine.low %v4904_v56, %v4905_v50 }
 0x8bf   : > { %11557 = vmatmul.mubr.msk.f32.gmra.mrb[52].mxu1 %vm756_vm3, %v4927_v13 }
 0x982   : > { %v11552_v21 = vpop.f32.mrb[48].mxu1 }
 0x983   : > { %v5020_v52 = vadd.f32 %v11552_v21, %v4909_v33  ;;  %v5014_v1 = vpop.f32.mrb[49].mxu1 }
 0x984   : > { %v5015_v19 = vadd.f32 %v5014_v1, %v4909_v33 }
 0x985   : > { %v5044_v51 = vadd.f32 %v12097_v27, %v5020_v52  ;;  %v11896_v27 = vpack.c.bf16 %v12464_v39, %v12461_v38 }
 0x986   : > { %v5043_v4 = vadd.f32 %v12098_v62, %v5015_v19 }
 0x987   : > { %v5052_v61 = vsel %vm756_vm3, %v5044_v51, 0.0  ;;  %11897 = vmatprep.subr.bf16.mxu0 %v11896_v27 }
 0x988   : > { %5053 = vadd.xlane.f32.xlu0 %v5052_v61  ;;  %v5049_v15 = vsel %vm756_vm3, %v5043_v4, 0.0  ;;  %11899 = vmatpush3.bf16.msra.mxu0 %v11896_v27 }
 0x989   : > { %5050 = vadd.xlane.f32.xlu1 %v5049_v15 }
 0x98a   : > { %v11555_v35 = vpop.f32.mrb[50].mxu1 }
 0x98b   : > { %v5030_v59 = vadd.f32 %v11555_v35, %v4909_v33  ;;  %v5024_v2 = vpop.f32.mrb[51].mxu1 }
 0x98c   : > { %v5025_v10 = vadd.f32 %v5024_v2, %v4909_v33 }
 0x98d   : > { %v5046_v55 = vadd.f32 %v12099_v3, %v5030_v59 }
 0x98e   : > { %v5045_v25 = vadd.f32 %v12100_v31, %v5025_v10  ;;  %v14374_v31 = vld [vmem:[#allocation14_spill] sm:$0xff] }
 0x98f   : > { %v5058_v17 = vsel %vm756_vm3, %v5046_v55, 0.0 }
 0x990   : > { %5059 = vadd.xlane.f32.xlu1 %v5058_v17  ;;  %v5055_v54 = vsel %vm756_vm3, %v5045_v25, 0.0 }
 0x991   : > { %5056 = vadd.xlane.f32.xlu0 %v5055_v54 }
 0x992   : > { %v11558_v5 = vpop.f32.mrb[52].mxu1 }
 0x993   : > { %v5040_v22 = vadd.f32 %v11558_v5, %v4909_v33  ;;  %v5034_v16 = vpop.f32.mrb[53].mxu1  ;;  %v5140_v5 = vsub.s32 4, %v14374_v31 }
 0x994   : > { %v5035_v9 = vadd.f32 %v5034_v16, %v4909_v33 }
 0x995   : > { %v5048_v18 = vadd.f32 %v12101_v28, %v5040_v22 }
 0x996   : > { %v5047_v34 = vadd.f32 %v12102_v23, %v5035_v9 }
 0x997   : > { %v5064_v6 = vsel %vm756_vm3, %v5048_v18, 0.0 }
 0x998   : > { %5065 = vadd.xlane.f32.xlu1 %v5064_v6  ;;  %v5061_v63 = vsel %vm756_vm3, %v5047_v34, 0.0 }
 0x999   : > { %5062 = vadd.xlane.f32.xlu0 %v5061_v63  ;;  %v5141_v63 = vrot.slane %v12482_v45, %v5140_v5  ;;  %v5275_v5 = vsub.s32 2, %v14374_v31 }
 0xa15   : > { %v5054_v8 = vpop.xlane.xlu0 %5053 }
 0xa16   : > { %v5069_v12 = vmul.f32 0.0625, %v5054_v8  ;;  %v5051_v30 = vpop.xlane.xlu1 %5050 }
 0xa17   : > { %v5068_v53 = vmul.f32 0.0625, %v5051_v30 }
 0xa18   : > { %v5075_v29 = vsub.f32 %v5044_v51, %v5069_v12  ;;  %v11900_v51 = vpack.c.bf16 %v12470_v41, %v12467_v40 }
 0xa19   : > { %v5074_v24 = vsub.f32 %v5043_v4, %v5068_v53 }
 0xa1a   : > { %v5081_v26 = vmul.f32 %v5075_v29, %v5075_v29  ;;  %11901 = vmatprep.subr.bf16.mxu1 %v11900_v51 }
 0xa1b   : > { %v5080_v60 = vmul.f32 %v5074_v24, %v5074_v24  ;;  %11903 = vmatpush3.bf16.msra.mxu1 %v11900_v51 }
 0xa1c   : > { %v5089_v7 = vsel %vm756_vm3, %v5081_v26, 0.0 }
 0xa1d   : > { %5090 = vadd.xlane.f32.xlu1 %v5089_v7  ;;  %v5060_v32 = vpop.xlane.xlu1 %5059  ;;  %v5086_v44 = vsel %vm756_vm3, %v5080_v60, 0.0 }
 0xa1e   : > { %v5071_v57 = vmul.f32 0.0625, %v5060_v32  ;;  %v5057_v0 = vpop.xlane.xlu0 %5056  ;;  %5087 = vadd.xlane.f32.xlu0 %v5086_v44 }
 0xa1f   : > { %v5070_v20 = vmul.f32 0.0625, %v5057_v0 }
 0xa20   : > { %v13257_v46 = vsub.f32 %v5046_v55, %v5071_v57 }
 0xa21   : > { %v13259_v14 = vsub.f32 %v5045_v25, %v5070_v20  ;;  %v5130_v25 = vsub.s32 3, %v14374_v31 }
 0xa22   : > { %v5083_v48 = vmul.f32 %v13257_v46, %v13257_v46 }
 0xa23   : > { %v5082_v42 = vmul.f32 %v13259_v14, %v13259_v14  ;;  %v5131_v22 = vrot.slane %v12482_v45, %v5130_v25 }
 0xa24   : > { %v5095_v47 = vsel %vm756_vm3, %v5083_v48, 0.0 }
 0xa25   : > { %5096 = vadd.xlane.f32.xlu1 %v5095_v47  ;;  %v5066_v43 = vpop.xlane.xlu1 %5065  ;;  %v5092_v49 = vsel %vm756_vm3, %v5082_v42, 0.0 }
 0xa26   : > { %v5073_v11 = vmul.f32 0.0625, %v5066_v43  ;;  %v5063_v56 = vpop.xlane.xlu0 %5062  ;;  %5093 = vadd.xlane.f32.xlu0 %v5092_v49 }
 0xa27   : > { %v5072_v50 = vmul.f32 0.0625, %v5063_v56 }
 0xa28   : > { %v13267_v13 = vsub.f32 %v5048_v18, %v5073_v11 }
 0xa29   : > { %v13269_v33 = vsub.f32 %v5047_v34, %v5072_v50 }
 0xa2a   : > { %v5085_v21 = vmul.f32 %v13267_v13, %v13267_v13 }
 0xa2b   : > { %v5084_v52 = vmul.f32 %v13269_v33, %v13269_v33 }
 0xa2c   : > { %v5101_v1 = vsel %vm756_vm3, %v5085_v21, 0.0  ;;  %v14376_v21 = vld [vmem:[#allocation9_spill] sm:$0xff] }
 0xa2d   : > { %5102 = vadd.xlane.f32.xlu1 %v5101_v1  ;;  %v5098_v19 = vsel %vm756_vm3, %v5084_v52, 0.0  ;;  %v14377_v1 = vld [vmem:[#allocation13_spill] sm:$0xff] }
 0xa2e   : > { %5099 = vadd.xlane.f32.xlu0 %v5098_v19  ;;  %v5152_v19 = vrot.slane %v14377_v1, %v12512_v58 }
 0xaaa   : > { %v5091_v62 = vpop.xlane.xlu1 %5090 }
 0xaab   : > { %v5105_v4 = vmul.f32 0.0625, %v5091_v62  ;;  %v5088_v61 = vpop.xlane.xlu0 %5087 }
 0xaac   : > { %v5104_v15 = vmul.f32 0.0625, %v5088_v61 }
 0xaad   : > { %v5111_v35 = vadd.f32 1e-05, %v5105_v4 }
 0xaae   : > { %v5110_v59 = vadd.f32 1e-05, %v5104_v15 }
 0xaaf   : > { %12073 = vrsqrt.f32 %v5111_v35 }
 0xab0   : > { %12075 = vrsqrt.f32 %v5110_v59 }
 0xab2   : > { %v5097_v2 = vpop.xlane.xlu1 %5096 }
 0xab3   : > { %v5107_v10 = vmul.f32 0.0625, %v5097_v2  ;;  %v5094_v3 = vpop.xlane.xlu0 %5093 }
 0xab4   : > { %v5106_v55 = vmul.f32 0.0625, %v5094_v3 }
 0xab5   : > { %v5113_v17 = vadd.f32 1e-05, %v5107_v10 }
 0xab6   : > { %v5112_v54 = vadd.f32 1e-05, %v5106_v55 }
 0xab7   : > { %12077 = vrsqrt.f32 %v5113_v17 }
 0xab8   : > { %12079 = vrsqrt.f32 %v5112_v54 }
 0xab9   : > { %v12074_v16 = vpop.eup %12073 }
 0xaba   : > { %v12076_v9 = vpop.eup %12075  ;;  %v5123_v28 = vmul.f32 %v12074_v16, %v5075_v29  ;;  %v5103_v18 = vpop.xlane.xlu1 %5102 }
 0xabb   : > { %v5109_v23 = vmul.f32 0.0625, %v5103_v18  ;;  %v5100_v34 = vpop.xlane.xlu0 %5099  ;;  %v5122_v6 = vmul.f32 %v12076_v9, %v5074_v24 }
 0xabc   : > { %v5108_v8 = vmul.f32 0.0625, %v5100_v34  ;;  %v5133_v12 = vmul.f32 %v5131_v22, %v5123_v28 }
 0xabd   : > { %v5115_v30 = vadd.f32 1e-05, %v5109_v23  ;;  %v5132_v53 = vmul.f32 %v5131_v22, %v5122_v6 }
 0xabe   : > { %v5114_v26 = vadd.f32 1e-05, %v5108_v8  ;;  %v5143_v7 = vadd.f32 %v5141_v63, %v5133_v12 }
 0xabf   : > { %12081 = vrsqrt.f32 %v5115_v30  ;;  %v5142_v60 = vadd.f32 %v5141_v63, %v5132_v53 }
 0xac0   : > { %12083 = vrsqrt.f32 %v5114_v26 }
 0xac1   : > { %v12078_v32 = vpop.eup %12077  ;;  %11563 = vmatprep.mubr.msk.f32.mxu0 %vm756_vm3, %v5142_v60 }
 0xac2   : > { %v12080_v44 = vpop.eup %12079  ;;  %11564 = vmatmul.mubr.msk.f32.vlgmr.msra.gmra.mrb[54].mxu0 %vm756_vm3, %v5143_v7  ;;  %v5125_v29 = vmul.f32 %v12078_v32, %v13257_v46 }
 0xac3   : > { %v5124_v24 = vmul.f32 %v12080_v44, %v13259_v14  ;;  %v14375_v14 = vld [vmem:[#allocation8_spill] sm:$0xff] }
 0xac4   : > { %v5135_v57 = vmul.f32 %v5131_v22, %v5125_v29  ;;  %v11904_v52 = vpack.c.bf16 %v14376_v21, %v14375_v14 }
 0xac5   : > { %v5134_v0 = vmul.f32 %v5131_v22, %v5124_v24 }
 0xac6   : > { %v5145_v48 = vadd.f32 %v5141_v63, %v5135_v57  ;;  %11905 = vmatprep.subr.bf16.mxu1 %v11904_v52 }
 0xac7   : > { %v5144_v20 = vadd.f32 %v5141_v63, %v5134_v0  ;;  %11907 = vmatpush3.bf16.msra.mxu1 %v11904_v52 }
 0xac9   : > { %v12082_v42 = vpop.eup %12081  ;;  %11566 = vmatprep.mubr.msk.f32.mxu0 %vm756_vm3, %v5144_v20 }
 0xaca   : > { %v12084_v47 = vpop.eup %12083  ;;  %11567 = vmatmul.mubr.msk.f32.gmra.mrb[56].mxu0 %vm756_vm3, %v5145_v48  ;;  %v5127_v43 = vmul.f32 %v12082_v42, %v13267_v13 }
 0xacb   : > { %v5126_v49 = vmul.f32 %v12084_v47, %v13269_v33 }
 0xacc   : > { %v5137_v11 = vmul.f32 %v5131_v22, %v5127_v43 }
 0xacd   : > { %v5136_v56 = vmul.f32 %v5131_v22, %v5126_v49  ;;  %v5276_v22 = vrot.slane %v12482_v45, %v5275_v5 }
 0xace   : > { %v5147_v46 = vadd.f32 %v5141_v63, %v5137_v11 }
 0xacf   : > { %v5146_v50 = vadd.f32 %v5141_v63, %v5136_v56 }
 0xad1   : > { %11569 = vmatprep.mubr.msk.f32.mxu0 %vm756_vm3, %v5146_v50 }
 0xad2   : > { %11570 = vmatmul.mubr.msk.f32.gmra.mrb[58].mxu0 %vm756_vm3, %v5147_v46 }
 0xb95   : > { %v11565_v27 = vpop.f32.mrb[54].mxu0 }
 0xb96   : > { %v5244_v13 = vadd.f32 %v11565_v27, %v5152_v19  ;;  %v5238_v51 = vpop.f32.mrb[55].mxu0 }
 0xb97   : > { %v5239_v33 = vadd.f32 %v5238_v51, %v5152_v19 }
 0xb98   : > { %v5268_v4 = vmax.f32 %v5244_v13, 0.0 }
 0xb99   : > { %v5267_v62 = vmax.f32 %v5239_v33, 0.0 }
 0xb9b   : > { %11580 = vmatprep.mubr.msk.f32.mxu1 %vm5277_vm9, %v5267_v62 }
 0xb9c   : > { %11581 = vmatmul.mubr.msk.f32.vlgmr.msra.gmra.mrb[54].mxu1 %vm5277_vm9, %v5268_v4 }
 0xb9d   : > { %v11568_v61 = vpop.f32.mrb[56].mxu0 }
 0xb9e   : > { %v5254_v15 = vadd.f32 %v11568_v61, %v5152_v19  ;;  %v5248_v35 = vpop.f32.mrb[57].mxu0 }
 0xb9f   : > { %v5249_v59 = vadd.f32 %v5248_v35, %v5152_v19 }
 0xba0   : > { %v5270_v10 = vmax.f32 %v5254_v15, 0.0 }
 0xba1   : > { %v5269_v2 = vmax.f32 %v5249_v59, 0.0 }
 0xba3   : > { %11583 = vmatprep.mubr.msk.f32.mxu1 %vm5277_vm9, %v5269_v2 }
 0xba4   : > { %11584 = vmatmul.mubr.msk.f32.gmra.mrb[56].mxu1 %vm5277_vm9, %v5270_v10 }
 0xba5   : > { %v11571_v58 = vpop.f32.mrb[58].mxu0 }
 0xba6   : > { %v5264_v3 = vadd.f32 %v11571_v58, %v5152_v19  ;;  %v5258_v55 = vpop.f32.mrb[59].mxu0 }
 0xba7   : > { %v5259_v25 = vadd.f32 %v5258_v55, %v5152_v19 }
 0xba8   : > { %v5272_v54 = vmax.f32 %v5264_v3, 0.0 }
 0xba9   : > { %v5271_v17 = vmax.f32 %v5259_v25, 0.0 }
 0xbab   : > { %11586 = vmatprep.mubr.msk.f32.mxu1 %vm5277_vm9, %v5271_v17 }
 0xbac   : > { %11587 = vmatmul.mubr.msk.f32.gmra.mrb[58].mxu1 %vm5277_vm9, %v5272_v54 }
 0xc6f   : > { %v11582_v16 = vpop.f32.mrb[54].mxu1 }
 0xc70   : > { %v5368_v9 = vadd.f32 %v11582_v16, %v5276_v22  ;;  %v5362_v28 = vpop.f32.mrb[55].mxu1 }
 0xc71   : > { %v5363_v18 = vadd.f32 %v5362_v28, %v5276_v22 }
 0xc72   : > { %v5392_v23 = vadd.f32 %v5368_v9, %v5143_v7 }
 0xc73   : > { %v5391_v34 = vadd.f32 %v5363_v18, %v5142_v60 }
 0xc74   : > { %v5400_v6 = vsel %vm756_vm3, %v5392_v23, 0.0 }
 0xc75   : > { %5401 = vadd.xlane.f32.xlu1 %v5400_v6  ;;  %v5397_v63 = vsel %vm756_vm3, %v5391_v34, 0.0 }
 0xc76   : > { %5398 = vadd.xlane.f32.xlu0 %v5397_v63  ;;  %v5477_v63 = vsub.s32 5, %v14374_v31 }
 0xc77   : > { %v11585_v8 = vpop.f32.mrb[56].mxu1 }
 0xc78   : > { %v5378_v12 = vadd.f32 %v11585_v8, %v5276_v22  ;;  %v5372_v30 = vpop.f32.mrb[57].mxu1 }
 0xc79   : > { %v5373_v53 = vadd.f32 %v5372_v30, %v5276_v22  ;;  %v5487_v30 = vsub.s32 6, %v14374_v31 }
 0xc7a   : > { %v5394_v26 = vadd.f32 %v5378_v12, %v5145_v48 }
 0xc7b   : > { %v5393_v32 = vadd.f32 %v5373_v53, %v5144_v20 }
 0xc7c   : > { %v5406_v44 = vsel %vm756_vm3, %v5394_v26, 0.0 }
 0xc7d   : > { %5407 = vadd.xlane.f32.xlu1 %v5406_v44  ;;  %v5403_v29 = vsel %vm756_vm3, %v5393_v32, 0.0 }
 0xc7e   : > { %5404 = vadd.xlane.f32.xlu0 %v5403_v29  ;;  %v5488_v29 = vrot.slane %v12482_v45, %v5487_v30 }
 0xc7f   : > { %v11588_v7 = vpop.f32.mrb[58].mxu1 }
 0xc80   : > { %v5388_v60 = vadd.f32 %v11588_v7, %v5276_v22  ;;  %v5382_v24 = vpop.f32.mrb[59].mxu1 }
 0xc81   : > { %v5383_v57 = vadd.f32 %v5382_v24, %v5276_v22 }
 0xc82   : > { %v5396_v0 = vadd.f32 %v5388_v60, %v5147_v46 }
 0xc83   : > { %v5395_v42 = vadd.f32 %v5383_v57, %v5146_v50 }
 0xc84   : > { %v5412_v47 = vsel %vm756_vm3, %v5396_v0, 0.0 }
 0xc85   : > { %5413 = vadd.xlane.f32.xlu1 %v5412_v47  ;;  %v5409_v43 = vsel %vm756_vm3, %v5395_v42, 0.0 }
 0xc86   : > { %5410 = vadd.xlane.f32.xlu0 %v5409_v43 }
 0xd02   : > { %v5402_v48 = vpop.xlane.xlu1 %5401 }
 0xd03   : > { %v5416_v20 = vmul.f32 0.0625, %v5402_v48  ;;  %v5399_v49 = vpop.xlane.xlu0 %5398 }
 0xd04   : > { %v5415_v11 = vmul.f32 0.0625, %v5399_v49 }
 0xd05   : > { %v5422_v56 = vsub.f32 %v5392_v23, %v5416_v20 }
 0xd06   : > { %v5421_v14 = vsub.f32 %v5391_v34, %v5415_v11 }
 0xd07   : > { %v5428_v21 = vmul.f32 %v5422_v56, %v5422_v56 }
 0xd08   : > { %v5427_v52 = vmul.f32 %v5421_v14, %v5421_v14 }
 0xd09   : > { %v5436_v1 = vsel %vm756_vm3, %v5428_v21, 0.0 }
 0xd0a   : > { %5437 = vadd.xlane.f32.xlu1 %v5436_v1  ;;  %v5408_v19 = vpop.xlane.xlu1 %5407  ;;  %v5433_v50 = vsel %vm756_vm3, %v5427_v52, 0.0 }
 0xd0b   : > { %v5418_v46 = vmul.f32 0.0625, %v5408_v19  ;;  %v5405_v27 = vpop.xlane.xlu0 %5404  ;;  %5434 = vadd.xlane.f32.xlu0 %v5433_v50 }
 0xd0c   : > { %v5417_v13 = vmul.f32 0.0625, %v5405_v27 }
 0xd0d   : > { %v5424_v51 = vsub.f32 %v5394_v26, %v5418_v46  ;;  %v5478_v26 = vrot.slane %v12482_v45, %v5477_v63 }
 0xd0e   : > { %v5423_v33 = vsub.f32 %v5393_v32, %v5417_v13 }
 0xd0f   : > { %v5430_v62 = vmul.f32 %v5424_v51, %v5424_v51 }
 0xd10   : > { %v5429_v4 = vmul.f32 %v5423_v33, %v5423_v33 }
 0xd11   : > { %v5442_v61 = vsel %vm756_vm3, %v5430_v62, 0.0 }
 0xd12   : > { %5443 = vadd.xlane.f32.xlu1 %v5442_v61  ;;  %v5414_v15 = vpop.xlane.xlu1 %5413  ;;  %v5439_v35 = vsel %vm756_vm3, %v5429_v4, 0.0 }
 0xd13   : > { %v5420_v59 = vmul.f32 0.0625, %v5414_v15  ;;  %5440 = vadd.xlane.f32.xlu0 %v5439_v35  ;;  %v5411_v2 = vpop.xlane.xlu0 %5410 }
 0xd14   : > { %v5419_v10 = vmul.f32 0.0625, %v5411_v2 }
 0xd15   : > { %v5426_v58 = vsub.f32 %v5396_v0, %v5420_v59 }
 0xd16   : > { %v5425_v3 = vsub.f32 %v5395_v42, %v5419_v10 }
 0xd17   : > { %v5432_v55 = vmul.f32 %v5426_v58, %v5426_v58 }
 0xd18   : > { %v5431_v25 = vmul.f32 %v5425_v3, %v5425_v3 }
 0xd19   : > { %v5448_v17 = vsel %vm756_vm3, %v5432_v55, 0.0 }
 0xd1a   : > { %5449 = vadd.xlane.f32.xlu1 %v5448_v17  ;;  %v5445_v54 = vsel %vm756_vm3, %v5431_v25, 0.0 }
 0xd1b   : > { %5446 = vadd.xlane.f32.xlu0 %v5445_v54 }
 0xd97   : > { %v5438_v5 = vpop.xlane.xlu1 %5437 }
 0xd98   : > { %v5452_v22 = vmul.f32 0.0625, %v5438_v5  ;;  %v5435_v16 = vpop.xlane.xlu0 %5434 }
 0xd99   : > { %v5451_v9 = vmul.f32 0.0625, %v5435_v16 }
 0xd9a   : > { %v5458_v28 = vadd.f32 1e-05, %v5452_v22 }
 0xd9b   : > { %v5457_v18 = vadd.f32 1e-05, %v5451_v9 }
 0xd9c   : > { %12085 = vrsqrt.f32 %v5458_v28 }
 0xd9d   : > { %12087 = vrsqrt.f32 %v5457_v18 }
 0xd9f   : > { %v5444_v23 = vpop.xlane.xlu1 %5443 }
 0xda0   : > { %v5454_v34 = vmul.f32 0.0625, %v5444_v23  ;;  %v5441_v6 = vpop.xlane.xlu0 %5440 }
 0xda1   : > { %v5453_v8 = vmul.f32 0.0625, %v5441_v6 }
 0xda2   : > { %v5460_v12 = vadd.f32 1e-05, %v5454_v34 }
 0xda3   : > { %v5459_v53 = vadd.f32 1e-05, %v5453_v8 }
 0xda4   : > { %12089 = vrsqrt.f32 %v5460_v12 }
 0xda5   : > { %12091 = vrsqrt.f32 %v5459_v53 }
 0xda6   : > { %v12086_v32 = vpop.eup %12085 }
 0xda7   : > { %v12088_v44 = vpop.eup %12087  ;;  %v5470_v7 = vmul.f32 %v12086_v32, %v5422_v56  ;;  %v5450_v60 = vpop.xlane.xlu1 %5449 }
 0xda8   : > { %v5469_v24 = vmul.f32 %v12088_v44, %v5421_v14  ;;  %v5456_v57 = vmul.f32 0.0625, %v5450_v60  ;;  %v5447_v0 = vpop.xlane.xlu0 %5446 }
 0xda9   : > { %v5480_v42 = vmul.f32 %v5478_v26, %v5470_v7  ;;  %v5455_v47 = vmul.f32 0.0625, %v5447_v0 }
 0xdaa   : > { %v5479_v43 = vmul.f32 %v5478_v26, %v5469_v24  ;;  %v5462_v48 = vadd.f32 1e-05, %v5456_v57 }
 0xdab   : > { %v13323_v20 = vadd.f32 %v5488_v29, %v5480_v42  ;;  %v5461_v31 = vadd.f32 1e-05, %v5455_v47 }
 0xdac   : > { %v13325_v49 = vadd.f32 %v5488_v29, %v5479_v43  ;;  %12093 = vrsqrt.f32 %v5462_v48 }
 0xdad   : > { %12095 = vrsqrt.f32 %v5461_v31  ;;  %v5504_v59 = vsel (!%p10877_p6), %vm756_vm3, %v13323_v20, 0.0 }
 0xdae   : > { %v12090_v11 = vpop.eup %12089 }
 0xdaf   : > { %v12092_v21 = vpop.eup %12091  ;;  %v5472_v52 = vmul.f32 %v12090_v11, %v5424_v51  ;;  %v5501_v51 = vsel (!%p10877_p6), %vm756_vm3, %v13325_v49, 0.0 }
 0xdb0   : > { %v5471_v1 = vmul.f32 %v12092_v21, %v5423_v33  ;;  %5502 = vadd.xlane.f32.xlu0 (!%p10877_p6), %v5501_v51 }
 0xdb1   : > { %v5482_v56 = vmul.f32 %v5478_v26, %v5472_v52 }
 0xdb2   : > { %v5481_v19 = vmul.f32 %v5478_v26, %v5471_v1 }
 0xdb3   : > { %v13327_v14 = vadd.f32 %v5488_v29, %v5482_v56 }
 0xdb4   : > { %v13329_v50 = vadd.f32 %v5488_v29, %v5481_v19  ;;  %5505 = vadd.xlane.f32.xlu0 (!%p10877_p6), %v5504_v59 }
 0xdb5   : > { %v5510_v2 = vsel (!%p10877_p6), %vm756_vm3, %v13327_v14, 0.0 }
 0xdb6   : > { %v12094_v46 = vpop.eup %12093  ;;  %5498 = sbr.rel (%p10877_p6) target bundleno = 3833 (0xef9), region = 76  ;;  %v5507_v33 = vsel (!%p10877_p6), %vm756_vm3, %v13329_v50, 0.0 }
 0xdb7   : > { %v12096_v27 = vpop.eup %12095  ;;  %v5474_v13 = vmul.f32 %v12094_v46, %v5426_v58  ;;  %5508 = vadd.xlane.f32.xlu1 (!%p10877_p6), %v5507_v33 }
 0xdb8   : > { %v5473_v62 = vmul.f32 %v12096_v27, %v5425_v3 }
 0xdb9   : > { %v5484_v4 = vmul.f32 %v5478_v26, %v5474_v13 }
 0xdba   : > { %v5483_v61 = vmul.f32 %v5478_v26, %v5473_v62 }
 0xdbb   : > { %v13331_v15 = vadd.f32 %v5488_v29, %v5484_v4  ;;  %5511 = vadd.xlane.f32.xlu1 (!%p10877_p6), %v5510_v2  ;;  %v10878_v2 = vld [vmem:[%s14334_s10] ss:$0 sm:$0xff] (!%p10877_p6) }
 0xdbc   : > { %v13333_v35 = vadd.f32 %v5488_v29, %v5483_v61 }
 0xdbd   : > { %v5516_v58 = vsel %vm756_vm3, %v13331_v15, 0.0 }
 0xdbe   : > { %v5513_v10 = vsel %vm756_vm3, %v13333_v35, 0.0 }
 0xdbf   : > { %5514 = vadd.xlane.f32.xlu0 %v5513_v10  ;;  %5517 = vadd.xlane.f32.xlu1 %v5516_v58 }
 0xe3d   : > { %v5503_v3 = vpop.xlane.xlu0 %5502 }
 0xe3e   : > { %v5519_v25 = vmul.f32 0.0625, %v5503_v3  ;;  %v10879_v3 = vld [vmem:[%s14334_s10 + $0x1] ss:$0 sm:$0xff] }
 0xe40   : > { %v5525_v54 = vsub.f32 %v13325_v49, %v5519_v25 }
 0xe41   : > { %v5506_v22 = vpop.xlane.xlu0 %5505 }
 0xe42   : > { %v5520_v9 = vmul.f32 0.0625, %v5506_v22  ;;  %v5531_v18 = vmul.f32 %v5525_v54, %v5525_v54 }
 0xe44   : > { %v5509_v55 = vpop.xlane.xlu1 %5508  ;;  %v5526_v34 = vsub.f32 %v13323_v20, %v5520_v9  ;;  %v5537_v63 = vsel %vm756_vm3, %v5531_v18, 0.0 }
 0xe45   : > { %v5521_v17 = vmul.f32 0.0625, %v5509_v55  ;;  %5538 = vadd.xlane.f32.xlu0 %v5537_v63 }
 0xe46   : > { %v5532_v32 = vmul.f32 %v5526_v34, %v5526_v34 }
 0xe47   : > { %v13350_v5 = vsub.f32 %v13329_v50, %v5521_v17 }
 0xe48   : > { %v5512_v16 = vpop.xlane.xlu1 %5511  ;;  %v5540_v60 = vsel %vm756_vm3, %v5532_v32, 0.0 }
 0xe49   : > { %v5522_v28 = vmul.f32 0.0625, %v5512_v16  ;;  %v5533_v23 = vmul.f32 %v13350_v5, %v13350_v5  ;;  %5541 = vadd.xlane.f32.xlu1 %v5540_v60 }
 0xe4b   : > { %v13356_v6 = vsub.f32 %v13327_v14, %v5522_v28  ;;  %v5543_v30 = vsel %vm756_vm3, %v5533_v23, 0.0 }
 0xe4c   : > { %v5515_v8 = vpop.xlane.xlu0 %5514  ;;  %v5518_v12 = vpop.xlane.xlu1 %5517  ;;  %5544 = vadd.xlane.f32.xlu0 %v5543_v30 }
 0xe4d   : > { %v5523_v53 = vmul.f32 0.0625, %v5515_v8  ;;  %v5524_v26 = vmul.f32 0.0625, %v5518_v12  ;;  %v5534_v44 = vmul.f32 %v13356_v6, %v13356_v6 }
 0xe4f   : > { %v5529_v29 = vsub.f32 %v13333_v35, %v5523_v53  ;;  %v5530_v7 = vsub.f32 %v13331_v15, %v5524_v26  ;;  %v5546_v24 = vsel %vm756_vm3, %v5534_v44, 0.0 }
 0xe50   : > { %5547 = vadd.xlane.f32.xlu1 %v5546_v24 }
 0xe51   : > { %v5535_v57 = vmul.f32 %v5529_v29, %v5529_v29  ;;  %v5536_v0 = vmul.f32 %v5530_v7, %v5530_v7 }
 0xe53   : > { %v5549_v42 = vsel %vm756_vm3, %v5535_v57, 0.0  ;;  %v5552_v47 = vsel %vm756_vm3, %v5536_v0, 0.0 }
 0xe54   : > { %5550 = vadd.xlane.f32.xlu0 %v5549_v42  ;;  %5553 = vadd.xlane.f32.xlu1 %v5552_v47 }
 0xed2   : > { %v5539_v43 = vpop.xlane.xlu0 %5538 }
 0xed3   : > { %v5555_v48 = vmul.f32 0.0625, %v5539_v43 }
 0xed5   : > { %v5561_v31 = vadd.f32 1e-05, %v5555_v48 }
 0xed6   : > { %v5542_v11 = vpop.xlane.xlu1 %5541 }
 0xed7   : > { %12103 = vrsqrt.f32 %v5561_v31  ;;  %v5556_v52 = vmul.f32 0.0625, %v5542_v11 }
 0xed9   : > { %v5545_v21 = vpop.xlane.xlu0 %5544  ;;  %v5562_v56 = vadd.f32 1e-05, %v5556_v52 }
 0xeda   : > { %v5557_v1 = vmul.f32 0.0625, %v5545_v21 }
 0xedb   : > { %12105 = vrsqrt.f32 %v5562_v56 }
 0xedc   : > { %v5563_v19 = vadd.f32 1e-05, %v5557_v1 }
 0xedd   : > { %v5548_v46 = vpop.xlane.xlu1 %5547 }
 0xede   : > { %v5558_v13 = vmul.f32 0.0625, %v5548_v46  ;;  %12107 = vrsqrt.f32 %v5563_v19 }
 0xee0   : > { %v5564_v4 = vadd.f32 1e-05, %v5558_v13 }
 0xee1   : > { %v5551_v27 = vpop.xlane.xlu0 %5550  ;;  %v5554_v51 = vpop.xlane.xlu1 %5553 }
 0xee2   : > { %v5559_v62 = vmul.f32 0.0625, %v5551_v27  ;;  %12109 = vrsqrt.f32 %v5564_v4  ;;  %v5560_v33 = vmul.f32 0.0625, %v5554_v51  ;;  %v12104_v59 = vpop.eup %12103 }
 0xee3   : > { %v5573_v58 = vmul.f32 %v12104_v59, %v5525_v54 }
 0xee4   : > { %v5565_v61 = vadd.f32 1e-05, %v5559_v62  ;;  %v5566_v10 = vadd.f32 1e-05, %v5560_v33 }
 0xee5   : > { %v5583_v55 = vmul.f32 %v10878_v2, %v5573_v58  ;;  %v12106_v25 = vpop.eup %12105 }
 0xee6   : > { %12111 = vrsqrt.f32 %v5565_v61  ;;  %v5574_v16 = vmul.f32 %v12106_v25, %v5526_v34 }
 0xee7   : > { %12113 = vrsqrt.f32 %v5566_v10  ;;  %v5593_v22 = vadd.f32 %v10879_v3, %v5583_v55 }
 0xee8   : > { %v12108_v17 = vpop.eup %12107  ;;  %v5584_v28 = vmul.f32 %v10878_v2, %v5574_v16 }
 0xee9   : > { %v5575_v9 = vmul.f32 %v12108_v17, %v13350_v5  ;;  %5599 = vst.msk [vmem:[#allocation2] sm:$0xff] %vm756_vm3, %v5593_v22 }
 0xeea   : > { %v5594_v8 = vadd.f32 %v10879_v3, %v5584_v28 }
 0xeeb   : > { %v5585_v23 = vmul.f32 %v10878_v2, %v5575_v9 }
 0xeec   : > { %v12110_v18 = vpop.eup %12109  ;;  %5600 = vst.msk [vmem:[#allocation2 + $0x8] sm:$0xff] %vm756_vm3, %v5594_v8 }
 0xeed   : > { %v5576_v54 = vmul.f32 %v12110_v18, %v13356_v6  ;;  %v5595_v12 = vadd.f32 %v10879_v3, %v5585_v23 }
 0xeef   : > { %v5586_v53 = vmul.f32 %v10878_v2, %v5576_v54  ;;  %5601 = vst.msk [vmem:[#allocation2 + $0x10] sm:$0xff] %vm756_vm3, %v5595_v12 }
 0xef0   : > { %v12112_v63 = vpop.eup %12111 }
 0xef1   : > { %v5577_v30 = vmul.f32 %v12112_v63, %v5529_v29  ;;  %v12114_v26 = vpop.eup %12113  ;;  %v5596_v32 = vadd.f32 %v10879_v3, %v5586_v53 }
 0xef2   : > { %v5578_v5 = vmul.f32 %v12114_v26, %v5530_v7 }
 0xef3   : > { %v5587_v34 = vmul.f32 %v10878_v2, %v5577_v30  ;;  %5602 = vst.msk [vmem:[#allocation2 + $0x18] sm:$0xff] %vm756_vm3, %v5596_v32 }
 0xef4   : > { %v5588_v60 = vmul.f32 %v10878_v2, %v5578_v5 }
 0xef5   : > { %v5597_v44 = vadd.f32 %v10879_v3, %v5587_v34 }
 0xef6   : > { %v5598_v24 = vadd.f32 %v10879_v3, %v5588_v60 }
 0xef7   : > { %5603 = vst.msk [vmem:[#allocation2 + $0x20] sm:$0xff] %vm756_vm3, %v5597_v44 }
 0xef8   : > { %5604 = vst.msk [vmem:[#allocation2 + $0x28] sm:$0xff] %vm756_vm3, %v5598_v24 }
 0xef9 PF: > { %p10880_p7 = scmp.eq.s32.totalorder %s12353_s22, 1 }
 0xefa   : > { %5609 = vst.msk [vmem:[#allocation2] sm:$0xff] (!%p10880_p7), %vm756_vm3, %v13325_v49  ;;  %5610 = vst.msk [vmem:[#allocation2 + $0x8] sm:$0xff] (!%p10880_p7), %vm756_vm3, %v13323_v20 }
 0xefb   : > { %5608 = sbr.rel (%p10880_p7) target bundleno = 3842 (0xf02), region = 80  ;;  %5611 = vst.msk [vmem:[#allocation2 + $0x10] sm:$0xff] (!%p10880_p7), %vm756_vm3, %v13329_v50  ;;  %5612 = vst.msk [vmem:[#allocation2 + $0x18] sm:$0xff] (!%p10880_p7), %vm756_vm3, %v13327_v14 }
 0xefc   : > { %5613 = vst.msk [vmem:[#allocation2 + $0x20] sm:$0xff] (!%p10880_p7), %vm756_vm3, %v13333_v35  ;;  %5614 = vst.msk [vmem:[#allocation2 + $0x28] sm:$0xff] (!%p10880_p7), %vm756_vm3, %v13331_v15 }
 0xf02 PF: > { %5618 = sbr.rel (%p461_p3) target bundleno = 8083 (0x1f93), region = 84 }
 0xf09   : > { %v13399_v20 = vpack.i.bf16 %v12458_v37, %v12455_v36  ;;  %v5619_v49 = vld [vmem:[%s14335_s11] sm:$0xff]  ;;  %vm5643_vm10 = vcmask 130048   ;;  %v5627_v14 = vlaneseq  ;;  %s12270_s17 = smov 96   ;;  %s12271_s21 = smov 80   ;;  %v5620_v47 = vld [vmem:[%s14335_s11 + $0x8] sm:$0xf] }
 0xf0a   : > { %11593 = vmatprep.mubr.msk.f32.mxu1 %vm5643_vm10, %v5619_v49  ;;  %v14380_v36 = vld [vmem:[#allocation10_spill] sm:$0xff]  ;;  %vm5821_vm11 = vcmask 125952   ;;  %s12272_s19 = smov 48   ;;  %s12273_s23 = smov 64   ;;  %v5622_v60 = vld [vmem:[#allocation2 + $0x8] sm:$0xff]  ;;  %vm12276_vm12 = vmmov 0  }
 0xf0b   : > { %14378 = vst [vmem:[#allocation15_spill] sm:$0xff] %v13399_v20  ;;  %12116 = vrot.lane.b32.xlu0 %v13399_v20, %s12270_s17  ;;  %v13406_v50 = vshrl.u32 %v5627_v14, 7  ;;  %v5621_v22 = vld [vmem:[#allocation2] sm:$0xff]  ;;  %s12274_s13 = smov 112   ;;  %vm6159_vm13 = vcmask 64512   ;;  %s12278_s16 = smov 120  }
 0xf0c   : > { %vm7187_vm14 = vcmask 1043456   ;;  %vm7048_vm15 = vcmask 24576   ;;  %vm7183_vm0 = vcmask 31744   ;;  %s12279_s20 = smov 104   ;;  %s12280_s27 = smov 16   ;;  %vm10224_vm1 = vcmask 1041409  }
 0xf0d   : > { %14379 = vst [vmem:[#allocation16_spill] sm:$0xff] %v13406_v50  ;;  %v13409_v15 = vsub.s32 0, %v13406_v50  ;;  %v14345_v16 = vsub.s32 1, %v13406_v50  ;;  %v5848_v24 = vsub.s32 3, %v13406_v50  ;;  %v5854_v14 = vsub.s32 4, %v13406_v50  ;;  %s12281_s30 = smov 8  }
 0xf0e   : > { %vm10227_vm2 = vcmask 1042434   ;;  %vm10230_vm3 = vcmask 1043459   ;;  %vm10233_vm4 = vcmask 1044484   ;;  %vm10236_vm5 = vcmask 1045509   ;;  %p10997_p8 = scmp.ne.s32.totalorder %s12353_s22, 2 }
 0xf0f   : > { %12121 = vrot.lane.b32.xlu0 %v13399_v20, %s12271_s21  ;;  %v5630_v37 = vrot.slane %v14380_v36, %v13409_v15  ;;  %v5728_v1 = vrot.slane %v12482_v45, %v13409_v15  ;;  %v13433_v9 = vrot.slane %v14380_v36, %v14345_v16  ;;  %v5624_v36 = vld [vmem:[#allocation2 + $0x18] sm:$0xff]  ;;  %vm10239_vm6 = vcmask 1046534  }
 0xf10   : > { %vm10242_vm7 = vcmask 1047559   ;;  %vm10468_vm8 = vcmask 261120  }
 0xf11   : > { %5640 = vrot.lane.b32.xlu1 %v5630_v37, %s12270_s17  ;;  %v5849_v37 = vrot.slane %v12482_v45, %v5848_v24 }
 0xf7d   : > { %v12117_v35 = vpop.permute.xlu0 %12116 }
 0xf7e   : > { %v12119_v6 = vunpack.i.h.bf16 %v12117_v35  ;;  %v12118_v29 = vunpack.i.l.bf16 %v12117_v35 }
 0xf80   : > { %v11908_v7 = vpack.c.bf16 %v12119_v6, %v12118_v29  ;;  %v5625_v6 = vld [vmem:[#allocation2 + $0x20] sm:$0xff] }
 0xf81   : > { %v12122_v57 = vpop.permute.xlu0 %12121 }
 0xf82   : > { %11909 = vmatprep.subr.bf16.mxu1 %v11908_v7  ;;  %v12124_v0 = vunpack.i.h.bf16 %v12122_v57  ;;  %v12123_v42 = vunpack.i.l.bf16 %v12122_v57 }
 0xf83   : > { %11911 = vmatpush3.bf16.msra.mxu1 %v11908_v7  ;;  %v5641_v48 = vpop.permute.xlu1 %5640 }
 0xf84   : > { %v11912_v43 = vpack.c.bf16 %v12124_v0, %v12123_v42  ;;  %v5855_v0 = vrot.slane %v12482_v45, %v5854_v14  ;;  %v5626_v42 = vld [vmem:[#allocation2 + $0x28] sm:$0xff] }
 0xf86   : > { %11594 = vmatmul.mubr.msk.f32.vlgmr.msra.gmra.mrb[0].mxu1 %vm5643_vm10, %v5620_v47  ;;  %11913 = vmatprep.subr.bf16.mxu1 %v11912_v43 }
 0xf87   : > { %11915 = vmatpush3.bf16.msra.mxu1 %v11912_v43 }
0x1059   : > { %v11595_v31 = vpop.f32.mrb[0].mxu1 }
0x105a   : > { %v5716_v11 = vpop.f32.mrb[1].mxu1  ;;  %v5722_v52 = vadd.f32 %v11595_v31, %v5641_v48 }
0x105b   : > { %v5717_v21 = vadd.f32 %v5716_v11, %v5641_v48  ;;  %v14346_v11 = vmov 0.0  }
0x105d   : > { %11600 = vmatprep.mubr.msk.f32.mxu1 %vm5643_vm10, %v5717_v21 }
0x105e   : > { %11601 = vmatmul.mubr.msk.f32.vlgmr.msra.gmra.mrb[2].mxu1 %vm5643_vm10, %v5722_v52 }
0x105f   : > { %11614 = vmatprep.mubr.msk.f32.mxu1 %vm5643_vm10, %v5621_v22 }
0x1131   : > { %v11602_v56 = vpop.f32.mrb[2].mxu1 }
0x1132   : > { %v5813_v19 = vadd.f32 %v11602_v56, %v5728_v1  ;;  %v5807_v46 = vpop.f32.mrb[3].mxu1 }
0x1133   : > { %v5808_v27 = vadd.f32 %v5807_v46, %v5728_v1  ;;  %v12277_v46 = vmov 1966171168  }
0x1134   : > { %v5817_v13 = vadd.f32 %v5813_v19, %v5620_v47 }
0x1135   : > { %v5816_v62 = vadd.f32 %v5808_v27, %v5619_v49  ;;  %v5623_v49 = vld [vmem:[#allocation2 + $0x10] sm:$0xff]  ;;  %v6076_v27 = vunpack.c.l.s4 %v12277_v46 }
0x1136   : > { %v5822_v4 = vsel %vm5821_vm11, %v5817_v13, 0.0 }
0x1137   : > { %5823 = vadd.xlane.f32.xlu0 %v5822_v4  ;;  %v5818_v61 = vsel %vm5643_vm10, %v5816_v62, 0.0 }
0x1138   : > { %5819 = vadd.xlane.f32.xlu1 %v5818_v61 }
0x11c4   : > { %v5824_v51 = vpop.xlane.xlu0 %5823 }
0x11c5   : > { %v5827_v33 = vmul.f32 0.0625, %v5824_v51  ;;  %v5820_v59 = vpop.xlane.xlu1 %5819 }
0x11c6   : > { %v5826_v2 = vmul.f32 0.0625, %v5820_v59 }
0x11c7   : > { %v5829_v10 = vsub.f32 %v5817_v13, %v5827_v33  ;;  %v6077_v33 = vunpack.c.0.s8 %v6076_v27 }
0x11c8   : > { %v5828_v58 = vsub.f32 %v5816_v62, %v5826_v2 }
0x11c9   : > { %v5831_v3 = vmul.f32 %v5829_v10, %v5829_v10 }
0x11ca   : > { %v5830_v55 = vmul.f32 %v5828_v58, %v5828_v58 }
0x11cb   : > { %v5835_v25 = vsel %vm5821_vm11, %v5831_v3, 0.0  ;;  %v13491_v3 = vsub.s32 %v6077_v33, %v13406_v50 }
0x11cc   : > { %5836 = vadd.xlane.f32.xlu1 %v5835_v25  ;;  %v5832_v17 = vsel %vm5643_vm10, %v5830_v55, 0.0 }
0x11cd   : > { %5833 = vadd.xlane.f32.xlu0 %v5832_v17 }
0x11dd   : > { %12131 = vrot.lane.b32.xlu1 %v13399_v20, %s12272_s19 }
0x11e1   : > { %5956 = vrot.lane.b32.xlu1 %v13433_v9, %s12274_s13 }
0x11e3   : > { %12126 = vrot.lane.b32.xlu0 %v13399_v20, %s12273_s23 }
0x1259   : > { %v5837_v28 = vpop.xlane.xlu1 %5836 }
0x125a   : > { %v5839_v18 = vmul.f32 0.0625, %v5837_v28  ;;  %v5834_v23 = vpop.xlane.xlu0 %5833 }
0x125b   : > { %v5838_v63 = vmul.f32 0.0625, %v5834_v23 }
0x125c   : > { %v5841_v8 = vadd.f32 1e-05, %v5839_v18 }
0x125d   : > { %v5840_v54 = vadd.f32 1e-05, %v5838_v63  ;;  %v12132_v12 = vpop.permute.xlu1 %12131 }
0x125e   : > { %12140 = vrsqrt.f32 %v5841_v8  ;;  %v12134_v30 = vunpack.i.h.bf16 %v12132_v12  ;;  %v12133_v53 = vunpack.i.l.bf16 %v12132_v12  ;;  %v12127_v26 = vpop.permute.xlu0 %12126 }
0x125f   : > { %12142 = vrsqrt.f32 %v5840_v54  ;;  %v12129_v34 = vunpack.i.h.bf16 %v12127_v26  ;;  %v12128_v32 = vunpack.i.l.bf16 %v12127_v26 }
0x1260   : > { %v11920_v5 = vpack.c.bf16 %v12134_v30, %v12133_v53 }
0x1261   : > { %v11916_v44 = vpack.c.bf16 %v12129_v34, %v12128_v32  ;;  %v5957_v21 = vpop.permute.xlu1 %5956 }
0x1262   : > { %11921 = vmatprep.subr.bf16.mxu1 %v11920_v5 }
0x1263   : > { %11923 = vmatpush3.bf16.msra.mxu1 %v11920_v5  ;;  %11917 = vmatprep.subr.bf16.mxu0 %v11916_v44 }
0x1264   : > { %11919 = vmatpush3.bf16.msra.mxu0 %v11916_v44  ;;  %11638 = vmatprep.subr.mxu1 %v14346_v11 }
0x1265   : > { %11623 = vmatprep.subr.mxu0 %v14346_v11 }
0x1266   : > { %11615 = vmatmul.mubr.msk.f32.vlgmr.msra.gmra.mrb[4].mxu1 %vm5643_vm10, %v5622_v60 }
0x1267   : > { %11617 = vmatprep.mubr.msk.f32.mxu1 %vm5643_vm10, %v5623_v49 }
0x1268   : > { %v12141_v35 = vpop.eup %12140 }
0x1269   : > { %v12143_v29 = vpop.eup %12142  ;;  %v5845_v7 = vmul.f32 %v12141_v35, %v5829_v10 }
0x126a   : > { %11618 = vmatmul.mubr.msk.f32.gmra.mrb[6].mxu1 %vm5643_vm10, %v5624_v36  ;;  %v5844_v57 = vmul.f32 %v12143_v29, %v5828_v58 }
0x126b   : > { %11620 = vmatprep.mubr.msk.f32.mxu1 %vm5643_vm10, %v5625_v6  ;;  %v5851_v47 = vmul.f32 %v5849_v37, %v5845_v7 }
0x126c   : > { %v5850_v43 = vmul.f32 %v5849_v37, %v5844_v57 }
0x126d   : > { %v13448_v31 = vadd.f32 %v5855_v0, %v5851_v47 }
0x126e   : > { %11621 = vmatmul.mubr.msk.f32.gmra.mrb[8].mxu1 %vm5643_vm10, %v5626_v42  ;;  %v13446_v48 = vadd.f32 %v5855_v0, %v5850_v43 }
0x126f   : > { %14382 = vst [vmem:[#allocation18_spill] sm:$0xff] %v13448_v31  ;;  %11640 = vmatprep.mubr.msk.f32.mxu1 %vm12276_vm12, %v14346_v11 }
0x1270   : > { %14381 = vst [vmem:[#allocation17_spill] sm:$0xff] %v13446_v48  ;;  %11607 = vmatprep.mubr.msk.f32.mxu0 %vm5643_vm10, %v13446_v48 }
0x1271   : > { %11608 = vmatmul.mubr.msk.f32.vlgmr.msra.gmra.mrb[0].mxu0 %vm5643_vm10, %v13448_v31 }
0x1272   : > { %11625 = vmatprep.mubr.msk.f32.mxu0 %vm12276_vm12, %v14346_v11 }
0x1339   : > { %v11616_v52 = vpop.f32.mrb[4].mxu1 }
0x133a   : > { %v6043_v1 = vpop.f32.mrb[5].mxu1  ;;  %v13460_v56 = vadd.f32 %v11616_v52, %v5957_v21 }
0x133b   : > { %v13462_v19 = vadd.f32 %v6043_v1, %v5957_v21 }
0x133c   : > { %v13466_v13 = vcombine.high %v13460_v56, %v13460_v56 }
0x133d   : > { %7181 = vrot.lane.b32.xlu1 %v13462_v19, %s12274_s13  ;;  %v11619_v62 = vpop.f32.mrb[6].mxu1  ;;  %v13472_v4 = vcombine.high %v13462_v19, %v13462_v19  ;;  %11624 = vmatpush3.xpose.msk.msra.mxu0 %vm6159_vm13, %v13462_v19 }
0x133e   : > { %v6053_v61 = vpop.f32.mrb[7].mxu1  ;;  %11639 = vmatpush3.xpose.msk.msra.mxu1 %vm6159_vm13, %v13466_v13  ;;  %11628 = vmatprep.subr.mxu0 %v14346_v11  ;;  %v13486_v10 = vadd.f32 %v11619_v62, %v5957_v21 }
0x133f   : > { %v13479_v51 = vadd.f32 %v6053_v61, %v5957_v21  ;;  %7260 = vrot.lane.b32.xlu0 %v13472_v4, %s12274_s13  ;;  %11648 = vmatprep.subr.mxu1 %v14346_v11 }
0x1340   : > { %v13513_v54 = vcombine.high %v13486_v10, %v13486_v10 }
0x1341   : > { %v11622_v59 = vpop.f32.mrb[8].mxu1  ;;  %7337 = vrot.lane.b32.xlu1 %v13460_v56, %s12274_s13  ;;  %v13497_v25 = vcombine.high %v13479_v51, %v13479_v51 }
0x1342   : > { %v6063_v2 = vpop.f32.mrb[9].mxu1  ;;  %v13519_v30 = vadd.f32 %v11622_v59, %v5957_v21 }
0x1343   : > { %7491 = vrot.lane.b32.xlu0 %v13479_v51, %s12274_s13  ;;  %v13503_v18 = vadd.f32 %v6063_v2, %v5957_v21 }
0x1344   : > { %v11609_v58 = vpop.f32.mrb[0].mxu0  ;;  %v13566_v60 = vcombine.high %v13519_v30, %v13519_v30 }
0x1345   : > { %v5940_v55 = vpop.f32.mrb[1].mxu0  ;;  %7414 = vrot.lane.b32.xlu1 %v13466_v13, %s12274_s13  ;;  %v13540_v34 = vcombine.high %v13503_v18, %v13503_v18  ;;  %v5946_v32 = vadd.f32 %v11609_v58, %v13433_v9 }
0x1346   : > { %v5941_v17 = vadd.f32 %v5940_v55, %v13433_v9 }
0x1347   : > { %7645 = vrot.lane.b32.xlu0 %v13486_v10, %s12274_s13  ;;  %v6129_v9 = vrot.slane %v5946_v32, %v13491_v3 }
0x1348   : > { %v6074_v22 = vcombine.high %v5941_v17, %v5941_v17  ;;  %v6081_v28 = vrot.slane %v5941_v17, %v13491_v3 }
0x1349   : > { %7568 = vrot.lane.b32.xlu1 %v13497_v25, %s12274_s13  ;;  %v6130_v14 = vcombine.high %v6129_v9, %v6129_v9  ;;  %v13624_v29 = vrot.slane %v6129_v9, %v13491_v3 }
0x134a   : > { %v6089_v23 = vcombine.high %v6081_v28, %v6081_v28  ;;  %v6097_v63 = vrot.slane %v6081_v28, %v13491_v3  ;;  %v6088_v8 = vrot.slane %v6074_v22, %v13491_v3 }
0x134b   : > { %7799 = vrot.lane.b32.xlu0 %v13503_v18, %s12274_s13  ;;  %v13603_v37 = vrot.slane %v6130_v14, %v13491_v3  ;;  %v13648_v0 = vcombine.high %v13624_v29, %v13624_v29 }
0x134c   : > { %v13516_v12 = vrot.slane %v6089_v23, %v13491_v3  ;;  %11626 = vmatmul.mubr.msk.f32.vlgmr.msra.gmra.mrb[2].mxu0 %vm6159_vm13, %v6097_v63  ;;  %v6090_v26 = vcombine.high %v6088_v8, %v6088_v8  ;;  %v6119_v44 = vcombine.high %v6097_v63, %v6097_v63  ;;  %v13577_v24 = vrot.slane %v6088_v8, %v13491_v3 }
0x134d   : > { %11629 = vmatpush3.xpose.msk.msra.mxu0 %vm6159_vm13, %v13472_v4  ;;  %7722 = vrot.lane.b32.xlu1 %v13513_v54, %s12274_s13  ;;  %v8110_v36 = vrot.slane %v6097_v63, %v13409_v15  ;;  %v13632_v7 = vcombine.high %v13603_v37, %v13603_v37 }
0x134e   : > { %v13527_v53 = vcombine.high %v13516_v12, %v13516_v12  ;;  %11630 = vmatprep.mubr.msk.f32.mxu0 %vm12276_vm12, %v14346_v11  ;;  %11633 = vmatprep.subr.mxu0 %v14346_v11  ;;  %v13552_v5 = vrot.slane %v6090_v26, %v13491_v3  ;;  %v13607_v35 = vcombine.high %v13577_v24, %v13577_v24 }
0x134f   : > { %7953 = vrot.lane.b32.xlu0 %v13519_v30, %s12274_s13  ;;  %v8274_v6 = vrot.slane %v6119_v44, %v13409_v15  ;;  %v8192_v57 = vrot.slane %v13516_v12, %v13409_v15 }
0x1350   : > { %11631 = vmatmul.mubr.msk.f32.vlgmr.msra.gmra.mrb[4].mxu0 %vm6159_vm13, %v13516_v12  ;;  %11641 = vmatmul.mubr.msk.f32.vlgmr.msra.gmra.mrb[10].mxu1 %vm6159_vm13, %v13527_v53  ;;  %v13584_v49 = vcombine.high %v13552_v5, %v13552_v5  ;;  %v8356_v42 = vrot.slane %v13527_v53, %v13409_v15 }
0x1351   : > { %11634 = vmatpush3.xpose.msk.msra.mxu0 %vm6159_vm13, %v13460_v56  ;;  %11649 = vmatpush3.xpose.msk.msra.mxu1 %vm6159_vm13, %v13497_v25 }
0x1352   : > { %7876 = vrot.lane.b32.xlu1 %v13540_v34, %s12274_s13  ;;  %11650 = vmatprep.mubr.msk.f32.mxu1 %vm12276_vm12, %v14346_v11 }
0x1353   : > { %11658 = vmatprep.subr.mxu1 %v14346_v11  ;;  %8113 = vrot.lane.b32.xlu0 %v13462_v19, %s12278_s16 }
0x1354   : > { %11635 = vmatprep.mubr.msk.f32.mxu0 %vm12276_vm12, %v14346_v11  ;;  %11643 = vmatprep.subr.mxu0 %v14346_v11 }
0x1355   : > { %11636 = vmatmul.mubr.msk.f32.vlgmr.msra.gmra.mrb[6].mxu0 %vm6159_vm13, %v6119_v44  ;;  %11651 = vmatmul.mubr.msk.f32.vlgmr.msra.gmra.mrb[12].mxu1 %vm6159_vm13, %v13552_v5 }
0x1356   : > { %11644 = vmatpush3.xpose.msk.msra.mxu0 %vm6159_vm13, %v13479_v51  ;;  %11659 = vmatpush3.xpose.msk.msra.mxu1 %vm6159_vm13, %v13513_v54 }
0x1357   : > { %8030 = vrot.lane.b32.xlu1 %v13566_v60, %s12274_s13  ;;  %11660 = vmatprep.mubr.msk.f32.mxu1 %vm12276_vm12, %v14346_v11 }
0x1358   : > { %11668 = vmatprep.subr.mxu1 %v14346_v11  ;;  %8277 = vrot.lane.b32.xlu0 %v13460_v56, %s12278_s16 }
0x1359   : > { %11645 = vmatprep.mubr.msk.f32.mxu0 %vm12276_vm12, %v14346_v11  ;;  %11653 = vmatprep.subr.mxu0 %v14346_v11 }
0x135a   : > { %11646 = vmatmul.mubr.msk.f32.vlgmr.msra.gmra.mrb[8].mxu0 %vm6159_vm13, %v13577_v24  ;;  %11661 = vmatmul.mubr.msk.f32.vlgmr.msra.gmra.mrb[14].mxu1 %vm6159_vm13, %v13584_v49 }
0x135b   : > { %11654 = vmatpush3.xpose.msk.msra.mxu0 %vm6159_vm13, %v13486_v10  ;;  %11669 = vmatpush3.xpose.msk.msra.mxu1 %vm6159_vm13, %v13540_v34 }
0x135c   : > { %8195 = vrot.lane.b32.xlu1 %v13472_v4, %s12278_s16  ;;  %11670 = vmatprep.mubr.msk.f32.mxu1 %vm12276_vm12, %v14346_v11 }
0x135d   : > { %11678 = vmatprep.subr.mxu1 %v14346_v11  ;;  %8111 = vrot.lane.b32.xlu0 %v8110_v36, %s12278_s16 }
0x135e   : > { %11655 = vmatprep.mubr.msk.f32.mxu0 %vm12276_vm12, %v14346_v11  ;;  %11663 = vmatprep.subr.mxu0 %v14346_v11 }
0x135f   : > { %11656 = vmatmul.mubr.msk.f32.vlgmr.msra.gmra.mrb[10].mxu0 %vm6159_vm13, %v13607_v35  ;;  %11671 = vmatmul.mubr.msk.f32.vlgmr.msra.gmra.mrb[16].mxu1 %vm6159_vm13, %v13603_v37 }
0x1360   : > { %11664 = vmatpush3.xpose.msk.msra.mxu0 %vm6159_vm13, %v13503_v18  ;;  %11679 = vmatpush3.xpose.msk.msra.mxu1 %vm6159_vm13, %v13566_v60 }
0x1361   : > { %8359 = vrot.lane.b32.xlu1 %v13466_v13, %s12278_s16  ;;  %11680 = vmatprep.mubr.msk.f32.mxu1 %vm12276_vm12, %v14346_v11 }
0x1362   : > { %8275 = vrot.lane.b32.xlu0 %v8274_v6, %s12278_s16  ;;  %11665 = vmatprep.mubr.msk.f32.mxu0 %vm12276_vm12, %v14346_v11 }
0x1363   : > { %11673 = vmatprep.subr.mxu0 %v14346_v11  ;;  %11666 = vmatmul.mubr.msk.f32.vlgmr.msra.gmra.mrb[12].mxu0 %vm6159_vm13, %v13624_v29 }
0x1364   : > { %11674 = vmatpush3.xpose.msk.msra.mxu0 %vm6159_vm13, %v13519_v30  ;;  %11681 = vmatmul.mubr.msk.f32.vlgmr.msra.gmra.mrb[18].mxu1 %vm6159_vm13, %v13632_v7 }
0x1365   : > { %8193 = vrot.lane.b32.xlu1 %v8192_v57, %s12278_s16  ;;  %11675 = vmatprep.mubr.msk.f32.mxu0 %vm12276_vm12, %v14346_v11 }
0x1366   : > { %11683 = vmatprep.subr.mxu0 %v14346_v11  ;;  %11688 = vmatprep.subr.mxu1 %v14346_v11 }
0x1367   : > { %11676 = vmatmul.mubr.msk.f32.vlgmr.msra.gmra.mrb[14].mxu0 %vm6159_vm13, %v13648_v0  ;;  %11690 = vmatprep.mubr.msk.f32.mxu1 %vm12276_vm12, %v14346_v11 }
0x1368   : > { %11685 = vmatprep.mubr.msk.f32.mxu0 %vm12276_vm12, %v14346_v11 }
0x1369   : > { %8357 = vrot.lane.b32.xlu1 %v8356_v42, %s12278_s16 }
0x13af   : > { %v7182_v47 = vpop.permute.xlu1 %7181 }
0x13b0   : > { %11684 = vmatpush3.msk.msra.mxu0 %vm7187_vm14, %v7182_v47 }
0x13b1   : > { %v7261_v43 = vpop.permute.xlu0 %7260  ;;  %11693 = vmatprep.subr.mxu0 %v14346_v11 }
0x13b2   : > { %11689 = vmatpush3.msk.msra.mxu1 %vm7187_vm14, %v7261_v43 }
0x13b3   : > { %11698 = vmatprep.subr.mxu1 %v14346_v11 }
0x141f   : > { %v13668_v21 = vpop.f32.mrb[2].mxu0 }
0x1420   : > { %v11627_v52 = vpop.f32.mrb[3].mxu0  ;;  %v7049_v1 = vsel %vm7048_vm15, %v13668_v21, -inf }
0x1421   : > { %7050 = vmax.xlane.f32.xlu0 %v7049_v1 }
0x1423   : > { %v13672_v46 = vpop.f32.mrb[4].mxu0  ;;  %v13674_v27 = vpop.f32.mrb[10].mxu1 }
0x1424   : > { %v11632_v62 = vpop.f32.mrb[5].mxu0  ;;  %v11642_v61 = vpop.f32.mrb[11].mxu1  ;;  %v7058_v33 = vsel %vm7048_vm15, %v13674_v27, -inf  ;;  %v7052_v59 = vsel %vm7048_vm15, %v13672_v46, -inf }
0x1425   : > { %7059 = vmax.xlane.f32.xlu0 %v7058_v33  ;;  %7053 = vmax.xlane.f32.xlu1 %v7052_v59  ;;  %v13720_v33 = vpop.permute.xlu1 %7337 }
0x1428   : > { %v13680_v2 = vpop.f32.mrb[6].mxu0  ;;  %v13682_v58 = vpop.f32.mrb[12].mxu1 }
0x1429   : > { %v11637_v3 = vpop.f32.mrb[7].mxu0  ;;  %v11652_v55 = vpop.f32.mrb[13].mxu1  ;;  %v7055_v17 = vsel %vm7048_vm15, %v13680_v2, -inf  ;;  %v7064_v23 = vsel %vm7048_vm15, %v13682_v58, -inf }
0x142a   : > { %7056 = vmax.xlane.f32.xlu0 %v7055_v17  ;;  %v13722_v59 = vpop.permute.xlu1 %7414  ;;  %v13724_v3 = vpop.permute.xlu0 %7491 }
0x142d   : > { %v13686_v22 = vpop.f32.mrb[8].mxu0  ;;  %v13688_v28 = vpop.f32.mrb[14].mxu1 }
0x142e   : > { %v11647_v63 = vpop.f32.mrb[9].mxu0  ;;  %v11662_v8 = vpop.f32.mrb[15].mxu1  ;;  %7065 = vmax.xlane.f32.xlu0 %v7064_v23  ;;  %v7061_v12 = vsel %vm7048_vm15, %v13686_v22, -inf  ;;  %v7070_v53 = vsel %vm7048_vm15, %v13688_v28, -inf }
0x142f   : > { %7062 = vmax.xlane.f32.xlu1 %v7061_v12  ;;  %v13726_v55 = vpop.permute.xlu1 %7568  ;;  %v13728_v17 = vpop.permute.xlu0 %7645 }
0x1432   : > { %v13696_v26 = vpop.f32.mrb[10].mxu0  ;;  %v13698_v32 = vpop.f32.mrb[16].mxu1  ;;  %7071 = vmax.xlane.f32.xlu0 %v7070_v53 }
0x1433   : > { %v11657_v44 = vpop.f32.mrb[11].mxu0  ;;  %v11672_v9 = vpop.f32.mrb[17].mxu1  ;;  %v7067_v14 = vsel %vm7048_vm15, %v13696_v26, -inf  ;;  %v7076_v36 = vsel %vm7048_vm15, %v13698_v32, -inf }
0x1434   : > { %7068 = vmax.xlane.f32.xlu1 %v7067_v14  ;;  %v13730_v23 = vpop.permute.xlu1 %7722  ;;  %v13732_v63 = vpop.permute.xlu0 %7799 }
0x1436   : > { %v13704_v6 = vpop.f32.mrb[12].mxu0  ;;  %7077 = vmax.xlane.f32.xlu0 %v7076_v36 }
0x1437   : > { %v13706_v57 = vpop.f32.mrb[18].mxu1  ;;  %v11667_v42 = vpop.f32.mrb[13].mxu0  ;;  %v7073_v47 = vsel %vm7048_vm15, %v13704_v6, -inf }
0x1438   : > { %v11682_v43 = vpop.f32.mrb[19].mxu1  ;;  %7074 = vmax.xlane.f32.xlu1 %v7073_v47  ;;  %v7082_v52 = vsel %vm7048_vm15, %v13706_v57, -inf  ;;  %v13734_v8 = vpop.permute.xlu1 %7876 }
0x1439   : > { %v13736_v12 = vpop.permute.xlu0 %7953 }
0x143a   : > { %v13712_v1 = vpop.f32.mrb[14].mxu0  ;;  %7083 = vmax.xlane.f32.xlu0 %v7082_v52 }
0x143b   : > { %v11677_v62 = vpop.f32.mrb[15].mxu0  ;;  %v7079_v61 = vsel %vm7048_vm15, %v13712_v1, -inf }
0x143c   : > { %v13738_v53 = vpop.permute.xlu1 %8030 }
0x143d   : > { %v13740_v44 = vpop.permute.xlu0 %8113 }
0x1440   : > { %v13742_v9 = vpop.permute.xlu1 %8195 }
0x1441   : > { %v13744_v14 = vpop.permute.xlu0 %8277 }
0x1444   : > { %v13746_v36 = vpop.permute.xlu1 %8359 }
0x1445   : > { %v13748_v42 = vpop.permute.xlu0 %8111 }
0x1448   : > { %v13750_v47 = vpop.permute.xlu1 %8193 }
0x1449   : > { %8523 = vrot.lane.b32.xlu1 %v13497_v25, %s12278_s16  ;;  %v13752_v43 = vpop.permute.xlu0 %8275 }
0x144c   : > { %v13754_v52 = vpop.permute.xlu1 %8357 }
0x1450   : > { %8441 = vrot.lane.b32.xlu0 %v13479_v51, %s12278_s16 }
0x146d   : > { %7080 = vmax.xlane.f32.xlu1 %v7079_v61 }
0x14ae   : > { %v7051_v62 = vpop.xlane.xlu0 %7050 }
0x14af   : > { %v7085_v61 = vsub.f32 %v13668_v21, %v7051_v62 }
0x14b1   : > { %v7097_v16 = vmul.f32 1.442695, %v7085_v61 }
0x14b2   : > { %v7060_v11 = vpop.xlane.xlu0 %7059  ;;  %v7054_v41 = vpop.xlane.xlu1 %7053 }
0x14b3   : > { %12144 = vpow2.f32 %v7097_v16  ;;  %v7088_v40 = vsub.f32 %v13674_v27, %v7060_v11  ;;  %v7086_v39 = vsub.f32 %v13672_v46, %v7054_v41 }
0x14b5   : > { %v7099_v38 = vmul.f32 1.442695, %v7086_v39  ;;  %v7103_v48 = vmul.f32 1.442695, %v7088_v40 }
0x14b7   : > { %v7057_v31 = vpop.xlane.xlu0 %7056  ;;  %12146 = vpow2.f32 %v7099_v38 }
0x14b8   : > { %v7087_v45 = vsub.f32 %v13680_v2, %v7057_v31  ;;  %12148 = vpow2.f32 %v7103_v48 }
0x14ba   : > { %v7101_v50 = vmul.f32 1.442695, %v7087_v45 }
0x14bb   : > { %v7066_v20 = vpop.xlane.xlu0 %7065 }
0x14bc   : > { %12150 = vpow2.f32 %v7101_v50  ;;  %v7090_v21 = vsub.f32 %v13682_v58, %v7066_v20  ;;  %v7063_v62 = vpop.xlane.xlu1 %7062 }
0x14bd   : > { %v13761_v61 = vpop.eup %12144  ;;  %v7089_v16 = vsub.f32 %v13686_v22, %v7063_v62 }
0x14be   : > { %v7107_v11 = vmul.f32 1.442695, %v7090_v21  ;;  %v7121_v39 = vsel %vm7048_vm15, %v13761_v61, 0.0 }
0x14bf   : > { %v7105_v40 = vmul.f32 1.442695, %v7089_v16  ;;  %v7072_v41 = vpop.xlane.xlu0 %7071  ;;  %7122 = vadd.xlane.f32.xlu1 %v7121_v39 }
0x14c0   : > { %12152 = vpow2.f32 %v7107_v11  ;;  %v7092_v38 = vsub.f32 %v13688_v28, %v7072_v41 }
0x14c1   : > { %12154 = vpow2.f32 %v7105_v40  ;;  %v7069_v45 = vpop.xlane.xlu1 %7068  ;;  %v13767_v50 = vpop.eup %12146 }
0x14c2   : > { %v7111_v20 = vmul.f32 1.442695, %v7092_v38  ;;  %v7091_v48 = vsub.f32 %v13696_v26, %v7069_v45  ;;  %v7124_v46 = vsel %vm7048_vm15, %v13767_v50, 0.0  ;;  %v13772_v27 = vpop.eup %12148 }
0x14c3   : > { %v7078_v31 = vpop.xlane.xlu0 %7077  ;;  %7125 = vadd.xlane.f32.xlu0 %v7124_v46  ;;  %v7130_v21 = vsel %vm7048_vm15, %v13772_v27, 0.0 }
0x14c4   : > { %12156 = vpow2.f32 %v7111_v20  ;;  %v7109_v2 = vmul.f32 1.442695, %v7091_v48  ;;  %v7094_v58 = vsub.f32 %v13698_v32, %v7078_v31  ;;  %v8520_v48 = vrot.slane %v13552_v5, %v13409_v15 }
0x14c5   : > { %v8438_v31 = vrot.slane %v13577_v24, %v13409_v15  ;;  %v7075_v46 = vpop.xlane.xlu1 %7074 }
0x14c6   : > { %v13775_v22 = vpop.eup %12150  ;;  %12158 = vpow2.f32 %v7109_v2  ;;  %v7115_v28 = vmul.f32 1.442695, %v7094_v58  ;;  %v7093_v58 = vsub.f32 %v13704_v6, %v7075_v46 }
0x14c7   : > { %v7127_v26 = vsel %vm7048_vm15, %v13775_v22, 0.0  ;;  %7131 = vadd.xlane.f32.xlu0 %v7130_v21  ;;  %v7084_v2 = vpop.xlane.xlu0 %7083 }
0x14c8   : > { %12160 = vpow2.f32 %v7115_v28  ;;  %7128 = vadd.xlane.f32.xlu1 %v7127_v26  ;;  %v7096_v28 = vsub.f32 %v13706_v57, %v7084_v2  ;;  %v7113_v21 = vmul.f32 1.442695, %v7093_v58  ;;  %v8602_v57 = vrot.slane %v13607_v35, %v13409_v15 }
0x14c9   : > { %v13819_v6 = vpop.permute.xlu1 %8523  ;;  %v8930_v35 = vrot.slane %v13648_v0, %v13409_v15  ;;  %v8848_v58 = vrot.slane %v13603_v37, %v13409_v15  ;;  %v9012_v37 = vrot.slane %v13632_v7, %v13409_v15 }
0x14ca   : > { %v13781_v62 = vpop.eup %12152  ;;  %v7119_v26 = vmul.f32 1.442695, %v7096_v28  ;;  %12162 = vpow2.f32 %v7113_v21 }
0x14cb   : > { %v13783_v16 = vpop.eup %12154  ;;  %v7136_v32 = vsel %vm7048_vm15, %v13781_v62, 0.0  ;;  %v13843_v2 = vpop.permute.xlu0 %8441 }
0x14cc   : > { %7137 = vadd.xlane.f32.xlu0 %v7136_v32  ;;  %v7133_v11 = vsel %vm7048_vm15, %v13783_v16, 0.0  ;;  %12164 = vpow2.f32 %v7119_v26 }
0x14cd   : > { %7134 = vadd.xlane.f32.xlu1 %v7133_v11 }
0x14ce   : > { %v13789_v39 = vpop.eup %12156 }
0x14cf   : > { %v7142_v40 = vsel %vm7048_vm15, %v13789_v39, 0.0 }
0x14d0   : > { %v13793_v41 = vpop.eup %12158  ;;  %7143 = vadd.xlane.f32.xlu0 %v7142_v40 }
0x14d1   : > { %v7139_v38 = vsel %vm7048_vm15, %v13793_v41, 0.0 }
0x14d2   : > { %v13797_v45 = vpop.eup %12160  ;;  %7140 = vadd.xlane.f32.xlu1 %v7139_v38 }
0x14d3   : > { %v7148_v20 = vsel %vm7048_vm15, %v13797_v45, 0.0 }
0x14d4   : > { %7149 = vadd.xlane.f32.xlu0 %v7148_v20  ;;  %v13809_v32 = vpop.eup %12162  ;;  %v8766_v20 = vrot.slane %v13624_v29, %v13409_v15  ;;  %v8684_v29 = vrot.slane %v13584_v49, %v13409_v15 }
0x14d5   : > { %v7145_v11 = vsel %vm7048_vm15, %v13809_v32, 0.0 }
0x14d6   : > { %v13811_v5 = vpop.eup %12164 }
0x14d7   : > { %v7154_v24 = vsel %vm7048_vm15, %v13811_v5, 0.0 }
0x14e3   : > { %8521 = vrot.lane.b32.xlu1 %v8520_v48, %s12278_s16 }
0x14ea   : > { %8439 = vrot.lane.b32.xlu0 %v8438_v31, %s12278_s16 }
0x14fa   : > { %v7081_v40 = vpop.xlane.xlu1 %7080 }
0x14fb   : > { %v7095_v38 = vsub.f32 %v13712_v1, %v7081_v40 }
0x14fd   : > { %v7117_v48 = vmul.f32 1.442695, %v7095_v38 }
0x14ff   : > { %12166 = vpow2.f32 %v7117_v48 }
0x1507   : > { %7146 = vadd.xlane.f32.xlu1 %v7145_v11 }
0x1509   : > { %7155 = vadd.xlane.f32.xlu0 %v7154_v24  ;;  %v13837_v31 = vpop.eup %12166 }
0x150a   : > { %v7151_v1 = vsel %vm7048_vm15, %v13837_v31, 0.0 }
0x1518   : > { %8687 = vrot.lane.b32.xlu1 %v13513_v54, %s12278_s16 }
0x151f   : > { %8605 = vrot.lane.b32.xlu0 %v13486_v10, %s12278_s16 }
0x1523   : > { %8603 = vrot.lane.b32.xlu0 %v8602_v57, %s12278_s16  ;;  %v14383_v57 = vmov 0.0  }
0x1527   : > { %8769 = vrot.lane.b32.xlu0 %v13503_v18, %s12278_s16 }
0x152b   : > { %8767 = vrot.lane.b32.xlu0 %v8766_v20, %s12278_s16 }
0x152f   : > { %8933 = vrot.lane.b32.xlu0 %v13519_v30, %s12278_s16 }
0x1533   : > { %8931 = vrot.lane.b32.xlu0 %v8930_v35, %s12278_s16 }
0x153c   : > { %7152 = vadd.xlane.f32.xlu1 %v7151_v1 }
0x154c   : > { %v7123_v46 = vpop.xlane.xlu1 %7122 }
0x154d   : > { %8685 = vrot.lane.b32.xlu1 %v8684_v29, %s12278_s16  ;;  %12168 = vrcp.f32 %v7123_v46 }
0x1550   : > { %v7126_v0 = vpop.xlane.xlu0 %7125 }
0x1551   : > { %8851 = vrot.lane.b32.xlu1 %v13540_v34, %s12278_s16  ;;  %12170 = vrcp.f32 %v7126_v0 }
0x1554   : > { %v7132_v28 = vpop.xlane.xlu0 %7131 }
0x1555   : > { %8849 = vrot.lane.b32.xlu1 %v8848_v58, %s12278_s16  ;;  %v7129_v21 = vpop.xlane.xlu1 %7128  ;;  %12172 = vrcp.f32 %v7132_v28 }
0x1556   : > { %12174 = vrcp.f32 %v7129_v21 }
0x1557   : > { %v12169_v49 = vpop.eup %12168 }
0x1558   : > { %v7158_v26 = vmul.f32 %v12169_v49, %v13761_v61 }
0x1559   : > { %9015 = vrot.lane.b32.xlu1 %v13566_v60, %s12278_s16  ;;  %v7138_v11 = vpop.xlane.xlu0 %7137 }
0x155a   : > { %12176 = vrcp.f32 %v7138_v11  ;;  %v7135_v24 = vpop.xlane.xlu1 %7134  ;;  %11686 = vmatmul.mubr.msk.f32.vlgmr.msra.gmra.mrb[16].mxu0 %vm7183_vm0, %v7158_v26 }
0x155b   : > { %12178 = vrcp.f32 %v7135_v24  ;;  %11694 = vmatpush3.msk.msra.mxu0 %vm7187_vm14, %v13720_v33  ;;  %11695 = vmatprep.mubr.msk.f32.mxu0 %vm12276_vm12, %v14383_v57  ;;  %v12171_v40 = vpop.eup %12170 }
0x155c   : > { %11703 = vmatprep.subr.mxu0 %v14383_v57  ;;  %v7160_v61 = vmul.f32 %v12171_v40, %v13767_v50 }
0x155d   : > { %9013 = vrot.lane.b32.xlu1 %v9012_v37, %s12278_s16  ;;  %v7144_v38 = vpop.xlane.xlu0 %7143 }
0x155e   : > { %12180 = vrcp.f32 %v7144_v38  ;;  %11691 = vmatmul.mubr.msk.f32.vlgmr.msra.gmra.mrb[20].mxu1 %vm7183_vm0, %v7160_v61 }
0x155f   : > { %v7141_v20 = vpop.xlane.xlu1 %7140  ;;  %v12173_v48 = vpop.eup %12172  ;;  %11699 = vmatpush3.msk.msra.mxu1 %vm7187_vm14, %v13722_v59  ;;  %11700 = vmatprep.mubr.msk.f32.mxu1 %vm12276_vm12, %v14383_v57 }
0x1560   : > { %12182 = vrcp.f32 %v7141_v20  ;;  %v12175_v7 = vpop.eup %12174  ;;  %v7164_v33 = vmul.f32 %v12173_v48, %v13772_v27  ;;  %11708 = vmatprep.subr.mxu1 %v14383_v57 }
0x1561   : > { %9223 = vrot.lane.b32.xlu1 %v13462_v19, %s12279_s20  ;;  %v7150_v50 = vpop.xlane.xlu0 %7149  ;;  %v7162_v35 = vmul.f32 %v12175_v7, %v13775_v22 }
0x1562   : > { %12184 = vrcp.f32 %v7150_v50  ;;  %11701 = vmatmul.mubr.msk.f32.vlgmr.msra.gmra.mrb[22].mxu1 %vm7183_vm0, %v7164_v33 }
0x1563   : > { %11696 = vmatmul.mubr.msk.f32.vlgmr.msra.gmra.mrb[18].mxu0 %vm7183_vm0, %v7162_v35  ;;  %11709 = vmatpush3.msk.msra.mxu1 %vm7187_vm14, %v13726_v55 }
0x1564   : > { %v12177_v1 = vpop.eup %12176  ;;  %11704 = vmatpush3.msk.msra.mxu0 %vm7187_vm14, %v13724_v3  ;;  %11705 = vmatprep.mubr.msk.f32.mxu0 %vm12276_vm12, %v14383_v57 }
0x1565   : > { %v12179_v59 = vpop.eup %12178  ;;  %v7168_v27 = vmul.f32 %v12177_v1, %v13781_v62  ;;  %11710 = vmatprep.mubr.msk.f32.mxu1 %vm12276_vm12, %v14383_v57  ;;  %11713 = vmatprep.subr.mxu0 %v14383_v57 }
0x1566   : > { %v7166_v19 = vmul.f32 %v12179_v59, %v13783_v16  ;;  %11718 = vmatprep.subr.mxu1 %v14383_v57  ;;  %v13921_v16 = vpop.permute.xlu0 %8439 }
0x1567   : > { %11711 = vmatmul.mubr.msk.f32.vlgmr.msra.gmra.mrb[24].mxu1 %vm7183_vm0, %v7168_v27 }
0x1568   : > { %v12181_v55 = vpop.eup %12180  ;;  %11706 = vmatmul.mubr.msk.f32.vlgmr.msra.gmra.mrb[20].mxu0 %vm7183_vm0, %v7166_v19  ;;  %11719 = vmatpush3.msk.msra.mxu1 %vm7187_vm14, %v13730_v23 }
0x1569   : > { %v7172_v3 = vmul.f32 %v12181_v55, %v13789_v39  ;;  %11714 = vmatpush3.msk.msra.mxu0 %vm7187_vm14, %v13728_v17  ;;  %11715 = vmatprep.mubr.msk.f32.mxu0 %vm12276_vm12, %v14383_v57 }
0x156a   : > { %v12183_v22 = vpop.eup %12182  ;;  %11720 = vmatprep.mubr.msk.f32.mxu1 %vm12276_vm12, %v14383_v57  ;;  %11723 = vmatprep.subr.mxu0 %v14383_v57 }
0x156b   : > { %v7170_v62 = vmul.f32 %v12183_v22, %v13793_v41  ;;  %11728 = vmatprep.subr.mxu1 %v14383_v57  ;;  %11721 = vmatmul.mubr.msk.f32.vlgmr.msra.gmra.mrb[26].mxu1 %vm7183_vm0, %v7172_v3 }
0x156c   : > { %v12185_v23 = vpop.eup %12184  ;;  %11729 = vmatpush3.msk.msra.mxu1 %vm7187_vm14, %v13734_v8  ;;  %11730 = vmatprep.mubr.msk.f32.mxu1 %vm12276_vm12, %v14383_v57  ;;  %v8522_v8 = vpop.permute.xlu1 %8521 }
0x156d   : > { %v7176_v17 = vmul.f32 %v12185_v23, %v13797_v45  ;;  %11716 = vmatmul.mubr.msk.f32.vlgmr.msra.gmra.mrb[22].mxu0 %vm7183_vm0, %v7170_v62  ;;  %11738 = vmatprep.subr.mxu1 %v14383_v57 }
0x156e   : > { %11724 = vmatpush3.msk.msra.mxu0 %vm7187_vm14, %v13732_v63  ;;  %11725 = vmatprep.mubr.msk.f32.mxu0 %vm12276_vm12, %v14383_v57 }
0x156f   : > { %11731 = vmatmul.mubr.msk.f32.vlgmr.msra.gmra.mrb[28].mxu1 %vm7183_vm0, %v7176_v17  ;;  %11733 = vmatprep.subr.mxu0 %v14383_v57 }
0x1570   : > { %11739 = vmatpush3.msk.msra.mxu1 %vm7187_vm14, %v13738_v53  ;;  %11740 = vmatprep.mubr.msk.f32.mxu1 %vm12276_vm12, %v14383_v57 }
0x1571   : > { %11748 = vmatprep.subr.mxu1 %v14383_v57 }
0x1594   : > { %v7147_v39 = vpop.xlane.xlu1 %7146 }
0x1595   : > { %12186 = vrcp.f32 %v7147_v39 }
0x1596   : > { %v7156_v63 = vpop.xlane.xlu0 %7155 }
0x1597   : > { %12188 = vrcp.f32 %v7156_v63 }
0x159f   : > { %v12187_v41 = vpop.eup %12186 }
0x15a0   : > { %v7174_v45 = vmul.f32 %v12187_v41, %v13809_v32 }
0x15a1   : > { %v12189_v29 = vpop.eup %12188 }
0x15a2   : > { %v7180_v46 = vmul.f32 %v12189_v29, %v13811_v5  ;;  %11726 = vmatmul.mubr.msk.f32.vlgmr.msra.gmra.mrb[24].mxu0 %vm7183_vm0, %v7174_v45 }
0x15a3   : > { %11734 = vmatpush3.msk.msra.mxu0 %vm7187_vm14, %v13736_v12  ;;  %11735 = vmatprep.mubr.msk.f32.mxu0 %vm12276_vm12, %v14383_v57  ;;  %v8688_v12 = vpop.permute.xlu1 %8687 }
0x15a4   : > { %11741 = vmatmul.mubr.msk.f32.vlgmr.msra.gmra.mrb[30].mxu1 %vm7183_vm0, %v7180_v46  ;;  %11743 = vmatprep.subr.mxu0 %v14383_v57 }
0x15a5   : > { %11749 = vmatpush3.xpose.msk.msra.mxu1 %vm6159_vm13, %v13742_v9  ;;  %11750 = vmatprep.mubr.msk.f32.mxu1 %vm12276_vm12, %v14383_v57 }
0x15a6   : > { %11758 = vmatprep.subr.mxu1 %v14383_v57 }
0x15a8   : > { %11751 = vmatmul.mubr.msk.f32.vlgmr.msra.gmra.mrb[32].mxu1 %vm6159_vm13, %v13750_v47 }
0x15a9   : > { %11759 = vmatpush3.xpose.msk.msra.mxu1 %vm6159_vm13, %v13746_v36  ;;  %11760 = vmatprep.mubr.msk.f32.mxu1 %vm12276_vm12, %v14383_v57  ;;  %v8606_v36 = vpop.permute.xlu0 %8605 }
0x15aa   : > { %11768 = vmatprep.subr.mxu1 %v14383_v57 }
0x15ac   : > { %11761 = vmatmul.mubr.msk.f32.vlgmr.msra.gmra.mrb[34].mxu1 %vm6159_vm13, %v13754_v52 }
0x15ad   : > { %11769 = vmatpush3.xpose.msk.msra.mxu1 %vm6159_vm13, %v13819_v6  ;;  %11770 = vmatprep.mubr.msk.f32.mxu1 %vm12276_vm12, %v14383_v57  ;;  %v8604_v6 = vpop.permute.xlu0 %8603 }
0x15ae   : > { %11778 = vmatprep.subr.mxu1 %v14383_v57 }
0x15b0   : > { %11771 = vmatmul.mubr.msk.f32.vlgmr.msra.gmra.mrb[36].mxu1 %vm6159_vm13, %v8522_v8 }
0x15b1   : > { %11779 = vmatpush3.xpose.msk.msra.mxu1 %vm6159_vm13, %v8688_v12  ;;  %11780 = vmatprep.mubr.msk.f32.mxu1 %vm12276_vm12, %v14383_v57 }
0x15b2   : > { %11788 = vmatprep.subr.mxu1 %v14383_v57 }
0x15c9   : > { %v7153_v53 = vpop.xlane.xlu1 %7152 }
0x15ca   : > { %12190 = vrcp.f32 %v7153_v53 }
0x15cd   : > { %v8686_v9 = vpop.permute.xlu1 %8685 }
0x15ce   : > { %11781 = vmatmul.mubr.msk.f32.vlgmr.msra.gmra.mrb[38].mxu1 %vm6159_vm13, %v8686_v9 }
0x15cf   : > { %11790 = vmatprep.mubr.msk.f32.mxu1 %vm12276_vm12, %v14383_v57 }
0x15d1   : > { %v8852_v47 = vpop.permute.xlu1 %8851 }
0x15d2   : > { %11789 = vmatpush3.xpose.msk.msra.mxu1 %vm6159_vm13, %v8852_v47 }
0x15d3   : > { %11798 = vmatprep.subr.mxu1 %v14383_v57 }
0x15d4   : > { %v12191_v52 = vpop.eup %12190 }
0x15d5   : > { %v7178_v32 = vmul.f32 %v12191_v52, %v13837_v31  ;;  %v8850_v5 = vpop.permute.xlu1 %8849  ;;  %v8770_v31 = vpop.permute.xlu0 %8769 }
0x15d6   : > { %11791 = vmatmul.mubr.msk.f32.vlgmr.msra.gmra.mrb[40].mxu1 %vm6159_vm13, %v8850_v5 }
0x15d7   : > { %11736 = vmatmul.mubr.msk.f32.vlgmr.msra.gmra.mrb[26].mxu0 %vm7183_vm0, %v7178_v32  ;;  %11800 = vmatprep.mubr.msk.f32.mxu1 %vm12276_vm12, %v14383_v57 }
0x15d8   : > { %11744 = vmatpush3.xpose.msk.msra.mxu0 %vm6159_vm13, %v13740_v44  ;;  %11745 = vmatprep.mubr.msk.f32.mxu0 %vm12276_vm12, %v14383_v57 }
0x15d9   : > { %v9016_v0 = vpop.permute.xlu1 %9015  ;;  %11753 = vmatprep.subr.mxu0 %v14383_v57 }
0x15da   : > { %11799 = vmatpush3.xpose.msk.msra.mxu1 %vm6159_vm13, %v9016_v0 }
0x15db   : > { %11746 = vmatmul.mubr.msk.f32.vlgmr.msra.gmra.mrb[28].mxu0 %vm6159_vm13, %v13748_v42  ;;  %11808 = vmatprep.subr.mxu1 %v14383_v57 }
0x15dc   : > { %11754 = vmatpush3.xpose.msk.msra.mxu0 %vm6159_vm13, %v13744_v14  ;;  %11755 = vmatprep.mubr.msk.f32.mxu0 %vm12276_vm12, %v14383_v57  ;;  %v8768_v14 = vpop.permute.xlu0 %8767 }
0x15dd   : > { %v9014_v44 = vpop.permute.xlu1 %9013  ;;  %11763 = vmatprep.subr.mxu0 %v14383_v57 }
0x15de   : > { %11801 = vmatmul.mubr.msk.f32.vlgmr.msra.gmra.mrb[42].mxu1 %vm6159_vm13, %v9014_v44 }
0x15df   : > { %11756 = vmatmul.mubr.msk.f32.vlgmr.msra.gmra.mrb[30].mxu0 %vm6159_vm13, %v13752_v43  ;;  %11810 = vmatprep.mubr.msk.f32.mxu1 %vm12276_vm12, %v14383_v57 }
0x15e0   : > { %11764 = vmatpush3.xpose.msk.msra.mxu0 %vm6159_vm13, %v13843_v2  ;;  %11765 = vmatprep.mubr.msk.f32.mxu0 %vm12276_vm12, %v14383_v57  ;;  %v8934_v42 = vpop.permute.xlu0 %8933 }
0x15e1   : > { %11773 = vmatprep.subr.mxu0 %v14383_v57  ;;  %v9224_v2 = vpop.permute.xlu1 %9223 }
0x15e3   : > { %11766 = vmatmul.mubr.msk.f32.vlgmr.msra.gmra.mrb[32].mxu0 %vm6159_vm13, %v13921_v16 }
0x15e4   : > { %11774 = vmatpush3.xpose.msk.msra.mxu0 %vm6159_vm13, %v8606_v36  ;;  %11775 = vmatprep.mubr.msk.f32.mxu0 %vm12276_vm12, %v14383_v57  ;;  %v8932_v43 = vpop.permute.xlu0 %8931 }
0x15e5   : > { %11783 = vmatprep.subr.mxu0 %v14383_v57 }
0x15e7   : > { %11776 = vmatmul.mubr.msk.f32.vlgmr.msra.gmra.mrb[34].mxu0 %vm6159_vm13, %v8604_v6 }
0x15e8   : > { %11784 = vmatpush3.xpose.msk.msra.mxu0 %vm6159_vm13, %v8770_v31  ;;  %11785 = vmatprep.mubr.msk.f32.mxu0 %vm12276_vm12, %v14383_v57 }
0x15e9   : > { %11793 = vmatprep.subr.mxu0 %v14383_v57 }
0x15eb   : > { %11786 = vmatmul.mubr.msk.f32.vlgmr.msra.gmra.mrb[36].mxu0 %vm6159_vm13, %v8768_v14 }
0x15ec   : > { %11794 = vmatpush3.xpose.msk.msra.mxu0 %vm6159_vm13, %v8934_v42  ;;  %11795 = vmatprep.mubr.msk.f32.mxu0 %vm12276_vm12, %v14383_v57 }
0x15ed   : > { %11803 = vmatprep.subr.mxu0 %v14383_v57 }
0x15ef   : > { %11796 = vmatmul.mubr.msk.f32.vlgmr.msra.gmra.mrb[38].mxu0 %vm6159_vm13, %v8932_v43 }
0x15f0   : > { %11804 = vmatpush3.msk.msra.mxu0 %vm7187_vm14, %v9224_v2  ;;  %11805 = vmatprep.mubr.msk.f32.mxu0 %vm12276_vm12, %v14383_v57 }
0x15f1   : > { %11813 = vmatprep.subr.mxu0 %v14383_v57 }
0x162d   : > { %v14011_v58 = vpop.f32.mrb[16].mxu0 }
0x162e   : > { %v11687_v28 = vpop.f32.mrb[17].mxu0 }
0x1631   : > { %v14013_v21 = vpop.f32.mrb[20].mxu1 }
0x1632   : > { %v11692_v49 = vpop.f32.mrb[21].mxu1 }
0x1635   : > { %v14015_v26 = vpop.f32.mrb[22].mxu1 }
0x1636   : > { %v14017_v11 = vpop.f32.mrb[18].mxu0  ;;  %v11702_v24 = vpop.f32.mrb[23].mxu1 }
0x1637   : > { %v11697_v37 = vpop.f32.mrb[19].mxu0 }
0x163a   : > { %v14019_v40 = vpop.f32.mrb[24].mxu1 }
0x163b   : > { %v14021_v61 = vpop.f32.mrb[20].mxu0  ;;  %v11712_v38 = vpop.f32.mrb[25].mxu1 }
0x163c   : > { %v11707_v20 = vpop.f32.mrb[21].mxu0 }
0x163e   : > { %v14023_v48 = vpop.f32.mrb[26].mxu1 }
0x163f   : > { %v11722_v7 = vpop.f32.mrb[27].mxu1 }
0x1640   : > { %v14025_v33 = vpop.f32.mrb[22].mxu0 }
0x1641   : > { %v11717_v50 = vpop.f32.mrb[23].mxu0 }
0x1642   : > { %v14027_v35 = vpop.f32.mrb[28].mxu1 }
0x1643   : > { %v11732_v1 = vpop.f32.mrb[29].mxu1 }
0x1675   : > { %v14029_v59 = vpop.f32.mrb[24].mxu0 }
0x1676   : > { %v11727_v27 = vpop.f32.mrb[25].mxu0 }
0x1677   : > { %v14031_v19 = vpop.f32.mrb[30].mxu1 }
0x1678   : > { %v11742_v55 = vpop.f32.mrb[31].mxu1 }
0x167b   : > { %v8267_v3 = vpop.f32.mrb[32].mxu1 }
0x167c   : > { %v11752_v22 = vpop.f32.mrb[33].mxu1  ;;  %v9094_v62 = vsel %vm7048_vm15, %v8267_v3, -inf }
0x167d   : > { %9095 = vmax.xlane.f32.xlu1 %v9094_v62 }
0x167f   : > { %v14034_v23 = vpop.f32.mrb[34].mxu1 }
0x1680   : > { %v11762_v17 = vpop.f32.mrb[35].mxu1  ;;  %v9100_v31 = vsel %vm7048_vm15, %v14034_v23, -inf }
0x1683   : > { %v14036_v8 = vpop.f32.mrb[36].mxu1 }
0x1684   : > { %v11772_v16 = vpop.f32.mrb[37].mxu1  ;;  %v9106_v43 = vsel %vm7048_vm15, %v14036_v8, -inf }
0x16a1   : > { %v14038_v39 = vpop.f32.mrb[38].mxu1 }
0x16a2   : > { %v11782_v63 = vpop.f32.mrb[39].mxu1  ;;  %v9112_v24 = vsel %vm7048_vm15, %v14038_v39, -inf }
0x16a9   : > { %v14040_v41 = vpop.f32.mrb[40].mxu1 }
0x16aa   : > { %v14042_v45 = vpop.f32.mrb[26].mxu0  ;;  %v11792_v29 = vpop.f32.mrb[41].mxu1  ;;  %v9118_v7 = vsel %vm7048_vm15, %v14040_v41, -inf }
0x16ab   : > { %v11737_v46 = vpop.f32.mrb[27].mxu0 }
0x16ae   : > { %v8185_v12 = vpop.f32.mrb[28].mxu0 }
0x16af   : > { %v11747_v53 = vpop.f32.mrb[29].mxu0  ;;  %v9091_v9 = vsel %vm7048_vm15, %v8185_v12, -inf }
0x16b0   : > { %9092 = vmax.xlane.f32.xlu0 %v9091_v9 }
0x16b1   : > { %v14045_v36 = vpop.f32.mrb[42].mxu1 }
0x16b2   : > { %v8349_v47 = vpop.f32.mrb[30].mxu0  ;;  %v11802_v52 = vpop.f32.mrb[43].mxu1  ;;  %v9124_v1 = vsel %vm7048_vm15, %v14045_v36, -inf }
0x16b3   : > { %v11757_v32 = vpop.f32.mrb[31].mxu0  ;;  %v9097_v5 = vsel %vm7048_vm15, %v8349_v47, -inf }
0x16b4   : > { %9098 = vmax.xlane.f32.xlu0 %v9097_v5 }
0x16b6   : > { %v8513_v6 = vpop.f32.mrb[32].mxu0 }
0x16b7   : > { %v11767_v0 = vpop.f32.mrb[33].mxu0  ;;  %v9103_v44 = vsel %vm7048_vm15, %v8513_v6, -inf }
0x16b8   : > { %9101 = vmax.xlane.f32.xlu0 %v9100_v31  ;;  %9104 = vmax.xlane.f32.xlu1 %v9103_v44 }
0x16ba   : > { %v8677_v14 = vpop.f32.mrb[34].mxu0 }
0x16bb   : > { %v11777_v42 = vpop.f32.mrb[35].mxu0  ;;  %v9109_v2 = vsel %vm7048_vm15, %v8677_v14, -inf }
0x16bc   : > { %9107 = vmax.xlane.f32.xlu0 %v9106_v43  ;;  %9110 = vmax.xlane.f32.xlu1 %v9109_v2 }
0x16be   : > { %v14054_v28 = vpop.f32.mrb[36].mxu0 }
0x16bf   : > { %v11787_v49 = vpop.f32.mrb[37].mxu0  ;;  %v9115_v37 = vsel %vm7048_vm15, %v14054_v28, -inf }
0x16c0   : > { %9113 = vmax.xlane.f32.xlu0 %v9112_v24  ;;  %9116 = vmax.xlane.f32.xlu1 %v9115_v37 }
0x16c2   : > { %v14060_v38 = vpop.f32.mrb[38].mxu0 }
0x16c3   : > { %v11797_v20 = vpop.f32.mrb[39].mxu0  ;;  %v9121_v50 = vsel %vm7048_vm15, %v14060_v38, -inf }
0x16c4   : > { %9119 = vmax.xlane.f32.xlu0 %v9118_v7  ;;  %9122 = vmax.xlane.f32.xlu1 %v9121_v50 }
0x16c8   : > { %9125 = vmax.xlane.f32.xlu0 %v9124_v1 }
0x16d5   : > { %9377 = vrot.lane.b32.xlu1 %v13460_v56, %s12279_s20 }
0x16d9   : > { %9454 = vrot.lane.b32.xlu1 %v13466_v13, %s12279_s20 }
0x16dd   : > { %9608 = vrot.lane.b32.xlu1 %v13497_v25, %s12279_s20 }
0x16de   : > { %9300 = vrot.lane.b32.xlu0 %v13472_v4, %s12279_s20 }
0x16e1   : > { %9762 = vrot.lane.b32.xlu1 %v13513_v54, %s12279_s20 }
0x16e2   : > { %9531 = vrot.lane.b32.xlu0 %v13479_v51, %s12279_s20 }
0x16e5   : > { %9916 = vrot.lane.b32.xlu1 %v13540_v34, %s12279_s20 }
0x16e6   : > { %9685 = vrot.lane.b32.xlu0 %v13486_v10, %s12279_s20 }
0x16ea   : > { %9839 = vrot.lane.b32.xlu0 %v13503_v18, %s12279_s20 }
0x170a   : > { %v9096_v56 = vpop.xlane.xlu1 %9095 }
0x170b   : > { %v9128_v13 = vsub.f32 %v8267_v3, %v9096_v56 }
0x170d   : > { %v9141_v25 = vmul.f32 1.442695, %v9128_v13 }
0x170f   : > { %12192 = vpow2.f32 %v9141_v25 }
0x1719   : > { %v14086_v4 = vpop.eup %12192 }
0x171a   : > { %v9166_v54 = vsel %vm7048_vm15, %v14086_v4, 0.0 }
0x171b   : > { %9167 = vadd.xlane.f32.xlu0 %v9166_v54 }
0x173d   : > { %v9093_v51 = vpop.xlane.xlu0 %9092 }
0x173e   : > { %v9127_v27 = vsub.f32 %v8185_v12, %v9093_v51 }
0x1740   : > { %v9139_v55 = vmul.f32 1.442695, %v9127_v27 }
0x1741   : > { %v9099_v34 = vpop.xlane.xlu0 %9098 }
0x1742   : > { %12194 = vpow2.f32 %v9139_v55  ;;  %v9129_v22 = vsub.f32 %v8349_v47, %v9099_v34 }
0x1744   : > { %v9143_v10 = vmul.f32 1.442695, %v9129_v22 }
0x1745   : > { %v9102_v62 = vpop.xlane.xlu0 %9101  ;;  %v9105_v17 = vpop.xlane.xlu1 %9104 }
0x1746   : > { %12196 = vpow2.f32 %v9143_v10  ;;  %v9130_v18 = vsub.f32 %v14034_v23, %v9102_v62  ;;  %v9131_v3 = vsub.f32 %v8513_v6, %v9105_v17 }
0x1748   : > { %v9145_v16 = vmul.f32 1.442695, %v9130_v18  ;;  %v9147_v63 = vmul.f32 1.442695, %v9131_v3  ;;  %v14384_v3 = vld [vmem:[#allocation15_spill] sm:$0xff] }
0x1749   : > { %v9108_v29 = vpop.xlane.xlu0 %9107  ;;  %v9111_v46 = vpop.xlane.xlu1 %9110 }
0x174a   : > { %12198 = vpow2.f32 %v9145_v16  ;;  %v9132_v53 = vsub.f32 %v14036_v8, %v9108_v29  ;;  %v9133_v9 = vsub.f32 %v8677_v14, %v9111_v46 }
0x174b   : > { %12200 = vpow2.f32 %v9147_v63 }
0x174c   : > { %v14092_v12 = vpop.eup %12194  ;;  %v9149_v52 = vmul.f32 1.442695, %v9132_v53  ;;  %v9151_v47 = vmul.f32 1.442695, %v9133_v9 }
0x174d   : > { %v9114_v32 = vpop.xlane.xlu0 %9113  ;;  %v9117_v5 = vpop.xlane.xlu1 %9116  ;;  %v9163_v0 = vsel %vm7048_vm15, %v14092_v12, 0.0 }
0x174e   : > { %12202 = vpow2.f32 %v9149_v52  ;;  %v9134_v23 = vsub.f32 %v14038_v39, %v9114_v32  ;;  %v9135_v6 = vsub.f32 %v14054_v28, %v9117_v5  ;;  %9164 = vadd.xlane.f32.xlu1 %v9163_v0 }
0x174f   : > { %12204 = vpow2.f32 %v9151_v47 }
0x1750   : > { %v14098_v31 = vpop.eup %12196  ;;  %v9153_v8 = vmul.f32 1.442695, %v9134_v23  ;;  %v9155_v44 = vmul.f32 1.442695, %v9135_v6 }
0x1751   : > { %v9120_v14 = vpop.xlane.xlu0 %9119  ;;  %v9123_v42 = vpop.xlane.xlu1 %9122  ;;  %v9169_v43 = vsel %vm7048_vm15, %v14098_v31, 0.0 }
0x1752   : > { %12206 = vpow2.f32 %v9153_v8  ;;  %v9136_v2 = vsub.f32 %v14040_v41, %v9120_v14  ;;  %v9137_v49 = vsub.f32 %v14060_v38, %v9123_v42  ;;  %9170 = vadd.xlane.f32.xlu1 %v9169_v43 }
0x1753   : > { %12208 = vpow2.f32 %v9155_v44 }
0x1754   : > { %v14104_v39 = vpop.eup %12198  ;;  %v9157_v28 = vmul.f32 1.442695, %v9136_v2  ;;  %v9159_v24 = vmul.f32 1.442695, %v9137_v49 }
0x1755   : > { %v14106_v37 = vpop.eup %12200  ;;  %v9126_v20 = vpop.xlane.xlu0 %9125  ;;  %v9172_v7 = vsel %vm7048_vm15, %v14104_v39, 0.0 }
0x1756   : > { %12210 = vpow2.f32 %v9157_v28  ;;  %v9138_v50 = vsub.f32 %v14045_v36, %v9126_v20  ;;  %9173 = vadd.xlane.f32.xlu0 %v9172_v7  ;;  %v9175_v41 = vsel %vm7048_vm15, %v14106_v37, 0.0  ;;  %v9378_v53 = vpop.permute.xlu1 %9377 }
0x1757   : > { %12212 = vpow2.f32 %v9159_v24  ;;  %9176 = vadd.xlane.f32.xlu1 %v9175_v41 }
0x1758   : > { %v14113_v38 = vpop.eup %12202  ;;  %v9161_v1 = vmul.f32 1.442695, %v9138_v50 }
0x1759   : > { %v14115_v56 = vpop.eup %12204  ;;  %v9301_v13 = vpop.permute.xlu0 %9300  ;;  %v9178_v25 = vsel %vm7048_vm15, %v14113_v38, 0.0 }
0x175a   : > { %12214 = vpow2.f32 %v9161_v1  ;;  %9179 = vadd.xlane.f32.xlu0 %v9178_v25  ;;  %11809 = vmatpush3.msk.msra.mxu1 %vm7187_vm14, %v9301_v13  ;;  %v9181_v36 = vsel %vm7048_vm15, %v14115_v56, 0.0  ;;  %v9455_v47 = vpop.permute.xlu1 %9454 }
0x175b   : > { %9182 = vadd.xlane.f32.xlu1 %v9181_v36  ;;  %11818 = vmatprep.subr.mxu1 %v14383_v57 }
0x175c   : > { %v14123_v54 = vpop.eup %12206 }
0x175d   : > { %v14125_v51 = vpop.eup %12208  ;;  %v9184_v27 = vsel %vm7048_vm15, %v14123_v54, 0.0  ;;  %v9532_v16 = vpop.permute.xlu0 %9531 }
0x175e   : > { %9185 = vadd.xlane.f32.xlu0 %v9184_v27  ;;  %v9187_v55 = vsel %vm7048_vm15, %v14125_v51, 0.0 }
0x175f   : > { %9188 = vadd.xlane.f32.xlu1 %v9187_v55 }
0x1760   : > { %v14131_v34 = vpop.eup %12210 }
0x1761   : > { %v14133_v22 = vpop.eup %12212  ;;  %v9190_v10 = vsel %vm7048_vm15, %v14131_v34, 0.0  ;;  %v9686_v63 = vpop.permute.xlu0 %9685 }
0x1762   : > { %9191 = vadd.xlane.f32.xlu0 %v9190_v10  ;;  %v9193_v62 = vsel %vm7048_vm15, %v14133_v22, 0.0 }
0x1763   : > { %9194 = vadd.xlane.f32.xlu1 %v9193_v62 }
0x1764   : > { %v14139_v17 = vpop.eup %12214 }
0x1765   : > { %v9196_v18 = vsel %vm7048_vm15, %v14139_v17, 0.0  ;;  %v14148_v29 = vpop.permute.xlu0 %9839 }
0x1766   : > { %9197 = vadd.xlane.f32.xlu0 %v9196_v18 }
0x1774   : > { %10070 = vrot.lane.b32.xlu1 %v13566_v60, %s12279_s20 }
0x177c   : > { %9993 = vrot.lane.b32.xlu0 %v13519_v30, %s12279_s20  ;;  %v9609_v30 = vpop.permute.xlu1 %9608 }
0x1780   : > { %12136 = vrot.lane.b32.xlu0 %v14384_v3, %s12280_s27  ;;  %v9763_v60 = vpop.permute.xlu1 %9762 }
0x1784   : > { %v14156_v32 = vpop.permute.xlu1 %9916 }
0x17a8   : > { %v9168_v46 = vpop.xlane.xlu0 %9167 }
0x17a9   : > { %12216 = vrcp.f32 %v9168_v46 }
0x17b3   : > { %v12217_v9 = vpop.eup %12216 }
0x17b4   : > { %v9202_v52 = vmul.f32 %v12217_v9, %v14086_v4 }
0x17b6   : > { %11811 = vmatmul.mubr.msk.f32.vlgmr.msra.gmra.mrb[44].mxu1 %vm7183_vm0, %v9202_v52 }
0x17b7   : > { %11819 = vmatpush3.msk.msra.mxu1 %vm7187_vm14, %v9455_v47  ;;  %11820 = vmatprep.mubr.msk.f32.mxu1 %vm12276_vm12, %v14383_v57 }
0x17b8   : > { %11828 = vmatprep.subr.mxu1 %v14383_v57 }
0x17db   : > { %v9165_v5 = vpop.xlane.xlu1 %9164 }
0x17dc   : > { %12218 = vrcp.f32 %v9165_v5 }
0x17df   : > { %v9171_v0 = vpop.xlane.xlu1 %9170 }
0x17e0   : > { %12220 = vrcp.f32 %v9171_v0 }
0x17e3   : > { %v9174_v23 = vpop.xlane.xlu0 %9173 }
0x17e4   : > { %12222 = vrcp.f32 %v9174_v23  ;;  %v9177_v4 = vpop.xlane.xlu1 %9176 }
0x17e5   : > { %12224 = vrcp.f32 %v9177_v4 }
0x17e6   : > { %v12219_v6 = vpop.eup %12218 }
0x17e7   : > { %v9200_v8 = vmul.f32 %v12219_v6, %v14092_v12  ;;  %v9180_v44 = vpop.xlane.xlu0 %9179 }
0x17e8   : > { %12226 = vrcp.f32 %v9180_v44  ;;  %v9183_v14 = vpop.xlane.xlu1 %9182 }
0x17e9   : > { %12228 = vrcp.f32 %v9183_v14  ;;  %11806 = vmatmul.mubr.msk.f32.vlgmr.msra.gmra.mrb[40].mxu0 %vm7183_vm0, %v9200_v8 }
0x17ea   : > { %v12221_v42 = vpop.eup %12220  ;;  %11814 = vmatpush3.msk.msra.mxu0 %vm7187_vm14, %v9378_v53  ;;  %11815 = vmatprep.mubr.msk.f32.mxu0 %vm12276_vm12, %v14383_v57 }
0x17eb   : > { %v9204_v43 = vmul.f32 %v12221_v42, %v14098_v31  ;;  %v9186_v2 = vpop.xlane.xlu0 %9185  ;;  %11823 = vmatprep.subr.mxu0 %v14383_v57 }
0x17ec   : > { %12230 = vrcp.f32 %v9186_v2  ;;  %v9189_v49 = vpop.xlane.xlu1 %9188 }
0x17ed   : > { %12232 = vrcp.f32 %v9189_v49  ;;  %11816 = vmatmul.mubr.msk.f32.vlgmr.msra.gmra.mrb[42].mxu0 %vm7183_vm0, %v9204_v43 }
0x17ee   : > { %v12223_v12 = vpop.eup %12222  ;;  %11824 = vmatpush3.msk.msra.mxu0 %vm7187_vm14, %v9532_v16  ;;  %11825 = vmatprep.mubr.msk.f32.mxu0 %vm12276_vm12, %v14383_v57 }
0x17ef   : > { %v12225_v28 = vpop.eup %12224  ;;  %v9206_v24 = vmul.f32 %v12223_v12, %v14104_v39  ;;  %v9192_v20 = vpop.xlane.xlu0 %9191  ;;  %11833 = vmatprep.subr.mxu0 %v14383_v57 }
0x17f0   : > { %v9208_v31 = vmul.f32 %v12225_v28, %v14106_v37  ;;  %12234 = vrcp.f32 %v9192_v20  ;;  %v9195_v7 = vpop.xlane.xlu1 %9194 }
0x17f1   : > { %12236 = vrcp.f32 %v9195_v7  ;;  %11821 = vmatmul.mubr.msk.f32.vlgmr.msra.gmra.mrb[46].mxu1 %vm7183_vm0, %v9206_v24 }
0x17f2   : > { %v12227_v50 = vpop.eup %12226  ;;  %11826 = vmatmul.mubr.msk.f32.vlgmr.msra.gmra.mrb[44].mxu0 %vm7183_vm0, %v9208_v31  ;;  %11829 = vmatpush3.msk.msra.mxu1 %vm7187_vm14, %v9609_v30 }
0x17f3   : > { %v12229_v41 = vpop.eup %12228  ;;  %v9210_v1 = vmul.f32 %v12227_v50, %v14113_v38  ;;  %11834 = vmatpush3.msk.msra.mxu0 %vm7187_vm14, %v9686_v63  ;;  %v9198_v39 = vpop.xlane.xlu0 %9197  ;;  %11830 = vmatprep.mubr.msk.f32.mxu1 %vm12276_vm12, %v14383_v57 }
0x17f4   : > { %v9212_v37 = vmul.f32 %v12229_v41, %v14115_v56  ;;  %12238 = vrcp.f32 %v9198_v39  ;;  %11835 = vmatprep.mubr.msk.f32.mxu0 %vm12276_vm12, %v14383_v57  ;;  %11838 = vmatprep.subr.mxu1 %v14383_v57  ;;  %v10071_v10 = vpop.permute.xlu1 %10070 }
0x17f5   : > { %11843 = vmatprep.subr.mxu0 %v14383_v57  ;;  %11831 = vmatmul.mubr.msk.f32.vlgmr.msra.gmra.mrb[48].mxu1 %vm7183_vm0, %v9210_v1 }
0x17f6   : > { %v12231_v13 = vpop.eup %12230  ;;  %11836 = vmatmul.mubr.msk.f32.vlgmr.msra.gmra.mrb[46].mxu0 %vm7183_vm0, %v9212_v37  ;;  %11839 = vmatpush3.msk.msra.mxu1 %vm7187_vm14, %v9763_v60 }
0x17f7   : > { %v12233_v38 = vpop.eup %12232  ;;  %v9214_v25 = vmul.f32 %v12231_v13, %v14123_v54  ;;  %11844 = vmatpush3.msk.msra.mxu0 %vm7187_vm14, %v14148_v29  ;;  %11840 = vmatprep.mubr.msk.f32.mxu1 %vm12276_vm12, %v14383_v57  ;;  %v9994_v36 = vpop.permute.xlu0 %9993 }
0x17f8   : > { %v9216_v56 = vmul.f32 %v12233_v38, %v14125_v51  ;;  %11845 = vmatprep.mubr.msk.f32.mxu0 %vm12276_vm12, %v14383_v57  ;;  %11848 = vmatprep.subr.mxu1 %v14383_v57 }
0x17f9   : > { %11853 = vmatprep.subr.mxu0 %v14383_v57  ;;  %11841 = vmatmul.mubr.msk.f32.vlgmr.msra.gmra.mrb[50].mxu1 %vm7183_vm0, %v9214_v25 }
0x17fa   : > { %v12235_v27 = vpop.eup %12234  ;;  %11846 = vmatmul.mubr.msk.f32.vlgmr.msra.gmra.mrb[48].mxu0 %vm7183_vm0, %v9216_v56  ;;  %11849 = vmatpush3.msk.msra.mxu1 %vm7187_vm14, %v14156_v32 }
0x17fb   : > { %v12237_v54 = vpop.eup %12236  ;;  %v9218_v55 = vmul.f32 %v12235_v27, %v14131_v34  ;;  %11854 = vmatpush3.msk.msra.mxu0 %vm7187_vm14, %v9994_v36  ;;  %11850 = vmatprep.mubr.msk.f32.mxu1 %vm12276_vm12, %v14383_v57 }
0x17fc   : > { %v9220_v51 = vmul.f32 %v12237_v54, %v14133_v22  ;;  %11855 = vmatprep.mubr.msk.f32.mxu0 %vm12276_vm12, %v14383_v57  ;;  %11858 = vmatprep.subr.mxu1 %v14383_v57  ;;  %v12137_v22 = vpop.permute.xlu0 %12136 }
0x17fd   : > { %11851 = vmatmul.mubr.msk.f32.vlgmr.msra.gmra.mrb[52].mxu1 %vm7183_vm0, %v9218_v55  ;;  %v12139_v18 = vunpack.i.h.bf16 %v12137_v22  ;;  %v12138_v3 = vunpack.i.l.bf16 %v12137_v22 }
0x17fe   : > { %v12239_v62 = vpop.eup %12238  ;;  %11856 = vmatmul.mubr.msk.f32.vlgmr.msra.gmra.mrb[50].mxu0 %vm7183_vm0, %v9220_v51  ;;  %11859 = vmatpush3.msk.msra.mxu1 %vm7187_vm14, %v10071_v10 }
0x17ff   : > { %v9222_v34 = vmul.f32 %v12239_v62, %v14139_v17  ;;  %11860 = vmatprep.mubr.msk.f32.mxu1 %vm12276_vm12, %v14383_v57  ;;  %v11924_v16 = vpack.c.bf16 %v12139_v18, %v12138_v3 }
0x1801   : > { %11861 = vmatmul.mubr.msk.f32.vlgmr.msra.gmra.mrb[54].mxu1 %vm7183_vm0, %v9222_v34  ;;  %11925 = vmatprep.subr.bf16.mxu0 %v11924_v16 }
0x1802   : > { %11927 = vmatpush3.bf16.msra.mxu0 %v11924_v16 }
0x1889   : > { %v9373_v63 = vpop.f32.mrb[44].mxu1 }
0x188a   : > { %10161 = vrot.lane.b32.xlu0 %v9373_v63, %s12281_s30  ;;  %v11812_v29 = vpop.f32.mrb[45].mxu1 }
0x18bc   : > { %v9296_v46 = vpop.f32.mrb[40].mxu0 }
0x18bd   : > { %10159 = vrot.lane.b32.xlu0 %v9296_v46, %s12281_s30  ;;  %v11807_v17 = vpop.f32.mrb[41].mxu0 }
0x18c0   : > { %v9450_v53 = vpop.f32.mrb[42].mxu0 }
0x18c1   : > { %10163 = vrot.lane.b32.xlu1 %v9450_v53, %s12281_s30  ;;  %v11817_v57 = vpop.f32.mrb[43].mxu0 }
0x18c4   : > { %v9527_v9 = vpop.f32.mrb[46].mxu1 }
0x18c5   : > { %v9604_v52 = vpop.f32.mrb[44].mxu0  ;;  %v11822_v47 = vpop.f32.mrb[47].mxu1  ;;  %10165 = vrot.lane.b32.xlu1 %v9527_v9, %s12281_s30 }
0x18c6   : > { %10167 = vrot.lane.b32.xlu0 %v9604_v52, %s12281_s30  ;;  %v11827_v30 = vpop.f32.mrb[45].mxu0 }
0x18c7   : > { %v14387_v30 = vld [vmem:[#allocation11_spill] sm:$0xff] }
0x18c8   : > { %v9681_v60 = vpop.f32.mrb[48].mxu1 }
0x18c9   : > { %v9758_v32 = vpop.f32.mrb[46].mxu0  ;;  %v11832_v5 = vpop.f32.mrb[49].mxu1  ;;  %10169 = vrot.lane.b32.xlu1 %v9681_v60, %s12281_s30 }
0x18ca   : > { %10171 = vrot.lane.b32.xlu0 %v9758_v32, %s12281_s30  ;;  %v11837_v0 = vpop.f32.mrb[47].mxu0 }
0x18cc   : > { %v9835_v23 = vpop.f32.mrb[50].mxu1 }
0x18cd   : > { %v9912_v4 = vpop.f32.mrb[48].mxu0  ;;  %v11842_v6 = vpop.f32.mrb[51].mxu1  ;;  %10173 = vrot.lane.b32.xlu1 %v9835_v23, %s12281_s30  ;;  %v14388_v23 = vld [vmem:[#allocation18_spill] sm:$0xff] }
0x18ce   : > { %v11847_v8 = vpop.f32.mrb[49].mxu0  ;;  %v14389_v6 = vld [vmem:[#allocation17_spill] sm:$0xff] }
0x18d0   : > { %v9989_v44 = vpop.f32.mrb[52].mxu1 }
0x18d1   : > { %v10066_v14 = vpop.f32.mrb[50].mxu0  ;;  %v11852_v42 = vpop.f32.mrb[53].mxu1  ;;  %10177 = vrot.lane.b32.xlu1 %v9989_v44, %s12281_s30 }
0x18d2   : > { %10179 = vrot.lane.b32.xlu0 %v10066_v14, %s12281_s30  ;;  %v11857_v43 = vpop.f32.mrb[51].mxu0 }
0x18d4   : > { %v10143_v2 = vpop.f32.mrb[54].mxu1 }
0x18d5   : > { %v11862_v49 = vpop.f32.mrb[55].mxu1  ;;  %10175 = vrot.lane.b32.xlu1 %v9912_v4, %s12281_s30 }
0x18d6   : > { %10181 = vrot.lane.b32.xlu0 %v10143_v2, %s12281_s30 }
0x18fc   : > { %v10162_v12 = vpop.permute.xlu0 %10161 }
0x18fd   : > { %v10196_v28 = vsel %vm6159_vm13, %v14013_v21, %v10162_v12 }
0x18fe   : > { %v10223_v24 = vrot.slane %v10196_v28, 7 }
0x192f   : > { %v10160_v20 = vpop.permute.xlu0 %10159 }
0x1930   : > { %v10195_v31 = vsel %vm6159_vm13, %v14011_v58, %v10160_v20 }
0x1931   : > { %v10225_v7 = vsel %vm10224_vm1, %v10223_v24, %v10195_v31 }
0x1933   : > { %v10164_v50 = vpop.permute.xlu1 %10163 }
0x1934   : > { %v10197_v41 = vsel %vm6159_vm13, %v14017_v11, %v10164_v50  ;;  %v14391_v50 = vld [vmem:[#allocation5_spill] sm:$0xff] }
0x1935   : > { %v10226_v1 = vrot.slane %v10197_v41, 6 }
0x1937   : > { %v10228_v39 = vsel %vm10227_vm2, %v10226_v1, %v10225_v7  ;;  %v10166_v37 = vpop.permute.xlu1 %10165  ;;  %v14390_v7 = vld [vmem:[#allocation4_spill] sm:$0xff]  ;;  %v14392_v1 = vld [vmem:[#allocation6_spill] sm:$0xff] }
0x1938   : > { %v10198_v21 = vsel %vm6159_vm13, %v14015_v26, %v10166_v37  ;;  %v10168_v13 = vpop.permute.xlu0 %10167  ;;  %v11928_v41 = vpack.c.bf16 %v14391_v50, %v14390_v7 }
0x1939   : > { %v10229_v38 = vrot.slane %v10198_v21, 5  ;;  %v10199_v58 = vsel %vm6159_vm13, %v14021_v61, %v10168_v13 }
0x193a   : > { %v10232_v25 = vrot.slane %v10199_v58, 4  ;;  %11929 = vmatprep.subr.bf16.mxu1 %v11928_v41 }
0x193b   : > { %v10231_v56 = vsel %vm10230_vm3, %v10229_v38, %v10228_v39  ;;  %v10170_v36 = vpop.permute.xlu1 %10169  ;;  %11931 = vmatpush3.bf16.msra.mxu1 %v11928_v41  ;;  %v14393_v39 = vld [vmem:[#allocation7_spill] sm:$0xff] }
0x193c   : > { %v10234_v27 = vsel %vm10233_vm4, %v10232_v25, %v10231_v56  ;;  %v10200_v11 = vsel %vm6159_vm13, %v14019_v40, %v10170_v36  ;;  %v10172_v54 = vpop.permute.xlu0 %10171  ;;  %v11932_v37 = vpack.c.bf16 %v14393_v39, %v14392_v1 }
0x193d   : > { %v10235_v55 = vrot.slane %v10200_v11, 3  ;;  %v10201_v26 = vsel %vm6159_vm13, %v14025_v33, %v10172_v54 }
0x193e   : > { %v10238_v51 = vrot.slane %v10201_v26, 2  ;;  %11933 = vmatprep.subr.bf16.mxu0 %v11932_v37 }
0x193f   : > { %v10237_v10 = vsel %vm10236_vm5, %v10235_v55, %v10234_v27  ;;  %v10174_v62 = vpop.permute.xlu1 %10173 }
0x1940   : > { %v10202_v61 = vsel %vm6159_vm13, %v14023_v48, %v10174_v62  ;;  %v10240_v34 = vsel %vm10239_vm6, %v10238_v51, %v10237_v10 }
0x1941   : > { %v10241_v22 = vrot.slane %v10202_v61, 1 }
0x1943   : > { %v10178_v18 = vpop.permute.xlu1 %10177  ;;  %v10243_v3 = vsel %vm10242_vm7, %v10241_v22, %v10240_v34 }
0x1944   : > { %v10204_v40 = vsel %vm6159_vm13, %v14027_v35, %v10178_v18  ;;  %v10180_v16 = vpop.permute.xlu0 %10179  ;;  %11867 = vmatprep.mubr.msk.f32.mxu0 %vm5643_vm10, %v10243_v3  ;;  %v14394_v18 = vld [vmem:[#allocation8_spill] sm:$0xff]  ;;  %v14395_v3 = vld [vmem:[#allocation9_spill] sm:$0xff] }
0x1945   : > { %v10205_v33 = vsel %vm6159_vm13, %v14042_v45, %v10180_v16  ;;  %v10244_v63 = vrot.slane %v10204_v40, 7  ;;  %v14385_v45 = vld [vmem:[#allocation16_spill] sm:$0xff]  ;;  %v11936_v40 = vpack.c.bf16 %v14395_v3, %v14394_v18  ;;  %v14396_v16 = vld [vmem:[#allocation13_spill] sm:$0xff] }
0x1946   : > { %v10246_v46 = vrot.slane %v10205_v33, 6  ;;  %v14386_v47 = vsub.s32 1, %v14385_v45  ;;  %v10365_v36 = vsub.s32 5, %v14385_v45  ;;  %v10371_v27 = vsub.s32 6, %v14385_v45 }
0x1947   : > { %v10176_v29 = vpop.permute.xlu1 %10175  ;;  %v10379_v33 = vrot.slane %v14396_v16, %v13409_v15  ;;  %v10998_v16 = vld [vmem:[%s14334_s10 + $0x2] ss:$0 sm:$0xff] (!%p10997_p8) }
0x1948   : > { %v10203_v48 = vsel %vm6159_vm13, %v14029_v59, %v10176_v29  ;;  %v10182_v17 = vpop.permute.xlu0 %10181  ;;  %v10210_v60 = vrot.slane %v14387_v30, %v14386_v47  ;;  %v10366_v11 = vrot.slane %v14387_v30, %v10365_v36  ;;  %v10372_v10 = vrot.slane %v14387_v30, %v10371_v27 }
0x1949   : > { %v10245_v53 = vsel %vm10224_vm1, %v10244_v63, %v10203_v48  ;;  %v10206_v57 = vsel %vm6159_vm13, %v14031_v19, %v10182_v17 }
0x194a   : > { %v10247_v35 = vsel %vm10227_vm2, %v10246_v46, %v10245_v53  ;;  %v10248_v9 = vrot.slane %v10206_v57, 5  ;;  %v10466_v57 = vsub.s32 2, %v14385_v45 }
0x194c   : > { %v10249_v52 = vsel %vm10230_vm3, %v10248_v9, %v10247_v35  ;;  %v10467_v35 = vrot.slane %v14387_v30, %v10466_v57 }
0x194d   : > { %11868 = vmatmul.mubr.msk.f32.vlgmr.msra.gmra.mrb[52].mxu0 %vm5643_vm10, %v10249_v52 }
0x194e   : > { %11935 = vmatpush3.bf16.msra.mxu0 %v11932_v37 }
0x194f   : > { %11937 = vmatprep.subr.bf16.mxu0 %v11936_v40 }
0x1952   : > { %11939 = vmatpush3.bf16.msra.mxu0 %v11936_v40 }
0x1a20   : > { %v11869_v32 = vpop.f32.mrb[52].mxu0 }
0x1a21   : > { %v10332_v5 = vadd.f32 %v11869_v32, %v10210_v60  ;;  %v10326_v59 = vpop.f32.mrb[53].mxu0 }
0x1a22   : > { %v10327_v0 = vadd.f32 %v10326_v59, %v10210_v60 }
0x1a23   : > { %v10336_v4 = vadd.f32 %v10332_v5, %v14388_v23 }
0x1a24   : > { %v10335_v8 = vadd.f32 %v10327_v0, %v14389_v6 }
0x1a25   : > { %v10340_v19 = vsel %vm5821_vm11, %v10336_v4, 0.0 }
0x1a26   : > { %10341 = vadd.xlane.f32.xlu0 %v10340_v19  ;;  %v10337_v44 = vsel %vm5643_vm10, %v10335_v8, 0.0 }
0x1a27   : > { %10338 = vadd.xlane.f32.xlu1 %v10337_v44 }
0x1ab3   : > { %v10342_v14 = vpop.xlane.xlu0 %10341 }
0x1ab4   : > { %v10344_v42 = vmul.f32 0.0625, %v10342_v14  ;;  %v10339_v43 = vpop.xlane.xlu1 %10338 }
0x1ab5   : > { %v10343_v2 = vmul.f32 0.0625, %v10339_v43 }
0x1ab6   : > { %v10346_v49 = vsub.f32 %v10336_v4, %v10344_v42 }
0x1ab7   : > { %v10345_v12 = vsub.f32 %v10335_v8, %v10343_v2 }
0x1ab8   : > { %v10348_v28 = vmul.f32 %v10346_v49, %v10346_v49 }
0x1ab9   : > { %v10347_v24 = vmul.f32 %v10345_v12, %v10345_v12 }
0x1aba   : > { %v10352_v20 = vsel %vm5821_vm11, %v10348_v28, 0.0 }
0x1abb   : > { %10353 = vadd.xlane.f32.xlu1 %v10352_v20  ;;  %v10349_v31 = vsel %vm5643_vm10, %v10347_v24, 0.0 }
0x1abc   : > { %10350 = vadd.xlane.f32.xlu0 %v10349_v31  ;;  %v10580_v31 = vsub.s32 7, %v14385_v45 }
0x1abe   : > { %v10581_v7 = vrot.slane %v14387_v30, %v10580_v31 }
0x1b48   : > { %v10354_v21 = vpop.xlane.xlu1 %10353 }
0x1b49   : > { %v10356_v13 = vmul.f32 0.0625, %v10354_v21  ;;  %v10351_v38 = vpop.xlane.xlu0 %10350 }
0x1b4a   : > { %v10355_v58 = vmul.f32 0.0625, %v10351_v38 }
0x1b4b   : > { %v10358_v25 = vadd.f32 1e-05, %v10356_v13  ;;  %v14397_v13 = vld [vmem:[#allocation12_spill] sm:$0xff] }
0x1b4c   : > { %v10357_v56 = vadd.f32 1e-05, %v10355_v58 }
0x1b4d   : > { %12240 = vrsqrt.f32 %v10358_v25 }
0x1b4e   : > { %12242 = vrsqrt.f32 %v10357_v56 }
0x1b57   : > { %v12241_v54 = vpop.eup %12240 }
0x1b58   : > { %v12243_v55 = vpop.eup %12242  ;;  %v10362_v26 = vmul.f32 %v12241_v54, %v10346_v49 }
0x1b59   : > { %v10361_v51 = vmul.f32 %v12243_v55, %v10345_v12 }
0x1b5a   : > { %v10368_v62 = vmul.f32 %v10366_v11, %v10362_v26 }
0x1b5b   : > { %v10367_v61 = vmul.f32 %v10366_v11, %v10361_v51 }
0x1b5c   : > { %v10374_v22 = vadd.f32 %v10372_v10, %v10368_v62 }
0x1b5d   : > { %v10373_v34 = vadd.f32 %v10372_v10, %v10367_v61 }
0x1b5f   : > { %11874 = vmatprep.mubr.msk.f32.mxu1 %vm5643_vm10, %v10373_v34 }
0x1b60   : > { %11875 = vmatmul.mubr.msk.f32.vlgmr.msra.gmra.mrb[56].mxu1 %vm5643_vm10, %v10374_v22 }
0x1c33   : > { %v11876_v63 = vpop.f32.mrb[56].mxu1 }
0x1c34   : > { %v10459_v29 = vadd.f32 %v11876_v63, %v10379_v33  ;;  %v10453_v46 = vpop.f32.mrb[57].mxu1  ;;  %v10999_v63 = vld [vmem:[%s14334_s10 + $0x3] ss:$0 sm:$0xff] (!%p10997_p8) }
0x1c35   : > { %v10454_v48 = vadd.f32 %v10453_v46, %v10379_v33 }
0x1c36   : > { %v10463_v53 = vmax.f32 %v10459_v29, 0.0 }
0x1c37   : > { %v10462_v17 = vmax.f32 %v10454_v48, 0.0 }
0x1c39   : > { %11885 = vmatprep.mubr.msk.f32.mxu0 %vm10468_vm8, %v10462_v17 }
0x1c3a   : > { %11886 = vmatmul.mubr.msk.f32.vlgmr.msra.gmra.mrb[54].mxu0 %vm10468_vm8, %v10463_v53 }
0x1d0d   : > { %v11887_v9 = vpop.f32.mrb[54].mxu0 }
0x1d0e   : > { %v10547_v52 = vadd.f32 %v11887_v9, %v10467_v35  ;;  %v10541_v47 = vpop.f32.mrb[55].mxu0 }
0x1d0f   : > { %v10542_v60 = vadd.f32 %v10541_v47, %v10467_v35 }
0x1d10   : > { %v10551_v32 = vadd.f32 %v10547_v52, %v10374_v22 }
0x1d11   : > { %v10550_v5 = vadd.f32 %v10542_v60, %v10373_v34 }
0x1d12   : > { %v10555_v15 = vsel %vm5821_vm11, %v10551_v32, 0.0 }
0x1d13   : > { %10556 = vadd.xlane.f32.xlu1 %v10555_v15  ;;  %v10552_v59 = vsel %vm5643_vm10, %v10550_v5, 0.0 }
0x1d14   : > { %10553 = vadd.xlane.f32.xlu0 %v10552_v59 }
0x1da0   : > { %v10557_v0 = vpop.xlane.xlu1 %10556 }
0x1da1   : > { %v10559_v23 = vmul.f32 0.0625, %v10557_v0  ;;  %v10554_v4 = vpop.xlane.xlu0 %10553 }
0x1da2   : > { %v10558_v6 = vmul.f32 0.0625, %v10554_v4 }
0x1da3   : > { %v10561_v8 = vsub.f32 %v10551_v32, %v10559_v23 }
0x1da4   : > { %v10560_v19 = vsub.f32 %v10550_v5, %v10558_v6 }
0x1da5   : > { %v10563_v44 = vmul.f32 %v10561_v8, %v10561_v8 }
0x1da6   : > { %v10562_v14 = vmul.f32 %v10560_v19, %v10560_v19 }
0x1da7   : > { %v10567_v42 = vsel %vm5821_vm11, %v10563_v44, 0.0 }
0x1da8   : > { %10568 = vadd.xlane.f32.xlu1 %v10567_v42  ;;  %v10564_v43 = vsel %vm5643_vm10, %v10562_v14, 0.0 }
0x1da9   : > { %10565 = vadd.xlane.f32.xlu0 %v10564_v43 }
0x1e35   : > { %v10569_v2 = vpop.xlane.xlu1 %10568 }
0x1e36   : > { %v10571_v49 = vmul.f32 0.0625, %v10569_v2  ;;  %v10566_v12 = vpop.xlane.xlu0 %10565 }
0x1e37   : > { %v10570_v28 = vmul.f32 0.0625, %v10566_v12 }
0x1e38   : > { %v10573_v24 = vadd.f32 1e-05, %v10571_v49 }
0x1e39   : > { %v10572_v20 = vadd.f32 1e-05, %v10570_v28 }
0x1e3a   : > { %12244 = vrsqrt.f32 %v10573_v24 }
0x1e3b   : > { %12246 = vrsqrt.f32 %v10572_v20 }
0x1e44   : > { %v12245_v50 = vpop.eup %12244  ;;  %10593 = sbr.rel (%p10997_p8) target bundleno = 8074 (0x1f8a), region = 88 }
0x1e45   : > { %v12247_v41 = vpop.eup %12246  ;;  %v10577_v1 = vmul.f32 %v12245_v50, %v10561_v8 }
0x1e46   : > { %v10576_v39 = vmul.f32 %v12247_v41, %v10560_v19 }
0x1e47   : > { %v10583_v37 = vmul.f32 %v10581_v7, %v10577_v1 }
0x1e48   : > { %v10582_v21 = vmul.f32 %v10581_v7, %v10576_v39 }
0x1e49   : > { %v10589_v38 = vadd.f32 %v14397_v13, %v10583_v37 }
0x1e4a   : > { %v10588_v58 = vadd.f32 %v14397_v13, %v10582_v21 }
0x1e4b   : > { %v10599_v45 = vsel %vm5821_vm11, %v10589_v38, 0.0 }
0x1e4c   : > { %v10596_v25 = vsel %vm5643_vm10, %v10588_v58, 0.0 }
0x1e4d   : > { %10597 = vadd.xlane.f32.xlu0 %v10596_v25 }
0x1e51   : > { %10600 = vadd.xlane.f32.xlu0 %v10599_v45 }
0x1eda   : > { %v10598_v30 = vpop.xlane.xlu0 %10597 }
0x1edb   : > { %v10602_v56 = vmul.f32 0.0625, %v10598_v30 }
0x1edd   : > { %v10604_v36 = vsub.f32 %v10588_v58, %v10602_v56 }
0x1ede   : > { %v10601_v27 = vpop.xlane.xlu0 %10600 }
0x1edf   : > { %v10603_v11 = vmul.f32 0.0625, %v10601_v27  ;;  %v10606_v54 = vmul.f32 %v10604_v36, %v10604_v36 }
0x1ee1   : > { %v10605_v55 = vsub.f32 %v10589_v38, %v10603_v11  ;;  %v10608_v26 = vsel %vm5643_vm10, %v10606_v54, 0.0 }
0x1ee2   : > { %10609 = vadd.xlane.f32.xlu1 %v10608_v26 }
0x1ee3   : > { %v10607_v51 = vmul.f32 %v10605_v55, %v10605_v55 }
0x1ee5   : > { %v10611_v10 = vsel %vm5821_vm11, %v10607_v51, 0.0 }
0x1ee6   : > { %10612 = vadd.xlane.f32.xlu1 %v10611_v10 }
0x1f6f   : > { %v10610_v62 = vpop.xlane.xlu1 %10609 }
0x1f70   : > { %v10614_v61 = vmul.f32 0.0625, %v10610_v62 }
0x1f72   : > { %v10616_v34 = vadd.f32 1e-05, %v10614_v61 }
0x1f73   : > { %v10613_v22 = vpop.xlane.xlu1 %10612 }
0x1f74   : > { %12248 = vrsqrt.f32 %v10616_v34  ;;  %v10615_v18 = vmul.f32 0.0625, %v10613_v22 }
0x1f76   : > { %v10617_v3 = vadd.f32 1e-05, %v10615_v18 }
0x1f78   : > { %12250 = vrsqrt.f32 %v10617_v3 }
0x1f7e   : > { %v12249_v40 = vpop.eup %12248 }
0x1f7f   : > { %v10620_v33 = vmul.f32 %v12249_v40, %v10604_v36 }
0x1f81   : > { %v10626_v29 = vmul.f32 %v10998_v16, %v10620_v33 }
0x1f82   : > { %v12251_v46 = vpop.eup %12250 }
0x1f83   : > { %v10632_v48 = vadd.f32 %v10999_v63, %v10626_v29  ;;  %v10621_v17 = vmul.f32 %v12251_v46, %v10605_v55 }
0x1f85   : > { %10634 = vst.msk [vmem:[%s14335_s11] sm:$0xff] %vm5643_vm10, %v10632_v48  ;;  %v10627_v53 = vmul.f32 %v10998_v16, %v10621_v17 }
0x1f87   : > { %v10633_v57 = vadd.f32 %v10999_v63, %v10627_v53 }
0x1f89   : > { %10635 = vst.msk [vmem:[%s14335_s11 + $0x8] sm:$0xf] %vm5821_vm11, %v10633_v57 }
0x1f8a PF: > { %p11000_p9 = scmp.eq.s32.totalorder %s12353_s22, 2 }
0x1f8b   : > { %10640 = vst.msk [vmem:[%s14335_s11] sm:$0xff] (!%p11000_p9), %vm5643_vm10, %v10588_v58 }
0x1f8c   : > { %10639 = sbr.rel (%p11000_p9) target bundleno = 8083 (0x1f93), region = 92  ;;  %10641 = vst.msk [vmem:[%s14335_s11 + $0x8] sm:$0xf] (!%p11000_p9), %vm5821_vm11, %v10589_v38 }
0x1f93 PF: > { %s14398_s23 = sld [smem:[#allocation3_spill]] }
0x1f99   : > { %s23_s21 = sadd.s32 1, %s14398_s23  }
0x1f9a   : > { %p20_p10 = scmp.ge.s32.totalorder %s23_s21, 5  }
0x1f9c   :  { %22 = sbr.rel (!%p20_p10) target bundleno = 2 (0x2), region = 141 }

</bundles_post_ra>
